<compile_context>
chip_gen: v7x
topology: tpu7x:2x2x1
jax: 0.10.0
libtpu: 0.0.40
codegen_flags: <defaults>
</compile_context>

<pallas_src>
import functools

import jax
import jax.numpy as jnp
from jax.experimental import pallas as pl
from jax.experimental.pallas import tpu as pltpu


LANE = 128  # lane-padded channel width granularity


def _round_up(x, m):
    return (x + m - 1) // m * m


def _parallel():
    return pltpu.CompilerParams(dimension_semantics=("parallel",))


# ----------------------------- Pallas kernels ------------------------------

def _conv_kernel(*refs, S, k, Wp, Lo, Wo, bn, slope):
    """Accumulate k*k tap matmuls from S flattened (route) input sources.

    Inputs : S x x_ref  (1, Lf_s, Cp_s) bf16   flattened, spatially padded
             S x w_ref  (k, k, Cp_s, COP) bf16 zero-padded weight slabs
             [bias_ref (1, 1, COP) f32]        only when bn=False
    Outputs: y_ref      (1, Lo, COP)           "wide" conv output
             [sum_ref, ssq_ref (1, 1, COP)]    per-image stats, bn=True only
    """
    xs = refs[:S]
    ws = refs[S:2 * S]
    rest = refs[2 * S:]
    COP = ws[0].shape[-1]

    acc = jnp.zeros((Lo, COP), jnp.float32)
    for s in range(S):
        for i in range(k):
            for j in range(k):
                off = i * Wp + j
                tap = xs[s][0, off:off + Lo, :]            # (Lo, Cp_s) bf16
                acc = acc + jnp.dot(tap, ws[s][i, j],
                                    preferred_element_type=jnp.float32)

    if bn:
        y_ref, sum_ref, ssq_ref = rest
        y_ref[0] = acc
        if Wo != Wp:
            # Mask the wide wrap-around columns out of the batch statistics.
            col = jax.lax.broadcasted_iota(jnp.int32, (Lo, COP), 0) % Wp
            a = jnp.where(col < Wo, acc, 0.0)
        else:
            a = acc
        sum_ref[0] = jnp.sum(a, axis=0, keepdims=True)
        ssq_ref[0] = jnp.sum(a * a, axis=0, keepdims=True)
    else:
        bias_ref, y_ref = rest
        z = acc + bias_ref[0]
        if slope != 1.0:
            z = jnp.maximum(z, slope * z)
        y_ref[0] = z.astype(y_ref.dtype)


def _bn_act_kernel(y_ref, scale_ref, shift_ref, o_ref, *, slope, Wo):
    # y_ref (1, Ho, Wp, COP) wide f32 conv output; writes narrow bf16 act.
    z = y_ref[0, :, :Wo, :] * scale_ref[0] + shift_ref[0]
    if slope != 1.0:
        z = jnp.maximum(z, slope * z)
    o_ref[0] = z.astype(o_ref.dtype)


def _maxpool_kernel(x_ref, o_ref, *, Wo, C):
    # x_ref (1, Ho, 2*Wo, 2*C): rows [:Wo] are even input rows, [Wo:] odd
    # rows; lane halves are even/odd input columns (free NHWC reinterpretation).
    x = x_ref[0]
    a = x[:, :Wo, :C]
    b = x[:, :Wo, C:]
    c = x[:, Wo:, :C]
    d = x[:, Wo:, C:]
    o_ref[0] = jnp.maximum(jnp.maximum(a, b), jnp.maximum(c, d))


# ------------------------------- layer glue --------------------------------

def conv_block(parts, p, block):
    """parts: list of (data [N,H,W,Cp] bf16, c_real) route sources."""
    k = int(block['size'])
    stride = int(block['stride'])
    assert stride == 1  # TODO(synk): strided convs (unused by this config).
    pad = (k - 1) // 2 if block['pad'] else 0
    slope = 0.1 if block['activation'] == 'leaky' else 1.0

    N, H, W, _ = parts[0][0].shape
    Hp, Wp = H + 2 * pad, W + 2 * pad
    Ho, Wo = Hp - k + 1, Wp - k + 1
    Lo = Ho * Wp                       # wide output rows (Wp-Wo cols are junk)
    extra = 1 if k > 1 else 0          # spare padded row so every tap is in-bounds
    Lf = (Hp + extra) * Wp

    w = p['weight']                    # (Cout, Cin_total, k, k)
    Cout = w.shape[0]
    COP = _round_up(Cout, LANE)
    S = len(parts)

    xs, ws, x_specs, w_specs = [], [], [], []
    off = 0
    for data, c in parts:
        Cp = data.shape[-1]
        xd = data.astype(jnp.bfloat16)
        if pad or extra:
            xd = jnp.pad(xd, ((0, 0), (pad, pad + extra), (pad, pad), (0, 0)))
        xs.append(xd.reshape(N, Lf, Cp))                    # free reshape
        wsl = jnp.transpose(w[:, off:off + c, :, :], (2, 3, 1, 0))  # (k,k,c,Cout)
        wsl = jnp.pad(wsl, ((0, 0), (0, 0), (0, Cp - c), (0, COP - Cout)))
        ws.append(wsl.astype(jnp.bfloat16))
        x_specs.append(pl.BlockSpec((1, Lf, Cp), lambda n: (n, 0, 0)))
        w_specs.append(pl.BlockSpec((k, k, Cp, COP), lambda n: (0, 0, 0, 0)))
        off += c
    assert off == w.shape[1]

    vec_spec = pl.BlockSpec((1, 1, COP), lambda n: (0, 0, 0))
    wide_spec = pl.BlockSpec((1, Lo, COP), lambda n: (n, 0, 0))

    if block['batch_normalize']:
        y, s1, s2 = pl.pallas_call(
            functools.partial(_conv_kernel, S=S, k=k, Wp=Wp, Lo=Lo, Wo=Wo,
                              bn=True, slope=slope),
            out_shape=(jax.ShapeDtypeStruct((N, Lo, COP), jnp.float32),
                       jax.ShapeDtypeStruct((N, 1, COP), jnp.float32),
                       jax.ShapeDtypeStruct((N, 1, COP), jnp.float32)),
            grid=(N,),
            in_specs=x_specs + w_specs,
            out_specs=(wide_spec,
                       pl.BlockSpec((1, 1, COP), lambda n: (n, 0, 0)),
                       pl.BlockSpec((1, 1, COP), lambda n: (n, 0, 0))),
            compiler_params=_parallel(),
        )(*xs, *ws)

        # Tiny cross-image fold of the batch statistics (training-mode BN).
        m = float(N * Ho * Wo)
        mean = jnp.sum(s1, axis=(0, 1)) / m
        var = jnp.maximum(jnp.sum(s2, axis=(0, 1)) / m - mean * mean, 0.0)
        gamma = jnp.pad(p['gamma'], (0, COP - Cout))
        beta = jnp.pad(p['beta'], (0, COP - Cout))
        scale_v = gamma * jax.lax.rsqrt(var + 1e-5)
        shift_v = beta - mean * scale_v

        act = pl.pallas_call(
            functools.partial(_bn_act_kernel, slope=slope, Wo=Wo),
            out_shape=jax.ShapeDtypeStruct((N, Ho, Wo, COP), jnp.bfloat16),
            grid=(N,),
            in_specs=[pl.BlockSpec((1, Ho, Wp, COP), lambda n: (n, 0, 0, 0)),
                      vec_spec, vec_spec],
            out_specs=pl.BlockSpec((1, Ho, Wo, COP), lambda n: (n, 0, 0, 0)),
            compiler_params=_parallel(),
        )(y.reshape(N, Ho, Wp, COP),
          scale_v.reshape(1, 1, COP), shift_v.reshape(1, 1, COP))
        return [(act, Cout)]

    bias = jnp.pad(p['bias'], (0, COP - Cout)).reshape(1, 1, COP)
    out = pl.pallas_call(
        functools.partial(_conv_kernel, S=S, k=k, Wp=Wp, Lo=Lo, Wo=Wo,
                          bn=False, slope=slope),
        out_shape=jax.ShapeDtypeStruct((N, Lo, COP), jnp.float32),
        grid=(N,),
        in_specs=x_specs + w_specs + [vec_spec],
        out_specs=wide_spec,
        compiler_params=_parallel(),
    )(*xs, *ws, bias)
    out = out.reshape(N, Ho, Wp, COP)[:, :, :Wo, :]   # no-op slice when k == 1
    return [(out, Cout)]


def maxpool_block(parts, size, stride):
    assert size == 2 and stride == 2  # TODO(synk): other pool configs unused.
    out = []
    for data, c in parts:
        N, H, W, Cp = data.shape
        Ho, Wo = H // 2, W // 2
        xr = data.reshape(N, Ho, 2 * Wo, 2 * Cp)          # free reinterpretation
        pooled = pl.pallas_call(
            functools.partial(_maxpool_kernel, Wo=Wo, C=Cp),
            out_shape=jax.ShapeDtypeStruct((N, Ho, Wo, Cp), data.dtype),
            grid=(N,),
            in_specs=[pl.BlockSpec((1, Ho, 2 * Wo, 2 * Cp),
                                   lambda n: (n, 0, 0, 0))],
            out_specs=pl.BlockSpec((1, Ho, Wo, Cp), lambda n: (n, 0, 0, 0)),
            compiler_params=_parallel(),
        )(xr)
        out.append((pooled, c))
    return out


def reorg_nchw(x, s):
    # Mirrors the exact view/transpose sequence of the PyTorch Reorg module.
    N, C, d2, d3 = x.shape
    assert d2 % s == 0 and d3 % s == 0
    x = x.reshape(N, C, d3 // s, s, d2 // s, s)
    x = jnp.swapaxes(x, 3, 4).reshape(N, C, (d3 // s) * (d2 // s), s * s)
    x = jnp.swapaxes(x, 2, 3).reshape(N, C, s * s, d3 // s, d2 // s)
    x = jnp.swapaxes(x, 1, 2).reshape(N, s * s * C, d3 // s, d2 // s)
    return x


def reorg_block(parts, s):
    # Pure data movement on a tiny tensor; done in XLA (no compute involved).
    assert len(parts) == 1  # TODO(synk): reorg of a lazily-concatenated route.
    data, c = parts[0]
    x = jnp.transpose(data[..., :c], (0, 3, 1, 2))        # -> NCHW real chans
    x = reorg_nchw(x, s)
    c2 = x.shape[1]
    x = jnp.transpose(x, (0, 2, 3, 1))                    # -> NHWC
    x = jnp.pad(x, ((0, 0), (0, 0), (0, 0), (0, _round_up(c2, LANE) - c2)))
    return [(x.astype(jnp.bfloat16), c2)]


# ---------------------------- network definition ---------------------------

BLOCKS = [
    {'type': 'net', 'channels': 4, 'width': 16, 'height': 16},
    {'type': 'convolutional', 'batch_normalize': 1, 'filters': 8, 'size': 3,
     'stride': 1, 'pad': 1, 'activation': 'leaky'},                       # 0
    {'type': 'maxpool', 'size': 2, 'stride': 2},                          # 1
    {'type': 'convolutional', 'batch_normalize': 1, 'filters': 16, 'size': 3,
     'stride': 1, 'pad': 1, 'activation': 'leaky'},                       # 2
    {'type': 'maxpool', 'size': 2, 'stride': 2},                          # 3
    {'type': 'convolutional', 'batch_normalize': 1, 'filters': 32, 'size': 3,
     'stride': 1, 'pad': 1, 'activation': 'leaky'},                       # 4
    {'type': 'route', 'layers': '-3'},                                    # 5 -> layer 2
    {'type': 'reorg', 'stride': 2},                                       # 6
    {'type': 'route', 'layers': '-1,-3'},                                 # 7 -> cat(6, 4)
    {'type': 'convolutional', 'batch_normalize': 0, 'filters': 25, 'size': 1,
     'stride': 1, 'pad': 1, 'activation': 'linear'},                      # 8
    {'type': 'region', 'anchors': '1.3221,1.73145,3.19275,4.00944,5.05587,'
     '8.09892,9.47112,4.84053,11.2364,10.0071', 'num': 5, 'classes': 0,
     'object_scale': 5, 'noobject_scale': 1, 'class_scale': 1,
     'coord_scale': 1},                                                   # 9 (skipped)
]


def init_params(blocks, key):
    params = {}
    prev_filters = blocks[0]['channels']
    out_filters = []
    index = -2
    for block in blocks:
        index += 1
        t = block['type']
        if t == 'net':
            continue
        if t == 'convolutional':
            filters, k = block['filters'], block['size']
            key, k1, k2, k3 = jax.random.split(key, 4)
            p = {'weight': 0.1 * jax.random.normal(
                k1, (filters, prev_filters, k, k), jnp.float32)}
            if block['batch_normalize']:
                p['gamma'] = 1.0 + 0.1 * jax.random.normal(k2, (filters,), jnp.float32)
                p['beta'] = 0.1 * jax.random.normal(k3, (filters,), jnp.float32)
            else:
                p['bias'] = 0.1 * jax.random.normal(k2, (filters,), jnp.float32)
            params[index] = p
            prev_filters = filters
            out_filters.append(prev_filters)
        elif t == 'maxpool':
            out_filters.append(prev_filters)
        elif t == 'reorg':
            prev_filters = block['stride'] ** 2 * prev_filters
            out_filters.append(prev_filters)
        elif t == 'route':
            layers = [int(i) for i in block['layers'].split(',')]
            model_index = len(out_filters)
            layers = [l if l > 0 else l + model_index for l in layers]
            if len(layers) == 1:
                prev_filters = out_filters[layers[0]]
            else:
                prev_filters = out_filters[layers[0]] + out_filters[layers[1]]
            out_filters.append(prev_filters)
        elif t == 'region':
            out_filters.append(prev_filters)
    return params


def darknet_forward(x_nchw, blocks, params):
    # Single NCHW -> NHWC boundary conversion; lane-pad channels; bf16 inside.
    N, C, H, W = x_nchw.shape
    x = jnp.transpose(x_nchw, (0, 2, 3, 1))
    x = jnp.pad(x, ((0, 0), (0, 0), (0, 0), (0, _round_up(C, LANE) - C)))
    X = [(x.astype(jnp.bfloat16), C)]

    index = -2
    outputs = {}
    for block in blocks:
        index += 1
        t = block['type']
        if t == 'net':
            continue
        if t == 'convolutional':
            X = conv_block(X, params[index], block)
        elif t == 'maxpool':
            X = maxpool_block(X, block['size'], block['stride'])
        elif t == 'reorg':
            X = reorg_block(X, block['stride'])
        elif t == 'route':
            layers = [int(i) for i in block['layers'].split(',')]
            layers = [l if l > 0 else index + l for l in layers]
            if len(layers) == 1:
                X = outputs[layers[0]]
            else:
                # Lazy concat: keep route sources separate; the consuming conv
                # reads each through its own BlockSpec (no HBM concatenation).
                X = list(outputs[layers[0]]) + list(outputs[layers[1]])
        elif t == 'region':
            # RegionLoss is only used for training; DarkNet.forward skips it.
            continue
        outputs[index] = X

    assert len(X) == 1
    data, c = X[0]
    # Single NHWC -> NCHW boundary conversion, real channels only.
    return jnp.transpose(data[..., :c].astype(jnp.float32), (0, 3, 1, 2))


if __name__ == "__main__":
    key = jax.random.PRNGKey(0)
    kx, kp = jax.random.split(key)
    x = jax.random.normal(kx, (2, 4, 16, 16), jnp.float32)   # NCHW, like PyTorch
    params = init_params(BLOCKS, kp)

    fwd = jax.jit(lambda xx, pp: darknet_forward(xx, BLOCKS, pp))
    out = fwd(x, params)
    out = jax.block_until_ready(out)
    assert out.shape == (2, 25, 4, 4), out.shape
    assert out.dtype == jnp.float32
    print("KERNEL_OK")
</pallas_src>

<mosaic_0001>
module attributes {stable_mosaic.version = 11 : i64} {
  func.func @_conv_kernel(%arg0: i32, %arg1: memref<1x342x128xbf16, #tpu.memory_space<vmem>>, %arg2: memref<3x3x128x128xbf16, #tpu.memory_space<vmem>>, %arg3: memref<1x288x128xf32, #tpu.memory_space<vmem>>, %arg4: memref<1x1x128xf32, #tpu.memory_space<vmem>>, %arg5: memref<1x1x128xf32, #tpu.memory_space<vmem>>) attributes {dimension_semantics = [#tpu.dimension_semantics<parallel>], iteration_bounds = array<i64: 2>, scalar_prefetch = 0 : i64, scratch_operands = 0 : i64, tpu.core_type = #tpu.core_type<tc>, window_params = [{transform_indices = @transform_0, window_bounds = array<i64: 1, 342, 128>}, {pipeline_mode = #tpu.pipeline_mode<synchronous>, transform_indices = @transform_1, window_bounds = array<i64: 3, 3, 128, 128>}, {transform_indices = @transform_2, window_bounds = array<i64: 1, 288, 128>}, {transform_indices = @transform_3, window_bounds = array<i64: 1, 1, 128>}, {transform_indices = @transform_4, window_bounds = array<i64: 1, 1, 128>}]} {
    %cst = arith.constant 0.000000e+00 : f32
    %0 = vector.broadcast %cst : f32 to vector<288x128xf32>
    %c0 = arith.constant 0 : index
    %c0_0 = arith.constant 0 : index
    %c0_1 = arith.constant 0 : index
    %1 = vector.load %arg1[%c0, %c0_0, %c0_1] : memref<1x342x128xbf16, #tpu.memory_space<vmem>>, vector<1x288x128xbf16>
    %2 = vector.shape_cast %1 : vector<1x288x128xbf16> to vector<288x128xbf16>
    %c0_2 = arith.constant 0 : index
    %c0_3 = arith.constant 0 : index
    %c0_4 = arith.constant 0 : index
    %c0_5 = arith.constant 0 : index
    %3 = vector.load %arg2[%c0_2, %c0_3, %c0_4, %c0_5] : memref<3x3x128x128xbf16, #tpu.memory_space<vmem>>, vector<1x1x128x128xbf16>
    %4 = vector.shape_cast %3 : vector<1x1x128x128xbf16> to vector<128x128xbf16>
    %cst_6 = arith.constant dense<0.000000e+00> : vector<288x128xf32>
    %5 = tpu.matmul %2, %4, %cst_6 {dimension_numbers = #tpu.dot_dimension_numbers<[1], [0], [0], [1], [0, 0, 1, 1], [], []>} : vector<288x128xbf16>, vector<128x128xbf16>, vector<288x128xf32> -> vector<288x128xf32>
    %6 = arith.addf %0, %5 : vector<288x128xf32>
    %c0_7 = arith.constant 0 : index
    %c1 = arith.constant 1 : index
    %c0_8 = arith.constant 0 : index
    %7 = vector.load %arg1[%c0_7, %c1, %c0_8] : memref<1x342x128xbf16, #tpu.memory_space<vmem>>, vector<1x288x128xbf16>
    %8 = vector.shape_cast %7 : vector<1x288x128xbf16> to vector<288x128xbf16>
    %c0_9 = arith.constant 0 : index
    %c1_10 = arith.constant 1 : index
    %c0_11 = arith.constant 0 : index
    %c0_12 = arith.constant 0 : index
    %9 = vector.load %arg2[%c0_9, %c1_10, %c0_11, %c0_12] : memref<3x3x128x128xbf16, #tpu.memory_space<vmem>>, vector<1x1x128x128xbf16>
    %10 = vector.shape_cast %9 : vector<1x1x128x128xbf16> to vector<128x128xbf16>
    %cst_13 = arith.constant dense<0.000000e+00> : vector<288x128xf32>
    %11 = tpu.matmul %8, %10, %cst_13 {dimension_numbers = #tpu.dot_dimension_numbers<[1], [0], [0], [1], [0, 0, 1, 1], [], []>} : vector<288x128xbf16>, vector<128x128xbf16>, vector<288x128xf32> -> vector<288x128xf32>
    %12 = arith.addf %6, %11 : vector<288x128xf32>
    %c0_14 = arith.constant 0 : index
    %c2 = arith.constant 2 : index
    %c0_15 = arith.constant 0 : index
    %13 = vector.load %arg1[%c0_14, %c2, %c0_15] : memref<1x342x128xbf16, #tpu.memory_space<vmem>>, vector<1x288x128xbf16>
    %14 = vector.shape_cast %13 : vector<1x288x128xbf16> to vector<288x128xbf16>
    %c0_16 = arith.constant 0 : index
    %c2_17 = arith.constant 2 : index
    %c0_18 = arith.constant 0 : index
    %c0_19 = arith.constant 0 : index
    %15 = vector.load %arg2[%c0_16, %c2_17, %c0_18, %c0_19] : memref<3x3x128x128xbf16, #tpu.memory_space<vmem>>, vector<1x1x128x128xbf16>
    %16 = vector.shape_cast %15 : vector<1x1x128x128xbf16> to vector<128x128xbf16>
    %cst_20 = arith.constant dense<0.000000e+00> : vector<288x128xf32>
    %17 = tpu.matmul %14, %16, %cst_20 {dimension_numbers = #tpu.dot_dimension_numbers<[1], [0], [0], [1], [0, 0, 1, 1], [], []>} : vector<288x128xbf16>, vector<128x128xbf16>, vector<288x128xf32> -> vector<288x128xf32>
    %18 = arith.addf %12, %17 : vector<288x128xf32>
    %c0_21 = arith.constant 0 : index
    %c18 = arith.constant 18 : index
    %c0_22 = arith.constant 0 : index
    %19 = vector.load %arg1[%c0_21, %c18, %c0_22] : memref<1x342x128xbf16, #tpu.memory_space<vmem>>, vector<1x288x128xbf16>
    %20 = vector.shape_cast %19 : vector<1x288x128xbf16> to vector<288x128xbf16>
    %c1_23 = arith.constant 1 : index
    %c0_24 = arith.constant 0 : index
    %c0_25 = arith.constant 0 : index
    %c0_26 = arith.constant 0 : index
    %21 = vector.load %arg2[%c1_23, %c0_24, %c0_25, %c0_26] : memref<3x3x128x128xbf16, #tpu.memory_space<vmem>>, vector<1x1x128x128xbf16>
    %22 = vector.shape_cast %21 : vector<1x1x128x128xbf16> to vector<128x128xbf16>
    %cst_27 = arith.constant dense<0.000000e+00> : vector<288x128xf32>
    %23 = tpu.matmul %20, %22, %cst_27 {dimension_numbers = #tpu.dot_dimension_numbers<[1], [0], [0], [1], [0, 0, 1, 1], [], []>} : vector<288x128xbf16>, vector<128x128xbf16>, vector<288x128xf32> -> vector<288x128xf32>
    %24 = arith.addf %18, %23 : vector<288x128xf32>
    %c0_28 = arith.constant 0 : index
    %c19 = arith.constant 19 : index
    %c0_29 = arith.constant 0 : index
    %25 = vector.load %arg1[%c0_28, %c19, %c0_29] : memref<1x342x128xbf16, #tpu.memory_space<vmem>>, vector<1x288x128xbf16>
    %26 = vector.shape_cast %25 : vector<1x288x128xbf16> to vector<288x128xbf16>
    %c1_30 = arith.constant 1 : index
    %c1_31 = arith.constant 1 : index
    %c0_32 = arith.constant 0 : index
    %c0_33 = arith.constant 0 : index
    %27 = vector.load %arg2[%c1_30, %c1_31, %c0_32, %c0_33] : memref<3x3x128x128xbf16, #tpu.memory_space<vmem>>, vector<1x1x128x128xbf16>
    %28 = vector.shape_cast %27 : vector<1x1x128x128xbf16> to vector<128x128xbf16>
    %cst_34 = arith.constant dense<0.000000e+00> : vector<288x128xf32>
    %29 = tpu.matmul %26, %28, %cst_34 {dimension_numbers = #tpu.dot_dimension_numbers<[1], [0], [0], [1], [0, 0, 1, 1], [], []>} : vector<288x128xbf16>, vector<128x128xbf16>, vector<288x128xf32> -> vector<288x128xf32>
    %30 = arith.addf %24, %29 : vector<288x128xf32>
    %c0_35 = arith.constant 0 : index
    %c20 = arith.constant 20 : index
    %c0_36 = arith.constant 0 : index
    %31 = vector.load %arg1[%c0_35, %c20, %c0_36] : memref<1x342x128xbf16, #tpu.memory_space<vmem>>, vector<1x288x128xbf16>
    %32 = vector.shape_cast %31 : vector<1x288x128xbf16> to vector<288x128xbf16>
    %c1_37 = arith.constant 1 : index
    %c2_38 = arith.constant 2 : index
    %c0_39 = arith.constant 0 : index
    %c0_40 = arith.constant 0 : index
    %33 = vector.load %arg2[%c1_37, %c2_38, %c0_39, %c0_40] : memref<3x3x128x128xbf16, #tpu.memory_space<vmem>>, vector<1x1x128x128xbf16>
    %34 = vector.shape_cast %33 : vector<1x1x128x128xbf16> to vector<128x128xbf16>
    %cst_41 = arith.constant dense<0.000000e+00> : vector<288x128xf32>
    %35 = tpu.matmul %32, %34, %cst_41 {dimension_numbers = #tpu.dot_dimension_numbers<[1], [0], [0], [1], [0, 0, 1, 1], [], []>} : vector<288x128xbf16>, vector<128x128xbf16>, vector<288x128xf32> -> vector<288x128xf32>
    %36 = arith.addf %30, %35 : vector<288x128xf32>
    %c0_42 = arith.constant 0 : index
    %c36 = arith.constant 36 : index
    %c0_43 = arith.constant 0 : index
    %37 = vector.load %arg1[%c0_42, %c36, %c0_43] : memref<1x342x128xbf16, #tpu.memory_space<vmem>>, vector<1x288x128xbf16>
    %38 = vector.shape_cast %37 : vector<1x288x128xbf16> to vector<288x128xbf16>
    %c2_44 = arith.constant 2 : index
    %c0_45 = arith.constant 0 : index
    %c0_46 = arith.constant 0 : index
    %c0_47 = arith.constant 0 : index
    %39 = vector.load %arg2[%c2_44, %c0_45, %c0_46, %c0_47] : memref<3x3x128x128xbf16, #tpu.memory_space<vmem>>, vector<1x1x128x128xbf16>
    %40 = vector.shape_cast %39 : vector<1x1x128x128xbf16> to vector<128x128xbf16>
    %cst_48 = arith.constant dense<0.000000e+00> : vector<288x128xf32>
    %41 = tpu.matmul %38, %40, %cst_48 {dimension_numbers = #tpu.dot_dimension_numbers<[1], [0], [0], [1], [0, 0, 1, 1], [], []>} : vector<288x128xbf16>, vector<128x128xbf16>, vector<288x128xf32> -> vector<288x128xf32>
    %42 = arith.addf %36, %41 : vector<288x128xf32>
    %c0_49 = arith.constant 0 : index
    %c37 = arith.constant 37 : index
    %c0_50 = arith.constant 0 : index
    %43 = vector.load %arg1[%c0_49, %c37, %c0_50] : memref<1x342x128xbf16, #tpu.memory_space<vmem>>, vector<1x288x128xbf16>
    %44 = vector.shape_cast %43 : vector<1x288x128xbf16> to vector<288x128xbf16>
    %c2_51 = arith.constant 2 : index
    %c1_52 = arith.constant 1 : index
    %c0_53 = arith.constant 0 : index
    %c0_54 = arith.constant 0 : index
    %45 = vector.load %arg2[%c2_51, %c1_52, %c0_53, %c0_54] : memref<3x3x128x128xbf16, #tpu.memory_space<vmem>>, vector<1x1x128x128xbf16>
    %46 = vector.shape_cast %45 : vector<1x1x128x128xbf16> to vector<128x128xbf16>
    %cst_55 = arith.constant dense<0.000000e+00> : vector<288x128xf32>
    %47 = tpu.matmul %44, %46, %cst_55 {dimension_numbers = #tpu.dot_dimension_numbers<[1], [0], [0], [1], [0, 0, 1, 1], [], []>} : vector<288x128xbf16>, vector<128x128xbf16>, vector<288x128xf32> -> vector<288x128xf32>
    %48 = arith.addf %42, %47 : vector<288x128xf32>
    %c0_56 = arith.constant 0 : index
    %c38 = arith.constant 38 : index
    %c0_57 = arith.constant 0 : index
    %49 = vector.load %arg1[%c0_56, %c38, %c0_57] : memref<1x342x128xbf16, #tpu.memory_space<vmem>>, vector<1x288x128xbf16>
    %50 = vector.shape_cast %49 : vector<1x288x128xbf16> to vector<288x128xbf16>
    %c2_58 = arith.constant 2 : index
    %c2_59 = arith.constant 2 : index
    %c0_60 = arith.constant 0 : index
    %c0_61 = arith.constant 0 : index
    %51 = vector.load %arg2[%c2_58, %c2_59, %c0_60, %c0_61] : memref<3x3x128x128xbf16, #tpu.memory_space<vmem>>, vector<1x1x128x128xbf16>
    %52 = vector.shape_cast %51 : vector<1x1x128x128xbf16> to vector<128x128xbf16>
    %cst_62 = arith.constant dense<0.000000e+00> : vector<288x128xf32>
    %53 = tpu.matmul %50, %52, %cst_62 {dimension_numbers = #tpu.dot_dimension_numbers<[1], [0], [0], [1], [0, 0, 1, 1], [], []>} : vector<288x128xbf16>, vector<128x128xbf16>, vector<288x128xf32> -> vector<288x128xf32>
    %54 = arith.addf %48, %53 : vector<288x128xf32>
    %c0_63 = arith.constant 0 : index
    %c0_64 = arith.constant 0 : index
    %c0_65 = arith.constant 0 : index
    %55 = vector.load %arg3[%c0_63, %c0_64, %c0_65] : memref<1x288x128xf32, #tpu.memory_space<vmem>>, vector<1x288x128xf32>
    %56 = vector.shape_cast %55 : vector<1x288x128xf32> to vector<288x128xf32>
    %57 = vector.shape_cast %54 : vector<288x128xf32> to vector<1x288x128xf32>
    tpu.vector_store %arg3[%c0_63, %c0_64, %c0_65], %57 {strides = array<i32>} : memref<1x288x128xf32, #tpu.memory_space<vmem>>, vector<1x288x128xf32>,
    %58 = tpu.iota {dimensions = array<i32: 0>} : vector<288x128xi32>
    %c18_i32 = arith.constant 18 : i32
    %c0_i32 = arith.constant 0 : i32
    %59 = arith.cmpi eq, %c18_i32, %c0_i32 : i32
    %c1_i32 = arith.constant 1 : i32
    %60 = arith.select %59, %c1_i32, %c18_i32 : i32
    %61 = vector.broadcast %60 : i32 to vector<288x128xi32>
    %62 = arith.remsi %58, %61 : vector<288x128xi32>
    %c0_i32_66 = arith.constant 0 : i32
    %63 = vector.broadcast %c0_i32_66 : i32 to vector<288x128xi32>
    %64 = arith.cmpi ne, %62, %63 : vector<288x128xi32>
    %c0_i32_67 = arith.constant 0 : i32
    %65 = vector.broadcast %c0_i32_67 : i32 to vector<288x128xi32>
    %66 = arith.cmpi slt, %62, %65 : vector<288x128xi32>
    %c0_i32_68 = arith.constant 0 : i32
    %67 = arith.cmpi slt, %60, %c0_i32_68 : i32
    %68 = vector.broadcast %67 : i1 to vector<288x128xi1>
    %69 = vector.broadcast %68 : vector<288x128xi1> to vector<288x128xi1>
    %70 = arith.xori %66, %69 : vector<288x128xi1>
    %71 = arith.andi %70, %64 : vector<288x128xi1>
    %72 = vector.broadcast %60 : i32 to vector<288x128xi32>
    %73 = arith.addi %62, %72 : vector<288x128xi32>
    %74 = arith.select %71, %73, %62 : vector<288x128xi1>, vector<288x128xi32>
    %c16_i32 = arith.constant 16 : i32
    %75 = vector.broadcast %c16_i32 : i32 to vector<288x128xi32>
    %76 = arith.cmpi slt, %74, %75 : vector<288x128xi32>
    %cst_69 = arith.constant 0.000000e+00 : f32
    %77 = vector.broadcast %cst_69 : f32 to vector<288x128xf32>
    %78 = arith.select %76, %54, %77 : vector<288x128xi1>, vector<288x128xf32>
    %cst_70 = arith.constant dense<0.000000e+00> : vector<128xf32>
    %79 = vector.multi_reduction <add>, %78, %cst_70 [0] : vector<288x128xf32> to vector<128xf32>
    %80 = vector.shape_cast %79 : vector<128xf32> to vector<1x128xf32>
    %c0_71 = arith.constant 0 : index
    %c0_72 = arith.constant 0 : index
    %c0_73 = arith.constant 0 : index
    %81 = vector.load %arg4[%c0_71, %c0_72, %c0_73] : memref<1x1x128xf32, #tpu.memory_space<vmem>>, vector<1x1x128xf32>
    %82 = vector.shape_cast %81 : vector<1x1x128xf32> to vector<1x128xf32>
    %83 = vector.shape_cast %80 : vector<1x128xf32> to vector<1x1x128xf32>
    tpu.vector_store %arg4[%c0_71, %c0_72, %c0_73], %83 {strides = array<i32>} : memref<1x1x128xf32, #tpu.memory_space<vmem>>, vector<1x1x128xf32>,
    %84 = arith.mulf %78, %78 : vector<288x128xf32>
    %cst_74 = arith.constant dense<0.000000e+00> : vector<128xf32>
    %85 = vector.multi_reduction <add>, %84, %cst_74 [0] : vector<288x128xf32> to vector<128xf32>
    %86 = vector.shape_cast %85 : vector<128xf32> to vector<1x128xf32>
    %c0_75 = arith.constant 0 : index
    %c0_76 = arith.constant 0 : index
    %c0_77 = arith.constant 0 : index
    %87 = vector.load %arg5[%c0_75, %c0_76, %c0_77] : memref<1x1x128xf32, #tpu.memory_space<vmem>>, vector<1x1x128xf32>
    %88 = vector.shape_cast %87 : vector<1x1x128xf32> to vector<1x128xf32>
    %89 = vector.shape_cast %86 : vector<1x128xf32> to vector<1x1x128xf32>
    tpu.vector_store %arg5[%c0_75, %c0_76, %c0_77], %89 {strides = array<i32>} : memref<1x1x128xf32, #tpu.memory_space<vmem>>, vector<1x1x128xf32>,
    return
  }
  func.func @transform_0(%arg0: i32) -> (i32, i32, i32) {
    %c0_i32 = arith.constant 0 : i32
    %c0_i32_0 = arith.constant 0 : i32
    %c0_i32_1 = arith.constant 0 : i32
    return %arg0, %c0_i32, %c0_i32_0 : i32, i32, i32
  }
  func.func @transform_1(%arg0: i32) -> (i32, i32, i32, i32) {
    %c0_i32 = arith.constant 0 : i32
    %c0_i32_0 = arith.constant 0 : i32
    %c0_i32_1 = arith.constant 0 : i32
    %c0_i32_2 = arith.constant 0 : i32
    %c0_i32_3 = arith.constant 0 : i32
    return %c0_i32, %c0_i32_0, %c0_i32_1, %c0_i32_2 : i32, i32, i32, i32
  }
  func.func @transform_2(%arg0: i32) -> (i32, i32, i32) {
    %c0_i32 = arith.constant 0 : i32
    %c0_i32_0 = arith.constant 0 : i32
    %c0_i32_1 = arith.constant 0 : i32
    return %arg0, %c0_i32, %c0_i32_0 : i32, i32, i32
  }
  func.func @transform_3(%arg0: i32) -> (i32, i32, i32) {
    %c0_i32 = arith.constant 0 : i32
    %c0_i32_0 = arith.constant 0 : i32
    %c0_i32_1 = arith.constant 0 : i32
    return %arg0, %c0_i32, %c0_i32_0 : i32, i32, i32
  }
  func.func @transform_4(%arg0: i32) -> (i32, i32, i32) {
    %c0_i32 = arith.constant 0 : i32
    %c0_i32_0 = arith.constant 0 : i32
    %c0_i32_1 = arith.constant 0 : i32
    return %arg0, %c0_i32, %c0_i32_0 : i32, i32, i32
  }
}

module attributes {stable_mosaic.version = 11 : i64} {
  func.func @_bn_act_kernel(%arg0: i32, %arg1: memref<1x16x18x128xf32, #tpu.memory_space<vmem>>, %arg2: memref<1x1x128xf32, #tpu.memory_space<vmem>>, %arg3: memref<1x1x128xf32, #tpu.memory_space<vmem>>, %arg4: memref<1x16x16x128xbf16, #tpu.memory_space<vmem>>) attributes {dimension_semantics = [#tpu.dimension_semantics<parallel>], iteration_bounds = array<i64: 2>, scalar_prefetch = 0 : i64, scratch_operands = 0 : i64, tpu.core_type = #tpu.core_type<tc>, window_params = [{transform_indices = @transform_0, window_bounds = array<i64: 1, 16, 18, 128>}, {pipeline_mode = #tpu.pipeline_mode<synchronous>, transform_indices = @transform_1, window_bounds = array<i64: 1, 1, 128>}, {pipeline_mode = #tpu.pipeline_mode<synchronous>, transform_indices = @transform_2, window_bounds = array<i64: 1, 1, 128>}, {transform_indices = @transform_3, window_bounds = array<i64: 1, 16, 16, 128>}]} {
    %c0 = arith.constant 0 : index
    %c0_0 = arith.constant 0 : index
    %c0_1 = arith.constant 0 : index
    %c0_2 = arith.constant 0 : index
    %0 = vector.load %arg1[%c0, %c0_0, %c0_1, %c0_2] : memref<1x16x18x128xf32, #tpu.memory_space<vmem>>, vector<1x16x16x128xf32>
    %1 = vector.shape_cast %0 : vector<1x16x16x128xf32> to vector<16x16x128xf32>
    %c0_3 = arith.constant 0 : index
    %c0_4 = arith.constant 0 : index
    %c0_5 = arith.constant 0 : index
    %2 = vector.load %arg2[%c0_3, %c0_4, %c0_5] : memref<1x1x128xf32, #tpu.memory_space<vmem>>, vector<1x1x128xf32>
    %3 = vector.shape_cast %2 : vector<1x1x128xf32> to vector<1x128xf32>
    %4 = vector.shape_cast %3 : vector<1x128xf32> to vector<1x1x128xf32>
    %5 = vector.broadcast %4 : vector<1x1x128xf32> to vector<16x16x128xf32>
    %6 = arith.mulf %1, %5 : vector<16x16x128xf32>
    %c0_6 = arith.constant 0 : index
    %c0_7 = arith.constant 0 : index
    %c0_8 = arith.constant 0 : index
    %7 = vector.load %arg3[%c0_6, %c0_7, %c0_8] : memref<1x1x128xf32, #tpu.memory_space<vmem>>, vector<1x1x128xf32>
    %8 = vector.shape_cast %7 : vector<1x1x128xf32> to vector<1x128xf32>
    %9 = vector.shape_cast %8 : vector<1x128xf32> to vector<1x1x128xf32>
    %10 = vector.broadcast %9 : vector<1x1x128xf32> to vector<16x16x128xf32>
    %11 = arith.addf %6, %10 : vector<16x16x128xf32>
    %cst = arith.constant 1.000000e-01 : f32
    %12 = vector.broadcast %cst : f32 to vector<16x16x128xf32>
    %13 = arith.mulf %12, %11 : vector<16x16x128xf32>
    %14 = arith.maximumf %11, %13 : vector<16x16x128xf32>
    %15 = arith.truncf %14 : vector<16x16x128xf32> to vector<16x16x128xbf16>
    %c0_9 = arith.constant 0 : index
    %c0_10 = arith.constant 0 : index
    %c0_11 = arith.constant 0 : index
    %c0_12 = arith.constant 0 : index
    %16 = vector.load %arg4[%c0_9, %c0_10, %c0_11, %c0_12] : memref<1x16x16x128xbf16, #tpu.memory_space<vmem>>, vector<1x16x16x128xbf16>
    %17 = vector.shape_cast %16 : vector<1x16x16x128xbf16> to vector<16x16x128xbf16>
    %18 = vector.shape_cast %15 : vector<16x16x128xbf16> to vector<1x16x16x128xbf16>
    tpu.vector_store %arg4[%c0_9, %c0_10, %c0_11, %c0_12], %18 {strides = array<i32>} : memref<1x16x16x128xbf16, #tpu.memory_space<vmem>>, vector<1x16x16x128xbf16>,
    return
  }
  func.func @transform_0(%arg0: i32) -> (i32, i32, i32, i32) {
    %c0_i32 = arith.constant 0 : i32
    %c0_i32_0 = arith.constant 0 : i32
    %c0_i32_1 = arith.constant 0 : i32
    %c0_i32_2 = arith.constant 0 : i32
    return %arg0, %c0_i32, %c0_i32_0, %c0_i32_1 : i32, i32, i32, i32
  }
  func.func @transform_1(%arg0: i32) -> (i32, i32, i32) {
    %c0_i32 = arith.constant 0 : i32
    %c0_i32_0 = arith.constant 0 : i32
    %c0_i32_1 = arith.constant 0 : i32
    %c0_i32_2 = arith.constant 0 : i32
    return %c0_i32, %c0_i32_0, %c0_i32_1 : i32, i32, i32
  }
  func.func @transform_2(%arg0: i32) -> (i32, i32, i32) {
    %c0_i32 = arith.constant 0 : i32
    %c0_i32_0 = arith.constant 0 : i32
    %c0_i32_1 = arith.constant 0 : i32
    %c0_i32_2 = arith.constant 0 : i32
    return %c0_i32, %c0_i32_0, %c0_i32_1 : i32, i32, i32
  }
  func.func @transform_3(%arg0: i32) -> (i32, i32, i32, i32) {
    %c0_i32 = arith.constant 0 : i32
    %c0_i32_0 = arith.constant 0 : i32
    %c0_i32_1 = arith.constant 0 : i32
    %c0_i32_2 = arith.constant 0 : i32
    return %arg0, %c0_i32, %c0_i32_0, %c0_i32_1 : i32, i32, i32, i32
  }
}

module attributes {stable_mosaic.version = 11 : i64} {
  func.func @_maxpool_kernel(%arg0: i32, %arg1: memref<1x8x16x256xbf16, #tpu.memory_space<vmem>>, %arg2: memref<1x8x8x128xbf16, #tpu.memory_space<vmem>>) attributes {dimension_semantics = [#tpu.dimension_semantics<parallel>], iteration_bounds = array<i64: 2>, scalar_prefetch = 0 : i64, scratch_operands = 0 : i64, tpu.core_type = #tpu.core_type<tc>, window_params = [{transform_indices = @transform_0, window_bounds = array<i64: 1, 8, 16, 256>}, {transform_indices = @transform_1, window_bounds = array<i64: 1, 8, 8, 128>}]} {
    %c0 = arith.constant 0 : index
    %c0_0 = arith.constant 0 : index
    %c0_1 = arith.constant 0 : index
    %c0_2 = arith.constant 0 : index
    %0 = vector.load %arg1[%c0, %c0_0, %c0_1, %c0_2] : memref<1x8x16x256xbf16, #tpu.memory_space<vmem>>, vector<1x8x16x256xbf16>
    %1 = vector.shape_cast %0 : vector<1x8x16x256xbf16> to vector<8x16x256xbf16>
    %2 = vector.extract_strided_slice %1 {offsets = [0, 0, 0], sizes = [8, 8, 128], strides = [1, 1, 1]} : vector<8x16x256xbf16> to vector<8x8x128xbf16>
    %3 = vector.extract_strided_slice %1 {offsets = [0, 0, 128], sizes = [8, 8, 128], strides = [1, 1, 1]} : vector<8x16x256xbf16> to vector<8x8x128xbf16>
    %4 = vector.extract_strided_slice %1 {offsets = [0, 8, 0], sizes = [8, 8, 128], strides = [1, 1, 1]} : vector<8x16x256xbf16> to vector<8x8x128xbf16>
    %5 = vector.extract_strided_slice %1 {offsets = [0, 8, 128], sizes = [8, 8, 128], strides = [1, 1, 1]} : vector<8x16x256xbf16> to vector<8x8x128xbf16>
    %6 = arith.maximumf %2, %3 : vector<8x8x128xbf16>
    %7 = arith.maximumf %4, %5 : vector<8x8x128xbf16>
    %8 = arith.maximumf %6, %7 : vector<8x8x128xbf16>
    %c0_3 = arith.constant 0 : index
    %c0_4 = arith.constant 0 : index
    %c0_5 = arith.constant 0 : index
    %c0_6 = arith.constant 0 : index
    %9 = vector.load %arg2[%c0_3, %c0_4, %c0_5, %c0_6] : memref<1x8x8x128xbf16, #tpu.memory_space<vmem>>, vector<1x8x8x128xbf16>
    %10 = vector.shape_cast %9 : vector<1x8x8x128xbf16> to vector<8x8x128xbf16>
    %11 = vector.shape_cast %8 : vector<8x8x128xbf16> to vector<1x8x8x128xbf16>
    tpu.vector_store %arg2[%c0_3, %c0_4, %c0_5, %c0_6], %11 {strides = array<i32>} : memref<1x8x8x128xbf16, #tpu.memory_space<vmem>>, vector<1x8x8x128xbf16>,
    return
  }
  func.func @transform_0(%arg0: i32) -> (i32, i32, i32, i32) {
    %c0_i32 = arith.constant 0 : i32
    %c0_i32_0 = arith.constant 0 : i32
    %c0_i32_1 = arith.constant 0 : i32
    %c0_i32_2 = arith.constant 0 : i32
    return %arg0, %c0_i32, %c0_i32_0, %c0_i32_1 : i32, i32, i32, i32
  }
  func.func @transform_1(%arg0: i32) -> (i32, i32, i32, i32) {
    %c0_i32 = arith.constant 0 : i32
    %c0_i32_0 = arith.constant 0 : i32
    %c0_i32_1 = arith.constant 0 : i32
    %c0_i32_2 = arith.constant 0 : i32
    return %arg0, %c0_i32, %c0_i32_0, %c0_i32_1 : i32, i32, i32, i32
  }
}

module attributes {stable_mosaic.version = 11 : i64} {
  func.func @_conv_kernel(%arg0: i32, %arg1: memref<1x110x128xbf16, #tpu.memory_space<vmem>>, %arg2: memref<3x3x128x128xbf16, #tpu.memory_space<vmem>>, %arg3: memref<1x80x128xf32, #tpu.memory_space<vmem>>, %arg4: memref<1x1x128xf32, #tpu.memory_space<vmem>>, %arg5: memref<1x1x128xf32, #tpu.memory_space<vmem>>) attributes {dimension_semantics = [#tpu.dimension_semantics<parallel>], iteration_bounds = array<i64: 2>, scalar_prefetch = 0 : i64, scratch_operands = 0 : i64, tpu.core_type = #tpu.core_type<tc>, window_params = [{transform_indices = @transform_0, window_bounds = array<i64: 1, 110, 128>}, {pipeline_mode = #tpu.pipeline_mode<synchronous>, transform_indices = @transform_1, window_bounds = array<i64: 3, 3, 128, 128>}, {transform_indices = @transform_2, window_bounds = array<i64: 1, 80, 128>}, {transform_indices = @transform_3, window_bounds = array<i64: 1, 1, 128>}, {transform_indices = @transform_4, window_bounds = array<i64: 1, 1, 128>}]} {
    %cst = arith.constant 0.000000e+00 : f32
    %0 = vector.broadcast %cst : f32 to vector<80x128xf32>
    %c0 = arith.constant 0 : index
    %c0_0 = arith.constant 0 : index
    %c0_1 = arith.constant 0 : index
    %1 = vector.load %arg1[%c0, %c0_0, %c0_1] : memref<1x110x128xbf16, #tpu.memory_space<vmem>>, vector<1x80x128xbf16>
    %2 = vector.shape_cast %1 : vector<1x80x128xbf16> to vector<80x128xbf16>
    %c0_2 = arith.constant 0 : index
    %c0_3 = arith.constant 0 : index
    %c0_4 = arith.constant 0 : index
    %c0_5 = arith.constant 0 : index
    %3 = vector.load %arg2[%c0_2, %c0_3, %c0_4, %c0_5] : memref<3x3x128x128xbf16, #tpu.memory_space<vmem>>, vector<1x1x128x128xbf16>
    %4 = vector.shape_cast %3 : vector<1x1x128x128xbf16> to vector<128x128xbf16>
    %cst_6 = arith.constant dense<0.000000e+00> : vector<80x128xf32>
    %5 = tpu.matmul %2, %4, %cst_6 {dimension_numbers = #tpu.dot_dimension_numbers<[1], [0], [0], [1], [0, 0, 1, 1], [], []>} : vector<80x128xbf16>, vector<128x128xbf16>, vector<80x128xf32> -> vector<80x128xf32>
    %6 = arith.addf %0, %5 : vector<80x128xf32>
    %c0_7 = arith.constant 0 : index
    %c1 = arith.constant 1 : index
    %c0_8 = arith.constant 0 : index
    %7 = vector.load %arg1[%c0_7, %c1, %c0_8] : memref<1x110x128xbf16, #tpu.memory_space<vmem>>, vector<1x80x128xbf16>
    %8 = vector.shape_cast %7 : vector<1x80x128xbf16> to vector<80x128xbf16>
    %c0_9 = arith.constant 0 : index
    %c1_10 = arith.constant 1 : index
    %c0_11 = arith.constant 0 : index
    %c0_12 = arith.constant 0 : index
    %9 = vector.load %arg2[%c0_9, %c1_10, %c0_11, %c0_12] : memref<3x3x128x128xbf16, #tpu.memory_space<vmem>>, vector<1x1x128x128xbf16>
    %10 = vector.shape_cast %9 : vector<1x1x128x128xbf16> to vector<128x128xbf16>
    %cst_13 = arith.constant dense<0.000000e+00> : vector<80x128xf32>
    %11 = tpu.matmul %8, %10, %cst_13 {dimension_numbers = #tpu.dot_dimension_numbers<[1], [0], [0], [1], [0, 0, 1, 1], [], []>} : vector<80x128xbf16>, vector<128x128xbf16>, vector<80x128xf32> -> vector<80x128xf32>
    %12 = arith.addf %6, %11 : vector<80x128xf32>
    %c0_14 = arith.constant 0 : index
    %c2 = arith.constant 2 : index
    %c0_15 = arith.constant 0 : index
    %13 = vector.load %arg1[%c0_14, %c2, %c0_15] : memref<1x110x128xbf16, #tpu.memory_space<vmem>>, vector<1x80x128xbf16>
    %14 = vector.shape_cast %13 : vector<1x80x128xbf16> to vector<80x128xbf16>
    %c0_16 = arith.constant 0 : index
    %c2_17 = arith.constant 2 : index
    %c0_18 = arith.constant 0 : index
    %c0_19 = arith.constant 0 : index
    %15 = vector.load %arg2[%c0_16, %c2_17, %c0_18, %c0_19] : memref<3x3x128x128xbf16, #tpu.memory_space<vmem>>, vector<1x1x128x128xbf16>
    %16 = vector.shape_cast %15 : vector<1x1x128x128xbf16> to vector<128x128xbf16>
    %cst_20 = arith.constant dense<0.000000e+00> : vector<80x128xf32>
    %17 = tpu.matmul %14, %16, %cst_20 {dimension_numbers = #tpu.dot_dimension_numbers<[1], [0], [0], [1], [0, 0, 1, 1], [], []>} : vector<80x128xbf16>, vector<128x128xbf16>, vector<80x128xf32> -> vector<80x128xf32>
    %18 = arith.addf %12, %17 : vector<80x128xf32>
    %c0_21 = arith.constant 0 : index
    %c10 = arith.constant 10 : index
    %c0_22 = arith.constant 0 : index
    %19 = vector.load %arg1[%c0_21, %c10, %c0_22] : memref<1x110x128xbf16, #tpu.memory_space<vmem>>, vector<1x80x128xbf16>
    %20 = vector.shape_cast %19 : vector<1x80x128xbf16> to vector<80x128xbf16>
    %c1_23 = arith.constant 1 : index
    %c0_24 = arith.constant 0 : index
    %c0_25 = arith.constant 0 : index
    %c0_26 = arith.constant 0 : index
    %21 = vector.load %arg2[%c1_23, %c0_24, %c0_25, %c0_26] : memref<3x3x128x128xbf16, #tpu.memory_space<vmem>>, vector<1x1x128x128xbf16>
    %22 = vector.shape_cast %21 : vector<1x1x128x128xbf16> to vector<128x128xbf16>
    %cst_27 = arith.constant dense<0.000000e+00> : vector<80x128xf32>
    %23 = tpu.matmul %20, %22, %cst_27 {dimension_numbers = #tpu.dot_dimension_numbers<[1], [0], [0], [1], [0, 0, 1, 1], [], []>} : vector<80x128xbf16>, vector<128x128xbf16>, vector<80x128xf32> -> vector<80x128xf32>
    %24 = arith.addf %18, %23 : vector<80x128xf32>
    %c0_28 = arith.constant 0 : index
    %c11 = arith.constant 11 : index
    %c0_29 = arith.constant 0 : index
    %25 = vector.load %arg1[%c0_28, %c11, %c0_29] : memref<1x110x128xbf16, #tpu.memory_space<vmem>>, vector<1x80x128xbf16>
    %26 = vector.shape_cast %25 : vector<1x80x128xbf16> to vector<80x128xbf16>
    %c1_30 = arith.constant 1 : index
    %c1_31 = arith.constant 1 : index
    %c0_32 = arith.constant 0 : index
    %c0_33 = arith.constant 0 : index
    %27 = vector.load %arg2[%c1_30, %c1_31, %c0_32, %c0_33] : memref<3x3x128x128xbf16, #tpu.memory_space<vmem>>, vector<1x1x128x128xbf16>
    %28 = vector.shape_cast %27 : vector<1x1x128x128xbf16> to vector<128x128xbf16>
    %cst_34 = arith.constant dense<0.000000e+00> : vector<80x128xf32>
    %29 = tpu.matmul %26, %28, %cst_34 {dimension_numbers = #tpu.dot_dimension_numbers<[1], [0], [0], [1], [0, 0, 1, 1], [], []>} : vector<80x128xbf16>, vector<128x128xbf16>, vector<80x128xf32> -> vector<80x128xf32>
    %30 = arith.addf %24, %29 : vector<80x128xf32>
    %c0_35 = arith.constant 0 : index
    %c12 = arith.constant 12 : index
    %c0_36 = arith.constant 0 : index
    %31 = vector.load %arg1[%c0_35, %c12, %c0_36] : memref<1x110x128xbf16, #tpu.memory_space<vmem>>, vector<1x80x128xbf16>
    %32 = vector.shape_cast %31 : vector<1x80x128xbf16> to vector<80x128xbf16>
    %c1_37 = arith.constant 1 : index
    %c2_38 = arith.constant 2 : index
    %c0_39 = arith.constant 0 : index
    %c0_40 = arith.constant 0 : index
    %33 = vector.load %arg2[%c1_37, %c2_38, %c0_39, %c0_40] : memref<3x3x128x128xbf16, #tpu.memory_space<vmem>>, vector<1x1x128x128xbf16>
    %34 = vector.shape_cast %33 : vector<1x1x128x128xbf16> to vector<128x128xbf16>
    %cst_41 = arith.constant dense<0.000000e+00> : vector<80x128xf32>
    %35 = tpu.matmul %32, %34, %cst_41 {dimension_numbers = #tpu.dot_dimension_numbers<[1], [0], [0], [1], [0, 0, 1, 1], [], []>} : vector<80x128xbf16>, vector<128x128xbf16>, vector<80x128xf32> -> vector<80x128xf32>
    %36 = arith.addf %30, %35 : vector<80x128xf32>
    %c0_42 = arith.constant 0 : index
    %c20 = arith.constant 20 : index
    %c0_43 = arith.constant 0 : index
    %37 = vector.load %arg1[%c0_42, %c20, %c0_43] : memref<1x110x128xbf16, #tpu.memory_space<vmem>>, vector<1x80x128xbf16>
    %38 = vector.shape_cast %37 : vector<1x80x128xbf16> to vector<80x128xbf16>
    %c2_44 = arith.constant 2 : index
    %c0_45 = arith.constant 0 : index
    %c0_46 = arith.constant 0 : index
    %c0_47 = arith.constant 0 : index
    %39 = vector.load %arg2[%c2_44, %c0_45, %c0_46, %c0_47] : memref<3x3x128x128xbf16, #tpu.memory_space<vmem>>, vector<1x1x128x128xbf16>
    %40 = vector.shape_cast %39 : vector<1x1x128x128xbf16> to vector<128x128xbf16>
    %cst_48 = arith.constant dense<0.000000e+00> : vector<80x128xf32>
    %41 = tpu.matmul %38, %40, %cst_48 {dimension_numbers = #tpu.dot_dimension_numbers<[1], [0], [0], [1], [0, 0, 1, 1], [], []>} : vector<80x128xbf16>, vector<128x128xbf16>, vector<80x128xf32> -> vector<80x128xf32>
    %42 = arith.addf %36, %41 : vector<80x128xf32>
    %c0_49 = arith.constant 0 : index
    %c21 = arith.constant 21 : index
    %c0_50 = arith.constant 0 : index
    %43 = vector.load %arg1[%c0_49, %c21, %c0_50] : memref<1x110x128xbf16, #tpu.memory_space<vmem>>, vector<1x80x128xbf16>
    %44 = vector.shape_cast %43 : vector<1x80x128xbf16> to vector<80x128xbf16>
    %c2_51 = arith.constant 2 : index
    %c1_52 = arith.constant 1 : index
    %c0_53 = arith.constant 0 : index
    %c0_54 = arith.constant 0 : index
    %45 = vector.load %arg2[%c2_51, %c1_52, %c0_53, %c0_54] : memref<3x3x128x128xbf16, #tpu.memory_space<vmem>>, vector<1x1x128x128xbf16>
    %46 = vector.shape_cast %45 : vector<1x1x128x128xbf16> to vector<128x128xbf16>
    %cst_55 = arith.constant dense<0.000000e+00> : vector<80x128xf32>
    %47 = tpu.matmul %44, %46, %cst_55 {dimension_numbers = #tpu.dot_dimension_numbers<[1], [0], [0], [1], [0, 0, 1, 1], [], []>} : vector<80x128xbf16>, vector<128x128xbf16>, vector<80x128xf32> -> vector<80x128xf32>
    %48 = arith.addf %42, %47 : vector<80x128xf32>
    %c0_56 = arith.constant 0 : index
    %c22 = arith.constant 22 : index
    %c0_57 = arith.constant 0 : index
    %49 = vector.load %arg1[%c0_56, %c22, %c0_57] : memref<1x110x128xbf16, #tpu.memory_space<vmem>>, vector<1x80x128xbf16>
    %50 = vector.shape_cast %49 : vector<1x80x128xbf16> to vector<80x128xbf16>
    %c2_58 = arith.constant 2 : index
    %c2_59 = arith.constant 2 : index
    %c0_60 = arith.constant 0 : index
    %c0_61 = arith.constant 0 : index
    %51 = vector.load %arg2[%c2_58, %c2_59, %c0_60, %c0_61] : memref<3x3x128x128xbf16, #tpu.memory_space<vmem>>, vector<1x1x128x128xbf16>
    %52 = vector.shape_cast %51 : vector<1x1x128x128xbf16> to vector<128x128xbf16>
    %cst_62 = arith.constant dense<0.000000e+00> : vector<80x128xf32>
    %53 = tpu.matmul %50, %52, %cst_62 {dimension_numbers = #tpu.dot_dimension_numbers<[1], [0], [0], [1], [0, 0, 1, 1], [], []>} : vector<80x128xbf16>, vector<128x128xbf16>, vector<80x128xf32> -> vector<80x128xf32>
    %54 = arith.addf %48, %53 : vector<80x128xf32>
    %c0_63 = arith.constant 0 : index
    %c0_64 = arith.constant 0 : index
    %c0_65 = arith.constant 0 : index
    %55 = vector.load %arg3[%c0_63, %c0_64, %c0_65] : memref<1x80x128xf32, #tpu.memory_space<vmem>>, vector<1x80x128xf32>
    %56 = vector.shape_cast %55 : vector<1x80x128xf32> to vector<80x128xf32>
    %57 = vector.shape_cast %54 : vector<80x128xf32> to vector<1x80x128xf32>
    tpu.vector_store %arg3[%c0_63, %c0_64, %c0_65], %57 {strides = array<i32>} : memref<1x80x128xf32, #tpu.memory_space<vmem>>, vector<1x80x128xf32>,
    %58 = tpu.iota {dimensions = array<i32: 0>} : vector<80x128xi32>
    %c10_i32 = arith.constant 10 : i32
    %c0_i32 = arith.constant 0 : i32
    %59 = arith.cmpi eq, %c10_i32, %c0_i32 : i32
    %c1_i32 = arith.constant 1 : i32
    %60 = arith.select %59, %c1_i32, %c10_i32 : i32
    %61 = vector.broadcast %60 : i32 to vector<80x128xi32>
    %62 = arith.remsi %58, %61 : vector<80x128xi32>
    %c0_i32_66 = arith.constant 0 : i32
    %63 = vector.broadcast %c0_i32_66 : i32 to vector<80x128xi32>
    %64 = arith.cmpi ne, %62, %63 : vector<80x128xi32>
    %c0_i32_67 = arith.constant 0 : i32
    %65 = vector.broadcast %c0_i32_67 : i32 to vector<80x128xi32>
    %66 = arith.cmpi slt, %62, %65 : vector<80x128xi32>
    %c0_i32_68 = arith.constant 0 : i32
    %67 = arith.cmpi slt, %60, %c0_i32_68 : i32
    %68 = vector.broadcast %67 : i1 to vector<80x128xi1>
    %69 = vector.broadcast %68 : vector<80x128xi1> to vector<80x128xi1>
    %70 = arith.xori %66, %69 : vector<80x128xi1>
    %71 = arith.andi %70, %64 : vector<80x128xi1>
    %72 = vector.broadcast %60 : i32 to vector<80x128xi32>
    %73 = arith.addi %62, %72 : vector<80x128xi32>
    %74 = arith.select %71, %73, %62 : vector<80x128xi1>, vector<80x128xi32>
    %c8_i32 = arith.constant 8 : i32
    %75 = vector.broadcast %c8_i32 : i32 to vector<80x128xi32>
    %76 = arith.cmpi slt, %74, %75 : vector<80x128xi32>
    %cst_69 = arith.constant 0.000000e+00 : f32
    %77 = vector.broadcast %cst_69 : f32 to vector<80x128xf32>
    %78 = arith.select %76, %54, %77 : vector<80x128xi1>, vector<80x128xf32>
    %cst_70 = arith.constant dense<0.000000e+00> : vector<128xf32>
    %79 = vector.multi_reduction <add>, %78, %cst_70 [0] : vector<80x128xf32> to vector<128xf32>
    %80 = vector.shape_cast %79 : vector<128xf32> to vector<1x128xf32>
    %c0_71 = arith.constant 0 : index
    %c0_72 = arith.constant 0 : index
    %c0_73 = arith.constant 0 : index
    %81 = vector.load %arg4[%c0_71, %c0_72, %c0_73] : memref<1x1x128xf32, #tpu.memory_space<vmem>>, vector<1x1x128xf32>
    %82 = vector.shape_cast %81 : vector<1x1x128xf32> to vector<1x128xf32>
    %83 = vector.shape_cast %80 : vector<1x128xf32> to vector<1x1x128xf32>
    tpu.vector_store %arg4[%c0_71, %c0_72, %c0_73], %83 {strides = array<i32>} : memref<1x1x128xf32, #tpu.memory_space<vmem>>, vector<1x1x128xf32>,
    %84 = arith.mulf %78, %78 : vector<80x128xf32>
    %cst_74 = arith.constant dense<0.000000e+00> : vector<128xf32>
    %85 = vector.multi_reduction <add>, %84, %cst_74 [0] : vector<80x128xf32> to vector<128xf32>
    %86 = vector.shape_cast %85 : vector<128xf32> to vector<1x128xf32>
    %c0_75 = arith.constant 0 : index
    %c0_76 = arith.constant 0 : index
    %c0_77 = arith.constant 0 : index
    %87 = vector.load %arg5[%c0_75, %c0_76, %c0_77] : memref<1x1x128xf32, #tpu.memory_space<vmem>>, vector<1x1x128xf32>
    %88 = vector.shape_cast %87 : vector<1x1x128xf32> to vector<1x128xf32>
    %89 = vector.shape_cast %86 : vector<1x128xf32> to vector<1x1x128xf32>
    tpu.vector_store %arg5[%c0_75, %c0_76, %c0_77], %89 {strides = array<i32>} : memref<1x1x128xf32, #tpu.memory_space<vmem>>, vector<1x1x128xf32>,
    return
  }
  func.func @transform_0(%arg0: i32) -> (i32, i32, i32) {
    %c0_i32 = arith.constant 0 : i32
    %c0_i32_0 = arith.constant 0 : i32
    %c0_i32_1 = arith.constant 0 : i32
    return %arg0, %c0_i32, %c0_i32_0 : i32, i32, i32
  }
  func.func @transform_1(%arg0: i32) -> (i32, i32, i32, i32) {
    %c0_i32 = arith.constant 0 : i32
    %c0_i32_0 = arith.constant 0 : i32
    %c0_i32_1 = arith.constant 0 : i32
    %c0_i32_2 = arith.constant 0 : i32
    %c0_i32_3 = arith.constant 0 : i32
    return %c0_i32, %c0_i32_0, %c0_i32_1, %c0_i32_2 : i32, i32, i32, i32
  }
  func.func @transform_2(%arg0: i32) -> (i32, i32, i32) {
    %c0_i32 = arith.constant 0 : i32
    %c0_i32_0 = arith.constant 0 : i32
    %c0_i32_1 = arith.constant 0 : i32
    return %arg0, %c0_i32, %c0_i32_0 : i32, i32, i32
  }
  func.func @transform_3(%arg0: i32) -> (i32, i32, i32) {
    %c0_i32 = arith.constant 0 : i32
    %c0_i32_0 = arith.constant 0 : i32
    %c0_i32_1 = arith.constant 0 : i32
    return %arg0, %c0_i32, %c0_i32_0 : i32, i32, i32
  }
  func.func @transform_4(%arg0: i32) -> (i32, i32, i32) {
    %c0_i32 = arith.constant 0 : i32
    %c0_i32_0 = arith.constant 0 : i32
    %c0_i32_1 = arith.constant 0 : i32
    return %arg0, %c0_i32, %c0_i32_0 : i32, i32, i32
  }
}

module attributes {stable_mosaic.version = 11 : i64} {
  func.func @_bn_act_kernel(%arg0: i32, %arg1: memref<1x8x10x128xf32, #tpu.memory_space<vmem>>, %arg2: memref<1x1x128xf32, #tpu.memory_space<vmem>>, %arg3: memref<1x1x128xf32, #tpu.memory_space<vmem>>, %arg4: memref<1x8x8x128xbf16, #tpu.memory_space<vmem>>) attributes {dimension_semantics = [#tpu.dimension_semantics<parallel>], iteration_bounds = array<i64: 2>, scalar_prefetch = 0 : i64, scratch_operands = 0 : i64, tpu.core_type = #tpu.core_type<tc>, window_params = [{transform_indices = @transform_0, window_bounds = array<i64: 1, 8, 10, 128>}, {pipeline_mode = #tpu.pipeline_mode<synchronous>, transform_indices = @transform_1, window_bounds = array<i64: 1, 1, 128>}, {pipeline_mode = #tpu.pipeline_mode<synchronous>, transform_indices = @transform_2, window_bounds = array<i64: 1, 1, 128>}, {transform_indices = @transform_3, window_bounds = array<i64: 1, 8, 8, 128>}]} {
    %c0 = arith.constant 0 : index
    %c0_0 = arith.constant 0 : index
    %c0_1 = arith.constant 0 : index
    %c0_2 = arith.constant 0 : index
    %0 = vector.load %arg1[%c0, %c0_0, %c0_1, %c0_2] : memref<1x8x10x128xf32, #tpu.memory_space<vmem>>, vector<1x8x8x128xf32>
    %1 = vector.shape_cast %0 : vector<1x8x8x128xf32> to vector<8x8x128xf32>
    %c0_3 = arith.constant 0 : index
    %c0_4 = arith.constant 0 : index
    %c0_5 = arith.constant 0 : index
    %2 = vector.load %arg2[%c0_3, %c0_4, %c0_5] : memref<1x1x128xf32, #tpu.memory_space<vmem>>, vector<1x1x128xf32>
    %3 = vector.shape_cast %2 : vector<1x1x128xf32> to vector<1x128xf32>
    %4 = vector.shape_cast %3 : vector<1x128xf32> to vector<1x1x128xf32>
    %5 = vector.broadcast %4 : vector<1x1x128xf32> to vector<8x8x128xf32>
    %6 = arith.mulf %1, %5 : vector<8x8x128xf32>
    %c0_6 = arith.constant 0 : index
    %c0_7 = arith.constant 0 : index
    %c0_8 = arith.constant 0 : index
    %7 = vector.load %arg3[%c0_6, %c0_7, %c0_8] : memref<1x1x128xf32, #tpu.memory_space<vmem>>, vector<1x1x128xf32>
    %8 = vector.shape_cast %7 : vector<1x1x128xf32> to vector<1x128xf32>
    %9 = vector.shape_cast %8 : vector<1x128xf32> to vector<1x1x128xf32>
    %10 = vector.broadcast %9 : vector<1x1x128xf32> to vector<8x8x128xf32>
    %11 = arith.addf %6, %10 : vector<8x8x128xf32>
    %cst = arith.constant 1.000000e-01 : f32
    %12 = vector.broadcast %cst : f32 to vector<8x8x128xf32>
    %13 = arith.mulf %12, %11 : vector<8x8x128xf32>
    %14 = arith.maximumf %11, %13 : vector<8x8x128xf32>
    %15 = arith.truncf %14 : vector<8x8x128xf32> to vector<8x8x128xbf16>
    %c0_9 = arith.constant 0 : index
    %c0_10 = arith.constant 0 : index
    %c0_11 = arith.constant 0 : index
    %c0_12 = arith.constant 0 : index
    %16 = vector.load %arg4[%c0_9, %c0_10, %c0_11, %c0_12] : memref<1x8x8x128xbf16, #tpu.memory_space<vmem>>, vector<1x8x8x128xbf16>
    %17 = vector.shape_cast %16 : vector<1x8x8x128xbf16> to vector<8x8x128xbf16>
    %18 = vector.shape_cast %15 : vector<8x8x128xbf16> to vector<1x8x8x128xbf16>
    tpu.vector_store %arg4[%c0_9, %c0_10, %c0_11, %c0_12], %18 {strides = array<i32>} : memref<1x8x8x128xbf16, #tpu.memory_space<vmem>>, vector<1x8x8x128xbf16>,
    return
  }
  func.func @transform_0(%arg0: i32) -> (i32, i32, i32, i32) {
    %c0_i32 = arith.constant 0 : i32
    %c0_i32_0 = arith.constant 0 : i32
    %c0_i32_1 = arith.constant 0 : i32
    %c0_i32_2 = arith.constant 0 : i32
    return %arg0, %c0_i32, %c0_i32_0, %c0_i32_1 : i32, i32, i32, i32
  }
  func.func @transform_1(%arg0: i32) -> (i32, i32, i32) {
    %c0_i32 = arith.constant 0 : i32
    %c0_i32_0 = arith.constant 0 : i32
    %c0_i32_1 = arith.constant 0 : i32
    %c0_i32_2 = arith.constant 0 : i32
    return %c0_i32, %c0_i32_0, %c0_i32_1 : i32, i32, i32
  }
  func.func @transform_2(%arg0: i32) -> (i32, i32, i32) {
    %c0_i32 = arith.constant 0 : i32
    %c0_i32_0 = arith.constant 0 : i32
    %c0_i32_1 = arith.constant 0 : i32
    %c0_i32_2 = arith.constant 0 : i32
    return %c0_i32, %c0_i32_0, %c0_i32_1 : i32, i32, i32
  }
  func.func @transform_3(%arg0: i32) -> (i32, i32, i32, i32) {
    %c0_i32 = arith.constant 0 : i32
    %c0_i32_0 = arith.constant 0 : i32
    %c0_i32_1 = arith.constant 0 : i32
    %c0_i32_2 = arith.constant 0 : i32
    return %arg0, %c0_i32, %c0_i32_0, %c0_i32_1 : i32, i32, i32, i32
  }
}

module attributes {stable_mosaic.version = 11 : i64} {
  func.func @_maxpool_kernel(%arg0: i32, %arg1: memref<1x4x8x256xbf16, #tpu.memory_space<vmem>>, %arg2: memref<1x4x4x128xbf16, #tpu.memory_space<vmem>>) attributes {dimension_semantics = [#tpu.dimension_semantics<parallel>], iteration_bounds = array<i64: 2>, scalar_prefetch = 0 : i64, scratch_operands = 0 : i64, tpu.core_type = #tpu.core_type<tc>, window_params = [{transform_indices = @transform_0, window_bounds = array<i64: 1, 4, 8, 256>}, {transform_indices = @transform_1, window_bounds = array<i64: 1, 4, 4, 128>}]} {
    %c0 = arith.constant 0 : index
    %c0_0 = arith.constant 0 : index
    %c0_1 = arith.constant 0 : index
    %c0_2 = arith.constant 0 : index
    %0 = vector.load %arg1[%c0, %c0_0, %c0_1, %c0_2] : memref<1x4x8x256xbf16, #tpu.memory_space<vmem>>, vector<1x4x8x256xbf16>
    %1 = vector.shape_cast %0 : vector<1x4x8x256xbf16> to vector<4x8x256xbf16>
    %2 = vector.extract_strided_slice %1 {offsets = [0, 0, 0], sizes = [4, 4, 128], strides = [1, 1, 1]} : vector<4x8x256xbf16> to vector<4x4x128xbf16>
    %3 = vector.extract_strided_slice %1 {offsets = [0, 0, 128], sizes = [4, 4, 128], strides = [1, 1, 1]} : vector<4x8x256xbf16> to vector<4x4x128xbf16>
    %4 = vector.extract_strided_slice %1 {offsets = [0, 4, 0], sizes = [4, 4, 128], strides = [1, 1, 1]} : vector<4x8x256xbf16> to vector<4x4x128xbf16>
    %5 = vector.extract_strided_slice %1 {offsets = [0, 4, 128], sizes = [4, 4, 128], strides = [1, 1, 1]} : vector<4x8x256xbf16> to vector<4x4x128xbf16>
    %6 = arith.maximumf %2, %3 : vector<4x4x128xbf16>
    %7 = arith.maximumf %4, %5 : vector<4x4x128xbf16>
    %8 = arith.maximumf %6, %7 : vector<4x4x128xbf16>
    %c0_3 = arith.constant 0 : index
    %c0_4 = arith.constant 0 : index
    %c0_5 = arith.constant 0 : index
    %c0_6 = arith.constant 0 : index
    %9 = vector.load %arg2[%c0_3, %c0_4, %c0_5, %c0_6] : memref<1x4x4x128xbf16, #tpu.memory_space<vmem>>, vector<1x4x4x128xbf16>
    %10 = vector.shape_cast %9 : vector<1x4x4x128xbf16> to vector<4x4x128xbf16>
    %11 = vector.shape_cast %8 : vector<4x4x128xbf16> to vector<1x4x4x128xbf16>
    tpu.vector_store %arg2[%c0_3, %c0_4, %c0_5, %c0_6], %11 {strides = array<i32>} : memref<1x4x4x128xbf16, #tpu.memory_space<vmem>>, vector<1x4x4x128xbf16>,
    return
  }
  func.func @transform_0(%arg0: i32) -> (i32, i32, i32, i32) {
    %c0_i32 = arith.constant 0 : i32
    %c0_i32_0 = arith.constant 0 : i32
    %c0_i32_1 = arith.constant 0 : i32
    %c0_i32_2 = arith.constant 0 : i32
    return %arg0, %c0_i32, %c0_i32_0, %c0_i32_1 : i32, i32, i32, i32
  }
  func.func @transform_1(%arg0: i32) -> (i32, i32, i32, i32) {
    %c0_i32 = arith.constant 0 : i32
    %c0_i32_0 = arith.constant 0 : i32
    %c0_i32_1 = arith.constant 0 : i32
    %c0_i32_2 = arith.constant 0 : i32
    return %arg0, %c0_i32, %c0_i32_0, %c0_i32_1 : i32, i32, i32, i32
  }
}

module attributes {stable_mosaic.version = 11 : i64} {
  func.func @_conv_kernel(%arg0: i32, %arg1: memref<1x42x128xbf16, #tpu.memory_space<vmem>>, %arg2: memref<3x3x128x128xbf16, #tpu.memory_space<vmem>>, %arg3: memref<1x24x128xf32, #tpu.memory_space<vmem>>, %arg4: memref<1x1x128xf32, #tpu.memory_space<vmem>>, %arg5: memref<1x1x128xf32, #tpu.memory_space<vmem>>) attributes {dimension_semantics = [#tpu.dimension_semantics<parallel>], iteration_bounds = array<i64: 2>, scalar_prefetch = 0 : i64, scratch_operands = 0 : i64, tpu.core_type = #tpu.core_type<tc>, window_params = [{transform_indices = @transform_0, window_bounds = array<i64: 1, 42, 128>}, {pipeline_mode = #tpu.pipeline_mode<synchronous>, transform_indices = @transform_1, window_bounds = array<i64: 3, 3, 128, 128>}, {transform_indices = @transform_2, window_bounds = array<i64: 1, 24, 128>}, {transform_indices = @transform_3, window_bounds = array<i64: 1, 1, 128>}, {transform_indices = @transform_4, window_bounds = array<i64: 1, 1, 128>}]} {
    %cst = arith.constant 0.000000e+00 : f32
    %0 = vector.broadcast %cst : f32 to vector<24x128xf32>
    %c0 = arith.constant 0 : index
    %c0_0 = arith.constant 0 : index
    %c0_1 = arith.constant 0 : index
    %1 = vector.load %arg1[%c0, %c0_0, %c0_1] : memref<1x42x128xbf16, #tpu.memory_space<vmem>>, vector<1x24x128xbf16>
    %2 = vector.shape_cast %1 : vector<1x24x128xbf16> to vector<24x128xbf16>
    %c0_2 = arith.constant 0 : index
    %c0_3 = arith.constant 0 : index
    %c0_4 = arith.constant 0 : index
    %c0_5 = arith.constant 0 : index
    %3 = vector.load %arg2[%c0_2, %c0_3, %c0_4, %c0_5] : memref<3x3x128x128xbf16, #tpu.memory_space<vmem>>, vector<1x1x128x128xbf16>
    %4 = vector.shape_cast %3 : vector<1x1x128x128xbf16> to vector<128x128xbf16>
    %cst_6 = arith.constant dense<0.000000e+00> : vector<24x128xf32>
    %5 = tpu.matmul %2, %4, %cst_6 {dimension_numbers = #tpu.dot_dimension_numbers<[1], [0], [0], [1], [0, 0, 1, 1], [], []>} : vector<24x128xbf16>, vector<128x128xbf16>, vector<24x128xf32> -> vector<24x128xf32>
    %6 = arith.addf %0, %5 : vector<24x128xf32>
    %c0_7 = arith.constant 0 : index
    %c1 = arith.constant 1 : index
    %c0_8 = arith.constant 0 : index
    %7 = vector.load %arg1[%c0_7, %c1, %c0_8] : memref<1x42x128xbf16, #tpu.memory_space<vmem>>, vector<1x24x128xbf16>
    %8 = vector.shape_cast %7 : vector<1x24x128xbf16> to vector<24x128xbf16>
    %c0_9 = arith.constant 0 : index
    %c1_10 = arith.constant 1 : index
    %c0_11 = arith.constant 0 : index
    %c0_12 = arith.constant 0 : index
    %9 = vector.load %arg2[%c0_9, %c1_10, %c0_11, %c0_12] : memref<3x3x128x128xbf16, #tpu.memory_space<vmem>>, vector<1x1x128x128xbf16>
    %10 = vector.shape_cast %9 : vector<1x1x128x128xbf16> to vector<128x128xbf16>
    %cst_13 = arith.constant dense<0.000000e+00> : vector<24x128xf32>
    %11 = tpu.matmul %8, %10, %cst_13 {dimension_numbers = #tpu.dot_dimension_numbers<[1], [0], [0], [1], [0, 0, 1, 1], [], []>} : vector<24x128xbf16>, vector<128x128xbf16>, vector<24x128xf32> -> vector<24x128xf32>
    %12 = arith.addf %6, %11 : vector<24x128xf32>
    %c0_14 = arith.constant 0 : index
    %c2 = arith.constant 2 : index
    %c0_15 = arith.constant 0 : index
    %13 = vector.load %arg1[%c0_14, %c2, %c0_15] : memref<1x42x128xbf16, #tpu.memory_space<vmem>>, vector<1x24x128xbf16>
    %14 = vector.shape_cast %13 : vector<1x24x128xbf16> to vector<24x128xbf16>
    %c0_16 = arith.constant 0 : index
    %c2_17 = arith.constant 2 : index
    %c0_18 = arith.constant 0 : index
    %c0_19 = arith.constant 0 : index
    %15 = vector.load %arg2[%c0_16, %c2_17, %c0_18, %c0_19] : memref<3x3x128x128xbf16, #tpu.memory_space<vmem>>, vector<1x1x128x128xbf16>
    %16 = vector.shape_cast %15 : vector<1x1x128x128xbf16> to vector<128x128xbf16>
    %cst_20 = arith.constant dense<0.000000e+00> : vector<24x128xf32>
    %17 = tpu.matmul %14, %16, %cst_20 {dimension_numbers = #tpu.dot_dimension_numbers<[1], [0], [0], [1], [0, 0, 1, 1], [], []>} : vector<24x128xbf16>, vector<128x128xbf16>, vector<24x128xf32> -> vector<24x128xf32>
    %18 = arith.addf %12, %17 : vector<24x128xf32>
    %c0_21 = arith.constant 0 : index
    %c6 = arith.constant 6 : index
    %c0_22 = arith.constant 0 : index
    %19 = vector.load %arg1[%c0_21, %c6, %c0_22] : memref<1x42x128xbf16, #tpu.memory_space<vmem>>, vector<1x24x128xbf16>
    %20 = vector.shape_cast %19 : vector<1x24x128xbf16> to vector<24x128xbf16>
    %c1_23 = arith.constant 1 : index
    %c0_24 = arith.constant 0 : index
    %c0_25 = arith.constant 0 : index
    %c0_26 = arith.constant 0 : index
    %21 = vector.load %arg2[%c1_23, %c0_24, %c0_25, %c0_26] : memref<3x3x128x128xbf16, #tpu.memory_space<vmem>>, vector<1x1x128x128xbf16>
    %22 = vector.shape_cast %21 : vector<1x1x128x128xbf16> to vector<128x128xbf16>
    %cst_27 = arith.constant dense<0.000000e+00> : vector<24x128xf32>
    %23 = tpu.matmul %20, %22, %cst_27 {dimension_numbers = #tpu.dot_dimension_numbers<[1], [0], [0], [1], [0, 0, 1, 1], [], []>} : vector<24x128xbf16>, vector<128x128xbf16>, vector<24x128xf32> -> vector<24x128xf32>
    %24 = arith.addf %18, %23 : vector<24x128xf32>
    %c0_28 = arith.constant 0 : index
    %c7 = arith.constant 7 : index
    %c0_29 = arith.constant 0 : index
    %25 = vector.load %arg1[%c0_28, %c7, %c0_29] : memref<1x42x128xbf16, #tpu.memory_space<vmem>>, vector<1x24x128xbf16>
    %26 = vector.shape_cast %25 : vector<1x24x128xbf16> to vector<24x128xbf16>
    %c1_30 = arith.constant 1 : index
    %c1_31 = arith.constant 1 : index
    %c0_32 = arith.constant 0 : index
    %c0_33 = arith.constant 0 : index
    %27 = vector.load %arg2[%c1_30, %c1_31, %c0_32, %c0_33] : memref<3x3x128x128xbf16, #tpu.memory_space<vmem>>, vector<1x1x128x128xbf16>
    %28 = vector.shape_cast %27 : vector<1x1x128x128xbf16> to vector<128x128xbf16>
    %cst_34 = arith.constant dense<0.000000e+00> : vector<24x128xf32>
    %29 = tpu.matmul %26, %28, %cst_34 {dimension_numbers = #tpu.dot_dimension_numbers<[1], [0], [0], [1], [0, 0, 1, 1], [], []>} : vector<24x128xbf16>, vector<128x128xbf16>, vector<24x128xf32> -> vector<24x128xf32>
    %30 = arith.addf %24, %29 : vector<24x128xf32>
    %c0_35 = arith.constant 0 : index
    %c8 = arith.constant 8 : index
    %c0_36 = arith.constant 0 : index
    %31 = vector.load %arg1[%c0_35, %c8, %c0_36] : memref<1x42x128xbf16, #tpu.memory_space<vmem>>, vector<1x24x128xbf16>
    %32 = vector.shape_cast %31 : vector<1x24x128xbf16> to vector<24x128xbf16>
    %c1_37 = arith.constant 1 : index
    %c2_38 = arith.constant 2 : index
    %c0_39 = arith.constant 0 : index
    %c0_40 = arith.constant 0 : index
    %33 = vector.load %arg2[%c1_37, %c2_38, %c0_39, %c0_40] : memref<3x3x128x128xbf16, #tpu.memory_space<vmem>>, vector<1x1x128x128xbf16>
    %34 = vector.shape_cast %33 : vector<1x1x128x128xbf16> to vector<128x128xbf16>
    %cst_41 = arith.constant dense<0.000000e+00> : vector<24x128xf32>
    %35 = tpu.matmul %32, %34, %cst_41 {dimension_numbers = #tpu.dot_dimension_numbers<[1], [0], [0], [1], [0, 0, 1, 1], [], []>} : vector<24x128xbf16>, vector<128x128xbf16>, vector<24x128xf32> -> vector<24x128xf32>
    %36 = arith.addf %30, %35 : vector<24x128xf32>
    %c0_42 = arith.constant 0 : index
    %c12 = arith.constant 12 : index
    %c0_43 = arith.constant 0 : index
    %37 = vector.load %arg1[%c0_42, %c12, %c0_43] : memref<1x42x128xbf16, #tpu.memory_space<vmem>>, vector<1x24x128xbf16>
    %38 = vector.shape_cast %37 : vector<1x24x128xbf16> to vector<24x128xbf16>
    %c2_44 = arith.constant 2 : index
    %c0_45 = arith.constant 0 : index
    %c0_46 = arith.constant 0 : index
    %c0_47 = arith.constant 0 : index
    %39 = vector.load %arg2[%c2_44, %c0_45, %c0_46, %c0_47] : memref<3x3x128x128xbf16, #tpu.memory_space<vmem>>, vector<1x1x128x128xbf16>
    %40 = vector.shape_cast %39 : vector<1x1x128x128xbf16> to vector<128x128xbf16>
    %cst_48 = arith.constant dense<0.000000e+00> : vector<24x128xf32>
    %41 = tpu.matmul %38, %40, %cst_48 {dimension_numbers = #tpu.dot_dimension_numbers<[1], [0], [0], [1], [0, 0, 1, 1], [], []>} : vector<24x128xbf16>, vector<128x128xbf16>, vector<24x128xf32> -> vector<24x128xf32>
    %42 = arith.addf %36, %41 : vector<24x128xf32>
    %c0_49 = arith.constant 0 : index
    %c13 = arith.constant 13 : index
    %c0_50 = arith.constant 0 : index
    %43 = vector.load %arg1[%c0_49, %c13, %c0_50] : memref<1x42x128xbf16, #tpu.memory_space<vmem>>, vector<1x24x128xbf16>
    %44 = vector.shape_cast %43 : vector<1x24x128xbf16> to vector<24x128xbf16>
    %c2_51 = arith.constant 2 : index
    %c1_52 = arith.constant 1 : index
    %c0_53 = arith.constant 0 : index
    %c0_54 = arith.constant 0 : index
    %45 = vector.load %arg2[%c2_51, %c1_52, %c0_53, %c0_54] : memref<3x3x128x128xbf16, #tpu.memory_space<vmem>>, vector<1x1x128x128xbf16>
    %46 = vector.shape_cast %45 : vector<1x1x128x128xbf16> to vector<128x128xbf16>
    %cst_55 = arith.constant dense<0.000000e+00> : vector<24x128xf32>
    %47 = tpu.matmul %44, %46, %cst_55 {dimension_numbers = #tpu.dot_dimension_numbers<[1], [0], [0], [1], [0, 0, 1, 1], [], []>} : vector<24x128xbf16>, vector<128x128xbf16>, vector<24x128xf32> -> vector<24x128xf32>
    %48 = arith.addf %42, %47 : vector<24x128xf32>
    %c0_56 = arith.constant 0 : index
    %c14 = arith.constant 14 : index
    %c0_57 = arith.constant 0 : index
    %49 = vector.load %arg1[%c0_56, %c14, %c0_57] : memref<1x42x128xbf16, #tpu.memory_space<vmem>>, vector<1x24x128xbf16>
    %50 = vector.shape_cast %49 : vector<1x24x128xbf16> to vector<24x128xbf16>
    %c2_58 = arith.constant 2 : index
    %c2_59 = arith.constant 2 : index
    %c0_60 = arith.constant 0 : index
    %c0_61 = arith.constant 0 : index
    %51 = vector.load %arg2[%c2_58, %c2_59, %c0_60, %c0_61] : memref<3x3x128x128xbf16, #tpu.memory_space<vmem>>, vector<1x1x128x128xbf16>
    %52 = vector.shape_cast %51 : vector<1x1x128x128xbf16> to vector<128x128xbf16>
    %cst_62 = arith.constant dense<0.000000e+00> : vector<24x128xf32>
    %53 = tpu.matmul %50, %52, %cst_62 {dimension_numbers = #tpu.dot_dimension_numbers<[1], [0], [0], [1], [0, 0, 1, 1], [], []>} : vector<24x128xbf16>, vector<128x128xbf16>, vector<24x128xf32> -> vector<24x128xf32>
    %54 = arith.addf %48, %53 : vector<24x128xf32>
    %c0_63 = arith.constant 0 : index
    %c0_64 = arith.constant 0 : index
    %c0_65 = arith.constant 0 : index
    %55 = vector.load %arg3[%c0_63, %c0_64, %c0_65] : memref<1x24x128xf32, #tpu.memory_space<vmem>>, vector<1x24x128xf32>
    %56 = vector.shape_cast %55 : vector<1x24x128xf32> to vector<24x128xf32>
    %57 = vector.shape_cast %54 : vector<24x128xf32> to vector<1x24x128xf32>
    tpu.vector_store %arg3[%c0_63, %c0_64, %c0_65], %57 {strides = array<i32>} : memref<1x24x128xf32, #tpu.memory_space<vmem>>, vector<1x24x128xf32>,
    %58 = tpu.iota {dimensions = array<i32: 0>} : vector<24x128xi32>
    %c6_i32 = arith.constant 6 : i32
    %c0_i32 = arith.constant 0 : i32
    %59 = arith.cmpi eq, %c6_i32, %c0_i32 : i32
    %c1_i32 = arith.constant 1 : i32
    %60 = arith.select %59, %c1_i32, %c6_i32 : i32
    %61 = vector.broadcast %60 : i32 to vector<24x128xi32>
    %62 = arith.remsi %58, %61 : vector<24x128xi32>
    %c0_i32_66 = arith.constant 0 : i32
    %63 = vector.broadcast %c0_i32_66 : i32 to vector<24x128xi32>
    %64 = arith.cmpi ne, %62, %63 : vector<24x128xi32>
    %c0_i32_67 = arith.constant 0 : i32
    %65 = vector.broadcast %c0_i32_67 : i32 to vector<24x128xi32>
    %66 = arith.cmpi slt, %62, %65 : vector<24x128xi32>
    %c0_i32_68 = arith.constant 0 : i32
    %67 = arith.cmpi slt, %60, %c0_i32_68 : i32
    %68 = vector.broadcast %67 : i1 to vector<24x128xi1>
    %69 = vector.broadcast %68 : vector<24x128xi1> to vector<24x128xi1>
    %70 = arith.xori %66, %69 : vector<24x128xi1>
    %71 = arith.andi %70, %64 : vector<24x128xi1>
    %72 = vector.broadcast %60 : i32 to vector<24x128xi32>
    %73 = arith.addi %62, %72 : vector<24x128xi32>
    %74 = arith.select %71, %73, %62 : vector<24x128xi1>, vector<24x128xi32>
    %c4_i32 = arith.constant 4 : i32
    %75 = vector.broadcast %c4_i32 : i32 to vector<24x128xi32>
    %76 = arith.cmpi slt, %74, %75 : vector<24x128xi32>
    %cst_69 = arith.constant 0.000000e+00 : f32
    %77 = vector.broadcast %cst_69 : f32 to vector<24x128xf32>
    %78 = arith.select %76, %54, %77 : vector<24x128xi1>, vector<24x128xf32>
    %cst_70 = arith.constant dense<0.000000e+00> : vector<128xf32>
    %79 = vector.multi_reduction <add>, %78, %cst_70 [0] : vector<24x128xf32> to vector<128xf32>
    %80 = vector.shape_cast %79 : vector<128xf32> to vector<1x128xf32>
    %c0_71 = arith.constant 0 : index
    %c0_72 = arith.constant 0 : index
    %c0_73 = arith.constant 0 : index
    %81 = vector.load %arg4[%c0_71, %c0_72, %c0_73] : memref<1x1x128xf32, #tpu.memory_space<vmem>>, vector<1x1x128xf32>
    %82 = vector.shape_cast %81 : vector<1x1x128xf32> to vector<1x128xf32>
    %83 = vector.shape_cast %80 : vector<1x128xf32> to vector<1x1x128xf32>
    tpu.vector_store %arg4[%c0_71, %c0_72, %c0_73], %83 {strides = array<i32>} : memref<1x1x128xf32, #tpu.memory_space<vmem>>, vector<1x1x128xf32>,
    %84 = arith.mulf %78, %78 : vector<24x128xf32>
    %cst_74 = arith.constant dense<0.000000e+00> : vector<128xf32>
    %85 = vector.multi_reduction <add>, %84, %cst_74 [0] : vector<24x128xf32> to vector<128xf32>
    %86 = vector.shape_cast %85 : vector<128xf32> to vector<1x128xf32>
    %c0_75 = arith.constant 0 : index
    %c0_76 = arith.constant 0 : index
    %c0_77 = arith.constant 0 : index
    %87 = vector.load %arg5[%c0_75, %c0_76, %c0_77] : memref<1x1x128xf32, #tpu.memory_space<vmem>>, vector<1x1x128xf32>
    %88 = vector.shape_cast %87 : vector<1x1x128xf32> to vector<1x128xf32>
    %89 = vector.shape_cast %86 : vector<1x128xf32> to vector<1x1x128xf32>
    tpu.vector_store %arg5[%c0_75, %c0_76, %c0_77], %89 {strides = array<i32>} : memref<1x1x128xf32, #tpu.memory_space<vmem>>, vector<1x1x128xf32>,
    return
  }
  func.func @transform_0(%arg0: i32) -> (i32, i32, i32) {
    %c0_i32 = arith.constant 0 : i32
    %c0_i32_0 = arith.constant 0 : i32
    %c0_i32_1 = arith.constant 0 : i32
    return %arg0, %c0_i32, %c0_i32_0 : i32, i32, i32
  }
  func.func @transform_1(%arg0: i32) -> (i32, i32, i32, i32) {
    %c0_i32 = arith.constant 0 : i32
    %c0_i32_0 = arith.constant 0 : i32
    %c0_i32_1 = arith.constant 0 : i32
    %c0_i32_2 = arith.constant 0 : i32
    %c0_i32_3 = arith.constant 0 : i32
    return %c0_i32, %c0_i32_0, %c0_i32_1, %c0_i32_2 : i32, i32, i32, i32
  }
  func.func @transform_2(%arg0: i32) -> (i32, i32, i32) {
    %c0_i32 = arith.constant 0 : i32
    %c0_i32_0 = arith.constant 0 : i32
    %c0_i32_1 = arith.constant 0 : i32
    return %arg0, %c0_i32, %c0_i32_0 : i32, i32, i32
  }
  func.func @transform_3(%arg0: i32) -> (i32, i32, i32) {
    %c0_i32 = arith.constant 0 : i32
    %c0_i32_0 = arith.constant 0 : i32
    %c0_i32_1 = arith.constant 0 : i32
    return %arg0, %c0_i32, %c0_i32_0 : i32, i32, i32
  }
  func.func @transform_4(%arg0: i32) -> (i32, i32, i32) {
    %c0_i32 = arith.constant 0 : i32
    %c0_i32_0 = arith.constant 0 : i32
    %c0_i32_1 = arith.constant 0 : i32
    return %arg0, %c0_i32, %c0_i32_0 : i32, i32, i32
  }
}

module attributes {stable_mosaic.version = 11 : i64} {
  func.func @_bn_act_kernel(%arg0: i32, %arg1: memref<1x4x6x128xf32, #tpu.memory_space<vmem>>, %arg2: memref<1x1x128xf32, #tpu.memory_space<vmem>>, %arg3: memref<1x1x128xf32, #tpu.memory_space<vmem>>, %arg4: memref<1x4x4x128xbf16, #tpu.memory_space<vmem>>) attributes {dimension_semantics = [#tpu.dimension_semantics<parallel>], iteration_bounds = array<i64: 2>, scalar_prefetch = 0 : i64, scratch_operands = 0 : i64, tpu.core_type = #tpu.core_type<tc>, window_params = [{transform_indices = @transform_0, window_bounds = array<i64: 1, 4, 6, 128>}, {pipeline_mode = #tpu.pipeline_mode<synchronous>, transform_indices = @transform_1, window_bounds = array<i64: 1, 1, 128>}, {pipeline_mode = #tpu.pipeline_mode<synchronous>, transform_indices = @transform_2, window_bounds = array<i64: 1, 1, 128>}, {transform_indices = @transform_3, window_bounds = array<i64: 1, 4, 4, 128>}]} {
    %c0 = arith.constant 0 : index
    %c0_0 = arith.constant 0 : index
    %c0_1 = arith.constant 0 : index
    %c0_2 = arith.constant 0 : index
    %0 = vector.load %arg1[%c0, %c0_0, %c0_1, %c0_2] : memref<1x4x6x128xf32, #tpu.memory_space<vmem>>, vector<1x4x4x128xf32>
    %1 = vector.shape_cast %0 : vector<1x4x4x128xf32> to vector<4x4x128xf32>
    %c0_3 = arith.constant 0 : index
    %c0_4 = arith.constant 0 : index
    %c0_5 = arith.constant 0 : index
    %2 = vector.load %arg2[%c0_3, %c0_4, %c0_5] : memref<1x1x128xf32, #tpu.memory_space<vmem>>, vector<1x1x128xf32>
    %3 = vector.shape_cast %2 : vector<1x1x128xf32> to vector<1x128xf32>
    %4 = vector.shape_cast %3 : vector<1x128xf32> to vector<1x1x128xf32>
    %5 = vector.broadcast %4 : vector<1x1x128xf32> to vector<4x4x128xf32>
    %6 = arith.mulf %1, %5 : vector<4x4x128xf32>
    %c0_6 = arith.constant 0 : index
    %c0_7 = arith.constant 0 : index
    %c0_8 = arith.constant 0 : index
    %7 = vector.load %arg3[%c0_6, %c0_7, %c0_8] : memref<1x1x128xf32, #tpu.memory_space<vmem>>, vector<1x1x128xf32>
    %8 = vector.shape_cast %7 : vector<1x1x128xf32> to vector<1x128xf32>
    %9 = vector.shape_cast %8 : vector<1x128xf32> to vector<1x1x128xf32>
    %10 = vector.broadcast %9 : vector<1x1x128xf32> to vector<4x4x128xf32>
    %11 = arith.addf %6, %10 : vector<4x4x128xf32>
    %cst = arith.constant 1.000000e-01 : f32
    %12 = vector.broadcast %cst : f32 to vector<4x4x128xf32>
    %13 = arith.mulf %12, %11 : vector<4x4x128xf32>
    %14 = arith.maximumf %11, %13 : vector<4x4x128xf32>
    %15 = arith.truncf %14 : vector<4x4x128xf32> to vector<4x4x128xbf16>
    %c0_9 = arith.constant 0 : index
    %c0_10 = arith.constant 0 : index
    %c0_11 = arith.constant 0 : index
    %c0_12 = arith.constant 0 : index
    %16 = vector.load %arg4[%c0_9, %c0_10, %c0_11, %c0_12] : memref<1x4x4x128xbf16, #tpu.memory_space<vmem>>, vector<1x4x4x128xbf16>
    %17 = vector.shape_cast %16 : vector<1x4x4x128xbf16> to vector<4x4x128xbf16>
    %18 = vector.shape_cast %15 : vector<4x4x128xbf16> to vector<1x4x4x128xbf16>
    tpu.vector_store %arg4[%c0_9, %c0_10, %c0_11, %c0_12], %18 {strides = array<i32>} : memref<1x4x4x128xbf16, #tpu.memory_space<vmem>>, vector<1x4x4x128xbf16>,
    return
  }
  func.func @transform_0(%arg0: i32) -> (i32, i32, i32, i32) {
    %c0_i32 = arith.constant 0 : i32
    %c0_i32_0 = arith.constant 0 : i32
    %c0_i32_1 = arith.constant 0 : i32
    %c0_i32_2 = arith.constant 0 : i32
    return %arg0, %c0_i32, %c0_i32_0, %c0_i32_1 : i32, i32, i32, i32
  }
  func.func @transform_1(%arg0: i32) -> (i32, i32, i32) {
    %c0_i32 = arith.constant 0 : i32
    %c0_i32_0 = arith.constant 0 : i32
    %c0_i32_1 = arith.constant 0 : i32
    %c0_i32_2 = arith.constant 0 : i32
    return %c0_i32, %c0_i32_0, %c0_i32_1 : i32, i32, i32
  }
  func.func @transform_2(%arg0: i32) -> (i32, i32, i32) {
    %c0_i32 = arith.constant 0 : i32
    %c0_i32_0 = arith.constant 0 : i32
    %c0_i32_1 = arith.constant 0 : i32
    %c0_i32_2 = arith.constant 0 : i32
    return %c0_i32, %c0_i32_0, %c0_i32_1 : i32, i32, i32
  }
  func.func @transform_3(%arg0: i32) -> (i32, i32, i32, i32) {
    %c0_i32 = arith.constant 0 : i32
    %c0_i32_0 = arith.constant 0 : i32
    %c0_i32_1 = arith.constant 0 : i32
    %c0_i32_2 = arith.constant 0 : i32
    return %arg0, %c0_i32, %c0_i32_0, %c0_i32_1 : i32, i32, i32, i32
  }
}

module attributes {stable_mosaic.version = 11 : i64} {
  func.func @_conv_kernel(%arg0: i32, %arg1: memref<1x16x128xbf16, #tpu.memory_space<vmem>>, %arg2: memref<1x16x128xbf16, #tpu.memory_space<vmem>>, %arg3: memref<1x1x128x128xbf16, #tpu.memory_space<vmem>>, %arg4: memref<1x1x128x128xbf16, #tpu.memory_space<vmem>>, %arg5: memref<1x1x128xf32, #tpu.memory_space<vmem>>, %arg6: memref<1x16x128xf32, #tpu.memory_space<vmem>>) attributes {dimension_semantics = [#tpu.dimension_semantics<parallel>], iteration_bounds = array<i64: 2>, scalar_prefetch = 0 : i64, scratch_operands = 0 : i64, tpu.core_type = #tpu.core_type<tc>, window_params = [{transform_indices = @transform_0, window_bounds = array<i64: 1, 16, 128>}, {transform_indices = @transform_1, window_bounds = array<i64: 1, 16, 128>}, {pipeline_mode = #tpu.pipeline_mode<synchronous>, transform_indices = @transform_2, window_bounds = array<i64: 1, 1, 128, 128>}, {pipeline_mode = #tpu.pipeline_mode<synchronous>, transform_indices = @transform_3, window_bounds = array<i64: 1, 1, 128, 128>}, {pipeline_mode = #tpu.pipeline_mode<synchronous>, transform_indices = @transform_4, window_bounds = array<i64: 1, 1, 128>}, {transform_indices = @transform_5, window_bounds = array<i64: 1, 16, 128>}]} {
    %cst = arith.constant 0.000000e+00 : f32
    %0 = vector.broadcast %cst : f32 to vector<16x128xf32>
    %c0 = arith.constant 0 : index
    %c0_0 = arith.constant 0 : index
    %c0_1 = arith.constant 0 : index
    %1 = vector.load %arg1[%c0, %c0_0, %c0_1] : memref<1x16x128xbf16, #tpu.memory_space<vmem>>, vector<1x16x128xbf16>
    %2 = vector.shape_cast %1 : vector<1x16x128xbf16> to vector<16x128xbf16>
    %c0_2 = arith.constant 0 : index
    %c0_3 = arith.constant 0 : index
    %c0_4 = arith.constant 0 : index
    %c0_5 = arith.constant 0 : index
    %3 = vector.load %arg3[%c0_2, %c0_3, %c0_4, %c0_5] : memref<1x1x128x128xbf16, #tpu.memory_space<vmem>>, vector<1x1x128x128xbf16>
    %4 = vector.shape_cast %3 : vector<1x1x128x128xbf16> to vector<128x128xbf16>
    %cst_6 = arith.constant dense<0.000000e+00> : vector<16x128xf32>
    %5 = tpu.matmul %2, %4, %cst_6 {dimension_numbers = #tpu.dot_dimension_numbers<[1], [0], [0], [1], [0, 0, 1, 1], [], []>} : vector<16x128xbf16>, vector<128x128xbf16>, vector<16x128xf32> -> vector<16x128xf32>
    %6 = arith.addf %0, %5 : vector<16x128xf32>
    %c0_7 = arith.constant 0 : index
    %c0_8 = arith.constant 0 : index
    %c0_9 = arith.constant 0 : index
    %7 = vector.load %arg2[%c0_7, %c0_8, %c0_9] : memref<1x16x128xbf16, #tpu.memory_space<vmem>>, vector<1x16x128xbf16>
    %8 = vector.shape_cast %7 : vector<1x16x128xbf16> to vector<16x128xbf16>
    %c0_10 = arith.constant 0 : index
    %c0_11 = arith.constant 0 : index
    %c0_12 = arith.constant 0 : index
    %c0_13 = arith.constant 0 : index
    %9 = vector.load %arg4[%c0_10, %c0_11, %c0_12, %c0_13] : memref<1x1x128x128xbf16, #tpu.memory_space<vmem>>, vector<1x1x128x128xbf16>
    %10 = vector.shape_cast %9 : vector<1x1x128x128xbf16> to vector<128x128xbf16>
    %cst_14 = arith.constant dense<0.000000e+00> : vector<16x128xf32>
    %11 = tpu.matmul %8, %10, %cst_14 {dimension_numbers = #tpu.dot_dimension_numbers<[1], [0], [0], [1], [0, 0, 1, 1], [], []>} : vector<16x128xbf16>, vector<128x128xbf16>, vector<16x128xf32> -> vector<16x128xf32>
    %12 = arith.addf %6, %11 : vector<16x128xf32>
    %c0_15 = arith.constant 0 : index
    %c0_16 = arith.constant 0 : index
    %c0_17 = arith.constant 0 : index
    %13 = vector.load %arg5[%c0_15, %c0_16, %c0_17] : memref<1x1x128xf32, #tpu.memory_space<vmem>>, vector<1x1x128xf32>
    %14 = vector.shape_cast %13 : vector<1x1x128xf32> to vector<1x128xf32>
    %15 = vector.broadcast %14 : vector<1x128xf32> to vector<16x128xf32>
    %16 = arith.addf %12, %15 : vector<16x128xf32>
    %c0_18 = arith.constant 0 : index
    %c0_19 = arith.constant 0 : index
    %c0_20 = arith.constant 0 : index
    %17 = vector.load %arg6[%c0_18, %c0_19, %c0_20] : memref<1x16x128xf32, #tpu.memory_space<vmem>>, vector<1x16x128xf32>
    %18 = vector.shape_cast %17 : vector<1x16x128xf32> to vector<16x128xf32>
    %19 = vector.shape_cast %16 : vector<16x128xf32> to vector<1x16x128xf32>
    tpu.vector_store %arg6[%c0_18, %c0_19, %c0_20], %19 {strides = array<i32>} : memref<1x16x128xf32, #tpu.memory_space<vmem>>, vector<1x16x128xf32>,
    return
  }
  func.func @transform_0(%arg0: i32) -> (i32, i32, i32) {
    %c0_i32 = arith.constant 0 : i32
    %c0_i32_0 = arith.constant 0 : i32
    %c0_i32_1 = arith.constant 0 : i32
    return %arg0, %c0_i32, %c0_i32_0 : i32, i32, i32
  }
  func.func @transform_1(%arg0: i32) -> (i32, i32, i32) {
    %c0_i32 = arith.constant 0 : i32
    %c0_i32_0 = arith.constant 0 : i32
    %c0_i32_1 = arith.constant 0 : i32
    return %arg0, %c0_i32, %c0_i32_0 : i32, i32, i32
  }
  func.func @transform_2(%arg0: i32) -> (i32, i32, i32, i32) {
    %c0_i32 = arith.constant 0 : i32
    %c0_i32_0 = arith.constant 0 : i32
    %c0_i32_1 = arith.constant 0 : i32
    %c0_i32_2 = arith.constant 0 : i32
    %c0_i32_3 = arith.constant 0 : i32
    return %c0_i32, %c0_i32_0, %c0_i32_1, %c0_i32_2 : i32, i32, i32, i32
  }
  func.func @transform_3(%arg0: i32) -> (i32, i32, i32, i32) {
    %c0_i32 = arith.constant 0 : i32
    %c0_i32_0 = arith.constant 0 : i32
    %c0_i32_1 = arith.constant 0 : i32
    %c0_i32_2 = arith.constant 0 : i32
    %c0_i32_3 = arith.constant 0 : i32
    return %c0_i32, %c0_i32_0, %c0_i32_1, %c0_i32_2 : i32, i32, i32, i32
  }
  func.func @transform_4(%arg0: i32) -> (i32, i32, i32) {
    %c0_i32 = arith.constant 0 : i32
    %c0_i32_0 = arith.constant 0 : i32
    %c0_i32_1 = arith.constant 0 : i32
    %c0_i32_2 = arith.constant 0 : i32
    return %c0_i32, %c0_i32_0, %c0_i32_1 : i32, i32, i32
  }
  func.func @transform_5(%arg0: i32) -> (i32, i32, i32) {
    %c0_i32 = arith.constant 0 : i32
    %c0_i32_0 = arith.constant 0 : i32
    %c0_i32_1 = arith.constant 0 : i32
    return %arg0, %c0_i32, %c0_i32_0 : i32, i32, i32
  }
}

</mosaic_0001>

<bundles_post_ra>
// kernel: _lambda_.10
= control target key start
LH: loop header
LB: loop body
LE: loop exit
PB: predicated region body
PF: predicated region fallthrough
CT: control target
= control target key end

     0   :  { %s769_s12 = smov 0   ;;  %s916_s0 = inlined_call_operand.vmem [shape: f32[2,16,18,128], index: 0, kind: input, shape index: {}]   ;;  %s917_s1 = inlined_call_operand.vmem [shape: f32[1,1,128], index: 1, kind: input, shape index: {}]   ;;  %s918_s2 = inlined_call_operand.vmem [shape: f32[1,1,128], index: 2, kind: input, shape index: {}]   ;;  %s919_s3 = inlined_call_operand.vmem [shape: bf16[2,16,16,128], index: 3, kind: output, shape index: {}]  }
   0x1 LB: > { %s560_s13 = sadd.s32 4294967295, %s747_s12   ;;  %p564_p0 = scmp.ge.s32.totalorder %s747_s12, 1  ;;  %s747_s12 = sphi %s769_s12, %s13_s12  }
   0x2   : > { %p137_p1 = scmp.lt.s32.totalorder %s747_s12, 3 }
   0x4   : > { %p138_p2 = pnand %p564_p0, %p137_p1 }
   0x5   : > { %p161_p3 = scmp.lt.s32.totalorder (!%p138_p2), %s560_s13, 1  ;;  %v783_v0 = vld [vmem:[%s917_s1] ss:$0 sm:$0xff] (!%p138_p2) }
   0x6   : > { %141 = sbr.rel (%p138_p2) target bundleno = 61 (0x3d), region = 32  ;;  %v793_v1 = vld [vmem:[%s918_s2] ss:$0 sm:$0xff] (!%p138_p2) }
   0xd   : > { %s921_s13 = smov (!%p161_p3, %s560_s13), 1 }
   0xe   : > { %s732_s14 = smul.u32 384, %s921_s13  ;;  %s604_s22 = sshll.u32 %s921_s13, 7 }
   0xf   : > { %s826_s25 = scalar_lea.vmem %s919_s3, %s604_s22 }
  0x10   : > { %s788_s19 = scalar_lea.vmem %s916_s0, %s732_s14 }
  0x11   : > { %v171_v2 = vld [vmem:[%s788_s19] sm:$0xff]  ;;  %v172_v3 = vld [vmem:[%s788_s19 + $0x8] sm:$0xff]  ;;  %v173_v4 = vld [vmem:[%s788_s19 + $0x18] sm:$0xff] }
  0x12   : > { %v210_v5 = vmul.f32 %v783_v0, %v171_v2  ;;  %v211_v6 = vmul.f32 %v783_v0, %v172_v3  ;;  %v174_v7 = vld [vmem:[%s788_s19 + $0x20] sm:$0xff]  ;;  %v212_v8 = vmul.f32 %v783_v0, %v173_v4  ;;  %v175_v9 = vld [vmem:[%s788_s19 + $0x30] sm:$0xff]  ;;  %v176_v10 = vld [vmem:[%s788_s19 + $0x38] sm:$0xff] }
  0x13   : > { %v213_v11 = vmul.f32 %v783_v0, %v174_v7  ;;  %v214_v12 = vmul.f32 %v783_v0, %v175_v9  ;;  %v215_v13 = vmul.f32 %v783_v0, %v176_v10  ;;  %v177_v14 = vld [vmem:[%s788_s19 + $0x48] sm:$0xff]  ;;  %v178_v15 = vld [vmem:[%s788_s19 + $0x50] sm:$0xff]  ;;  %v179_v24 = vld [vmem:[%s788_s19 + $0x60] sm:$0xff] }
  0x14   : > { %v249_v16 = vadd.f32 %v793_v1, %v210_v5  ;;  %v250_v17 = vadd.f32 %v793_v1, %v211_v6  ;;  %v251_v18 = vadd.f32 %v793_v1, %v212_v8  ;;  %v216_v19 = vmul.f32 %v783_v0, %v177_v14  ;;  %v180_v25 = vld [vmem:[%s788_s19 + $0x68] sm:$0xff]  ;;  %v181_v38 = vld [vmem:[%s788_s19 + $0x78] sm:$0xff]  ;;  %v182_v43 = vld [vmem:[%s788_s19 + $0x80] sm:$0xff] }
  0x15   : > { %v252_v20 = vadd.f32 %v793_v1, %v213_v11  ;;  %v253_v21 = vadd.f32 %v793_v1, %v214_v12  ;;  %v254_v22 = vadd.f32 %v793_v1, %v215_v13  ;;  %v217_v23 = vmul.f32 %v783_v0, %v178_v15  ;;  %v183_v44 = vld [vmem:[%s788_s19 + $0x90] sm:$0xff]  ;;  %v184_v49 = vld [vmem:[%s788_s19 + $0x98] sm:$0xff]  ;;  %v185_v50 = vld [vmem:[%s788_s19 + $0xa8] sm:$0xff] }
  0x16   : > { %v281_v26 = vmul.f32 0.1, %v249_v16  ;;  %v282_v27 = vmul.f32 0.1, %v250_v17  ;;  %v283_v28 = vmul.f32 0.1, %v251_v18  ;;  %v255_v29 = vadd.f32 %v793_v1, %v216_v19 }
  0x17   : > { %v284_v30 = vmul.f32 0.1, %v252_v20  ;;  %v285_v31 = vmul.f32 0.1, %v253_v21  ;;  %v286_v32 = vmul.f32 0.1, %v254_v22  ;;  %v256_v33 = vadd.f32 %v793_v1, %v217_v23 }
  0x18   : > { %v313_v34 = vmax.f32 %v249_v16, %v281_v26  ;;  %v314_v35 = vmax.f32 %v250_v17, %v282_v27  ;;  %v315_v36 = vmax.f32 %v251_v18, %v283_v28  ;;  %v287_v37 = vmul.f32 0.1, %v255_v29  ;;  %v186_v59 = vld [vmem:[%s788_s19 + $0xb0] sm:$0xff]  ;;  %v187_v10 = vld [vmem:[%s788_s19 + $0xc0] sm:$0xff]  ;;  %v188_v15 = vld [vmem:[%s788_s19 + $0xc8] sm:$0xff] }
  0x19   : > { %v316_v39 = vmax.f32 %v252_v20, %v284_v30  ;;  %v317_v40 = vmax.f32 %v253_v21, %v285_v31  ;;  %v318_v41 = vmax.f32 %v254_v22, %v286_v32  ;;  %v288_v42 = vmul.f32 0.1, %v256_v33  ;;  %v189_v20 = vld [vmem:[%s788_s19 + $0xd8] sm:$0xff]  ;;  %v190_v21 = vld [vmem:[%s788_s19 + $0xe0] sm:$0xff]  ;;  %v191_v26 = vld [vmem:[%s788_s19 + $0xf0] sm:$0xff] }
  0x1a   : > { %v640_v45 = vpack.c.bf16 %v314_v35, %v313_v34  ;;  %v319_v46 = vmax.f32 %v255_v29, %v287_v37  ;;  %v218_v47 = vmul.f32 %v783_v0, %v179_v24  ;;  %v219_v48 = vmul.f32 %v783_v0, %v180_v25  ;;  %v192_v31 = vld [vmem:[%s788_s19 + $0xf8] sm:$0xff] }
  0x1b   : > { %v645_v51 = vpack.c.bf16 %v316_v39, %v315_v36  ;;  %v650_v52 = vpack.c.bf16 %v318_v41, %v317_v40  ;;  %v320_v53 = vmax.f32 %v256_v33, %v288_v42  ;;  %v220_v54 = vmul.f32 %v783_v0, %v181_v38  ;;  %v193_v36 = vld [vmem:[%s788_s19 + $0x108] sm:$0xff] }
  0x1c   : > { %641 = vst [vmem:[%s826_s25] sm:$0xff] %v640_v45   ;;  %v257_v55 = vadd.f32 %v793_v1, %v218_v47  ;;  %v258_v56 = vadd.f32 %v793_v1, %v219_v48  ;;  %v221_v57 = vmul.f32 %v783_v0, %v182_v43  ;;  %v222_v58 = vmul.f32 %v783_v0, %v183_v44  ;;  %v194_v45 = vld [vmem:[%s788_s19 + $0x110] sm:$0xff] }
  0x1d   : > { %717 = vst [vmem:[%s826_s25 + $0x8] sm:$0xff] %v645_v51   ;;  %718 = vst [vmem:[%s826_s25 + $0x10] sm:$0xff] %v650_v52   ;;  %v655_v60 = vpack.c.bf16 %v320_v53, %v319_v46  ;;  %v259_v61 = vadd.f32 %v793_v1, %v220_v54  ;;  %v223_v62 = vmul.f32 %v783_v0, %v184_v49 }
  0x1e   : > { %v224_v63 = vmul.f32 %v783_v0, %v185_v50  ;;  %v289_v2 = vmul.f32 0.1, %v257_v55  ;;  %v290_v3 = vmul.f32 0.1, %v258_v56  ;;  %v260_v4 = vadd.f32 %v793_v1, %v221_v57  ;;  %v195_v50 = vld [vmem:[%s788_s19 + $0x120] sm:$0xff] }
  0x1f   : > { %v261_v5 = vadd.f32 %v793_v1, %v222_v58  ;;  %719 = vst [vmem:[%s826_s25 + $0x18] sm:$0xff] %v655_v60   ;;  %v291_v6 = vmul.f32 0.1, %v259_v61  ;;  %v262_v7 = vadd.f32 %v793_v1, %v223_v62  ;;  %v225_v8 = vmul.f32 %v783_v0, %v186_v59  ;;  %v196_v59 = vld [vmem:[%s788_s19 + $0x128] sm:$0xff] }
  0x20   : > { %v263_v9 = vadd.f32 %v793_v1, %v224_v63  ;;  %v321_v11 = vmax.f32 %v257_v55, %v289_v2  ;;  %v322_v12 = vmax.f32 %v258_v56, %v290_v3  ;;  %v292_v13 = vmul.f32 0.1, %v260_v4  ;;  %v197_v2 = vld [vmem:[%s788_s19 + $0x138] sm:$0xff]  ;;  %v198_v3 = vld [vmem:[%s788_s19 + $0x140] sm:$0xff] }
  0x21   : > { %v293_v14 = vmul.f32 0.1, %v261_v5  ;;  %v323_v16 = vmax.f32 %v259_v61, %v291_v6  ;;  %v294_v17 = vmul.f32 0.1, %v262_v7  ;;  %v264_v18 = vadd.f32 %v793_v1, %v225_v8  ;;  %v199_v8 = vld [vmem:[%s788_s19 + $0x150] sm:$0xff] }
  0x22   : > { %v295_v19 = vmul.f32 0.1, %v263_v9  ;;  %v660_v22 = vpack.c.bf16 %v322_v12, %v321_v11  ;;  %v324_v23 = vmax.f32 %v260_v4, %v292_v13  ;;  %v226_v25 = vmul.f32 %v783_v0, %v187_v10  ;;  %v200_v13 = vld [vmem:[%s788_s19 + $0x158] sm:$0xff] }
  0x23   : > { %v325_v24 = vmax.f32 %v261_v5, %v293_v14  ;;  %v326_v27 = vmax.f32 %v262_v7, %v294_v17  ;;  %v296_v28 = vmul.f32 0.1, %v264_v18  ;;  %v227_v30 = vmul.f32 %v783_v0, %v188_v15 }
  0x24   : > { %v327_v29 = vmax.f32 %v263_v9, %v295_v19  ;;  %720 = vst [vmem:[%s826_s25 + $0x20] sm:$0xff] %v660_v22   ;;  %v665_v32 = vpack.c.bf16 %v324_v23, %v323_v16  ;;  %v265_v33 = vadd.f32 %v793_v1, %v226_v25  ;;  %v228_v34 = vmul.f32 %v783_v0, %v189_v20 }
  0x25   : > { %v229_v35 = vmul.f32 %v783_v0, %v190_v21  ;;  %v670_v37 = vpack.c.bf16 %v326_v27, %v325_v24  ;;  %v328_v38 = vmax.f32 %v264_v18, %v296_v28  ;;  %v266_v39 = vadd.f32 %v793_v1, %v227_v30  ;;  %v201_v18 = vld [vmem:[%s788_s19 + $0x168] sm:$0xff]  ;;  %v202_v27 = vld [vmem:[%s788_s19 + $0x170] sm:$0xff] }
  0x26   : > { %v230_v40 = vmul.f32 %v783_v0, %v191_v26  ;;  %721 = vst [vmem:[%s826_s25 + $0x28] sm:$0xff] %v665_v32   ;;  %v297_v41 = vmul.f32 0.1, %v265_v33  ;;  %v267_v42 = vadd.f32 %v793_v1, %v228_v34  ;;  %v231_v44 = vmul.f32 %v783_v0, %v192_v31 }
  0x27   : > { %v268_v43 = vadd.f32 %v793_v1, %v229_v35  ;;  %722 = vst [vmem:[%s826_s25 + $0x30] sm:$0xff] %v670_v37   ;;  %v675_v46 = vpack.c.bf16 %v328_v38, %v327_v29  ;;  %v298_v47 = vmul.f32 0.1, %v266_v39  ;;  %v232_v49 = vmul.f32 %v783_v0, %v193_v36 }
  0x28   : > { %v269_v48 = vadd.f32 %v793_v1, %v230_v40  ;;  %v329_v51 = vmax.f32 %v265_v33, %v297_v41  ;;  %v299_v52 = vmul.f32 0.1, %v267_v42  ;;  %v270_v54 = vadd.f32 %v793_v1, %v231_v44 }
  0x29   : > { %v300_v53 = vmul.f32 0.1, %v268_v43  ;;  %723 = vst [vmem:[%s826_s25 + $0x38] sm:$0xff] %v675_v46   ;;  %v330_v55 = vmax.f32 %v266_v39, %v298_v47  ;;  %v233_v57 = vmul.f32 %v783_v0, %v194_v45  ;;  %v271_v58 = vadd.f32 %v793_v1, %v232_v49 }
  0x2a   : > { %v301_v56 = vmul.f32 0.1, %v269_v48  ;;  %v331_v60 = vmax.f32 %v267_v42, %v299_v52  ;;  %v302_v62 = vmul.f32 0.1, %v270_v54  ;;  %v234_v63 = vmul.f32 %v783_v0, %v195_v50 }
  0x2b   : > { %v332_v61 = vmax.f32 %v268_v43, %v300_v53  ;;  %v680_v4 = vpack.c.bf16 %v330_v55, %v329_v51  ;;  %v272_v6 = vadd.f32 %v793_v1, %v233_v57  ;;  %v303_v7 = vmul.f32 0.1, %v271_v58 }
  0x2c   : > { %v333_v5 = vmax.f32 %v269_v48, %v301_v56  ;;  %v334_v10 = vmax.f32 %v270_v54, %v302_v62  ;;  %v235_v11 = vmul.f32 %v783_v0, %v196_v59  ;;  %v273_v12 = vadd.f32 %v793_v1, %v234_v63 }
  0x2d   : > { %v685_v9 = vpack.c.bf16 %v332_v61, %v331_v60  ;;  %724 = vst [vmem:[%s826_s25 + $0x40] sm:$0xff] %v680_v4   ;;  %v304_v14 = vmul.f32 0.1, %v272_v6  ;;  %v335_v15 = vmax.f32 %v271_v58, %v303_v7  ;;  %v236_v16 = vmul.f32 %v783_v0, %v197_v2 }
  0x2e   : > { %v237_v17 = vmul.f32 %v783_v0, %v198_v3  ;;  %v690_v19 = vpack.c.bf16 %v334_v10, %v333_v5  ;;  %v274_v20 = vadd.f32 %v793_v1, %v235_v11  ;;  %v305_v21 = vmul.f32 0.1, %v273_v12 }
  0x2f   : > { %725 = vst [vmem:[%s826_s25 + $0x48] sm:$0xff] %v685_v9   ;;  %v238_v22 = vmul.f32 %v783_v0, %v199_v8  ;;  %v336_v23 = vmax.f32 %v272_v6, %v304_v14  ;;  %v275_v24 = vadd.f32 %v793_v1, %v236_v16  ;;  %v239_v26 = vmul.f32 %v783_v0, %v200_v13 }
  0x30   : > { %v276_v25 = vadd.f32 %v793_v1, %v237_v17  ;;  %726 = vst [vmem:[%s826_s25 + $0x50] sm:$0xff] %v690_v19   ;;  %v306_v28 = vmul.f32 0.1, %v274_v20  ;;  %v337_v29 = vmax.f32 %v273_v12, %v305_v21  ;;  %v240_v31 = vmul.f32 %v783_v0, %v201_v18 }
  0x31   : > { %v277_v30 = vadd.f32 %v793_v1, %v238_v22  ;;  %v695_v32 = vpack.c.bf16 %v336_v23, %v335_v15  ;;  %v307_v33 = vmul.f32 0.1, %v275_v24  ;;  %v278_v35 = vadd.f32 %v793_v1, %v239_v26 }
  0x32   : > { %v308_v34 = vmul.f32 0.1, %v276_v25  ;;  %v338_v36 = vmax.f32 %v274_v20, %v306_v28  ;;  %v241_v38 = vmul.f32 %v783_v0, %v202_v27  ;;  %v279_v39 = vadd.f32 %v793_v1, %v240_v31 }
  0x33   : > { %v309_v37 = vmul.f32 0.1, %v277_v30  ;;  %727 = vst [vmem:[%s826_s25 + $0x58] sm:$0xff] %v695_v32   ;;  %v339_v40 = vmax.f32 %v275_v24, %v307_v33  ;;  %v310_v42 = vmul.f32 0.1, %v278_v35 }
  0x34   : > { %v340_v41 = vmax.f32 %v276_v25, %v308_v34  ;;  %v700_v43 = vpack.c.bf16 %v338_v36, %v337_v29  ;;  %v280_v45 = vadd.f32 %v793_v1, %v241_v38  ;;  %v311_v46 = vmul.f32 0.1, %v279_v39 }
  0x35   : > { %v341_v44 = vmax.f32 %v277_v30, %v309_v37  ;;  %v342_v48 = vmax.f32 %v278_v35, %v310_v42 }
  0x36   : > { %v705_v47 = vpack.c.bf16 %v340_v41, %v339_v40  ;;  %728 = vst [vmem:[%s826_s25 + $0x60] sm:$0xff] %v700_v43   ;;  %v312_v49 = vmul.f32 0.1, %v280_v45  ;;  %v343_v50 = vmax.f32 %v279_v39, %v311_v46 }
  0x37   : > { %v710_v0 = vpack.c.bf16 %v342_v48, %v341_v44 }
  0x38   : > { %729 = vst [vmem:[%s826_s25 + $0x68] sm:$0xff] %v705_v47   ;;  %v344_v51 = vmax.f32 %v280_v45, %v312_v49 }
  0x39   : > { %730 = vst [vmem:[%s826_s25 + $0x70] sm:$0xff] %v710_v0  }
  0x3a   : > { %v715_v52 = vpack.c.bf16 %v344_v51, %v343_v50 }
  0x3c   : > { %731 = vst [vmem:[%s826_s25 + $0x78] sm:$0xff] %v715_v52  }
  0x3d PF: > { %s13_s12 = sadd.s32 1, %s747_s12  }
  0x3e   : > { %p10_p4 = scmp.ge.s32.totalorder %s13_s12, 4  }
  0x40   :  { %12 = sbr.rel (!%p10_p4) target bundleno = 1 (0x1), region = 62 }

// kernel: _lambda_.11
= control target key start
LH: loop header
LB: loop body
LE: loop exit
PB: predicated region body
PF: predicated region fallthrough
CT: control target
= control target key end

     0   :  { %s334_s6 = smov 0   ;;  %s373_s0 = inlined_call_operand.vmem [shape: bf16[2,8,16,256], index: 0, kind: input, shape index: {}]   ;;  %s374_s1 = inlined_call_operand.vmem [shape: bf16[2,8,8,128], index: 1, kind: output, shape index: {}]  }
   0x1 LB: > { %s268_s7 = sadd.s32 4294967295, %s322_s6   ;;  %p272_p0 = scmp.ge.s32.totalorder %s322_s6, 1  ;;  %s322_s6 = sphi %s334_s6, %s11_s6  }
   0x2   : > { %p87_p1 = scmp.lt.s32.totalorder %s322_s6, 3 }
   0x4   : > { %p88_p2 = pnand %p272_p0, %p87_p1 }
   0x5   : > { %p107_p3 = scmp.lt.s32.totalorder (!%p88_p2), %s268_s7, 1 }
   0x6   : > { %91 = sbr.rel (%p88_p2) target bundleno = 34 (0x22), region = 24 }
   0xd   : > { %s376_s7 = smov (!%p107_p3, %s268_s7), 1 }
   0xe   : > { %s279_s8 = sshll.u32 %s376_s7, 7  ;;  %s280_s12 = sshll.u32 %s376_s7, 5 }
   0xf   : > { %s348_s11 = scalar_lea.vmem %s373_s0, %s279_s8  ;;  %s116_s15 = scalar_lea.vmem %s374_s1, %s280_s12 }
  0x10   : > { %v117_v0 = vld [vmem:[%s348_s11] sm:$0xff]  ;;  %v118_v1 = vld [vmem:[%s348_s11 + $0x8] sm:$0xff]  ;;  %v119_v2 = vld [vmem:[%s348_s11 + $0x10] sm:$0xff] }
  0x11   : > { %v120_v3 = vld [vmem:[%s348_s11 + $0x18] sm:$0xff]  ;;  %v141_v4 = vrot.slane %v117_v0, 4  ;;  %v142_v5 = vrot.slane %v119_v2, 4  ;;  %v173_v6 = vrot.slane %v118_v1, 4  ;;  %v121_v7 = vld [vmem:[%s348_s11 + $0x20] sm:$0xff]  ;;  %v122_v8 = vld [vmem:[%s348_s11 + $0x28] sm:$0xff] }
  0x12   : > { %v174_v9 = vrot.slane %v120_v3, 4  ;;  %v123_v10 = vld [vmem:[%s348_s11 + $0x30] sm:$0xff]  ;;  %v124_v11 = vld [vmem:[%s348_s11 + $0x38] sm:$0xff]  ;;  %v143_v12 = vrot.slane %v121_v7, 4  ;;  %v175_v13 = vrot.slane %v122_v8, 4  ;;  %v125_v14 = vld [vmem:[%s348_s11 + $0x40] sm:$0xff] }
  0x13   : > { %v157_v15 = vmax.bf16 %v141_v4, %v117_v0  ;;  %v158_v16 = vmax.bf16 %v142_v5, %v119_v2  ;;  %v189_v17 = vmax.bf16 %v173_v6, %v118_v1  ;;  %v144_v18 = vrot.slane %v123_v10, 4  ;;  %v126_v19 = vld [vmem:[%s348_s11 + $0x48] sm:$0xff]  ;;  %v127_v20 = vld [vmem:[%s348_s11 + $0x50] sm:$0xff]  ;;  %v128_v25 = vld [vmem:[%s348_s11 + $0x58] sm:$0xff] }
  0x14   : > { %v190_v21 = vmax.bf16 %v174_v9, %v120_v3  ;;  %v159_v22 = vmax.bf16 %v143_v12, %v121_v7  ;;  %v176_v23 = vrot.slane %v124_v11, 4  ;;  %v191_v24 = vmax.bf16 %v175_v13, %v122_v8  ;;  %v129_v26 = vld [vmem:[%s348_s11 + $0x60] sm:$0xff]  ;;  %v131_v31 = vld [vmem:[%s348_s11 + $0x70] sm:$0xff]  ;;  %v130_v36 = vld [vmem:[%s348_s11 + $0x68] sm:$0xff] }
  0x15   : > { %v197_v27 = vmax.bf16 %v189_v17, %v157_v15  ;;  %v160_v28 = vmax.bf16 %v144_v18, %v123_v10  ;;  %v145_v29 = vrot.slane %v125_v14, 4  ;;  %v146_v30 = vrot.slane %v127_v20, 4  ;;  %v132_v37 = vld [vmem:[%s348_s11 + $0x78] sm:$0xff] }
  0x16   : > { %v198_v32 = vmax.bf16 %v190_v21, %v158_v16  ;;  %v192_v33 = vmax.bf16 %v176_v23, %v124_v11  ;;  %v199_v34 = vmax.bf16 %v191_v24, %v159_v22  ;;  %v177_v35 = vrot.slane %v126_v19, 4 }
  0x17   : > { %v161_v38 = vmax.bf16 %v145_v29, %v125_v14  ;;  %v162_v39 = vmax.bf16 %v146_v30, %v127_v20  ;;  %v178_v40 = vrot.slane %v128_v25, 4  ;;  %v147_v41 = vrot.slane %v129_v26, 4 }
  0x18   : > { %v301_v42 = vcombine.low %v197_v27, %v198_v32  ;;  %v200_v43 = vmax.bf16 %v192_v33, %v160_v28  ;;  %v193_v44 = vmax.bf16 %v177_v35, %v126_v19  ;;  %v148_v45 = vrot.slane %v131_v31, 4 }
  0x19   : > { %v194_v46 = vmax.bf16 %v178_v40, %v128_v25  ;;  %v163_v47 = vmax.bf16 %v147_v41, %v129_v26  ;;  %v179_v48 = vrot.slane %v130_v36, 4  ;;  %v180_v49 = vrot.slane %v132_v37, 4 }
  0x1a   : > { %285 = vst [vmem:[%s116_s15] sm:$0xff] %v301_v42   ;;  %v302_v50 = vcombine.low %v199_v34, %v200_v43  ;;  %v201_v51 = vmax.bf16 %v193_v44, %v161_v38  ;;  %v164_v52 = vmax.bf16 %v148_v45, %v131_v31 }
  0x1b   : > { %v202_v53 = vmax.bf16 %v194_v46, %v162_v39  ;;  %v195_v54 = vmax.bf16 %v179_v48, %v130_v36  ;;  %v196_v55 = vmax.bf16 %v180_v49, %v132_v37 }
  0x1c   : > { %303 = vst [vmem:[%s116_s15 + $0x8] sm:$0xff] %v302_v50  }
  0x1d   : > { %v304_v56 = vcombine.low %v201_v51, %v202_v53  ;;  %v203_v57 = vmax.bf16 %v195_v54, %v163_v47  ;;  %v204_v58 = vmax.bf16 %v196_v55, %v164_v52 }
  0x1f   : > { %305 = vst [vmem:[%s116_s15 + $0x10] sm:$0xff] %v304_v56   ;;  %v306_v59 = vcombine.low %v203_v57, %v204_v58 }
  0x21   : > { %307 = vst [vmem:[%s116_s15 + $0x18] sm:$0xff] %v306_v59  }
  0x22 PF: > { %s11_s6 = sadd.s32 1, %s322_s6  }
  0x23   : > { %p8_p4 = scmp.ge.s32.totalorder %s11_s6, 4  }
  0x25   :  { %10 = sbr.rel (!%p8_p4) target bundleno = 1 (0x1), region = 54 }

// kernel: _lambda_.13
= control target key start
LH: loop header
LB: loop body
LE: loop exit
PB: predicated region body
PF: predicated region fallthrough
CT: control target
= control target key end

     0   :  { %s370_s12 = smov 0   ;;  %s397_s0 = inlined_call_operand.vmem [shape: f32[2,8,10,128], index: 0, kind: input, shape index: {}]   ;;  %s398_s1 = inlined_call_operand.vmem [shape: f32[1,1,128], index: 1, kind: input, shape index: {}]   ;;  %s399_s2 = inlined_call_operand.vmem [shape: f32[1,1,128], index: 2, kind: input, shape index: {}]   ;;  %s400_s3 = inlined_call_operand.vmem [shape: bf16[2,8,8,128], index: 3, kind: output, shape index: {}]  }
   0x1 LB: > { %s296_s13 = sadd.s32 4294967295, %s348_s12   ;;  %p300_p0 = scmp.ge.s32.totalorder %s348_s12, 1  ;;  %s348_s12 = sphi %s370_s12, %s13_s12  }
   0x2   : > { %p137_p1 = scmp.lt.s32.totalorder %s348_s12, 3 }
   0x4   : > { %p138_p2 = pnand %p300_p0, %p137_p1 }
   0x5   : > { %p161_p3 = scmp.lt.s32.totalorder (!%p138_p2), %s296_s13, 1  ;;  %v305_v0 = vld [vmem:[%s398_s1] ss:$0 sm:$0xff] (!%p138_p2) }
   0x6   : > { %141 = sbr.rel (%p138_p2) target bundleno = 31 (0x1f), region = 32  ;;  %v306_v1 = vld [vmem:[%s399_s2] ss:$0 sm:$0xff] (!%p138_p2) }
   0xd   : > { %s402_s13 = smov (!%p161_p3, %s296_s13), 1 }
   0xe   : > { %s309_s14 = sshll.u32 %s402_s13, 7  ;;  %s310_s22 = sshll.u32 %s402_s13, 5 }
   0xf   : > { %s165_s19 = scalar_lea.vmem %s397_s0, %s309_s14  ;;  %s170_s25 = scalar_lea.vmem %s400_s3, %s310_s22 }
  0x10   : > { %v171_v2 = vld [vmem:[%s165_s19] sm:$0xff]  ;;  %v172_v3 = vld [vmem:[%s165_s19 + $0x10] sm:$0xff] }
  0x11   : > { %v173_v4 = vld [vmem:[%s165_s19 + $0x20] sm:$0xff]  ;;  %v186_v5 = vmul.f32 %v305_v0, %v171_v2  ;;  %v187_v6 = vmul.f32 %v305_v0, %v172_v3  ;;  %v174_v7 = vld [vmem:[%s165_s19 + $0x30] sm:$0xff] }
  0x12   : > { %v188_v8 = vmul.f32 %v305_v0, %v173_v4  ;;  %v175_v9 = vld [vmem:[%s165_s19 + $0x40] sm:$0xff]  ;;  %v176_v10 = vld [vmem:[%s165_s19 + $0x50] sm:$0xff]  ;;  %v189_v11 = vmul.f32 %v305_v0, %v174_v7 }
  0x13   : > { %v190_v12 = vmul.f32 %v305_v0, %v175_v9  ;;  %v191_v13 = vmul.f32 %v305_v0, %v176_v10  ;;  %v177_v14 = vld [vmem:[%s165_s19 + $0x60] sm:$0xff]  ;;  %v178_v15 = vld [vmem:[%s165_s19 + $0x70] sm:$0xff]  ;;  %v201_v16 = vadd.f32 %v306_v1, %v186_v5  ;;  %v202_v17 = vadd.f32 %v306_v1, %v187_v6 }
  0x14   : > { %v203_v18 = vadd.f32 %v306_v1, %v188_v8  ;;  %v192_v19 = vmul.f32 %v305_v0, %v177_v14  ;;  %v204_v20 = vadd.f32 %v306_v1, %v189_v11  ;;  %v193_v23 = vmul.f32 %v305_v0, %v178_v15 }
  0x15   : > { %v205_v21 = vadd.f32 %v306_v1, %v190_v12  ;;  %v206_v22 = vadd.f32 %v306_v1, %v191_v13  ;;  %v209_v24 = vmul.f32 0.1, %v201_v16  ;;  %v210_v25 = vmul.f32 0.1, %v202_v17 }
  0x16   : > { %v211_v26 = vmul.f32 0.1, %v203_v18  ;;  %v207_v27 = vadd.f32 %v306_v1, %v192_v19  ;;  %v212_v28 = vmul.f32 0.1, %v204_v20  ;;  %v208_v31 = vadd.f32 %v306_v1, %v193_v23 }
  0x17   : > { %v213_v29 = vmul.f32 0.1, %v205_v21  ;;  %v214_v30 = vmul.f32 0.1, %v206_v22  ;;  %v217_v32 = vmax.f32 %v201_v16, %v209_v24  ;;  %v218_v33 = vmax.f32 %v202_v17, %v210_v25 }
  0x18   : > { %v219_v34 = vmax.f32 %v203_v18, %v211_v26  ;;  %v215_v35 = vmul.f32 0.1, %v207_v27  ;;  %v220_v36 = vmax.f32 %v204_v20, %v212_v28  ;;  %v216_v39 = vmul.f32 0.1, %v208_v31 }
  0x19   : > { %v221_v37 = vmax.f32 %v205_v21, %v213_v29  ;;  %v222_v38 = vmax.f32 %v206_v22, %v214_v30  ;;  %v314_v40 = vpack.c.bf16 %v218_v33, %v217_v32 }
  0x1a   : > { %v223_v41 = vmax.f32 %v207_v27, %v215_v35  ;;  %v319_v42 = vpack.c.bf16 %v220_v36, %v219_v34  ;;  %v224_v44 = vmax.f32 %v208_v31, %v216_v39 }
  0x1b   : > { %v324_v43 = vpack.c.bf16 %v222_v38, %v221_v37  ;;  %315 = vst [vmem:[%s170_s25] sm:$0xff] %v314_v40  }
  0x1c   : > { %331 = vst [vmem:[%s170_s25 + $0x8] sm:$0xff] %v319_v42   ;;  %v329_v45 = vpack.c.bf16 %v224_v44, %v223_v41 }
  0x1d   : > { %332 = vst [vmem:[%s170_s25 + $0x10] sm:$0xff] %v324_v43  }
  0x1e   : > { %333 = vst [vmem:[%s170_s25 + $0x18] sm:$0xff] %v329_v45  }
  0x1f PF: > { %s13_s12 = sadd.s32 1, %s348_s12  }
  0x20   : > { %p10_p4 = scmp.ge.s32.totalorder %s13_s12, 4  }
  0x22   :  { %12 = sbr.rel (!%p10_p4) target bundleno = 1 (0x1), region = 62 }

// kernel: _lambda_.14
= control target key start
LH: loop header
LB: loop body
LE: loop exit
PB: predicated region body
PF: predicated region fallthrough
CT: control target
= control target key end

     0   :  { %s259_s6 = smov 0   ;;  %s276_s0 = inlined_call_operand.vmem [shape: bf16[2,4,8,256], index: 0, kind: input, shape index: {}]   ;;  %s277_s1 = inlined_call_operand.vmem [shape: bf16[2,4,4,128], index: 1, kind: output, shape index: {}]  }
   0x1 LB: > { %s216_s7 = sadd.s32 4294967295, %s247_s6   ;;  %p220_p0 = scmp.ge.s32.totalorder %s247_s6, 1  ;;  %s247_s6 = sphi %s259_s6, %s11_s6  }
   0x2   : > { %p87_p1 = scmp.lt.s32.totalorder %s247_s6, 3 }
   0x4   : > { %p88_p2 = pnand %p220_p0, %p87_p1 }
   0x5   : > { %p107_p3 = scmp.lt.s32.totalorder (!%p88_p2), %s216_s7, 1 }
   0x6   : > { %91 = sbr.rel (%p88_p2) target bundleno = 27 (0x1b), region = 24 }
   0xd   : > { %s279_s7 = smov (!%p107_p3, %s216_s7), 1 }
   0xe   : > { %s231_s8 = sshll.u32 %s279_s7, 5  ;;  %s232_s12 = sshll.u32 %s279_s7, 3 }
   0xf   : > { %s111_s11 = scalar_lea.vmem %s276_s0, %s231_s8  ;;  %s116_s15 = scalar_lea.vmem %s277_s1, %s232_s12 }
  0x10   : > { %v117_v0 = vld [vmem:[%s111_s11] sm:$0xff]  ;;  %v118_v1 = vld [vmem:[%s111_s11 + $0x8] sm:$0xff]  ;;  %v119_v2 = vld [vmem:[%s111_s11 + $0x10] sm:$0xff] }
  0x11   : > { %v125_v3 = vrot.slane %v117_v0, 4  ;;  %v126_v4 = vrot.slane %v118_v1, 4  ;;  %v127_v5 = vrot.slane %v119_v2, 4  ;;  %v120_v6 = vld [vmem:[%s111_s11 + $0x18] sm:$0xff] }
  0x12   : > { %v128_v7 = vrot.slane %v120_v6, 4 }
  0x13   : > { %v133_v8 = vmax.bf16 %v125_v3, %v117_v0  ;;  %v134_v9 = vmax.bf16 %v126_v4, %v118_v1  ;;  %v135_v10 = vmax.bf16 %v127_v5, %v119_v2 }
  0x14   : > { %v136_v11 = vmax.bf16 %v128_v7, %v120_v6 }
  0x15   : > { %v225_v12 = vrot.slane %v133_v8, 10  ;;  %v226_v13 = vrot.slane %v134_v9, 10  ;;  %v227_v14 = vrot.slane %v135_v10, 10 }
  0x16   : > { %v228_v15 = vrot.slane %v136_v11, 10 }
  0x17   : > { %v153_v16 = vmax.bf16 %v225_v12, %v133_v8  ;;  %v154_v17 = vmax.bf16 %v226_v13, %v134_v9  ;;  %v155_v18 = vmax.bf16 %v227_v14, %v135_v10 }
  0x18   : > { %v156_v19 = vmax.bf16 %v228_v15, %v136_v11 }
  0x19   : > { %157 = vst [vmem:[%s116_s15] sm:$0x3] %v153_v16  ;;  %158 = vst [vmem:[%s116_s15 + $0x2] sm:$0x3] %v154_v17 }
  0x1a   : > { %159 = vst [vmem:[%s116_s15 + $0x4] sm:$0x3] %v155_v18  ;;  %160 = vst [vmem:[%s116_s15 + $0x6] sm:$0x3] %v156_v19 }
  0x1b PF: > { %s11_s6 = sadd.s32 1, %s247_s6  }
  0x1c   : > { %p8_p4 = scmp.ge.s32.totalorder %s11_s6, 4  }
  0x1e   :  { %10 = sbr.rel (!%p8_p4) target bundleno = 1 (0x1), region = 54 }

// kernel: _lambda_.9
= control target key start
LH: loop header
LB: loop body
LE: loop exit
PB: predicated region body
PF: predicated region fallthrough
CT: control target
= control target key end

     0   :  { %s6411_s15 = smov 0   ;;  %s8651_s0 = inlined_call_operand.vmem [shape: bf16[2,342,128], index: 0, kind: input, shape index: {}]   ;;  %s8652_s1 = inlined_call_operand.vmem [shape: bf16[3,3,128,128], index: 1, kind: input, shape index: {}]   ;;  %s8653_s2 = inlined_call_operand.vmem [shape: f32[2,288,128], index: 2, kind: output, shape index: {0}]   ;;  %s8654_s3 = inlined_call_operand.vmem [shape: f32[2,1,128], index: 3, kind: output, shape index: {1}]   ;;  %s8655_s4 = inlined_call_operand.vmem [shape: f32[2,1,128], index: 4, kind: output, shape index: {2}]  }
   0x1 LB: > { %s4842_s16 = sadd.s32 4294967295, %s6384_s15   ;;  %p4846_p0 = scmp.ge.s32.totalorder %s6384_s15, 1  ;;  %s6384_s15 = sphi %s6411_s15, %s15_s15  }
   0x2   : > { %p167_p1 = scmp.lt.s32.totalorder %s6384_s15, 3 }
   0x4   : > { %p168_p2 = pnand %p4846_p0, %p167_p1 }
   0x6   : > { %171 = sbr.rel (%p168_p2) target bundleno = 618 (0x26a), region = 28 }
   0xd   : > { %v6201_v0 = vld [vmem:[%s8652_s1 + $0x40] sm:$0xff]   ;;  %p199_p3 = scmp.lt.s32.totalorder %s4842_s16, 1  ;;  %v6203_v2 = vld [vmem:[%s8652_s1 + $0x48] sm:$0xff]   ;;  %v6205_v4 = vld [vmem:[%s8652_s1 + $0x50] sm:$0xff]   ;;  %vm379_vm0 = vsmask.f32 7424 }
   0xe   : > { %v6202_v1 = vld [vmem:[%s8652_s1 + $0x100] sm:$0xff]   ;;  %5347 = vmatprep.subr.bf16.mxu1 %v6201_v0  ;;  %v6204_v3 = vld [vmem:[%s8652_s1 + $0x108] sm:$0xff]   ;;  %v6206_v5 = vld [vmem:[%s8652_s1 + $0x110] sm:$0xff]   ;;  %vm1836_vm1 = vsmask.f32 6400  ;;  %vm2307_vm2 = vcmask 1045504  }
   0xf   : > { %5555 = vmatprep.subr.bf16.mxu0 %v6202_v1  ;;  %5348 = vmatpush3.bf16.msra.mxu1 %v6201_v0  ;;  %s8949_s16 = smov (!%p199_p3, %s4842_s16), 1  ;;  %v6207_v6 = vld [vmem:[%s8652_s1 + $0x58] sm:$0xff]   ;;  %v6209_v8 = vld [vmem:[%s8652_s1 + $0x60] sm:$0xff]   ;;  %v6211_v10 = vld [vmem:[%s8652_s1 + $0x68] sm:$0xff]   ;;  %vm1035_vm3 = vcmask 1046528   ;;  %vm3579_vm5 = vcmask 1044480  }
  0x10   : > { %5556 = vmatpush3.bf16.msra.mxu0 %v6202_v1  ;;  %5349 = vmatprep.subr.bf16.mxu1 %v6203_v2  ;;  %v6208_v7 = vld [vmem:[%s8652_s1 + $0x118] sm:$0xff]   ;;  %s6119_s7 = smul.u32 172, %s8949_s16  ;;  %v6210_v9 = vld [vmem:[%s8652_s1 + $0x120] sm:$0xff]   ;;  %v6212_v11 = vld [vmem:[%s8652_s1 + $0x128] sm:$0xff]   ;;  %vm3108_vm4 = vsmask.f32 5376  ;;  %s211_s24 = scalar_lea.vmem %s8654_s3, %s8949_s16 }
  0x11   : > { %5557 = vmatprep.subr.bf16.mxu0 %v6204_v3  ;;  %v6213_v17 = vld [vmem:[%s8652_s1 + $0x70] sm:$0xff]   ;;  %v6215_v32 = vld [vmem:[%s8652_s1 + $0x78] sm:$0xff]   ;;  %v6222_v48 = vld [vmem:[%s8652_s1] sm:$0xff]   ;;  %s214_s27 = scalar_lea.vmem %s8655_s4, %s8949_s16 }
  0x12   : > { %s6455_s14 = scalar_lea.vmem %s8651_s0, %s6119_s7  ;;  %v6214_v20 = vld [vmem:[%s8652_s1 + $0x130] sm:$0xff]   ;;  %v6216_v36 = vld [vmem:[%s8652_s1 + $0x138] sm:$0xff]   ;;  %v6224_v54 = vld [vmem:[%s8652_s1 + $0x140] sm:$0xff]  }
  0x13   : > { %5350 = vmatpush3.bf16.msra.mxu1 %v6203_v2  ;;  %v216_v12 = vld [vmem:[%s6455_s14] sm:$0xf]  ;;  %v217_v13 = vld [vmem:[%s6455_s14 + $0x4] sm:$0xf]  ;;  %v6468_v15 = vld [vmem:[%s6455_s14 + $0x8] sm:$0xff]  }
  0x14   : > { %5558 = vmatpush3.bf16.msra.mxu0 %v6204_v3  ;;  %5351 = vmatprep.subr.bf16.mxu1 %v6205_v4  ;;  %v6465_v14 = vcombine.low %v216_v12, %v217_v13  ;;  %v6471_v16 = vld [vmem:[%s6455_s14 + $0x10] sm:$0xff]   ;;  %v1352_v18 = vld [vmem:[%s6455_s14 + $0x8] sm:$0xe]  ;;  %v6478_v19 = vld [vmem:[%s6455_s14 + $0xc] sm:$0xf]  ;;  %v388_v23 = vshll.u32 %v6468_v15, 16 }
  0x15   : > { %5559 = vmatprep.subr.bf16.mxu0 %v6206_v5  ;;  %v6487_v24 = vcombine.low %v1352_v18, %v6478_v19  ;;  %v6490_v25 = vld [vmem:[%s6455_s14 + $0x10] sm:$0xff]   ;;  %v1846_v26 = vshrl.u32 %v6471_v16, 16  ;;  %v1849_v27 = vshll.u32 %v6471_v16, 16  ;;  %v392_v40 = vshrl.u32 %v6468_v15, 16  ;;  %v6505_v41 = vld [vmem:[%s6455_s14 + $0x18] sm:$0xff]   ;;  %v6522_v57 = vld [vmem:[%s6455_s14 + $0x20] sm:$0xff]  }
  0x16   : > { %v381_v21 = vshrl.u32 %v6465_v14, 16  ;;  %v383_v22 = vshll.u32 %v6465_v14, 16  ;;  %v390_v29 = vrot.slane %v388_v23, 1  ;;  %v396_v35 = vshll.u32 %v6490_v25, 16  ;;  %v6519_v55 = vld [vmem:[%s6455_s14 + $0x18] sm:$0xff]   ;;  %v6526_v60 = vld [vmem:[%s6455_s14 + $0x20] sm:$0xff]  }
  0x17   : > { %5352 = vmatpush3.bf16.msra.mxu1 %v6205_v4  ;;  %v1838_v30 = vshrl.u32 %v6487_v24, 16  ;;  %v1841_v31 = vshll.u32 %v6487_v24, 16  ;;  %v1848_v33 = vrot.slane %v1846_v26, 1  ;;  %v1851_v34 = vrot.slane %v1849_v27, 2  ;;  %v6530_v62 = vld [vmem:[%s6455_s14 + $0x28] sm:$0xff]  }
  0x18   : > { %5560 = vmatpush3.bf16.msra.mxu0 %v6206_v5  ;;  %5353 = vmatprep.subr.bf16.mxu1 %v6207_v6  ;;  %v385_v28 = vrot.slane %v383_v22, 1  ;;  %v1855_v45 = vshrl.u32 %v6505_v41, 16  ;;  %v1858_v46 = vshll.u32 %v6505_v41, 16  ;;  %v398_v47 = vrot.slane %v396_v35, 1  ;;  %v6550_v22 = vld [vmem:[%s6455_s14 + $0x28] sm:$0xff]  }
  0x19   : > { %5561 = vmatprep.subr.bf16.mxu0 %v6208_v7  ;;  %v1840_v38 = vrot.slane %v1838_v30, 1  ;;  %v1843_v39 = vrot.slane %v1841_v31, 2  ;;  %v1852_v42 = vor.u32 %v1851_v34, %v1848_v33  ;;  %v400_v49 = vshrl.u32 %v6490_v25, 16  ;;  %v6559_v31 = vld [vmem:[%s6455_s14 + $0x30] sm:$0xff]   ;;  %v6563_v33 = vld [vmem:[%s6455_s14 + $0x38] sm:$0xff]  }
  0x1a   : > { %v386_v37 = vor.u32 %v385_v28, %v381_v21  ;;  %v394_v51 = vor.u32 %v392_v40, %v390_v29  ;;  %v1857_v52 = vrot.slane %v1855_v45, 1  ;;  %v1860_v53 = vrot.slane %v1858_v46, 2  ;;  %v6230_v21 = vld [vmem:[%s8652_s1 + $0x150] sm:$0xff]  }
  0x1b   : > { %5354 = vmatpush3.bf16.msra.mxu1 %v6207_v6  ;;  %v1844_v44 = vor.u32 %v1843_v39, %v1840_v38  ;;  %v402_v58 = vor.u32 %v400_v49, %v398_v47  ;;  %v404_v59 = vshll.u32 %v6519_v55, 16  ;;  %v408_v61 = vshrl.u32 %v6519_v55, 16  ;;  %v6555_v28 = vld [vmem:[%s6455_s14 + $0x30] sm:$0xff]  }
  0x1c   : > { %5562 = vmatpush3.bf16.msra.mxu0 %v6208_v7  ;;  %5355 = vmatprep.subr.bf16.mxu1 %v6209_v8  ;;  %v391_v43 = vsel %vm379_vm0, %v386_v37, %v390_v29  ;;  %v1861_v56 = vor.u32 %v1860_v53, %v1857_v52  ;;  %v399_v63 = vsel %vm379_vm0, %v394_v51, %v398_v47  ;;  %v1864_v1 = vshrl.u32 %v6522_v57, 16  ;;  %v6225_v7 = vld [vmem:[%s8652_s1 + $0x148] sm:$0xff]   ;;  %v6238_v46 = vld [vmem:[%s8652_s1 + $0x10] sm:$0xff]   ;;  %v6237_v53 = vld [vmem:[%s8652_s1 + $0x160] sm:$0xff]  }
  0x1d   : > { %5563 = vmatprep.subr.bf16.mxu0 %v6210_v9  ;;  %5363 = vmatprep.mubr.bf16.mxu1 %v391_v43  ;;  %v1853_v50 = vsel %vm1836_vm1, %v1844_v44, %v1852_v42  ;;  %v1867_v2 = vshll.u32 %v6522_v57, 16  ;;  %v406_v3 = vrot.slane %v404_v59, 1  ;;  %v412_v4 = vshll.u32 %v6526_v60, 16  ;;  %v6232_v43 = vld [vmem:[%s8652_s1 + $0x158] sm:$0xff]  }
  0x1e   : > { %5571 = vmatprep.mubr.bf16.mxu0 %v1853_v50  ;;  %v1862_v0 = vsel %vm1836_vm1, %v1852_v42, %v1861_v56  ;;  %v1873_v5 = vshrl.u32 %v6530_v62, 16  ;;  %v1876_v6 = vshll.u32 %v6530_v62, 16  ;;  %v416_v23 = vshrl.u32 %v6526_v60, 16 }
  0x1f   : > { %5356 = vmatpush3.bf16.msra.mxu1 %v6209_v8  ;;  %v1866_v8 = vrot.slane %v1864_v1, 1  ;;  %v414_v18 = vrot.slane %v412_v4, 1  ;;  %v420_v30 = vshll.u32 %v6550_v22, 16  ;;  %v1885_v37 = vshll.u32 %v6555_v28, 16  ;;  %v6592_v1 = vld [vmem:[%s6455_s14 + $0x40] sm:$0xff]  }
  0x20   : > { %5564 = vmatpush3.bf16.msra.mxu0 %v6210_v9  ;;  %5357 = vmatprep.subr.bf16.mxu1 %v6211_v10  ;;  %v1869_v9 = vrot.slane %v1867_v2, 2  ;;  %v1875_v12 = vrot.slane %v1873_v5, 1  ;;  %v428_v39 = vshll.u32 %v6559_v31, 16  ;;  %v1891_v40 = vshrl.u32 %v6563_v33, 16 }
  0x21   : > { %5565 = vmatprep.subr.bf16.mxu0 %v6212_v11  ;;  %v418_v29 = vor.u32 %v416_v23, %v414_v18  ;;  %v422_v38 = vrot.slane %v420_v30, 1  ;;  %v1894_v42 = vshll.u32 %v6563_v33, 16  ;;  %v1887_v45 = vrot.slane %v1885_v37, 2  ;;  %v6245_v30 = vld [vmem:[%s8652_s1 + $0x18] sm:$0xff]   ;;  %v2286_v37 = vld [vmem:[%s6455_s14 + $0x8] sm:$0xc] }
  0x22   : > { %v1870_v13 = vor.u32 %v1869_v9, %v1866_v8  ;;  %v430_v51 = vrot.slane %v428_v39, 1  ;;  %v2309_v39 = vrot.slane %v6471_v16, 2 }
  0x23   : > { %5358 = vmatpush3.bf16.msra.mxu1 %v6211_v10  ;;  %v6231_v10 = vld [vmem:[%s8652_s1 + $0x8] sm:$0xff]   ;;  %v423_v47 = vsel %vm379_vm0, %v418_v29, %v422_v38  ;;  %v1896_v52 = vrot.slane %v1894_v42, 2  ;;  %v6244_v29 = vld [vmem:[%s8652_s1 + $0x170] sm:$0xff]  }
  0x24   : > { %5566 = vmatpush3.bf16.msra.mxu0 %v6212_v11  ;;  %5359 = vmatprep.subr.bf16.mxu1 %v6213_v17  ;;  %v407_v11 = vsel %vm379_vm0, %v402_v58, %v406_v3  ;;  %v1871_v26 = vsel %vm1836_vm1, %v1861_v56, %v1870_v13  ;;  %v432_v56 = vshrl.u32 %v6559_v31, 16 }
  0x25   : > { %5567 = vmatprep.subr.bf16.mxu0 %v6214_v20 }
  0x27   : > { %5360 = vmatpush3.bf16.msra.mxu1 %v6213_v17  ;;  %v410_v17 = vor.u32 %v408_v61, %v406_v3  ;;  %v6588_v61 = vld [vmem:[%s6455_s14 + $0x40] sm:$0xff]   ;;  %v6239_v3 = vld [vmem:[%s8652_s1 + $0x168] sm:$0xff]  }
  0x28   : > { %5568 = vmatpush3.bf16.msra.mxu0 %v6214_v20  ;;  %5361 = vmatprep.subr.bf16.mxu1 %v6215_v32  ;;  %v1878_v20 = vrot.slane %v1876_v6, 2  ;;  %v1900_v4 = vshrl.u32 %v6588_v61, 16  ;;  %v1903_v5 = vshll.u32 %v6588_v61, 16 }
  0x29   : > { %5569 = vmatprep.subr.bf16.mxu0 %v6216_v36  ;;  %v415_v34 = vsel %vm379_vm0, %v410_v17, %v414_v18 }
  0x2a   : > { %v1879_v27 = vor.u32 %v1878_v20, %v1875_v12  ;;  %v1905_v12 = vrot.slane %v1903_v5, 2  ;;  %v2313_v5 = vrot.slane %v6522_v57, 2 }
  0x2b   : > { %5362 = vmatpush3.bf16.msra.mxu1 %v6215_v32  ;;  %v424_v32 = vshrl.u32 %v6550_v22, 16 }
  0x2c   : > { %5570 = vmatpush3.bf16.msra.mxu0 %v6216_v36  ;;  %5399 = vmatprep.subr.bf16.mxu1 %v6222_v48  ;;  %v1880_v35 = vsel %vm1836_vm1, %v1870_v13, %v1879_v27  ;;  %v1882_v36 = vshrl.u32 %v6555_v28, 16 }
  0x2d   : > { %5607 = vmatprep.subr.bf16.mxu0 %v6224_v54  ;;  %v426_v50 = vor.u32 %v424_v32, %v422_v38  ;;  %v5009_v38 = vcombine.low %v2286_v37, %v6478_v19  ;;  %v6261_v37 = vld [vmem:[%s8652_s1 + $0x190] sm:$0xff]  }
  0x2e   : > { %5364 = vmatmul.mubr.bf16.vlgmr.msra.gmra.mrb[0].mxu1 %v399_v63  ;;  %v1884_v44 = vrot.slane %v1882_v36, 1  ;;  %v434_v63 = vor.u32 %v432_v56, %v430_v51  ;;  %v448_v36 = vshrl.u32 %v6592_v1, 16 }
  0x2f   : > { %5572 = vmatmul.mubr.bf16.vlgmr.msra.gmra.mrb[0].mxu0 %v1862_v0  ;;  %5400 = vmatpush3.bf16.msra.mxu1 %v6222_v48  ;;  %v1893_v48 = vrot.slane %v1891_v40, 1  ;;  %v431_v2 = vsel %vm379_vm0, %v426_v50, %v430_v51  ;;  %v6626_v40 = vld [vmem:[%s6455_s14 + $0x50] sm:$0xff]   ;;  %v2308_v19 = vrot.slane %v5009_v38, 2 }
  0x30   : > { %5608 = vmatpush3.bf16.msra.mxu0 %v6224_v54  ;;  %5367 = vmatprep.mubr.bf16.mxu1 %v407_v11  ;;  %v1888_v49 = vor.u32 %v1887_v45, %v1884_v44  ;;  %v6583_v54 = vld [vmem:[%s6455_s14 + $0x38] sm:$0xff]   ;;  %v1902_v11 = vrot.slane %v1900_v4, 1  ;;  %v464_v51 = vshrl.u32 %v6626_v40, 16 }
  0x31   : > { %5609 = vmatprep.subr.bf16.mxu0 %v6225_v7  ;;  %5401 = vmatprep.subr.bf16.mxu1 %v6231_v10  ;;  %v1897_v59 = vor.u32 %v1896_v52, %v1893_v48  ;;  %v436_v0 = vshll.u32 %v6583_v54, 16  ;;  %v440_v6 = vshrl.u32 %v6583_v54, 16  ;;  %v460_v48 = vshll.u32 %v6626_v40, 16 }
  0x32   : > { %5575 = vmatprep.mubr.bf16.mxu0 %v1871_v26  ;;  %v1889_v58 = vsel %vm1836_vm1, %v1879_v27, %v1888_v49 }
  0x33   : > { %5402 = vmatpush3.bf16.msra.mxu1 %v6231_v10  ;;  %v1898_v8 = vsel %vm1836_vm1, %v1888_v49, %v1897_v59  ;;  %v438_v9 = vrot.slane %v436_v0, 1  ;;  %v444_v10 = vshll.u32 %v6592_v1, 16  ;;  %v6246_v49 = vld [vmem:[%s8652_s1 + $0x178] sm:$0xff]   ;;  %v462_v56 = vrot.slane %v460_v48, 1 }
  0x34   : > { %5610 = vmatpush3.bf16.msra.mxu0 %v6225_v7  ;;  %5403 = vmatprep.subr.bf16.mxu1 %v6238_v46  ;;  %v6602_v7 = vld [vmem:[%s6455_s14 + $0x48] sm:$0xff]   ;;  %v2311_v0 = vrot.slane %v6505_v41, 2  ;;  %v6267_v48 = vld [vmem:[%s8652_s1 + $0x198] sm:$0xff]  }
  0x35   : > { %5611 = vmatprep.subr.bf16.mxu0 %v6230_v21  ;;  %v1909_v13 = vshrl.u32 %v6602_v7, 16  ;;  %v1912_v17 = vshll.u32 %v6602_v7, 16  ;;  %v439_v18 = vsel %vm379_vm0, %v434_v63, %v438_v9  ;;  %v446_v20 = vrot.slane %v444_v10, 1 }
  0x36   : > { %5368 = vmatmul.mubr.bf16.gmra.mrb[4].mxu1 %v415_v34  ;;  %v442_v23 = vor.u32 %v440_v6, %v438_v9  ;;  %v466_v4 = vor.u32 %v464_v51, %v462_v56  ;;  %v6253_v6 = vld [vmem:[%s8652_s1 + $0x180] sm:$0xff]   ;;  %v2312_v57 = vsel %vm2307_vm2, %v2309_v39, %v2311_v0 }
  0x37   : > { %5576 = vmatmul.mubr.bf16.gmra.mrb[4].mxu0 %v1880_v35  ;;  %5371 = vmatprep.mubr.bf16.mxu1 %v423_v47  ;;  %v1911_v26 = vrot.slane %v1909_v13, 1  ;;  %v1914_v27 = vrot.slane %v1912_v17, 2  ;;  %v6619_v35 = vld [vmem:[%s6455_s14 + $0x48] sm:$0xff]   ;;  %v6635_v47 = vld [vmem:[%s6455_s14 + $0x58] sm:$0xff]   ;;  %v6258_v17 = vld [vmem:[%s8652_s1 + $0x30] sm:$0xff]  }
  0x38   : > { %5612 = vmatpush3.bf16.msra.mxu0 %v6230_v21  ;;  %5404 = vmatpush3.bf16.msra.mxu1 %v6238_v46  ;;  %v1906_v21 = vor.u32 %v1905_v12, %v1902_v11  ;;  %v447_v42 = vsel %vm379_vm0, %v442_v23, %v446_v20  ;;  %v452_v44 = vshll.u32 %v6619_v35, 16  ;;  %v456_v45 = vshrl.u32 %v6619_v35, 16  ;;  %v6250_v46 = vld [vmem:[%s8652_s1 + $0x20] sm:$0xff]   ;;  %v6676_v23 = vld [vmem:[%s6455_s14 + $0x70] sm:$0xff]  }
  0x39   : > { %5613 = vmatprep.subr.bf16.mxu0 %v6232_v43  ;;  %5579 = vmatprep.mubr.bf16.mxu0 %v1889_v58  ;;  %v6616_v34 = vor.u32 %v1914_v27, %v1911_v26  ;;  %v468_v52 = vshll.u32 %v6635_v47, 16  ;;  %v6647_v58 = vld [vmem:[%s6455_s14 + $0x60] sm:$0xff]   ;;  %v472_v10 = vshrl.u32 %v6635_v47, 16  ;;  %v2315_v27 = vrot.slane %v6530_v62, 2 }
  0x3a   : > { %v1907_v32 = vsel %vm1836_vm1, %v1897_v59, %v1906_v21  ;;  %5405 = vmatprep.subr.bf16.mxu1 %v6245_v30  ;;  %v454_v50 = vrot.slane %v452_v44, 1  ;;  %v476_v41 = vshll.u32 %v6647_v58, 16  ;;  %v480_v11 = vshrl.u32 %v6647_v58, 16 }
  0x3b   : > { %v1916_v16 = vsel %vm1836_vm1, %v1906_v21, %v6616_v34  ;;  %v492_v38 = vshll.u32 %v6676_v23, 16  ;;  %v496_v44 = vshrl.u32 %v6676_v23, 16 }
  0x3c   : > { %5614 = vmatpush3.bf16.msra.mxu0 %v6232_v43  ;;  %5406 = vmatpush3.bf16.msra.mxu1 %v6245_v30  ;;  %v450_v43 = vor.u32 %v448_v36, %v446_v20  ;;  %v458_v63 = vor.u32 %v456_v45, %v454_v50  ;;  %v6257_v20 = vld [vmem:[%s8652_s1 + $0x188] sm:$0xff]   ;;  %v478_v21 = vrot.slane %v476_v41, 1  ;;  %v2317_v36 = vrot.slane %v6555_v28, 2  ;;  %v6264_v41 = vld [vmem:[%s6455_s14 + $0x50] sm:$0xff]  }
  0x3d   : > { %5615 = vmatprep.subr.bf16.mxu0 %v6237_v53  ;;  %5407 = vmatprep.subr.bf16.mxu1 %v6250_v46 }
  0x3e   : > { %5372 = vmatmul.mubr.bf16.gmra.mrb[8].mxu1 %v431_v2  ;;  %v455_v59 = vsel %vm379_vm0, %v450_v43, %v454_v50  ;;  %v470_v2 = vrot.slane %v468_v52, 1  ;;  %v463_v9 = vsel %vm379_vm0, %v458_v63, %v462_v56  ;;  %v2316_v43 = vsel %vm2307_vm2, %v2313_v5, %v2315_v27 }
  0x3f   : > { %5580 = vmatmul.mubr.bf16.gmra.mrb[8].mxu0 %v1898_v8  ;;  %5375 = vmatprep.mubr.bf16.mxu1 %v439_v18  ;;  %v6659_v8 = vld [vmem:[%s6455_s14 + $0x68] sm:$0xff]   ;;  %v2314_v18 = vsel %vm2307_vm2, %v2311_v0, %v2313_v5  ;;  %v2319_v50 = vrot.slane %v6563_v33, 2  ;;  %v2321_v56 = vrot.slane %v6588_v61, 2  ;;  %v6271_v61 = vld [vmem:[%s8652_s1 + $0x1a0] sm:$0xff]  }
  0x40   : > { %5616 = vmatpush3.bf16.msra.mxu0 %v6237_v53  ;;  %5583 = vmatprep.mubr.bf16.mxu0 %v1907_v32  ;;  %v2310_v53 = vsel %vm2307_vm2, %v2308_v19, %v2309_v39  ;;  %v471_v12 = vsel %vm379_vm0, %v466_v4, %v470_v2  ;;  %v484_v13 = vshll.u32 %v6659_v8, 16  ;;  %v474_v26 = vor.u32 %v472_v10, %v470_v2  ;;  %v6680_v32 = vld [vmem:[%s6455_s14 + $0x78] sm:$0xff]  }
  0x41   : > { %5617 = vmatprep.subr.bf16.mxu0 %v6239_v3  ;;  %5408 = vmatpush3.bf16.msra.mxu1 %v6250_v46  ;;  %v488_v62 = vshrl.u32 %v6659_v8, 16  ;;  %v500_v45 = vshll.u32 %v6680_v32, 16  ;;  %v2318_v46 = vsel %vm2307_vm2, %v2315_v27, %v2317_v36  ;;  %v494_v19 = vrot.slane %v492_v38, 1  ;;  %v6279_v27 = vld [vmem:[%s8652_s1 + $0x1b0] sm:$0xff]  }
  0x42   : > { %v486_v30 = vrot.slane %v484_v13, 1  ;;  %v479_v39 = vsel %vm379_vm0, %v474_v26, %v478_v21  ;;  %v504_v0 = vshrl.u32 %v6680_v32, 16  ;;  %v2320_v2 = vsel %vm2307_vm2, %v2317_v36, %v2319_v50 }
  0x43   : > { %v498_v51 = vor.u32 %v496_v44, %v494_v19  ;;  %v502_v52 = vrot.slane %v500_v45, 1  ;;  %v6270_v45 = vld [vmem:[%s6455_s14 + $0x68] sm:$0xff]  }
  0x44   : > { %5618 = vmatpush3.bf16.msra.mxu0 %v6239_v3  ;;  %v6254_v3 = vld [vmem:[%s8652_s1 + $0x28] sm:$0xff]  }
  0x45   : > { %5619 = vmatprep.subr.bf16.mxu0 %v6244_v29  ;;  %5409 = vmatprep.subr.bf16.mxu1 %v6254_v3 }
  0x46   : > { %5376 = vmatmul.mubr.bf16.gmra.mrb[12].mxu1 %v447_v42  ;;  %v6263_v42 = vld [vmem:[%s8652_s1 + $0x38] sm:$0xff]  }
  0x47   : > { %5584 = vmatmul.mubr.bf16.gmra.mrb[12].mxu0 %v1916_v16  ;;  %5379 = vmatprep.mubr.bf16.mxu1 %v455_v59  ;;  %v6698_v16 = vld [vmem:[%s6455_s14 + $0x80] sm:$0xff]  }
  0x48   : > { %5620 = vmatpush3.bf16.msra.mxu0 %v6244_v29  ;;  %5623 = vmatprep.mubr.bf16.mxu0 %v2310_v53  ;;  %v482_v29 = vor.u32 %v480_v11, %v478_v21  ;;  %v6705_v53 = vld [vmem:[%s6455_s14 + $0x88] sm:$0xff]   ;;  %v6711_v59 = vld [vmem:[%s8652_s1 + $0x80] sm:$0xff]   ;;  %v508_v63 = vshll.u32 %v6698_v16, 16  ;;  %v512_v4 = vshrl.u32 %v6698_v16, 16  ;;  %v506_v11 = vor.u32 %v504_v0, %v502_v52  ;;  %v6278_v0 = vld [vmem:[%s8652_s1 + $0x90] sm:$0xff]  }
  0x49   : > { %5621 = vmatprep.subr.bf16.mxu0 %v6246_v49  ;;  %5410 = vmatpush3.bf16.msra.mxu1 %v6254_v3  ;;  %v503_v3 = vsel %vm379_vm0, %v498_v51, %v502_v52  ;;  %v516_v5 = vshll.u32 %v6705_v53, 16  ;;  %v6273_v51 = vld [vmem:[%s6455_s14 + $0x78] sm:$0xff]  }
  0x4a   : > { %5411 = vmatprep.subr.bf16.mxu1 %v6258_v17  ;;  %v487_v28 = vsel %vm379_vm0, %v482_v29, %v486_v30  ;;  %v510_v10 = vrot.slane %v508_v63, 1 }
  0x4c   : > { %5622 = vmatpush3.bf16.msra.mxu0 %v6246_v49  ;;  %v490_v49 = vor.u32 %v488_v62, %v486_v30  ;;  %v514_v13 = vor.u32 %v512_v4, %v510_v10  ;;  %v511_v21 = vsel %vm379_vm0, %v506_v11, %v510_v10  ;;  %v6283_v62 = vld [vmem:[%s8652_s1 + $0x1b8] sm:$0xff]   ;;  %v6287_v10 = vld [vmem:[%s8652_s1 + $0xa0] sm:$0xff]  }
  0x4d   : > { %5659 = vmatprep.subr.bf16.mxu0 %v6253_v6  ;;  %5412 = vmatpush3.bf16.msra.mxu1 %v6258_v17  ;;  %v518_v17 = vrot.slane %v516_v5, 1  ;;  %v6282_v4 = vld [vmem:[%s8652_s1 + $0x98] sm:$0xff]   ;;  %v2624_v5 = vld [vmem:[%s6455_s14 + $0x10] sm:$0xc] }
  0x4e   : > { %5380 = vmatmul.mubr.bf16.gmra.mrb[16].mxu1 %v463_v9  ;;  %5413 = vmatprep.subr.bf16.mxu1 %v6263_v42  ;;  %v495_v33 = vsel %vm379_vm0, %v490_v49, %v494_v19  ;;  %v6727_v9 = vld [vmem:[%s6455_s14 + $0x90] ss:$0 sps:$4 sm:$0x11]   ;;  %v2331_v49 = vrot.slane %v6270_v45, 2  ;;  %v6302_v45 = vld [vmem:[%s8652_s1 + $0x1d8] sm:$0xff]  }
  0x4f   : > { %5624 = vmatmul.mubr.bf16.vlgmr.msra.gmra.mrb[0].mxu0 %v2312_v57  ;;  %5383 = vmatprep.mubr.bf16.mxu1 %v471_v12  ;;  %v6275_v57 = vld [vmem:[%s8652_s1 + $0x1a8] sm:$0xff]   ;;  %v2323_v12 = vrot.slane %v6602_v7, 2  ;;  %v524_v26 = vshll.u32 %v6727_v9, 16  ;;  %v519_v30 = vsel %vm379_vm0, %v514_v13, %v518_v17  ;;  %v6266_v7 = vld [vmem:[%s6455_s14 + $0x58] sm:$0xff]   ;;  %v6272_v19 = vld [vmem:[%s6455_s14 + $0x70] sm:$0xff]  }
  0x50   : > { %5627 = vmatprep.mubr.bf16.mxu0 %v2314_v18  ;;  %5660 = vmatpush3.bf16.msra.mxu0 %v6253_v6  ;;  %v2322_v6 = vsel %vm2307_vm2, %v2319_v50, %v2321_v56  ;;  %v2325_v18 = vrot.slane %v6264_v41, 2  ;;  %v2333_v50 = vrot.slane %v6272_v19, 2  ;;  %v6281_v11 = vld [vmem:[%s6455_s14 + $0x98] ss:$0 sps:$4 sm:$0x33]   ;;  %v6291_v13 = vld [vmem:[%s8652_s1 + $0xa8] sm:$0xff]  }
  0x51   : > { %5661 = vmatprep.subr.bf16.mxu0 %v6257_v20  ;;  %5414 = vmatpush3.bf16.msra.mxu1 %v6263_v42  ;;  %v2324_v29 = vsel %vm2307_vm2, %v2321_v56, %v2323_v12  ;;  %v2327_v42 = vrot.slane %v6266_v7, 2  ;;  %v6274_v56 = vld [vmem:[%s8652_s1 + $0x88] sm:$0xff]  }
  0x52   : > { %5451 = vmatprep.subr.bf16.mxu1 %v6711_v59  ;;  %v2326_v36 = vsel %vm2307_vm2, %v2323_v12, %v2325_v18  ;;  %v2334_v63 = vsel %vm2307_vm2, %v2331_v49, %v2333_v50 }
  0x53   : > { %v2328_v44 = vsel %vm2307_vm2, %v2325_v18, %v2327_v42 }
  0x54   : > { %5662 = vmatpush3.bf16.msra.mxu0 %v6257_v20  ;;  %v520_v20 = vshrl.u32 %v6705_v53, 16 }
  0x55   : > { %5663 = vmatprep.subr.bf16.mxu0 %v6261_v37 }
  0x56   : > { %5384 = vmatmul.mubr.bf16.gmra.mrb[20].mxu1 %v479_v39  ;;  %v522_v38 = vor.u32 %v520_v20, %v518_v17  ;;  %v526_v39 = vrot.slane %v524_v26, 1  ;;  %v2343_v17 = vrot.slane %v6281_v11, 2 }
  0x57   : > { %5628 = vmatmul.mubr.bf16.gmra.mrb[4].mxu0 %v2316_v43  ;;  %5387 = vmatprep.mubr.bf16.mxu1 %v487_v28 }
  0x58   : > { %5631 = vmatprep.mubr.bf16.mxu0 %v2318_v46  ;;  %5664 = vmatpush3.bf16.msra.mxu0 %v6261_v37  ;;  %v6268_v37 = vld [vmem:[%s6455_s14 + $0x60] sm:$0xff]   ;;  %v527_v28 = vsel %vm379_vm0, %v522_v38, %v526_v39  ;;  %v6829_v38 = vld [vmem:[%s6455_s14 + $0x30] sm:$0xff]   ;;  %v6294_v39 = vld [vmem:[%s8652_s1 + $0x1c8] sm:$0xff]  }
  0x59   : > { %5665 = vmatprep.subr.bf16.mxu0 %v6267_v48  ;;  %v2329_v43 = vrot.slane %v6268_v37, 2 }
  0x5b   : > { %v2330_v46 = vsel %vm2307_vm2, %v2327_v42, %v2329_v43  ;;  %v2332_v52 = vsel %vm2307_vm2, %v2329_v43, %v2331_v49  ;;  %v6298_v43 = vld [vmem:[%s8652_s1 + $0x1d0] sm:$0xff]  }
  0x5c   : > { %5666 = vmatpush3.bf16.msra.mxu0 %v6267_v48  ;;  %v6755_v48 = vld [vmem:[%s8652_s1 + $0x1c0] sm:$0xff]  }
  0x5d   : > { %5667 = vmatprep.subr.bf16.mxu0 %v6271_v61 }
  0x5e   : > { %5388 = vmatmul.mubr.bf16.gmra.mrb[24].mxu1 %v495_v33  ;;  %v6276_v33 = vld [vmem:[%s6455_s14 + $0x80] sm:$0xff]  }
  0x5f   : > { %5632 = vmatmul.mubr.bf16.gmra.mrb[8].mxu0 %v2320_v2  ;;  %5391 = vmatprep.mubr.bf16.mxu1 %v503_v3  ;;  %v6277_v2 = vld [vmem:[%s6455_s14 + $0x88] sm:$0xff]  }
  0x60   : > { %5635 = vmatprep.mubr.bf16.mxu0 %v2322_v6  ;;  %5668 = vmatpush3.bf16.msra.mxu0 %v6271_v61  ;;  %v2337_v61 = vrot.slane %v6276_v33, 2  ;;  %v6783_v6 = vld [vmem:[%s6455_s14 + $0x14] sm:$0xf] }
  0x61   : > { %5669 = vmatprep.subr.bf16.mxu0 %v6275_v57  ;;  %v6315_v33 = vld [vmem:[%s8652_s1 + $0x1f0] sm:$0xff]  }
  0x64   : > { %5670 = vmatpush3.bf16.msra.mxu0 %v6275_v57 }
  0x65   : > { %5671 = vmatprep.subr.bf16.mxu0 %v6279_v27 }
  0x66   : > { %5392 = vmatmul.mubr.bf16.gmra.mrb[28].mxu1 %v511_v21  ;;  %v6295_v21 = vld [vmem:[%s8652_s1 + $0xb0] sm:$0xff]  }
  0x67   : > { %5636 = vmatmul.mubr.bf16.gmra.mrb[12].mxu0 %v2324_v29  ;;  %5395 = vmatprep.mubr.bf16.mxu1 %v519_v30  ;;  %v6299_v29 = vld [vmem:[%s8652_s1 + $0xb8] sm:$0xff]  }
  0x68   : > { %5639 = vmatprep.mubr.bf16.mxu0 %v2326_v36  ;;  %5672 = vmatpush3.bf16.msra.mxu0 %v6279_v27  ;;  %v6809_v27 = vld [vmem:[%s6455_s14 + $0x20] sm:$0xff]  }
  0x69   : > { %5673 = vmatprep.subr.bf16.mxu0 %v6283_v62  ;;  %v2774_v30 = vrot.slane %v6809_v27, 2  ;;  %v6825_v36 = vld [vmem:[%s8652_s1 + $0xc0] sm:$0xff]  }
  0x6c   : > { %5674 = vmatpush3.bf16.msra.mxu0 %v6283_v62  ;;  %v2778_v62 = vrot.slane %v6829_v38, 2 }
  0x6d   : > { %5711 = vmatprep.subr.bf16.mxu0 %v6755_v48 }
  0x6e   : > { %5396 = vmatmul.mubr.bf16.gmra.mrb[32].mxu1 %v527_v28 }
  0x6f   : > { %5640 = vmatmul.mubr.bf16.gmra.mrb[16].mxu0 %v2328_v44  ;;  %5415 = vmatprep.mubr.bf16.mxu1 %v6465_v14  ;;  %v2335_v14 = vrot.slane %v6273_v51, 2  ;;  %v6849_v44 = vld [vmem:[%s6455_s14 + $0x40] sm:$0xff]   ;;  %v6311_v51 = vld [vmem:[%s8652_s1 + $0x1e8] sm:$0xff]  }
  0x70   : > { %5643 = vmatprep.mubr.bf16.mxu0 %v2330_v46  ;;  %v2782_v46 = vrot.slane %v6849_v44, 2 }
  0x71   : > { %v2336_v3 = vsel %vm2307_vm2, %v2333_v50, %v2335_v14  ;;  %v6867_v50 = vld [vmem:[%s6455_s14 + $0x50] sm:$0xff]  }
  0x76   : > { %5416 = vmatmul.mubr.bf16.vlgmr.msra.gmra.mrb[0].mxu1 %v6468_v15  ;;  %v2338_v15 = vsel %vm2307_vm2, %v2335_v14, %v2337_v61 }
  0x77   : > { %5644 = vmatmul.mubr.bf16.gmra.mrb[20].mxu0 %v2332_v52  ;;  %5452 = vmatpush3.bf16.msra.mxu1 %v6711_v59  ;;  %v2339_v59 = vrot.slane %v6277_v2, 2  ;;  %v2786_v52 = vrot.slane %v6867_v50, 2  ;;  %v6891_v2 = vld [vmem:[%s6455_s14 + $0x68] sm:$0xff]  }
  0x78   : > { %5419 = vmatprep.mubr.bf16.mxu1 %v6490_v25  ;;  %5647 = vmatprep.mubr.bf16.mxu0 %v2334_v63  ;;  %v6280_v25 = vld [vmem:[%s6455_s14 + $0x90] sm:$0xff]   ;;  %v1014_v63 = vld [vmem:[%s6455_s14] sm:$0xe] }
  0x79   : > { %5453 = vmatprep.subr.bf16.mxu1 %v6274_v56  ;;  %v2341_v41 = vrot.slane %v6280_v25, 2  ;;  %v2340_v57 = vsel %vm2307_vm2, %v2337_v61, %v2339_v59  ;;  %v6336_v25 = vld [vmem:[%s6455_s14 + $0x8] sm:$0xff]  }
  0x7b   : > { %5454 = vmatpush3.bf16.msra.mxu1 %v6274_v56  ;;  %v2342_v12 = vsel %vm2307_vm2, %v2339_v59, %v2341_v41  ;;  %v2344_v26 = vsel %vm2307_vm2, %v2341_v41, %v2343_v17 }
  0x7c   : > { %5455 = vmatprep.subr.bf16.mxu1 %v6278_v0 }
  0x7e   : > { %5420 = vmatmul.mubr.bf16.gmra.mrb[4].mxu1 %v6519_v55  ;;  %v6791_v55 = vcombine.low %v2624_v5, %v6783_v6  ;;  %v2792_v5 = vrot.slane %v6891_v2, 2 }
  0x7f   : > { %5648 = vmatmul.mubr.bf16.gmra.mrb[24].mxu0 %v2336_v3  ;;  %5423 = vmatprep.mubr.bf16.mxu1 %v6526_v60  ;;  %v6794_v60 = vld [vmem:[%s6455_s14 + $0x18] sm:$0xff]  }
  0x80   : > { %5651 = vmatprep.mubr.bf16.mxu0 %v2338_v15  ;;  %5456 = vmatpush3.bf16.msra.mxu1 %v6278_v0  ;;  %v2771_v18 = vrot.slane %v6791_v55, 2  ;;  %v2772_v20 = vrot.slane %v6794_v60, 2  ;;  %v6335_v0 = vld [vmem:[%s6455_s14 + $0x4] sm:$0xf]  ;;  %v6319_v3 = vld [vmem:[%s8652_s1 + $0x1f8] sm:$0xff]  }
  0x81   : > { %5457 = vmatprep.subr.bf16.mxu1 %v6282_v4  ;;  %v4916_v61 = vcombine.low %v1014_v63, %v6335_v0  ;;  %v3110_v0 = vshrl.u32 %v6791_v55, 16 }
  0x82   : > { %v2775_v37 = vsel %vm2307_vm2, %v2772_v20, %v2774_v30 }
  0x83   : > { %v1036_v59 = vrot.slane %v4916_v61, 1 }
  0x84   : > { %5458 = vmatpush3.bf16.msra.mxu1 %v6282_v4  ;;  %v1037_v4 = vrot.slane %v6336_v25, 1 }
  0x85   : > { %5459 = vmatprep.subr.bf16.mxu1 %v6287_v10 }
  0x86   : > { %5424 = vmatmul.mubr.bf16.gmra.mrb[8].mxu1 %v6550_v22  ;;  %v2773_v22 = vsel %vm2307_vm2, %v2771_v18, %v2772_v20  ;;  %v1038_v41 = vsel %vm1035_vm3, %v1036_v59, %v1037_v4  ;;  %v6338_v18 = vld [vmem:[%s6455_s14 + $0x18] sm:$0xff]   ;;  %v6320_v59 = vld [vmem:[%s8652_s1 + $0xe0] sm:$0xff]  }
  0x87   : > { %5652 = vmatmul.mubr.bf16.gmra.mrb[28].mxu0 %v2340_v57  ;;  %5427 = vmatprep.mubr.bf16.mxu1 %v6559_v31  ;;  %v6813_v31 = vld [vmem:[%s6455_s14 + $0x28] sm:$0xff]   ;;  %v6913_v57 = vld [vmem:[%s6455_s14 + $0x78] sm:$0xff]   ;;  %v1041_v20 = vrot.slane %v6338_v18, 1  ;;  %v6343_v18 = vld [vmem:[%s6455_s14 + $0x40] sm:$0xff]  }
  0x88   : > { %5655 = vmatprep.mubr.bf16.mxu0 %v2342_v12  ;;  %5460 = vmatpush3.bf16.msra.mxu1 %v6287_v10  ;;  %v2776_v7 = vrot.slane %v6813_v31, 2  ;;  %v6909_v10 = vld [vmem:[%s6455_s14 + $0x70] sm:$0xff]  }
  0x89   : > { %5461 = vmatprep.subr.bf16.mxu1 %v6291_v13  ;;  %v6337_v12 = vld [vmem:[%s6455_s14 + $0x10] sm:$0xff]   ;;  %v2794_v17 = vrot.slane %v6909_v10, 2 }
  0x8a   : > { %v2779_v28 = vsel %vm2307_vm2, %v2776_v7, %v2778_v62 }
  0x8c   : > { %5462 = vmatpush3.bf16.msra.mxu1 %v6291_v13  ;;  %v1039_v13 = vrot.slane %v6337_v12, 1 }
  0x8d   : > { %5463 = vmatprep.subr.bf16.mxu1 %v6295_v21 }
  0x8e   : > { %5428 = vmatmul.mubr.bf16.gmra.mrb[12].mxu1 %v6583_v54  ;;  %v2777_v54 = vsel %vm2307_vm2, %v2774_v30, %v2776_v7  ;;  %v1042_v30 = vsel %vm1035_vm3, %v1039_v13, %v1041_v20 }
  0x8f   : > { %5656 = vmatmul.mubr.bf16.gmra.mrb[32].mxu0 %v2344_v26  ;;  %5431 = vmatprep.mubr.bf16.mxu1 %v6592_v1  ;;  %v6833_v1 = vld [vmem:[%s6455_s14 + $0x38] sm:$0xff]   ;;  %v1040_v26 = vsel %vm1035_vm3, %v1037_v4, %v1039_v13 }
  0x90   : > { %5675 = vmatprep.mubr.bf16.mxu0 %v2773_v22  ;;  %5464 = vmatpush3.bf16.msra.mxu1 %v6295_v21  ;;  %v2780_v42 = vrot.slane %v6833_v1, 2  ;;  %v2796_v21 = vrot.slane %v6913_v57, 2  ;;  %v2795_v22 = vsel %vm2307_vm2, %v2792_v5, %v2794_v17 }
  0x91   : > { %5465 = vmatprep.subr.bf16.mxu1 %v6299_v29 }
  0x92   : > { %v2783_v49 = vsel %vm2307_vm2, %v2780_v42, %v2782_v46  ;;  %v2797_v7 = vsel %vm2307_vm2, %v2794_v17, %v2796_v21  ;;  %v6322_v17 = vld [vmem:[%s8652_s1 + $0xe8] sm:$0xff]  }
  0x94   : > { %5466 = vmatpush3.bf16.msra.mxu1 %v6299_v29  ;;  %v6924_v29 = vld [vmem:[%s6455_s14 + $0x80] sm:$0xff]  }
  0x95   : > { %5503 = vmatprep.subr.bf16.mxu1 %v6825_v36 }
  0x96   : > { %5432 = vmatmul.mubr.bf16.gmra.mrb[16].mxu1 %v6619_v35  ;;  %v6852_v35 = vld [vmem:[%s6455_s14 + $0x48] sm:$0xff]  }
  0x97   : > { %5676 = vmatmul.mubr.bf16.vlgmr.msra.gmra.mrb[0].mxu0 %v2775_v37  ;;  %5435 = vmatprep.mubr.bf16.mxu1 %v6626_v40  ;;  %v2781_v40 = vsel %vm2307_vm2, %v2778_v62, %v2780_v42  ;;  %v2784_v19 = vrot.slane %v6852_v35, 2  ;;  %v6310_v37 = vld [vmem:[%s8652_s1 + $0xc8] sm:$0xff]   ;;  %v2798_v42 = vrot.slane %v6924_v29, 2 }
  0x98   : > { %5679 = vmatprep.mubr.bf16.mxu0 %v2777_v54  ;;  %5712 = vmatpush3.bf16.msra.mxu0 %v6755_v48  ;;  %v6307_v48 = vld [vmem:[%s8652_s1 + $0x1e0] sm:$0xff]   ;;  %v6932_v54 = vld [vmem:[%s6455_s14 + $0x88] sm:$0xff]  }
  0x99   : > { %5713 = vmatprep.subr.bf16.mxu0 %v6294_v39  ;;  %v2787_v14 = vsel %vm2307_vm2, %v2784_v19, %v2786_v52 }
  0x9c   : > { %5714 = vmatpush3.bf16.msra.mxu0 %v6294_v39  ;;  %v6339_v39 = vld [vmem:[%s6455_s14 + $0x20] sm:$0xff]  }
  0x9d   : > { %5715 = vmatprep.subr.bf16.mxu0 %v6298_v43  ;;  %v1043_v62 = vrot.slane %v6339_v39, 1 }
  0x9e   : > { %5436 = vmatmul.mubr.bf16.gmra.mrb[20].mxu1 %v6635_v47  ;;  %v2785_v47 = vsel %vm2307_vm2, %v2782_v46, %v2784_v19 }
  0x9f   : > { %5680 = vmatmul.mubr.bf16.gmra.mrb[4].mxu0 %v2779_v28  ;;  %5439 = vmatprep.mubr.bf16.mxu1 %v6647_v58  ;;  %v6871_v58 = vld [vmem:[%s6455_s14 + $0x58] sm:$0xff]   ;;  %v1044_v46 = vsel %vm1035_vm3, %v1041_v20, %v1043_v62  ;;  %v1051_v20 = vrot.slane %v6343_v18, 1  ;;  %v6348_v18 = vld [vmem:[%s6455_s14 + $0x60] sm:$0xff]  }
  0xa0   : > { %5683 = vmatprep.mubr.bf16.mxu0 %v2781_v40  ;;  %5716 = vmatpush3.bf16.msra.mxu0 %v6298_v43  ;;  %v2788_v56 = vrot.slane %v6871_v58, 2  ;;  %v6340_v43 = vld [vmem:[%s6455_s14 + $0x28] sm:$0xff]   ;;  %v6314_v40 = vld [vmem:[%s8652_s1 + $0xd0] sm:$0xff]  }
  0xa1   : > { %5717 = vmatprep.subr.bf16.mxu0 %v6302_v45  ;;  %v1045_v28 = vrot.slane %v6340_v43, 1  ;;  %v6324_v43 = vld [vmem:[%s8652_s1 + $0xf0] sm:$0xff]  }
  0xa3   : > { %v1046_v19 = vsel %vm1035_vm3, %v1043_v62, %v1045_v28  ;;  %v3136_v62 = vshrl.u32 %v6813_v31, 16 }
  0xa4   : > { %5718 = vmatpush3.bf16.msra.mxu0 %v6302_v45  ;;  %v2800_v45 = vrot.slane %v6932_v54, 2 }
  0xa5   : > { %5719 = vmatprep.subr.bf16.mxu0 %v6307_v48 }
  0xa6   : > { %5440 = vmatmul.mubr.bf16.gmra.mrb[24].mxu1 %v6659_v8  ;;  %v6886_v8 = vld [vmem:[%s6455_s14 + $0x60] sm:$0xff]  }
  0xa7   : > { %5684 = vmatmul.mubr.bf16.gmra.mrb[8].mxu0 %v2783_v49  ;;  %5443 = vmatprep.mubr.bf16.mxu1 %v6676_v23  ;;  %v2789_v23 = vsel %vm2307_vm2, %v2786_v52, %v2788_v56  ;;  %v2790_v15 = vrot.slane %v6886_v8, 2  ;;  %v2801_v49 = vsel %vm2307_vm2, %v2798_v42, %v2800_v45  ;;  %v6341_v52 = vld [vmem:[%s6455_s14 + $0x30] sm:$0xff]  }
  0xa8   : > { %5687 = vmatprep.mubr.bf16.mxu0 %v2785_v47  ;;  %5720 = vmatpush3.bf16.msra.mxu0 %v6307_v48  ;;  %v6946_v48 = vld [vmem:[%s6455_s14 + $0x90] sm:$0xff]   ;;  %v6950_v47 = vld [vmem:[%s6455_s14 + $0x98] sm:$0xff]  }
  0xa9   : > { %5721 = vmatprep.subr.bf16.mxu0 %v6311_v51  ;;  %v2793_v11 = vsel %vm2307_vm2, %v2790_v15, %v2792_v5  ;;  %v2802_v63 = vrot.slane %v6946_v48, 2  ;;  %v2804_v61 = vrot.slane %v6950_v47, 2 }
  0xab   : > { %v2803_v4 = vsel %vm2307_vm2, %v2800_v45, %v2802_v63 }
  0xac   : > { %5722 = vmatpush3.bf16.msra.mxu0 %v6311_v51  ;;  %v6318_v51 = vld [vmem:[%s8652_s1 + $0xd8] sm:$0xff]  }
  0xad   : > { %5723 = vmatprep.subr.bf16.mxu0 %v6315_v33 }
  0xae   : > { %5444 = vmatmul.mubr.bf16.gmra.mrb[28].mxu1 %v6680_v32  ;;  %v6904_v32 = vld [vmem:[%s8652_s1 + $0x200] sm:$0xff]  }
  0xaf   : > { %5688 = vmatmul.mubr.bf16.gmra.mrb[12].mxu0 %v2787_v14  ;;  %5447 = vmatprep.mubr.bf16.mxu1 %v6698_v16  ;;  %v2791_v16 = vsel %vm2307_vm2, %v2788_v56, %v2790_v15  ;;  %v1047_v56 = vrot.slane %v6341_v52, 1  ;;  %v3121_v15 = vshll.u32 %v6794_v60, 16  ;;  %v6326_v52 = vld [vmem:[%s8652_s1 + $0xf8] sm:$0xff]  }
  0xb0   : > { %5691 = vmatprep.mubr.bf16.mxu0 %v2789_v23  ;;  %5724 = vmatpush3.bf16.msra.mxu0 %v6315_v33  ;;  %v6342_v33 = vld [vmem:[%s6455_s14 + $0x38] sm:$0xff]   ;;  %v3113_v23 = vshll.u32 %v6791_v55, 16  ;;  %v2805_v55 = vsel %vm2307_vm2, %v2802_v63, %v2804_v61 }
  0xb1   : > { %5725 = vmatprep.subr.bf16.mxu0 %v6319_v3  ;;  %v1049_v14 = vrot.slane %v6342_v33, 1  ;;  %v1048_v25 = vsel %vm1035_vm3, %v1045_v28, %v1047_v56  ;;  %v3123_v13 = vrot.slane %v3121_v15, 3  ;;  %v3154_v15 = vshrl.u32 %v6833_v1, 16 }
  0xb3   : > { %v1050_v5 = vsel %vm1035_vm3, %v1047_v56, %v1049_v14  ;;  %v1052_v28 = vsel %vm1035_vm3, %v1049_v14, %v1051_v20  ;;  %v6345_v56 = vld [vmem:[%s6455_s14 + $0x50] sm:$0xff]   ;;  %v6346_v14 = vld [vmem:[%s6455_s14 + $0x58] sm:$0xff]  }
  0xb4   : > { %5726 = vmatpush3.bf16.msra.mxu0 %v6319_v3  ;;  %v3118_v3 = vshrl.u32 %v6794_v60, 16  ;;  %v1055_v63 = vrot.slane %v6345_v56, 1  ;;  %v6327_v56 = vld [vmem:[%s8652_s1 + $0x218] sm:$0xff]  }
  0xb5   : > { %5763 = vmatprep.subr.bf16.mxu0 %v6904_v32 }
  0xb6   : > { %5448 = vmatmul.mubr.bf16.gmra.mrb[32].mxu1 %v6705_v53  ;;  %v3120_v12 = vrot.slane %v3118_v3, 2 }
  0xb7   : > { %5692 = vmatmul.mubr.bf16.gmra.mrb[16].mxu0 %v2791_v16  ;;  %5467 = vmatprep.mubr.bf16.mxu1 %v1038_v41  ;;  %v6317_v16 = vld [vmem:[%s6455_s14 + $0xa0] ss:$0 sps:$4 sm:$0x33]   ;;  %v3112_v41 = vrot.slane %v3110_v0, 2  ;;  %v1057_v0 = vrot.slane %v6346_v14, 1 }
  0xb8   : > { %5695 = vmatprep.mubr.bf16.mxu0 %v2793_v11  ;;  %v3115_v11 = vrot.slane %v3113_v23, 3  ;;  %v3124_v39 = vor.u32 %v3123_v13, %v3120_v12  ;;  %v3148_v23 = vshll.u32 %v6829_v38, 16  ;;  %v6323_v13 = vld [vmem:[%s8652_s1 + $0x208] sm:$0xff]  }
  0xbe   : > { %5468 = vmatmul.mubr.bf16.vlgmr.msra.gmra.mrb[0].mxu1 %v1040_v26  ;;  %v6344_v26 = vld [vmem:[%s6455_s14 + $0x48] sm:$0xff]  }
  0xbf   : > { %5696 = vmatmul.mubr.bf16.gmra.mrb[20].mxu0 %v2795_v22  ;;  %5504 = vmatpush3.bf16.msra.mxu1 %v6825_v36  ;;  %v2799_v36 = vsel %vm2307_vm2, %v2796_v21, %v2798_v42  ;;  %v2806_v21 = vrot.slane %v6317_v16, 2  ;;  %v1053_v22 = vrot.slane %v6344_v26, 1  ;;  %v3139_v42 = vshll.u32 %v6813_v31, 16 }
  0xc0   : > { %5471 = vmatprep.mubr.bf16.mxu1 %v1042_v30  ;;  %5699 = vmatprep.mubr.bf16.mxu0 %v2797_v7  ;;  %v3127_v30 = vshrl.u32 %v6809_v27, 16  ;;  %v3130_v7 = vshll.u32 %v6809_v27, 16 }
  0xc1   : > { %5505 = vmatprep.subr.bf16.mxu1 %v6310_v37  ;;  %v1054_v45 = vsel %vm1035_vm3, %v1051_v20, %v1053_v22  ;;  %v1059_v20 = vrot.slane %v6348_v18, 1 }
  0xc3   : > { %5506 = vmatpush3.bf16.msra.mxu1 %v6310_v37  ;;  %v3116_v37 = vor.u32 %v3115_v11, %v3112_v41  ;;  %v3150_v41 = vrot.slane %v3148_v23, 3  ;;  %v3156_v11 = vrot.slane %v3154_v15, 2  ;;  %v3184_v15 = vshll.u32 %v6867_v50, 16 }
  0xc4   : > { %5507 = vmatprep.subr.bf16.mxu1 %v6314_v40 }
  0xc6   : > { %5472 = vmatmul.mubr.bf16.gmra.mrb[4].mxu1 %v1044_v46  ;;  %v3129_v46 = vrot.slane %v3127_v30, 2  ;;  %v3163_v30 = vshrl.u32 %v6849_v44, 16 }
  0xc7   : > { %5700 = vmatmul.mubr.bf16.gmra.mrb[24].mxu0 %v2799_v36  ;;  %5475 = vmatprep.mubr.bf16.mxu1 %v1046_v19  ;;  %v3132_v36 = vrot.slane %v3130_v7, 3  ;;  %v3125_v19 = vsel %vm3108_vm4, %v3116_v37, %v3124_v39  ;;  %v3166_v7 = vshll.u32 %v6849_v44, 16 }
  0xc8   : > { %5703 = vmatprep.mubr.bf16.mxu0 %v2801_v49  ;;  %5508 = vmatpush3.bf16.msra.mxu1 %v6314_v40  ;;  %v2807_v40 = vsel %vm2307_vm2, %v2804_v61, %v2806_v21  ;;  %v3138_v49 = vrot.slane %v3136_v62, 2  ;;  %v3145_v61 = vshrl.u32 %v6829_v38, 16  ;;  %v6349_v21 = vld [vmem:[%s6455_s14 + $0x68] sm:$0xff]   ;;  %v3175_v62 = vshll.u32 %v6852_v35, 16 }
  0xc9   : > { %5509 = vmatprep.subr.bf16.mxu1 %v6318_v51  ;;  %v3133_v33 = vor.u32 %v3132_v36, %v3129_v46  ;;  %v1061_v26 = vrot.slane %v6349_v21, 1  ;;  %v3165_v46 = vrot.slane %v3163_v30, 2  ;;  %v3168_v36 = vrot.slane %v3166_v7, 3  ;;  %v6329_v21 = vld [vmem:[%s8652_s1 + $0x228] sm:$0xff]  }
  0xca   : > { %v3147_v16 = vrot.slane %v3145_v61, 2  ;;  %v6351_v61 = vld [vmem:[%s6455_s14 + $0x78] sm:$0xff]   ;;  %v1069_v7 = vrot.slane %v6705_v53, 1 }
  0xcb   : > { %v1065_v23 = vrot.slane %v6351_v61, 1  ;;  %v6353_v61 = vld [vmem:[%s6455_s14 + $0x10] sm:$0xff]  }
  0xcc   : > { %5510 = vmatpush3.bf16.msra.mxu1 %v6318_v51  ;;  %v3141_v51 = vrot.slane %v3139_v42, 3  ;;  %v6325_v42 = vld [vmem:[%s8652_s1 + $0x210] sm:$0xff]  }
  0xcd   : > { %5511 = vmatprep.subr.bf16.mxu1 %v6320_v59 }
  0xce   : > { %5476 = vmatmul.mubr.bf16.gmra.mrb[8].mxu1 %v1048_v25  ;;  %v3142_v3 = vor.u32 %v3141_v51, %v3138_v49  ;;  %v1056_v25 = vsel %vm1035_vm3, %v1053_v22, %v1055_v63  ;;  %v3151_v22 = vor.u32 %v3150_v41, %v3147_v16 }
  0xcf   : > { %5704 = vmatmul.mubr.bf16.gmra.mrb[28].mxu0 %v2803_v4  ;;  %5479 = vmatprep.mubr.bf16.mxu1 %v1050_v5  ;;  %v3134_v4 = vsel %vm3108_vm4, %v3124_v39, %v3133_v33  ;;  %v1058_v5 = vsel %vm1035_vm3, %v1055_v63, %v1057_v0  ;;  %v3172_v39 = vshrl.u32 %v6852_v35, 16 }
  0xd0   : > { %5707 = vmatprep.mubr.bf16.mxu0 %v2805_v55  ;;  %5512 = vmatpush3.bf16.msra.mxu1 %v6320_v59  ;;  %v3157_v59 = vshll.u32 %v6833_v1, 16  ;;  %v3143_v55 = vsel %vm3108_vm4, %v3133_v33, %v3142_v3  ;;  %v6350_v33 = vld [vmem:[%s6455_s14 + $0x70] sm:$0xff]  }
  0xd1   : > { %5513 = vmatprep.subr.bf16.mxu1 %v6322_v17  ;;  %v3174_v51 = vrot.slane %v3172_v39, 2  ;;  %v1063_v14 = vrot.slane %v6350_v33, 1  ;;  %v3202_v39 = vshll.u32 %v6886_v8, 16  ;;  %v1071_v33 = vrot.slane %v6727_v9, 1 }
  0xd2   : > { %v3159_v12 = vrot.slane %v3157_v59, 3 }
  0xd3   : > { %v1064_v16 = vsel %vm1035_vm3, %v1061_v26, %v1063_v14  ;;  %v1072_v9 = vsel %vm1035_vm3, %v1069_v7, %v1071_v33  ;;  %v3253_v33 = vshrl.u32 %v6946_v48, 16 }
  0xd4   : > { %5514 = vmatpush3.bf16.msra.mxu1 %v6322_v17  ;;  %v7006_v17 = vld [vmem:[%s8652_s1 + $0x100] sm:$0xff]   ;;  %v3160_v37 = vor.u32 %v3159_v12, %v3156_v11  ;;  %v3186_v12 = vrot.slane %v3184_v15, 3  ;;  %v3220_v15 = vshll.u32 %v6909_v10, 16 }
  0xd5   : > { %5515 = vmatprep.subr.bf16.mxu1 %v6324_v43 }
  0xd6   : > { %5480 = vmatmul.mubr.bf16.gmra.mrb[12].mxu1 %v1052_v28  ;;  %v3613_v28 = vrot.slane %v6950_v47, 3  ;;  %v3161_v49 = vsel %vm3108_vm4, %v3151_v22, %v3160_v37 }
  0xd7   : > { %5708 = vmatmul.mubr.bf16.gmra.mrb[32].mxu0 %v2807_v40  ;;  %5483 = vmatprep.mubr.bf16.mxu1 %v1054_v45  ;;  %v1062_v40 = vsel %vm1035_vm3, %v1059_v20, %v1061_v26  ;;  %v3152_v45 = vsel %vm3108_vm4, %v3142_v3, %v3151_v22  ;;  %v3181_v3 = vshrl.u32 %v6867_v50, 16  ;;  %v6352_v26 = vld [vmem:[%s6455_s14 + $0x80] sm:$0xff]  }
  0xd8   : > { %5727 = vmatprep.mubr.bf16.mxu0 %v3125_v19  ;;  %5516 = vmatpush3.bf16.msra.mxu1 %v6324_v43  ;;  %v7020_v43 = vld [vmem:[%s6455_s14 + $0xa0] ss:$0 sps:$4 sm:$0x77]   ;;  %v1067_v22 = vrot.slane %v6352_v26, 1  ;;  %v3238_v26 = vshll.u32 %v6924_v29, 16 }
  0xd9   : > { %5517 = vmatprep.subr.bf16.mxu1 %v6326_v52  ;;  %v3615_v19 = vrot.slane %v7020_v43, 3  ;;  %v3183_v11 = vrot.slane %v3181_v3, 2  ;;  %v3217_v3 = vshrl.u32 %v6909_v10, 16 }
  0xda   : > { %v1070_v53 = vsel %vm1035_vm3, %v1067_v22, %v1069_v7 }
  0xdb   : > { %v7034_v63 = vsel %vm3579_vm5, %v3613_v28, %v3615_v19  ;;  %v3187_v30 = vor.u32 %v3186_v12, %v3183_v11  ;;  %v3204_v19 = vrot.slane %v3202_v39, 3  ;;  %v3247_v39 = vshll.u32 %v6932_v54, 16 }
  0xdc   : > { %5518 = vmatpush3.bf16.msra.mxu1 %v6326_v52  ;;  %v3177_v52 = vrot.slane %v3175_v62, 3 }
  0xdd   : > { %5815 = vmatprep.subr.bf16.mxu1 %v7006_v17 }
  0xde   : > { %5484 = vmatmul.mubr.bf16.gmra.mrb[16].mxu1 %v1056_v25  ;;  %v3178_v59 = vor.u32 %v3177_v52, %v3174_v51  ;;  %v3190_v25 = vshrl.u32 %v6871_v58, 16 }
  0xdf   : > { %5728 = vmatmul.mubr.bf16.vlgmr.msra.gmra.mrb[0].mxu0 %v3134_v4  ;;  %5487 = vmatprep.mubr.bf16.mxu1 %v1058_v5  ;;  %v3193_v4 = vshll.u32 %v6871_v58, 16  ;;  %v6328_v5 = vld [vmem:[%s8652_s1 + $0x220] sm:$0xff]  }
  0xe0   : > { %5731 = vmatprep.mubr.bf16.mxu0 %v3143_v55  ;;  %5764 = vmatpush3.bf16.msra.mxu0 %v6904_v32  ;;  %v1060_v32 = vsel %vm1035_vm3, %v1057_v0, %v1059_v20  ;;  %v3169_v0 = vor.u32 %v3168_v36, %v3165_v46  ;;  %v1066_v55 = vsel %vm1035_vm3, %v1063_v14, %v1065_v23  ;;  %v3192_v18 = vrot.slane %v3190_v25, 2 }
  0xe1   : > { %5765 = vmatprep.subr.bf16.mxu0 %v6323_v13  ;;  %v3195_v20 = vrot.slane %v3193_v4, 3  ;;  %v3188_v46 = vsel %vm3108_vm4, %v3178_v59, %v3187_v30  ;;  %v1499_v14 = vrot.slane %v6487_v24, 1  ;;  %v3226_v25 = vshrl.u32 %v6913_v57, 16 }
  0xe2   : > { %v3170_v41 = vsel %vm3108_vm4, %v3160_v37, %v3169_v0  ;;  %v3199_v37 = vshrl.u32 %v6886_v8, 16  ;;  %v3229_v4 = vshll.u32 %v6913_v57, 16 }
  0xe3   : > { %v3196_v62 = vor.u32 %v3195_v20, %v3192_v18  ;;  %v3228_v11 = vrot.slane %v3226_v25, 2  ;;  %v3255_v25 = vrot.slane %v3253_v33, 2 }
  0xe4   : > { %5766 = vmatpush3.bf16.msra.mxu0 %v6323_v13  ;;  %v3179_v13 = vsel %vm3108_vm4, %v3169_v0, %v3178_v59  ;;  %v3201_v36 = vrot.slane %v3199_v37, 2  ;;  %v3231_v12 = vrot.slane %v3229_v4, 3  ;;  %v3244_v37 = vshrl.u32 %v6932_v54, 16 }
  0xe5   : > { %5767 = vmatprep.subr.bf16.mxu0 %v6325_v42 }
  0xe6   : > { %5488 = vmatmul.mubr.bf16.gmra.mrb[20].mxu1 %v1060_v32  ;;  %v3211_v32 = vshll.u32 %v6891_v2, 16  ;;  %v3205_v0 = vor.u32 %v3204_v19, %v3201_v36  ;;  %v3232_v7 = vor.u32 %v3231_v12, %v3228_v11  ;;  %v3249_v36 = vrot.slane %v3247_v39, 3  ;;  %v6356_v19 = vld [vmem:[%s6455_s14 + $0x28] sm:$0xff]   ;;  %v6361_v12 = vld [vmem:[%s6455_s14 + $0x40] sm:$0xff]  }
  0xe7   : > { %5732 = vmatmul.mubr.bf16.gmra.mrb[4].mxu0 %v3152_v45  ;;  %5491 = vmatprep.mubr.bf16.mxu1 %v1062_v40  ;;  %v6330_v40 = vld [vmem:[%s8652_s1 + $0x230] sm:$0xff]   ;;  %v1068_v45 = vsel %vm1035_vm3, %v1065_v23, %v1067_v22  ;;  %v1500_v23 = vrot.slane %v6353_v61, 1  ;;  %v6355_v22 = vld [vmem:[%s6455_s14 + $0x20] sm:$0xff]  }
  0xe8   : > { %5735 = vmatprep.mubr.bf16.mxu0 %v3161_v49  ;;  %5768 = vmatpush3.bf16.msra.mxu0 %v6325_v42  ;;  %v3208_v42 = vshrl.u32 %v6891_v2, 16  ;;  %v3197_v49 = vsel %vm3108_vm4, %v3187_v30, %v3196_v62  ;;  %v3213_v52 = vrot.slane %v3211_v32, 3  ;;  %v3206_v24 = vsel %vm3108_vm4, %v3196_v62, %v3205_v0 }
  0xe9   : > { %5769 = vmatprep.subr.bf16.mxu0 %v6327_v56  ;;  %v1504_v30 = vrot.slane %v6355_v22, 1  ;;  %v3558_v22 = vld [vmem:[%s6455_s14 + $0x10] sm:$0x8] }
  0xea   : > { %v3210_v51 = vrot.slane %v3208_v42, 2 }
  0xec   : > { %5770 = vmatpush3.bf16.msra.mxu0 %v6327_v56  ;;  %v6332_v56 = vld [vmem:[%s8652_s1 + $0x238] sm:$0xff]   ;;  %v3214_v59 = vor.u32 %v3213_v52, %v3210_v51  ;;  %v6357_v52 = vld [vmem:[%s6455_s14 + $0x30] sm:$0xff]  }
  0xed   : > { %5771 = vmatprep.subr.bf16.mxu0 %v6328_v5 }
  0xee   : > { %5492 = vmatmul.mubr.bf16.gmra.mrb[24].mxu1 %v1064_v16  ;;  %v3219_v16 = vrot.slane %v3217_v3, 2 }
  0xef   : > { %5736 = vmatmul.mubr.bf16.gmra.mrb[8].mxu0 %v3170_v41  ;;  %5495 = vmatprep.mubr.bf16.mxu1 %v1066_v55  ;;  %v3222_v41 = vrot.slane %v3220_v15, 3  ;;  %v3215_v55 = vsel %vm3108_vm4, %v3205_v0, %v3214_v59  ;;  %v6358_v0 = vld [vmem:[%s8652_s1 + $0x108] sm:$0xff]  }
  0xf0   : > { %5739 = vmatprep.mubr.bf16.mxu0 %v3179_v13  ;;  %5772 = vmatpush3.bf16.msra.mxu0 %v6328_v5  ;;  %v1501_v5 = vsel %vm1035_vm3, %v1499_v14, %v1500_v23  ;;  %v6354_v13 = vld [vmem:[%s6455_s14 + $0x18] sm:$0xff]   ;;  %v3256_v14 = vshll.u32 %v6946_v48, 16 }
  0xf1   : > { %5773 = vmatprep.subr.bf16.mxu0 %v6329_v21  ;;  %v1502_v18 = vrot.slane %v6354_v13, 1  ;;  %v3223_v20 = vor.u32 %v3222_v41, %v3219_v16  ;;  %v6360_v41 = vld [vmem:[%s6455_s14 + $0x38] sm:$0xff]   ;;  %v1512_v13 = vrot.slane %v6361_v12, 1 }
  0xf2   : > { %v3258_v4 = vrot.slane %v3256_v14, 3  ;;  %v6367_v14 = vld [vmem:[%s8652_s1 + $0x130] sm:$0xff]  }
  0xf3   : > { %v1503_v62 = vsel %vm1035_vm3, %v1500_v23, %v1502_v18  ;;  %v3224_v42 = vsel %vm3108_vm4, %v3214_v59, %v3223_v20  ;;  %v3262_v23 = vshrl.u32 %v6950_v47, 16 }
  0xf4   : > { %5774 = vmatpush3.bf16.msra.mxu0 %v6329_v21  ;;  %v3235_v21 = vshrl.u32 %v6924_v29, 16  ;;  %v3259_v11 = vor.u32 %v3258_v4, %v3255_v25 }
  0xf5   : > { %5775 = vmatprep.subr.bf16.mxu0 %v6330_v40 }
  0xf6   : > { %5496 = vmatmul.mubr.bf16.gmra.mrb[28].mxu1 %v1068_v45  ;;  %v3237_v32 = vrot.slane %v3235_v21, 2  ;;  %v1505_v45 = vsel %vm1035_vm3, %v1502_v18, %v1504_v30  ;;  %v3271_v18 = vshrl.u32 %v7020_v43, 16 }
  0xf7   : > { %5740 = vmatmul.mubr.bf16.gmra.mrb[12].mxu0 %v3188_v46  ;;  %5499 = vmatprep.mubr.bf16.mxu1 %v1070_v53  ;;  %v3233_v46 = vsel %vm3108_vm4, %v3223_v20, %v3232_v7  ;;  %v3246_v53 = vrot.slane %v3244_v37, 2  ;;  %v3274_v20 = vshll.u32 %v7020_v43, 16 }
  0xf8   : > { %5743 = vmatprep.mubr.bf16.mxu0 %v3197_v49  ;;  %5776 = vmatpush3.bf16.msra.mxu0 %v6330_v40  ;;  %v3240_v40 = vrot.slane %v3238_v26, 3  ;;  %v1506_v49 = vrot.slane %v6356_v19, 1  ;;  %v6362_v26 = vld [vmem:[%s8652_s1 + $0x118] sm:$0xff]   ;;  %v3273_v39 = vrot.slane %v3271_v18, 2 }
  0xf9   : > { %5777 = vmatprep.subr.bf16.mxu0 %v6332_v56  ;;  %v3250_v61 = vor.u32 %v3249_v36, %v3246_v53  ;;  %v7124_v53 = vld [vmem:[%s6455_s14 + $0x50] sm:$0xff]   ;;  %v7170_v18 = vld [vmem:[%s6455_s14 + $0x78] sm:$0xff]  }
  0xfa   : > { %v3241_v51 = vor.u32 %v3240_v40, %v3237_v32  ;;  %v1507_v3 = vsel %vm1035_vm3, %v1504_v30, %v1506_v49  ;;  %v6363_v32 = vld [vmem:[%s8652_s1 + $0x120] sm:$0xff]   ;;  %v6364_v40 = vld [vmem:[%s6455_s14 + $0x48] sm:$0xff]   ;;  %v1516_v36 = vrot.slane %v7124_v53, 1 }
  0xfc   : > { %5778 = vmatpush3.bf16.msra.mxu0 %v6332_v56  ;;  %v1508_v56 = vrot.slane %v6357_v52, 1  ;;  %v3242_v15 = vsel %vm3108_vm4, %v3232_v7, %v3241_v51  ;;  %v3260_v7 = vsel %vm3108_vm4, %v3250_v61, %v3259_v11 }
  0xfe   : > { %5500 = vmatmul.mubr.bf16.gmra.mrb[32].mxu1 %v1072_v9  ;;  %v1509_v59 = vsel %vm1035_vm3, %v1506_v49, %v1508_v56  ;;  %v6359_v9 = vld [vmem:[%s8652_s1 + $0x110] sm:$0xff]   ;;  %v6366_v49 = vld [vmem:[%s8652_s1 + $0x128] sm:$0xff]  }
  0xff   : > { %5744 = vmatmul.mubr.bf16.gmra.mrb[16].mxu0 %v3206_v24  ;;  %5519 = vmatprep.mubr.bf16.mxu1 %v1501_v5  ;;  %v3251_v24 = vsel %vm3108_vm4, %v3241_v51, %v3250_v61  ;;  %v3264_v5 = vrot.slane %v3262_v23, 2  ;;  %v3583_v61 = vrot.slane %v6809_v27, 3  ;;  %v7144_v23 = vld [vmem:[%s6455_s14 + $0x60] sm:$0xff]  }
 0x100   : > { %5747 = vmatprep.mubr.bf16.mxu0 %v3215_v55  ;;  %v1510_v55 = vrot.slane %v6360_v41, 1  ;;  %v3589_v41 = vrot.slane %v6833_v1, 3  ;;  %v3591_v1 = vrot.slane %v6849_v44, 3 }
 0x102   : > { %v1511_v30 = vsel %vm1035_vm3, %v1508_v56, %v1510_v55  ;;  %v1513_v37 = vsel %vm1035_vm3, %v1510_v55, %v1512_v13 }
 0x106   : > { %5520 = vmatmul.mubr.bf16.vlgmr.msra.gmra.mrb[0].mxu1 %v1503_v62  ;;  %v3276_v62 = vrot.slane %v3274_v20, 3  ;;  %v7175_v20 = vld [vmem:[%s6455_s14 + $0x80] sm:$0xff]  }
 0x107   : > { %5748 = vmatmul.mubr.bf16.gmra.mrb[20].mxu0 %v3224_v42  ;;  %5823 = vmatpush3.bf16.msra.mxu1 %v7006_v17  ;;  %v3265_v17 = vshll.u32 %v6950_v47, 16  ;;  %v5102_v42 = vcombine.low %v3558_v22, %v6783_v6  ;;  %v3581_v6 = vrot.slane %v6794_v60, 3  ;;  %v7139_v60 = vld [vmem:[%s6455_s14 + $0x58] sm:$0xff]  }
 0x108   : > { %5523 = vmatprep.mubr.bf16.mxu1 %v1505_v45  ;;  %5751 = vmatprep.mubr.bf16.mxu0 %v3233_v46  ;;  %v1514_v45 = vrot.slane %v6364_v40, 1  ;;  %v3277_v46 = vor.u32 %v3276_v62, %v3273_v39  ;;  %v7184_v39 = vld [vmem:[%s6455_s14 + $0x88] sm:$0xff]   ;;  %v3595_v62 = vrot.slane %v6867_v50, 3  ;;  %v3597_v40 = vrot.slane %v6871_v58, 3 }
 0x109   : > { %5816 = vmatprep.subr.bf16.mxu1 %v6358_v0  ;;  %v3267_v16 = vrot.slane %v3265_v17, 3  ;;  %v3580_v19 = vrot.slane %v5102_v42, 3  ;;  %v1520_v17 = vrot.slane %v7144_v23, 1  ;;  %v3584_v25 = vsel %vm3579_vm5, %v3581_v6, %v3583_v61 }
 0x10a   : > { %v1515_v51 = vsel %vm1035_vm3, %v1512_v13, %v1514_v45  ;;  %v1517_v56 = vsel %vm1035_vm3, %v1514_v45, %v1516_v36  ;;  %v1530_v44 = vrot.slane %v7184_v39, 1  ;;  %v1918_v42 = vshrl.u32 %v7124_v53, 16 }
 0x10b   : > { %5824 = vmatpush3.bf16.msra.mxu1 %v6358_v0  ;;  %v3268_v21 = vor.u32 %v3267_v16, %v3264_v5  ;;  %v3582_v33 = vsel %vm3579_vm5, %v3580_v19, %v3581_v6  ;;  %v1518_v0 = vrot.slane %v7139_v60, 1  ;;  %v7161_v5 = vld [vmem:[%s6455_s14 + $0x70] sm:$0xff]   ;;  %v3598_v50 = vsel %vm3579_vm5, %v3595_v62, %v3597_v40 }
 0x10c   : > { %5817 = vmatprep.subr.bf16.mxu1 %v6359_v9  ;;  %v1524_v16 = vrot.slane %v7161_v5, 1  ;;  %v1920_v6 = vrot.slane %v1918_v42, 1  ;;  %v3599_v58 = vrot.slane %v6886_v8, 3 }
 0x10d   : > { %v3269_v43 = vsel %vm3108_vm4, %v3259_v11, %v3268_v21  ;;  %v3278_v52 = vsel %vm3108_vm4, %v3268_v21, %v3277_v46  ;;  %v1521_v4 = vsel %vm1035_vm3, %v1518_v0, %v1520_v17  ;;  %v1528_v21 = vrot.slane %v7175_v20, 1  ;;  %v6334_v46 = vld [vmem:[%s6455_s14 + $0x98] ss:$0 sps:$4 sm:$0x11]  }
 0x10e   : > { %5524 = vmatmul.mubr.bf16.gmra.mrb[4].mxu1 %v1507_v3  ;;  %v3585_v3 = vrot.slane %v6813_v31, 3 }
 0x10f   : > { %5752 = vmatmul.mubr.bf16.gmra.mrb[24].mxu0 %v3242_v15  ;;  %5527 = vmatprep.mubr.bf16.mxu1 %v1509_v59  ;;  %v6370_v15 = vld [vmem:[%s8652_s1 + $0x138] sm:$0xff]   ;;  %v1519_v59 = vsel %vm1035_vm3, %v1516_v36, %v1518_v0  ;;  %v1531_v45 = vsel %vm1035_vm3, %v1528_v21, %v1530_v44  ;;  %v3601_v0 = vrot.slane %v6891_v2, 3 }
 0x110   : > { %5755 = vmatprep.mubr.bf16.mxu0 %v3251_v24  ;;  %5825 = vmatpush3.bf16.msra.mxu1 %v6359_v9  ;;  %v3586_v27 = vsel %vm3579_vm5, %v3583_v61, %v3585_v3  ;;  %v7156_v9 = vld [vmem:[%s6455_s14 + $0x68] sm:$0xff]   ;;  %v3587_v24 = vrot.slane %v6829_v38, 3  ;;  %v1526_v38 = vrot.slane %v7170_v18, 1 }
 0x111   : > { %5818 = vmatprep.subr.bf16.mxu1 %v6362_v26  ;;  %v1522_v31 = vrot.slane %v7156_v9, 1  ;;  %v3602_v8 = vsel %vm3579_vm5, %v3599_v58, %v3601_v0  ;;  %v1948_v2 = vshll.u32 %v7156_v9, 16 }
 0x112   : > { %v3588_v11 = vsel %vm3579_vm5, %v3585_v3, %v3587_v24  ;;  %v3590_v13 = vsel %vm3579_vm5, %v3587_v24, %v3589_v41  ;;  %v1527_v22 = vsel %vm1035_vm3, %v1524_v16, %v1526_v38  ;;  %v1954_v24 = vshrl.u32 %v7161_v5, 16 }
 0x113   : > { %v1523_v55 = vsel %vm1035_vm3, %v1520_v17, %v1522_v31  ;;  %v1525_v12 = vsel %vm1035_vm3, %v1522_v31, %v1524_v16  ;;  %v3605_v16 = vrot.slane %v6913_v57, 3  ;;  %v1966_v57 = vshll.u32 %v7170_v18, 16 }
 0x114   : > { %5826 = vmatpush3.bf16.msra.mxu1 %v6362_v26  ;;  %v3593_v26 = vrot.slane %v6852_v35, 3  ;;  %v7189_v35 = vld [vmem:[%s6455_s14 + $0x90] sm:$0xff]  }
 0x115   : > { %5819 = vmatprep.subr.bf16.mxu1 %v6363_v32 }
 0x116   : > { %5528 = vmatmul.mubr.bf16.gmra.mrb[8].mxu1 %v1511_v30  ;;  %v3592_v30 = vsel %vm3579_vm5, %v3589_v41, %v3591_v1  ;;  %v3596_v36 = vsel %vm3579_vm5, %v3593_v26, %v3595_v62  ;;  %v1968_v62 = vrot.slane %v1966_v57, 2 }
 0x117   : > { %5756 = vmatmul.mubr.bf16.gmra.mrb[28].mxu0 %v3260_v7  ;;  %5531 = vmatprep.mubr.bf16.mxu1 %v1513_v37  ;;  %v1529_v7 = vsel %vm1035_vm3, %v1526_v38, %v1528_v21  ;;  %v3594_v37 = vsel %vm3579_vm5, %v3591_v1, %v3593_v26  ;;  %v1956_v38 = vrot.slane %v1954_v24, 1  ;;  %v3607_v21 = vrot.slane %v6924_v29, 3 }
 0x118   : > { %5759 = vmatprep.mubr.bf16.mxu0 %v3269_v43  ;;  %5827 = vmatpush3.bf16.msra.mxu1 %v6363_v32  ;;  %v1532_v43 = vrot.slane %v7189_v35, 1  ;;  %v1921_v32 = vshll.u32 %v7124_v53, 16  ;;  %v1930_v53 = vshll.u32 %v7139_v60, 16 }
 0x119   : > { %5820 = vmatprep.subr.bf16.mxu1 %v6366_v49 }
 0x11a   : > { %v1533_v19 = vsel %vm1035_vm3, %v1530_v44, %v1532_v43  ;;  %v1932_v3 = vrot.slane %v1930_v53, 2 }
 0x11c   : > { %5828 = vmatpush3.bf16.msra.mxu1 %v6366_v49  ;;  %v1923_v49 = vrot.slane %v1921_v32, 2 }
 0x11d   : > { %5821 = vmatprep.subr.bf16.mxu1 %v6367_v14 }
 0x11e   : > { %5532 = vmatmul.mubr.bf16.gmra.mrb[12].mxu1 %v1515_v51  ;;  %v1534_v51 = vrot.slane %v6334_v46, 1 }
 0x11f   : > { %5760 = vmatmul.mubr.bf16.gmra.mrb[32].mxu0 %v3278_v52  ;;  %5535 = vmatprep.mubr.bf16.mxu1 %v1517_v56  ;;  %v1927_v52 = vshrl.u32 %v7139_v60, 16  ;;  %v1924_v56 = vor.u32 %v1923_v49, %v1920_v6 }
 0x120   : > { %5779 = vmatprep.mubr.bf16.mxu0 %v3582_v33  ;;  %5829 = vmatpush3.bf16.msra.mxu1 %v6367_v14  ;;  %v1936_v33 = vshrl.u32 %v7144_v23, 16  ;;  %v1939_v14 = vshll.u32 %v7144_v23, 16  ;;  %v1535_v61 = vsel %vm1035_vm3, %v1532_v43, %v1534_v51  ;;  %v1945_v23 = vshrl.u32 %v7156_v9, 16 }
 0x121   : > { %5822 = vmatprep.subr.bf16.mxu1 %v6370_v15  ;;  %v1929_v17 = vrot.slane %v1927_v52, 1  ;;  %v3608_v43 = vsel %vm3579_vm5, %v3605_v16, %v3607_v21 }
 0x122   : > { %v1938_v60 = vrot.slane %v1936_v33, 1 }
 0x124   : > { %5830 = vmatpush3.bf16.msra.mxu1 %v6370_v15  ;;  %v3600_v15 = vsel %vm3579_vm5, %v3597_v40, %v3599_v58 }
 0x126   : > { %5536 = vmatmul.mubr.bf16.gmra.mrb[16].mxu1 %v1519_v59  ;;  %v1925_v59 = vsel %vm1836_vm1, %v6616_v34, %v1924_v56  ;;  %v1957_v34 = vshll.u32 %v7161_v5, 16  ;;  %v1963_v5 = vshrl.u32 %v7170_v18, 16 }
 0x127   : > { %5780 = vmatmul.mubr.bf16.vlgmr.msra.gmra.mrb[0].mxu0 %v3584_v25  ;;  %5539 = vmatprep.mubr.bf16.mxu1 %v1521_v4  ;;  %v1941_v25 = vrot.slane %v1939_v14, 2  ;;  %v1933_v4 = vor.u32 %v1932_v3, %v1929_v17 }
 0x128   : > { %5783 = vmatprep.mubr.bf16.mxu0 %v3586_v27  ;;  %v3603_v27 = vrot.slane %v6909_v10, 3  ;;  %v1959_v9 = vrot.slane %v1957_v34, 2  ;;  %v1965_v44 = vrot.slane %v1963_v5, 1 }
 0x129   : > { %v1942_v31 = vor.u32 %v1941_v25, %v1938_v60  ;;  %v1934_v41 = vsel %vm1836_vm1, %v1924_v56, %v1933_v4  ;;  %v6377_v56 = vld [vmem:[%s6455_s14 + $0x98] ss:$0 sps:$4 sm:$0x33]   ;;  %s6120_s14 = smul.u32 288, %s8949_s16 }
 0x12a   : > { %v3606_v1 = vsel %vm3579_vm5, %v3603_v27, %v3605_v16  ;;  %v1960_v26 = vor.u32 %v1959_v9, %v1956_v38  ;;  %v1969_v29 = vor.u32 %v1968_v62, %v1965_v44  ;;  %v2002_v33 = vshll.u32 %v6377_v56, 16 }
 0x12b   : > { %s7858_s21 = scalar_lea.vmem %s8653_s2, %s6120_s14 }
 0x12c   : > { %v1970_v6 = vsel %vm1836_vm1, %v1960_v26, %v1969_v29  ;;  %v2004_v17 = vrot.slane %v2002_v33, 2 }
 0x12e   : > { %5540 = vmatmul.mubr.bf16.gmra.mrb[20].mxu1 %v1523_v55  ;;  %v1947_v55 = vrot.slane %v1945_v23, 1 }
 0x12f   : > { %5784 = vmatmul.mubr.bf16.gmra.mrb[4].mxu0 %v3588_v11  ;;  %5543 = vmatprep.mubr.bf16.mxu1 %v1525_v12  ;;  %v1950_v11 = vrot.slane %v1948_v2, 2  ;;  %v3604_v12 = vsel %vm3579_vm5, %v3601_v0, %v3603_v27 }
 0x130   : > { %5787 = vmatprep.mubr.bf16.mxu0 %v3590_v13  ;;  %v1943_v13 = vsel %vm1836_vm1, %v1933_v4, %v1942_v31 }
 0x131   : > { %v1951_v10 = vor.u32 %v1950_v11, %v1947_v55 }
 0x133   : > { %v1961_v42 = vsel %vm1836_vm1, %v1951_v10, %v1960_v26 }
 0x136   : > { %5544 = vmatmul.mubr.bf16.gmra.mrb[24].mxu1 %v1527_v22  ;;  %v1972_v22 = vshrl.u32 %v7175_v20, 16 }
 0x137   : > { %5788 = vmatmul.mubr.bf16.gmra.mrb[8].mxu0 %v3592_v30  ;;  %5547 = vmatprep.mubr.bf16.mxu1 %v1529_v7  ;;  %v1975_v30 = vshll.u32 %v7175_v20, 16  ;;  %v3609_v7 = vrot.slane %v6932_v54, 3  ;;  %v1981_v20 = vshrl.u32 %v7184_v39, 16  ;;  %v1984_v54 = vshll.u32 %v7184_v39, 16 }
 0x138   : > { %5791 = vmatprep.mubr.bf16.mxu0 %v3594_v37  ;;  %v1952_v37 = vsel %vm1836_vm1, %v1942_v31, %v1951_v10  ;;  %v1974_v32 = vrot.slane %v1972_v22, 1 }
 0x139   : > { %v1977_v18 = vrot.slane %v1975_v30, 2  ;;  %v3610_v40 = vsel %vm3579_vm5, %v3607_v21, %v3609_v7  ;;  %v1983_v49 = vrot.slane %v1981_v20, 1 }
 0x13b   : > { %v1978_v46 = vor.u32 %v1977_v18, %v1974_v32 }
 0x13d   : > { %v1979_v52 = vsel %vm1836_vm1, %v1969_v29, %v1978_v46 }
 0x13e   : > { %5548 = vmatmul.mubr.bf16.gmra.mrb[28].mxu1 %v1531_v45  ;;  %v3611_v45 = vrot.slane %v6946_v48, 3 }
 0x13f   : > { %5792 = vmatmul.mubr.bf16.gmra.mrb[12].mxu0 %v3596_v36  ;;  %5551 = vmatprep.mubr.bf16.mxu1 %v1533_v19  ;;  %v1990_v36 = vshrl.u32 %v7189_v35, 16  ;;  %v1993_v19 = vshll.u32 %v7189_v35, 16  ;;  %v1999_v35 = vshrl.u32 %v6377_v56, 16 }
 0x140   : > { %5795 = vmatprep.mubr.bf16.mxu0 %v3598_v50  ;;  %v1986_v50 = vrot.slane %v1984_v54, 2  ;;  %v3612_v51 = vsel %vm3579_vm5, %v3609_v7, %v3611_v45  ;;  %v3614_v48 = vsel %vm3579_vm5, %v3611_v45, %v3613_v28 }
 0x141   : > { %v1992_v53 = vrot.slane %v1990_v36, 1  ;;  %v1995_v58 = vrot.slane %v1993_v19, 2 }
 0x142   : > { %v1987_v39 = vor.u32 %v1986_v50, %v1983_v49 }
 0x143   : > { %v1996_v14 = vor.u32 %v1995_v58, %v1992_v53 }
 0x144   : > { %v1988_v0 = vsel %vm1836_vm1, %v1978_v46, %v1987_v39  ;;  %v8792_v46 = vmov 0 }
 0x145   : > { %v1997_v3 = vsel %vm1836_vm1, %v1987_v39, %v1996_v14 }
 0x146   : > { %5552 = vmatmul.mubr.bf16.gmra.mrb[32].mxu1 %v1535_v61  ;;  %v2001_v61 = vrot.slane %v1999_v35, 1 }
 0x147   : > { %5796 = vmatmul.mubr.bf16.gmra.mrb[16].mxu0 %v3600_v15  ;;  %5587 = vmatprep.mubr.bf16.mxu1 %v1925_v59  ;;  %v3932_v15 = vlaneseq }
 0x148   : > { %5799 = vmatprep.mubr.bf16.mxu0 %v3602_v8  ;;  %v2005_v47 = vor.u32 %v2004_v17, %v2001_v61 }
 0x149   : > { %v7247_v59 = vshrl.u32 %v3932_v15, 7 }
 0x14a   : > { %v2006_v28 = vsel %vm1836_vm1, %v1996_v14, %v2005_v47 }
 0x14b   : > { %v3935_v60 = vadd.s32 16, %v7247_v59  ;;  %v3936_v4 = vadd.s32 24, %v7247_v59  ;;  %v7255_v23 = vmul.u32.u64.low 3817748708, %v7247_v59  ;;  %v7256_v2 = vmul.u32.u64.high 3817748708, %v7247_v59, %v7255_v23 }
 0x14c   : > { %v3937_v55 = vadd.s32 32, %v7247_v59  ;;  %v7287_v44 = vadd.s32 80, %v7247_v59  ;;  %v7314_v36 = vadd.s32 64, %v7247_v59  ;;  %v7337_v39 = vadd.s32 72, %v7247_v59 }
 0x14d   : > { %v7250_v25 = vmul.u32.u64.low 3817748708, %v3935_v60  ;;  %v7251_v8 = vmul.u32.u64.high 3817748708, %v3935_v60, %v7250_v25  ;;  %v7259_v27 = vmul.u32.u64.low 3817748708, %v3936_v4  ;;  %v7260_v31 = vmul.u32.u64.high 3817748708, %v3936_v4, %v7259_v27 }
 0x14e   : > { %5588 = vmatmul.mubr.bf16.vlgmr.msra.gmra.mrb[16].mxu1 %v1934_v41  ;;  %v3939_v41 = vadd.s32 48, %v7247_v59  ;;  %v3975_v11 = vshrl.u32 %v7256_v2, 4  ;;  %v7274_v10 = vmul.u32.u64.low 3817748708, %v3937_v55  ;;  %v7275_v5 = vmul.u32.u64.high 3817748708, %v3937_v55, %v7274_v10 }
 0x14f   : > { %5800 = vmatmul.mubr.bf16.gmra.mrb[20].mxu0 %v3604_v12  ;;  %5591 = vmatprep.mubr.bf16.mxu1 %v1943_v13  ;;  %v3997_v24 = vshrl.u32 %v7251_v8, 4  ;;  %v3940_v13 = vadd.s32 56, %v7247_v59  ;;  %v4008_v38 = vshrl.u32 %v7260_v31, 4  ;;  %v7344_v33 = vadd.s32 112, %v7247_v59 }
 0x150   : > { %5803 = vmatprep.mubr.bf16.mxu0 %v3606_v1  ;;  %v7271_v9 = vmul.u32.u64.low 3817748708, %v3939_v41  ;;  %v7272_v1 = vmul.u32.u64.high 3817748708, %v3939_v41, %v7271_v9  ;;  %v3976_v57 = vmul.u32 18, %v3975_v11  ;;  %v4019_v20 = vshrl.u32 %v7275_v5, 4 }
 0x151   : > { %v3998_v12 = vmul.u32 18, %v3997_v24  ;;  %v7280_v22 = vmul.u32.u64.low 3817748708, %v3940_v13  ;;  %v7281_v30 = vmul.u32.u64.high 3817748708, %v3940_v13, %v7280_v22  ;;  %v7375_v2 = vadd.s32 120, %v7247_v59 }
 0x152   : > { %v4009_v7 = vmul.u32 18, %v4008_v38  ;;  %v7292_v62 = vsub.s32 %v7247_v59, %v3976_v57  ;;  %v4041_v29 = vshrl.u32 %v7272_v1, 4  ;;  %v7382_v24 = vadd.s32 104, %v7247_v59 }
 0x153   : > { %v7277_v21 = vsub.s32 %v3935_v60, %v3998_v12  ;;  %v7306_v54 = vmul.u32.u64.low 3817748708, %v7287_v44  ;;  %v7307_v45 = vmul.u32.u64.high 3817748708, %v7287_v44, %v7306_v54  ;;  %v4052_v19 = vshrl.u32 %v7281_v30, 4 }
 0x154   : > { %v7297_v32 = vsub.s32 %v3936_v4, %v4009_v7  ;;  %vm4365_vm9 = vcmp.ne.s32.totalorder %v7292_v62, 0  ;;  %vm4401_vm10 = vcmp.lt.s32.totalorder %v7292_v62, 0 }
 0x155   : > { %vm4367_vm6 = vcmp.ne.s32.totalorder %v7277_v21, 0  ;;  %vm4403_vm7 = vcmp.lt.s32.totalorder %v7277_v21, 0  ;;  %v7330_v53 = vmul.u32.u64.low 3817748708, %v7314_v36  ;;  %v7331_v58 = vmul.u32.u64.high 3817748708, %v7314_v36, %v7330_v53  ;;  %vm7388_vm15 = vmand %vm4401_vm10, %vm4365_vm9 }
 0x156   : > { %5592 = vmatmul.mubr.bf16.gmra.mrb[20].mxu1 %v1952_v37  ;;  %v7284_v37 = vadd.s32 40, %v7247_v59  ;;  %vm7309_vm8 = vmand %vm4403_vm7, %vm4367_vm6  ;;  %vm4368_vm11 = vcmp.ne.s32.totalorder %v7297_v32, 0  ;;  %vm4404_vm12 = vcmp.lt.s32.totalorder %v7297_v32, 0  ;;  %v7341_v56 = vadd.s32 18, %v7297_v32 }
 0x157   : > { %5804 = vmatmul.mubr.bf16.gmra.mrb[24].mxu0 %v3608_v43  ;;  %5595 = vmatprep.mubr.bf16.mxu1 %v1961_v42  ;;  %v7295_v42 = vadd.s32 18, %v7277_v21  ;;  %v4053_v35 = vmul.u32 18, %v4052_v19  ;;  %v4085_v47 = vshrl.u32 %v7307_v45, 4  ;;  %vm7406_vm2 = vmand %vm4404_vm12, %vm4368_vm11  ;;  %v8702_v45 = vmov 0 }
 0x158   : > { %5807 = vmatprep.mubr.bf16.mxu0 %v3610_v40  ;;  %v7300_v18 = vmul.u32.u64.low 3817748708, %v7284_v37  ;;  %v7301_v40 = vmul.u32.u64.high 3817748708, %v7284_v37, %v7300_v18  ;;  %v7365_v60 = vmul.u32.u64.low 3817748708, %v7337_v39  ;;  %v7366_v25 = vmul.u32.u64.high 3817748708, %v7337_v39, %v7365_v60 }
 0x159   : > { %v7368_v8 = vsub.s32 %v3940_v13, %v4053_v35  ;;  %v7371_v4 = vmul.u32.u64.low 3817748708, %v7344_v33  ;;  %v7372_v23 = vmul.u32.u64.high 3817748708, %v7344_v33, %v7371_v4  ;;  %v4086_v12 = vmul.u32 18, %v4085_v47 }
 0x15a   : > { %v4030_v14 = vshrl.u32 %v7301_v40, 4  ;;  %v4063_v13 = vshrl.u32 %v7331_v58, 4  ;;  %v7426_v1 = vmul.u32.u64.low 3817748708, %v7375_v2  ;;  %v7427_v10 = vmul.u32.u64.high 3817748708, %v7375_v2, %v7426_v1 }
 0x15b   : > { %8688 = vst [vmem:[#allocation3_spill] sm:$0xff] %v7368_v8  ;;  %vm4372_vm6 = vcmp.ne.s32.totalorder %v7368_v8, 0  ;;  %vm4408_vm7 = vcmp.lt.s32.totalorder %v7368_v8, 0  ;;  %v7447_v30 = vmul.u32.u64.low 3817748708, %v7382_v24  ;;  %v7448_v7 = vmul.u32.u64.high 3817748708, %v7382_v24, %v7447_v30 }
 0x15c   : > { %v8699_v18 = vmov 0  ;;  %vm7478_vm11 = vmand %vm4408_vm7, %vm4372_vm6  ;;  %v7483_v19 = vsub.s32 %v7287_v44, %v4086_v12  ;;  %v4074_v35 = vshrl.u32 %v7366_v25, 4  ;;  %v7500_v47 = vadd.s32 128, %v7247_v59 }
 0x15d   : > { %v8703_v45 = vsel %vm7478_vm11, 4294967295, %v8702_v45  ;;  %v7514_v25 = vadd.s32 152, %v7247_v59 }
 0x15e   : > { %5596 = vmatmul.mubr.bf16.gmra.mrb[24].mxu1 %v1970_v6  ;;  %v7320_v6 = vadd.s32 18, %v7292_v62  ;;  %8704 = vst [vmem:[#allocation7_spill] sm:$0xff] %v8703_v45  ;;  %v4075_v1 = vmul.u32 18, %v4074_v35 }
 0x15f   : > { %5808 = vmatmul.mubr.bf16.gmra.mrb[28].mxu0 %v3612_v51  ;;  %5599 = vmatprep.mubr.bf16.mxu1 %v1979_v52  ;;  %v4042_v51 = vmul.u32 18, %v4041_v29  ;;  %v4020_v52 = vmul.u32 18, %v4019_v20 }
 0x160   : > { %5811 = vmatprep.mubr.bf16.mxu0 %v3614_v48  ;;  %v7334_v48 = vadd.s32 88, %v7247_v59 }
 0x161   : > { %v7355_v17 = vsub.s32 %v3939_v41, %v4042_v51  ;;  %v7398_v41 = vadd.s32 144, %v7247_v59  ;;  %v4064_v51 = vmul.u32 18, %v4063_v13  ;;  %v8708_v13 = vmov 0 }
 0x163   : > { %8687 = vst [vmem:[#allocation2_spill] sm:$0xff] %v7355_v17  ;;  %vm4371_vm0 = vcmp.ne.s32.totalorder %v7355_v17, 0  ;;  %vm4407_vm1 = vcmp.lt.s32.totalorder %v7355_v17, 0  ;;  %v7467_v29 = vmul.u32.u64.low 3817748708, %v7398_v41  ;;  %v7468_v20 = vmul.u32.u64.high 3817748708, %v7398_v41, %v7467_v29 }
 0x164   : > { %vm7439_vm9 = vmand %vm4407_vm1, %vm4371_vm0  ;;  %vm4411_vm0 = vcmp.lt.s32.totalorder %v7483_v19, 0  ;;  %v4140_v29 = vshrl.u32 %v7427_v10, 4  ;;  %v7558_v10 = vadd.s32 160, %v7247_v59 }
 0x165   : > { %v4173_v53 = vshrl.u32 %v7468_v20, 4  ;;  %v7572_v20 = vsub.s32 %v7337_v39, %v4075_v1 }
 0x166   : > { %5600 = vmatmul.mubr.bf16.gmra.mrb[28].mxu1 %v1988_v0  ;;  %v7350_v0 = vadd.s32 96, %v7247_v59  ;;  %v4141_v57 = vmul.u32 18, %v4140_v29  ;;  %v7587_v39 = vmul.u32.u64.low 3817748708, %v7558_v10  ;;  %v7588_v1 = vmul.u32.u64.high 3817748708, %v7558_v10, %v7587_v39 }
 0x167   : > { %5812 = vmatmul.mubr.bf16.gmra.mrb[32].mxu0 %v7034_v63  ;;  %5603 = vmatprep.mubr.bf16.mxu1 %v1997_v3  ;;  %v3934_v63 = vadd.s32 8, %v7247_v59  ;;  %v7357_v3 = vsub.s32 %v3937_v55, %v4020_v52  ;;  %vm8729_vm11 = vcmp.lt.s32.totalorder %v7572_v20, 0 }
 0x168   : > { %v7378_v27 = vmul.u32.u64.low 3817748708, %v7350_v0  ;;  %v7379_v31 = vmul.u32.u64.high 3817748708, %v7350_v0, %v7378_v27 }
 0x169   : > { %v7263_v34 = vmul.u32.u64.low 3817748708, %v3934_v63  ;;  %v7264_v16 = vmul.u32.u64.high 3817748708, %v3934_v63, %v7263_v34  ;;  %vm4369_vm3 = vcmp.ne.s32.totalorder %v7357_v3, 0  ;;  %vm4405_vm4 = vcmp.lt.s32.totalorder %v7357_v3, 0 }
 0x16a   : > { %vm7456_vm10 = vmand %vm4405_vm4, %vm4369_vm3  ;;  %v7461_v40 = vadd.s32 18, %v7357_v3  ;;  %v4107_v44 = vshrl.u32 %v7379_v31, 4  ;;  %v7527_v31 = vadd.s32 136, %v7247_v59 }
 0x16b   : > { %v3986_v26 = vshrl.u32 %v7264_v16, 4  ;;  %v7395_v16 = vadd.s32 18, %v7355_v17  ;;  %v8700_v18 = vsel %vm7456_vm10, 4294967295, %v8699_v18 }
 0x16d   : > { %v3987_v43 = vmul.u32 18, %v3986_v26  ;;  %v8695_v26 = vmov 0 }
 0x16e   : > { %5604 = vmatmul.mubr.bf16.gmra.mrb[32].mxu1 %v2006_v28  ;;  %v7361_v28 = vmul.u32.u64.low 3817748708, %v7334_v48  ;;  %v7362_v15 = vmul.u32.u64.high 3817748708, %v7334_v48, %v7361_v28  ;;  %v8696_v26 = vsel %vm7439_vm9, 4294967295, %v8695_v26 }
 0x16f   : > { %v7322_v49 = vsub.s32 %v3934_v63, %v3987_v43  ;;  %v4031_v63 = vmul.u32 18, %v4030_v14  ;;  %v4129_v14 = vshrl.u32 %v7372_v23, 4  ;;  %v7521_v23 = vadd.s32 18, %v7483_v19 }
 0x170   : > { %v4096_v52 = vshrl.u32 %v7362_v15, 4  ;;  %v4118_v15 = vshrl.u32 %v7448_v7, 4  ;;  %v7547_v58 = vmul.u32.u64.low 3817748708, %v7500_v47  ;;  %v7548_v28 = vmul.u32.u64.high 3817748708, %v7500_v47, %v7547_v58 }
 0x171   : > { %vm4366_vm13 = vcmp.ne.s32.totalorder %v7322_v49, 0  ;;  %vm4402_vm14 = vcmp.lt.s32.totalorder %v7322_v49, 0  ;;  %v7353_v61 = vadd.s32 18, %v7322_v49  ;;  %v7444_v22 = vsub.s32 %v7284_v37, %v4031_v63 }
 0x172   : > { %vm7419_vm5 = vmand %vm4402_vm14, %vm4366_vm13  ;;  %v7464_v37 = vadd.s32 18, %v7368_v8  ;;  %vm4375_vm14 = vcmp.ne.s32.totalorder %v7483_v19, 0  ;;  %v7524_v63 = vsub.s32 %v7314_v36, %v4064_v51  ;;  %v4097_v27 = vmul.u32 18, %v4096_v52 }
 0x173   : > { %8697 = vst [vmem:[#allocation4_spill] sm:$0xff] %v7444_v22  ;;  %vm4370_vm12 = vcmp.ne.s32.totalorder %v7444_v22, 0  ;;  %vm4406_vm13 = vcmp.lt.s32.totalorder %v7444_v22, 0  ;;  %v7511_v60 = vadd.s32 18, %v7444_v22  ;;  %v4130_v30 = vmul.u32 18, %v4129_v14 }
 0x174   : > { %8701 = vst [vmem:[#allocation6_spill] sm:$0xff] %v7464_v37  ;;  %vm7535_vm1 = vmand %vm4406_vm13, %vm4370_vm12  ;;  %v7541_v36 = vadd.s32 176, %v7247_v59  ;;  %v4108_v52 = vmul.u32 18, %v4107_v44  ;;  %v7554_v35 = vmul.u32.u64.low 3817748708, %v7514_v25  ;;  %v7555_v14 = vmul.u32.u64.high 3817748708, %v7514_v25, %v7554_v35 }
 0x175   : > { %8705 = vst [vmem:[#allocation8_spill] sm:$0xff] %v7511_v60  ;;  %v8709_v13 = vsel %vm7535_vm1, 4294967295, %v8708_v13  ;;  %v7565_v44 = vsub.s32 %v7334_v48, %v4097_v27  ;;  %v7568_v58 = vmul.u32.u64.low 3817748708, %v7527_v31  ;;  %v7569_v50 = vmul.u32.u64.high 3817748708, %v7527_v31, %v7568_v58  ;;  %vm7624_vm13 = vmand %vm4411_vm0, %vm4375_vm14 }
 0x176   : > { %8710 = vst [vmem:[#allocation11_spill] sm:$0xff] %v8709_v13  ;;  %vm4373_vm3 = vcmp.ne.s32.totalorder %v7524_v63, 0  ;;  %vm4409_vm4 = vcmp.lt.s32.totalorder %v7524_v63, 0  ;;  %v7581_v7 = vsub.s32 %v7344_v33, %v4130_v30  ;;  %v4119_v48 = vmul.u32 18, %v4118_v15 }
 0x177   : > { %8713 = vst [vmem:[#allocation14_spill] sm:$0xff] %v7565_v44  ;;  %v7584_v27 = vsub.s32 %v7350_v0, %v4108_v52  ;;  %v4174_v58 = vmul.u32 18, %v4173_v53  ;;  %v7598_v33 = vadd.s32 18, %v7565_v44  ;;  %v7605_v0 = vadd.s32 18, %v7572_v20  ;;  %vm7640_vm6 = vmand %vm4409_vm4, %vm4373_vm3 }
 0x178   : > { %v7608_v53 = vsub.s32 %v7375_v2, %v4141_v57  ;;  %v7615_v52 = vsub.s32 %v7382_v24, %v4119_v48  ;;  %v4151_v39 = vshrl.u32 %v7548_v28, 4  ;;  %v7629_v57 = vadd.s32 18, %v7581_v7 }
 0x179   : > { %v7633_v24 = vsub.s32 %v7398_v41, %v4174_v58  ;;  %v4184_v28 = vshrl.u32 %v7555_v14, 4  ;;  %v7650_v41 = vadd.s32 184, %v7247_v59  ;;  %vm8724_vm0 = vcmp.ne.s32.totalorder %v7565_v44, 0 }
 0x17a   : > { %vm8725_vm7 = vcmp.lt.s32.totalorder %v7565_v44, 0  ;;  %v8726_v14 = vmov 0  ;;  %vm8728_vm14 = vcmp.ne.s32.totalorder %v7572_v20, 0  ;;  %vm8732_vm4 = vcmp.ne.s32.totalorder %v7581_v7, 0 }
 0x17b   : > { %8720 = vst [vmem:[#allocation19_spill] sm:$0xff] %v7633_v24  ;;  %8723 = vst [vmem:[#allocation20_spill] sm:$0xff] %v7650_v41  ;;  %vm8733_vm3 = vcmp.lt.s32.totalorder %v7581_v7, 0  ;;  %v4185_v8 = vmul.u32 18, %v4184_v28  ;;  %v4195_v37 = vshrl.u32 %v7588_v1, 4  ;;  %v8744_v1 = vmov 0 }
 0x17c   : > { %vm7656_vm12 = vmand %vm8725_vm7, %vm8724_vm0  ;;  %vm8738_vm0 = vcmp.lt.s32.totalorder %v7584_v27, 0  ;;  %v7704_v22 = vmul.u32.u64.low 3817748708, %v7650_v41  ;;  %v7705_v60 = vmul.u32.u64.high 3817748708, %v7650_v41, %v7704_v22 }
 0x17d   : > { %v8727_v14 = vsel %vm7656_vm12, 4294967295, %v8726_v14  ;;  %vm7670_vm1 = vmand %vm8729_vm11, %vm8728_vm14  ;;  %vm8737_vm14 = vcmp.ne.s32.totalorder %v7584_v27, 0  ;;  %vm8743_vm11 = vcmp.lt.s32.totalorder %v7608_v53, 0  ;;  %v8747_v22 = vsel %vm7388_vm15, %v7320_v6, %v7292_v62 }
 0x17e   : > { %vm7683_vm9 = vmand %vm8733_vm3, %vm8732_vm4  ;;  %vm4419_vm3 = vcmp.lt.s32.totalorder %v7633_v24, 0  ;;  %vm8742_vm4 = vcmp.ne.s32.totalorder %v7608_v53, 0  ;;  %v8752_v62 = vmov 0  ;;  %v7752_v6 = vadd.s32 18, %v7633_v24 }
 0x17f   : > { %vm7698_vm7 = vmand %vm8738_vm0, %vm8737_vm14  ;;  %vm7731_vm0 = vcmp.lt.s32.totalorder %v8747_v22, 16  ;;  %vm8751_vm14 = vcmp.lt.s32.totalorder %v7615_v52, 0  ;;  %vm8789_vm12 = vnez %v8696_v26 }
 0x180   : > { %vm7713_vm10 = vmand %vm8743_vm11, %vm8742_vm4  ;;  %vm8750_vm11 = vcmp.ne.s32.totalorder %v7615_v52, 0  ;;  %8754 = vst [vmem:[#allocation24_spill] sm:$0xff] %v7752_v6  ;;  %vm8757_vm4 = vcmp.ne.s32.totalorder %v7633_v24, 0  ;;  %v8796_v24 = vld [vmem:[#allocation8_spill] sm:$0xff] }
 0x181   : > { %v8745_v1 = vsel %vm7713_vm10, 4294967295, %v8744_v1  ;;  %vm7747_vm15 = vmand %vm8751_vm14, %vm8750_vm11  ;;  %vm8776_vm10 = vnez %v8700_v18  ;;  %v7893_v18 = vadd.s32 216, %v7247_v59  ;;  %v8797_v6 = vld [vmem:[#allocation4_spill] sm:$0xff] }
 0x182   : > { %v8753_v62 = vsel %vm7747_vm15, 4294967295, %v8752_v62  ;;  %vm7771_vm11 = vmand %vm4419_vm3, %vm8757_vm4 }
 0x1d9   : > { %v7400_v55 = vpop.f32.mrb[0].mxu1 }
 0x1da   : > { %v7413_v38 = vpop.f32.mrb[1].mxu1 }
 0x1db   : > { %v7429_v5 = vpop.f32.mrb[2].mxu1 }
 0x1dc   : > { %v7450_v43 = vpop.f32.mrb[3].mxu1 }
 0x1dd   : > { %8698 = vst [vmem:[#allocation5_spill] sm:$0xff] %v7450_v43 }
 0x1e1   : > { %v7516_v4 = vpop.f32.mrb[4].mxu1 }
 0x1e2   : > { %8706 = vst [vmem:[#allocation9_spill] sm:$0xff] %v7516_v4  ;;  %v7529_v12 = vpop.f32.mrb[5].mxu1  ;;  %v7688_v4 = vadd.s32 18, %v7615_v52 }
 0x1e3   : > { %8707 = vst [vmem:[#allocation10_spill] sm:$0xff] %v7529_v12  ;;  %v7543_v51 = vpop.f32.mrb[6].mxu1  ;;  %v4152_v12 = vmul.u32 18, %v4151_v39  ;;  %v8739_v39 = vmov 0 }
 0x1e4   : > { %8711 = vst [vmem:[#allocation12_spill] sm:$0xff] %v7543_v51  ;;  %v7550_v54 = vpop.f32.mrb[7].mxu1  ;;  %v7675_v51 = vadd.s32 18, %v7608_v53  ;;  %v8740_v39 = vsel %vm7698_vm7, 4294967295, %v8739_v39 }
 0x1e5   : > { %8712 = vst [vmem:[#allocation13_spill] sm:$0xff] %v7550_v54  ;;  %v7575_v35 = vmul.u32.u64.low 3817748708, %v7541_v36  ;;  %v7576_v54 = vmul.u32.u64.high 3817748708, %v7541_v36, %v7575_v35  ;;  %v7755_v34 = vsub.s32 %v7500_v47, %v4152_v12  ;;  %v7776_v47 = vsub.s32 %v7514_v25, %v4185_v8 }
 0x1e6   : > { %v7593_v35 = vadd.s32 18, %v7524_v63  ;;  %v4196_v12 = vmul.u32 18, %v4195_v37  ;;  %v8768_v25 = vsel %vm7406_vm2, %v7341_v56, %v7297_v32 }
 0x1e7   : > { %v4217_v58 = vshrl.u32 %v7576_v54, 4  ;;  %v8734_v54 = vmov 0  ;;  %8755 = vst [vmem:[#allocation25_spill] sm:$0xff] %v7755_v34  ;;  %vm4417_vm4 = vcmp.lt.s32.totalorder %v7755_v34, 0  ;;  %v7842_v11 = vadd.s32 18, %v7755_v34 }
 0x1e8   : > { %v8735_v54 = vsel %vm7683_vm9, 4294967295, %v8734_v54  ;;  %v7847_v32 = vsub.s32 %v7558_v10, %v4196_v12  ;;  %v7850_v56 = vadd.s32 18, %v7776_v47 }
 0x1e9   : > { %v7590_v29 = vpop.f32.mrb[8].mxu1  ;;  %8772 = vst [vmem:[#allocation30_spill] sm:$0xff] %v7842_v11 }
 0x1ea   : > { %8714 = vst [vmem:[#allocation15_spill] sm:$0xff] %v7590_v29  ;;  %v7600_v15 = vpop.f32.mrb[9].mxu1  ;;  %v7664_v29 = vadd.s32 168, %v7247_v59  ;;  %v7942_v26 = vadd.s32 18, %v7847_v32  ;;  %v8822_v44 = vld [vmem:[#allocation10_spill] sm:$0xff] }
 0x1eb   : > { %8715 = vst [vmem:[#allocation16_spill] sm:$0xff] %v7600_v15  ;;  %v7610_v30 = vpop.f32.mrb[10].mxu1 }
 0x1ec   : > { %8716 = vst [vmem:[#allocation17_spill] sm:$0xff] %v7610_v30  ;;  %v7618_v15 = vpop.f32.mrb[11].mxu1  ;;  %v4162_v30 = vshrl.u32 %v7569_v50, 4  ;;  %v7718_v13 = vmul.u32.u64.low 3817748708, %v7664_v29  ;;  %v7719_v17 = vmul.u32.u64.high 3817748708, %v7664_v29, %v7718_v13 }
 0x1ed   : > { %8717 = vst [vmem:[#allocation18_spill] sm:$0xff] %v7618_v15  ;;  %v7646_v15 = vadd.s32 18, %v7584_v27  ;;  %v8764_v13 = vsel %vm7419_vm5, %v7353_v61, %v7322_v49  ;;  %vm4381_vm5 = vcmp.ne.s32.totalorder %v7755_v34, 0  ;;  %v8809_v34 = vld [vmem:[#allocation3_spill] sm:$0xff] }
 0x1ee   : > { %v4163_v43 = vmul.u32 18, %v4162_v30  ;;  %v7722_v30 = vadd.s32 208, %v7247_v59  ;;  %vm7792_vm3 = vcmp.lt.s32.totalorder %v8764_v13, 16  ;;  %vm7860_vm2 = vmand %vm4417_vm4, %vm4381_vm5  ;;  %v8773_v13 = vmov 0 }
 0x1ef   : > { %v8774_v13 = vsel %vm7860_vm2, 4294967295, %v8773_v13  ;;  %vm8780_vm4 = vcmp.ne.s32.totalorder %v7776_v47, 0 }
 0x1f0   : > { %v7809_v49 = vsub.s32 %v7527_v31, %v4163_v43  ;;  %v7820_v9 = vmul.u32.u64.low 3817748708, %v7722_v30  ;;  %v7821_v37 = vmul.u32.u64.high 3817748708, %v7722_v30, %v7820_v9  ;;  %8775 = vst [vmem:[#allocation31_spill] sm:$0xff] %v8774_v13  ;;  %v8819_v43 = vsel %vm7640_vm6, %v7593_v35, %v7524_v63 }
 0x1f1   : > { %v7692_v45 = vpop.f32.mrb[12].mxu1 }
 0x1f2   : > { %8736 = vst [vmem:[#allocation21_spill] sm:$0xff] %v7692_v45  ;;  %v7707_v28 = vpop.f32.mrb[13].mxu1  ;;  %v4218_v45 = vmul.u32 18, %v4217_v58  ;;  %v8761_v58 = vsel %vm7309_vm8, %v7295_v42, %v7277_v21  ;;  %vm7828_vm8 = vcmp.lt.s32.totalorder %v8768_v25, 16  ;;  %v7865_v10 = vadd.s32 18, %v7809_v49  ;;  %v8794_v21 = vld [vmem:[#allocation11_spill] sm:$0xff] }
 0x1f3   : > { %8741 = vst [vmem:[#allocation22_spill] sm:$0xff] %v7707_v28  ;;  %v7724_v41 = vpop.f32.mrb[14].mxu1  ;;  %vm7783_vm14 = vcmp.lt.s32.totalorder %v8761_v58, 16  ;;  %v8777_v25 = vsel %vm8776_vm10, %v7461_v40, %v7357_v3  ;;  %vm8784_vm10 = vcmp.ne.s32.totalorder %v7809_v49, 0  ;;  %vm8785_vm15 = vcmp.lt.s32.totalorder %v7809_v49, 0 }
 0x1f4   : > { %8746 = vst [vmem:[#allocation23_spill] sm:$0xff] %v7724_v41  ;;  %v7757_v22 = vpop.f32.mrb[15].mxu1  ;;  %v8758_v41 = vmov 0  ;;  %v7817_v8 = vsub.s32 %v7541_v36, %v4218_v45  ;;  %v7839_v45 = vadd.s32 192, %v7247_v59  ;;  %v4228_v36 = vshrl.u32 %v7705_v60, 4  ;;  %vm7900_vm7 = vmand %vm8785_vm15, %vm8784_vm10 }
 0x1f5   : > { %8756 = vst [vmem:[#allocation26_spill] sm:$0xff] %v7757_v22  ;;  %v8759_v41 = vsel %vm7771_vm11, 4294967295, %v8758_v41  ;;  %v4206_v60 = vshrl.u32 %v7719_v17, 4  ;;  %vm7876_vm5 = vcmp.lt.s32.totalorder %v8777_v25, 16  ;;  %vm8781_vm11 = vcmp.lt.s32.totalorder %v7776_v47, 0 }
 0x1f6   : > { %8760 = vst [vmem:[#allocation27_spill] sm:$0xff] %v8759_v41  ;;  %8767 = vst [vmem:[#allocation28_spill] sm:$0xff] %v7817_v8  ;;  %v7905_v25 = vadd.s32 18, %v7817_v8  ;;  %vm8795_vm10 = vnez %v8794_v21 }
 0x1f7   : > { %8771 = vst [vmem:[#allocation29_spill] sm:$0xff] %v7839_v45  ;;  %vm7884_vm9 = vmand %vm8781_vm11, %vm8780_vm4  ;;  %v8798_v41 = vsel %vm8795_vm10, %v8796_v24, %v8797_v6  ;;  %vm8802_vm4 = vcmp.lt.s32.totalorder %v7817_v8, 0  ;;  %v4229_v24 = vmul.u32 18, %v4228_v36  ;;  %v8805_v6 = vld [vmem:[#allocation5_spill] sm:$0xff] }
 0x1f8   : > { %8788 = vst [vmem:[#allocation32_spill] sm:$0xff] %v7905_v25  ;;  %vm7925_vm11 = vcmp.lt.s32.totalorder %v8798_v41, 16  ;;  %v8818_v25 = vld [vmem:[#allocation9_spill] sm:$0xff] }
 0x1fa   : > { %v5781_v58 = vpop.f32.mrb[0].mxu0 }
 0x1fb   : > { %v5831_v12 = vadd.f32 %v5781_v58, %v7400_v55  ;;  %v3717_v9 = vpop.f32.mrb[1].mxu0  ;;  %v7889_v17 = vmul.u32.u64.low 3817748708, %v7839_v45  ;;  %v7890_v55 = vmul.u32.u64.high 3817748708, %v7839_v45, %v7889_v17 }
 0x1fc   : > { %v5832_v3 = vadd.f32 %v3717_v9, %v7413_v38  ;;  %v5782_v40 = vpop.f32.mrb[2].mxu0  ;;  %v8790_v17 = vld [vmem:[#allocation2_spill] sm:$0xff] }
 0x1fd   : > { %3898 = vst [vmem:[%s7858_s21 + $0x10] sm:$0xff] %v5831_v12  ;;  %v5833_v38 = vadd.f32 %v5782_v40, %v7429_v5  ;;  %v3720_v9 = vpop.f32.mrb[3].mxu0  ;;  %v8791_v61 = vsel %vm8789_vm12, %v7395_v16, %v8790_v17  ;;  %vm8801_vm12 = vcmp.ne.s32.totalorder %v7817_v8, 0  ;;  %v4261_v40 = vshrl.u32 %v7821_v37, 4  ;;  %v8806_v17 = vld [vmem:[#allocation7_spill] sm:$0xff]  ;;  %v8808_v5 = vld [vmem:[#allocation6_spill] sm:$0xff] }
 0x1fe   : > { %vm7916_vm15 = vcmp.lt.s32.totalorder %v8791_v61, 16  ;;  %3896 = vst [vmem:[%s7858_s21] sm:$0xff] %v5832_v3  ;;  %v4581_v41 = vsel %vm7731_vm0, %v5832_v3, 0.0  ;;  %v5834_v21 = vadd.f32 %v3720_v9, %v8805_v6  ;;  %v4207_v61 = vmul.u32 18, %v4206_v60  ;;  %v8817_v37 = vld [vmem:[#allocation20_spill] sm:$0xff] }
 0x1ff   : > { %v8793_v46 = vsel %vm7916_vm15, 4294967295, %v8792_v46  ;;  %vm7937_vm15 = vmand %vm8802_vm4, %vm8801_vm12  ;;  %3899 = vst [vmem:[%s7858_s21 + $0x18] sm:$0xff] %v5833_v38  ;;  %vm8807_vm10 = vnez %v8806_v17  ;;  %vm8813_vm0 = vcmp.ne.s32.totalorder %v7847_v32, 0  ;;  %vm8814_vm12 = vcmp.lt.s32.totalorder %v7847_v32, 0 }
 0x200   : > { %v8810_v11 = vsel %vm8807_vm10, %v8808_v5, %v8809_v34  ;;  %vm7971_vm2 = vmand %vm8814_vm12, %vm8813_vm0  ;;  %v4583_v60 = vsel %vm7783_vm14, %v5831_v12, 0.0  ;;  %3897 = vst [vmem:[%s7858_s21 + $0x8] sm:$0xff] %v5834_v21  ;;  %v4582_v3 = vsel %vm7792_vm3, %v5834_v21, 0.0  ;;  %v7989_v5 = vadd.s32 200, %v7247_v59 }
 0x201   : > { %vm7955_vm4 = vcmp.lt.s32.totalorder %v8810_v11, 16  ;;  %v7976_v11 = vmul.u32.u64.low 3817748708, %v7893_v18  ;;  %v7977_v36 = vmul.u32.u64.high 3817748708, %v7893_v18, %v7976_v11  ;;  %v4659_v6 = vmul.f32 %v4581_v41, %v4581_v41 }
 0x202   : > { %v4617_v17 = vadd.f32 %v4582_v3, %v4581_v41  ;;  %v4660_v28 = vmul.f32 %v4582_v3, %v4582_v3  ;;  %v7992_v11 = vsub.s32 %v8817_v37, %v4229_v24  ;;  %v4584_v22 = vsel %vm7828_vm8, %v5833_v38, 0.0  ;;  %v5785_v12 = vpop.f32.mrb[4].mxu0 }
 0x203   : > { %v8001_v21 = vsub.s32 %v7664_v29, %v4207_v61  ;;  %v4262_v9 = vmul.u32 18, %v4261_v40  ;;  %v4661_v8 = vmul.f32 %v4583_v60, %v4583_v60  ;;  %v5835_v24 = vadd.f32 %v5785_v12, %v8818_v25  ;;  %v3733_v37 = vpop.f32.mrb[5].mxu0 }
 0x204   : > { %v4618_v41 = vadd.f32 %v4617_v17, %v4583_v60  ;;  %v4695_v3 = vadd.f32 %v4660_v28, %v4659_v6  ;;  %vm8009_vm14 = vcmp.lt.s32.totalorder %v8819_v43, 16  ;;  %v5836_v29 = vadd.f32 %v3733_v37, %v8822_v44  ;;  %v5786_v61 = vpop.f32.mrb[6].mxu0  ;;  %v8823_v17 = vld [vmem:[#allocation12_spill] sm:$0xff]  ;;  %v8830_v44 = vld [vmem:[#allocation13_spill] sm:$0xff] }
 0x205   : > { %v4239_v40 = vshrl.u32 %v7890_v55, 4  ;;  %v8016_v28 = vmul.u32.u64.low 3817748708, %v7989_v5  ;;  %v8017_v60 = vmul.u32.u64.high 3817748708, %v7989_v5, %v8016_v28  ;;  %v4662_v25 = vmul.f32 %v4584_v22, %v4584_v22  ;;  %3902 = vst [vmem:[%s7858_s21 + $0x30] sm:$0xff] %v5835_v24  ;;  %v3736_v35 = vpop.f32.mrb[7].mxu0 }
 0x206   : > { %v4696_v6 = vadd.f32 %v4695_v3, %v4661_v8  ;;  %v4619_v48 = vadd.f32 %v4618_v41, %v4584_v22  ;;  %v5837_v63 = vadd.f32 %v5786_v61, %v8823_v17  ;;  %v8824_v12 = vsel %vm7624_vm13, %v7521_v23, %v7483_v19  ;;  %3900 = vst [vmem:[%s7858_s21 + $0x20] sm:$0xff] %v5836_v29 }
 0x207   : > { %vm8026_vm6 = vcmp.lt.s32.totalorder %v8824_v12, 16  ;;  %v8827_v8 = vsel %vm7670_vm1, %v7605_v0, %v7572_v20  ;;  %v4585_v2 = vsel %vm7876_vm5, %v5836_v29, 0.0  ;;  %v5838_v41 = vadd.f32 %v3736_v35, %v8830_v44  ;;  %v8832_v20 = vld [vmem:[#allocation14_spill] sm:$0xff] }
 0x208   : > { %vm8035_vm3 = vcmp.lt.s32.totalorder %v8827_v8, 16  ;;  %v8044_v19 = vadd.s32 18, %v7992_v11  ;;  %v8047_v23 = vadd.s32 240, %v7247_v59  ;;  %v4620_v50 = vadd.f32 %v4619_v48, %v4585_v2  ;;  %3903 = vst [vmem:[%s7858_s21 + $0x38] sm:$0xff] %v5837_v63 }
 0x209   : > { %v4663_v3 = vmul.f32 %v4585_v2, %v4585_v2  ;;  %v4697_v37 = vadd.f32 %v4696_v6, %v4662_v25  ;;  %vm8831_vm1 = vnez %v8727_v14  ;;  %v8060_v43 = vadd.s32 224, %v7247_v59  ;;  %3901 = vst [vmem:[%s7858_s21 + $0x28] sm:$0xff] %v5838_v41 }
 0x20a   : > { %v8833_v0 = vsel %vm8831_vm1, %v7598_v33, %v8832_v20  ;;  %vm8836_vm8 = vnez %v8793_v46  ;;  %v4586_v61 = vsel %vm7925_vm11, %v5838_v41, 0.0  ;;  %v8068_v28 = vadd.s32 18, %v8001_v21  ;;  %v5789_v46 = vpop.f32.mrb[8].mxu0 }
 0x20b   : > { %vm8055_vm13 = vcmp.lt.s32.totalorder %v8833_v0, 16  ;;  %v4587_v29 = vsel %vm8836_vm8, %v5835_v24, 0.0  ;;  %v8071_v14 = vsub.s32 %v7722_v30, %v4262_v9  ;;  %v4698_v33 = vadd.f32 %v4697_v37, %v4663_v3  ;;  %v8837_v30 = vld [vmem:[#allocation15_spill] sm:$0xff]  ;;  %v3749_v44 = vpop.f32.mrb[9].mxu0 }
 0x20c   : > { %v4621_v25 = vadd.f32 %v4620_v50, %v4586_v61  ;;  %v4664_v6 = vmul.f32 %v4586_v61, %v4586_v61  ;;  %v4240_v48 = vmul.u32 18, %v4239_v40  ;;  %v4588_v17 = vsel %vm7955_vm4, %v5837_v63, 0.0  ;;  %v5790_v41 = vpop.f32.mrb[10].mxu0 }
 0x20d   : > { %v4272_v24 = vshrl.u32 %v7977_v36, 4  ;;  %v8077_v45 = vmul.u32.u64.low 3817748708, %v8047_v23  ;;  %v8078_v35 = vmul.u32.u64.high 3817748708, %v8047_v23, %v8077_v45  ;;  %v4665_v12 = vmul.f32 %v4587_v29, %v4587_v29  ;;  %v8842_v36 = vld [vmem:[#allocation16_spill] sm:$0xff] }
 0x20e   : > { %v4622_v8 = vadd.f32 %v4621_v25, %v4587_v29  ;;  %v4699_v2 = vadd.f32 %v4698_v33, %v4664_v6  ;;  %v5839_v9 = vadd.f32 %v5789_v46, %v8837_v30  ;;  %vm8838_vm5 = vnez %v8740_v39  ;;  %v8843_v29 = vld [vmem:[#allocation17_spill] sm:$0xff]  ;;  %v8852_v6 = vld [vmem:[#allocation18_spill] sm:$0xff] }
 0x20f   : > { %v8839_v13 = vsel %vm8838_vm5, %v7646_v15, %v7584_v27  ;;  %v5840_v63 = vadd.f32 %v3749_v44, %v8842_v36  ;;  %v4250_v50 = vshrl.u32 %v8017_v60, 4  ;;  %v4666_v20 = vmul.f32 %v4588_v17, %v4588_v17  ;;  %v3752_v15 = vpop.f32.mrb[11].mxu0 }
 0x210   : > { %vm8086_vm11 = vcmp.lt.s32.totalorder %v8839_v13, 16  ;;  %v8093_v3 = vmul.u32.u64.low 3817748708, %v8060_v43  ;;  %v8094_v37 = vmul.u32.u64.high 3817748708, %v8060_v43, %v8093_v3  ;;  %v4700_v0 = vadd.f32 %v4699_v2, %v4665_v12  ;;  %3906 = vst [vmem:[%s7858_s21 + $0x50] sm:$0xff] %v5839_v9 }
 0x211   : > { %v4623_v39 = vadd.f32 %v4622_v8, %v4588_v17  ;;  %v5841_v27 = vadd.f32 %v5790_v41, %v8843_v29  ;;  %vm8844_vm10 = vnez %v8735_v54  ;;  %vm8848_vm0 = vnez %v8753_v62  ;;  %3904 = vst [vmem:[%s7858_s21 + $0x40] sm:$0xff] %v5840_v63 }
 0x212   : > { %v8845_v61 = vsel %vm8844_vm10, %v7629_v57, %v7581_v7  ;;  %v8849_v60 = vsel %vm8848_vm0, %v7688_v4, %v7615_v52  ;;  %v4589_v54 = vsel %vm8009_vm14, %v5840_v63, 0.0  ;;  %v5842_v7 = vadd.f32 %v3752_v15, %v8852_v6  ;;  %v5793_v22 = vpop.f32.mrb[12].mxu0 }
 0x213   : > { %vm8103_vm4 = vcmp.lt.s32.totalorder %v8845_v61, 16  ;;  %vm8112_vm12 = vcmp.lt.s32.totalorder %v8849_v60, 16  ;;  %vm4388_vm1 = vcmp.ne.s32.totalorder %v7992_v11, 0  ;;  %v4273_v57 = vmul.u32 18, %v4272_v24  ;;  %3907 = vst [vmem:[%s7858_s21 + $0x58] sm:$0xff] %v5841_v27 }
 0x214   : > { %v8123_v62 = vadd.s32 248, %v7247_v59  ;;  %v4624_v4 = vadd.f32 %v4623_v39, %v4589_v54  ;;  %v4667_v52 = vmul.f32 %v4589_v54, %v4589_v54  ;;  %v4701_v17 = vadd.f32 %v4700_v0, %v4666_v20  ;;  %3905 = vst [vmem:[%s7858_s21 + $0x48] sm:$0xff] %v5842_v7  ;;  %v3765_v20 = vpop.f32.mrb[13].mxu0  ;;  %v8859_v0 = vld [vmem:[#allocation22_spill] sm:$0xff]  ;;  %v8860_v54 = vld [vmem:[#allocation23_spill] sm:$0xff] }
 0x215   : > { %vm8853_vm5 = vnez %v8745_v1  ;;  %vm4386_vm10 = vcmp.ne.s32.totalorder %v8001_v21, 0  ;;  %vm4422_vm0 = vcmp.lt.s32.totalorder %v8001_v21, 0  ;;  %v8138_v24 = vadd.s32 232, %v7247_v59  ;;  %v5794_v31 = vpop.f32.mrb[14].mxu0 }
 0x216   : > { %v8854_v38 = vsel %vm8853_vm5, %v7675_v51, %v7608_v53  ;;  %v4591_v45 = vsel %vm8026_vm6, %v5839_v9, 0.0  ;;  %v4590_v1 = vsel %vm8035_vm3, %v5842_v7, 0.0  ;;  %vm4391_vm5 = vcmp.ne.s32.totalorder %v8071_v14, 0  ;;  %v8857_v51 = vld [vmem:[#allocation29_spill] sm:$0xff]  ;;  %v3768_v7 = vpop.f32.mrb[15].mxu0 }
 0x217   : > { %vm8131_vm14 = vcmp.lt.s32.totalorder %v8854_v38, 16  ;;  %v8148_v53 = vsub.s32 %v8857_v51, %v4240_v48  ;;  %v4251_v12 = vmul.u32 18, %v4250_v50  ;;  %v4702_v8 = vadd.f32 %v4701_v17, %v4667_v52  ;;  %v8858_v50 = vld [vmem:[#allocation21_spill] sm:$0xff] }
 0x218   : > { %v4625_v2 = vadd.f32 %v4624_v4, %v4590_v1  ;;  %v4668_v30 = vmul.f32 %v4590_v1, %v4590_v1  ;;  %v8151_v44 = vadd.s32 272, %v7247_v59  ;;  %v4592_v55 = vsel %vm8055_vm13, %v5841_v27, 0.0  ;;  %v8861_v4 = vld [vmem:[#allocation26_spill] sm:$0xff] }
 0x219   : > { %v8156_v9 = vsub.s32 %v7893_v18, %v4273_v57  ;;  %v8159_v13 = vmul.u32.u64.low 3817748708, %v8123_v62  ;;  %v8160_v36 = vmul.u32.u64.high 3817748708, %v8123_v62, %v8159_v13  ;;  %v4669_v48 = vmul.f32 %v4591_v45, %v4591_v45 }
 0x21a   : > { %v4626_v63 = vadd.f32 %v4625_v2, %v4591_v45  ;;  %v4703_v41 = vadd.f32 %v4702_v8, %v4668_v30  ;;  %v5843_v3 = vadd.f32 %v5793_v22, %v8858_v50  ;;  %v5844_v39 = vadd.f32 %v3765_v20, %v8859_v0  ;;  %v5797_v25 = vpop.f32.mrb[16].mxu0  ;;  %v8865_v2 = vld [vmem:[#allocation31_spill] sm:$0xff]  ;;  %v8867_v30 = vld [vmem:[#allocation30_spill] sm:$0xff] }
 0x21b   : > { %v8165_v29 = vsub.s32 %v7989_v5, %v4251_v12  ;;  %v4305_v18 = vshrl.u32 %v8078_v35, 4  ;;  %v4283_v27 = vshrl.u32 %v8094_v37, 4  ;;  %v4670_v15 = vmul.f32 %v4592_v55, %v4592_v55  ;;  %v3781_v20 = vpop.f32.mrb[17].mxu0 }
 0x21c   : > { %v4704_v61 = vadd.f32 %v4703_v41, %v4669_v48  ;;  %3910 = vst [vmem:[%s7858_s21 + $0x70] sm:$0xff] %v5843_v3  ;;  %v4627_v60 = vadd.f32 %v4626_v63, %v4592_v55  ;;  %v5845_v6 = vadd.f32 %v5794_v31, %v8860_v54  ;;  %3908 = vst [vmem:[%s7858_s21 + $0x60] sm:$0xff] %v5844_v39  ;;  %v4593_v57 = vsel %vm8086_vm11, %v5844_v39, 0.0  ;;  %v8868_v55 = vld [vmem:[#allocation25_spill] sm:$0xff]  ;;  %v5798_v39 = vpop.f32.mrb[18].mxu0  ;;  %v8877_v31 = vld [vmem:[#allocation27_spill] sm:$0xff] }
 0x21d   : > { %v5846_v5 = vadd.f32 %v3768_v7, %v8861_v4  ;;  %v8176_v52 = vmul.u32.u64.low 3817748708, %v8138_v24  ;;  %v8177_v17 = vmul.u32.u64.high 3817748708, %v8138_v24, %v8176_v52  ;;  %v4671_v37 = vmul.f32 %v4593_v57, %v4593_v57 }
 0x21e   : > { %v4628_v35 = vadd.f32 %v4627_v60, %v4593_v57  ;;  %v4705_v38 = vadd.f32 %v4704_v61, %v4670_v15  ;;  %3911 = vst [vmem:[%s7858_s21 + $0x78] sm:$0xff] %v5845_v6  ;;  %vm4389_vm6 = vcmp.ne.s32.totalorder %v8148_v53, 0  ;;  %v4595_v45 = vsel %vm8103_vm4, %v5843_v3, 0.0  ;;  %v8879_v15 = vld [vmem:[#allocation24_spill] sm:$0xff] }
 0x21f   : > { %3909 = vst [vmem:[%s7858_s21 + $0x68] sm:$0xff] %v5846_v5  ;;  %v4594_v40 = vsel %vm8112_vm12, %v5846_v5, 0.0  ;;  %vm4425_vm3 = vcmp.lt.s32.totalorder %v8148_v53, 0  ;;  %vm8862_vm11 = vcmp.lt.s32.totalorder %v7992_v11, 0  ;;  %vm4428_vm4 = vcmp.lt.s32.totalorder %v8156_v9, 0  ;;  %v3784_v5 = vpop.f32.mrb[19].mxu0 }
 0x220   : > { %v4706_v1 = vadd.f32 %v4705_v38, %v4671_v37  ;;  %v4629_v51 = vadd.f32 %v4628_v35, %v4594_v40  ;;  %v4672_v12 = vmul.f32 %v4594_v40, %v4594_v40  ;;  %vm8192_vm8 = vmand %vm8862_vm11, %vm4388_vm1  ;;  %v4596_v33 = vsel %vm8131_vm14, %v5845_v6, 0.0 }
 0x221   : > { %vm8866_vm12 = vnez %v8865_v2  ;;  %vm8212_vm1 = vmand %vm4422_vm0, %vm4386_vm10  ;;  %v4306_v46 = vmul.u32 18, %v4305_v18  ;;  %v4284_v63 = vmul.u32 18, %v4283_v27  ;;  %v4673_v41 = vmul.f32 %v4595_v45, %v4595_v45  ;;  %v8880_v18 = vld [vmem:[#allocation19_spill] sm:$0xff] }
 0x222   : > { %v8869_v22 = vsel %vm8866_vm12, %v8867_v30, %v8868_v55  ;;  %v4630_v50 = vadd.f32 %v4629_v51, %v4595_v45  ;;  %v4707_v3 = vadd.f32 %v4706_v1, %v4672_v12  ;;  %vm8874_vm11 = vcmp.lt.s32.totalorder %v8071_v14, 0  ;;  %v5801_v55 = vpop.f32.mrb[20].mxu0 }
 0x223   : > { %vm8204_vm13 = vcmp.lt.s32.totalorder %v8869_v22, 16  ;;  %vm8221_vm12 = vmand %vm8874_vm11, %vm4391_vm5  ;;  %vm4426_vm10 = vcmp.lt.s32.totalorder %v8165_v29, 0  ;;  %vm8878_vm0 = vnez %v8877_v31  ;;  %v8884_v60 = vsel %vm7900_vm7, %v7865_v10, %v7809_v49  ;;  %v8902_v31 = vld [vmem:[#allocation28_spill] sm:$0xff] }
 0x224   : > { %v8881_v27 = vsel %vm8878_vm0, %v8879_v15, %v8880_v18  ;;  %vm8240_vm5 = vcmp.lt.s32.totalorder %v8884_v60, 16  ;;  %v8245_v6 = vadd.s32 18, %v8071_v14  ;;  %vm8251_vm11 = vmand %vm4425_vm3, %vm4389_vm6  ;;  %v8256_v58 = vadd.s32 18, %v8148_v53 }
 0x225   : > { %vm8231_vm14 = vcmp.lt.s32.totalorder %v8881_v27, 16  ;;  %v8259_v49 = vadd.s32 18, %v8156_v9  ;;  %v4316_v10 = vshrl.u32 %v8160_v36, 4  ;;  %v4674_v57 = vmul.f32 %v4596_v33, %v4596_v33 }
 0x226   : > { %v4708_v4 = vadd.f32 %v4707_v3, %v4673_v41  ;;  %v4631_v52 = vadd.f32 %v4630_v50, %v4596_v33  ;;  %vm8889_vm7 = vcmp.ne.s32.totalorder %v8156_v9, 0  ;;  %v8271_v37 = vadd.s32 18, %v8165_v29  ;;  %v5589_v33 = vpop.f32.mrb[16].mxu1  ;;  %v8901_v3 = vld [vmem:[#allocation32_spill] sm:$0xff] }
 0x227   : > { %vm8266_vm6 = vmand %vm4428_vm4, %vm8889_vm7  ;;  %v8892_v36 = vsel %vm7884_vm9, %v7850_v56, %v7776_v47  ;;  %v4532_v45 = vsel %vm8192_vm8, %v8044_v19, %v7992_v11  ;;  %vm8895_vm4 = vcmp.ne.s32.totalorder %v8165_v29, 0  ;;  %v8295_v42 = vsub.s32 %v8047_v23, %v4306_v46  ;;  %v2171_v22 = vpop.f32.mrb[17].mxu1 }
 0x228   : > { %vm8278_vm3 = vcmp.lt.s32.totalorder %v8892_v36, 16  ;;  %vm8290_vm0 = vmand %vm4426_vm10, %vm8895_vm4  ;;  %v8298_v47 = vsub.s32 %v8060_v43, %v4284_v63  ;;  %v8301_v56 = vadd.s32 256, %v7247_v59  ;;  %v4709_v1 = vadd.f32 %v4708_v4, %v4674_v57  ;;  %v5590_v46 = vpop.f32.mrb[18].mxu1 }
 0x229   : > { %v4294_v11 = vshrl.u32 %v8177_v17, 4  ;;  %v8305_v19 = vmul.u32.u64.low 3817748708, %v8151_v44  ;;  %v8306_v51 = vmul.u32.u64.high 3817748708, %v8151_v44, %v8305_v19  ;;  %v4530_v12 = vsel %vm8212_vm1, %v8068_v28, %v8001_v21  ;;  %v2174_v50 = vpop.f32.mrb[19].mxu1 }
 0x22a   : > { %v4535_v23 = vsel %vm8221_vm12, %v8245_v6, %v8071_v14  ;;  %v4317_v43 = vmul.u32 18, %v4316_v10  ;;  %v8317_v8 = vadd.s32 280, %v7247_v59  ;;  %v4533_v17 = vsel %vm8251_vm11, %v8256_v58, %v8148_v53 }
 0x22b   : > { %v4536_v21 = vsel %vm8266_vm6, %v8259_v49, %v8156_v9  ;;  %v4534_v28 = vsel %vm8290_vm0, %v8271_v37, %v8165_v29  ;;  %v8332_v2 = vadd.s32 264, %v7247_v59  ;;  %v5847_v30 = vadd.f32 %v5797_v25, %v5589_v33  ;;  %v3797_v25 = vpop.f32.mrb[21].mxu0 }
 0x22c   : > { %v8898_v53 = vsel %vm7971_vm2, %v7942_v26, %v7847_v32  ;;  %vm4395_vm8 = vcmp.ne.s32.totalorder %v8295_v42, 0  ;;  %vm4431_vm1 = vcmp.lt.s32.totalorder %v8295_v42, 0  ;;  %vm4393_vm10 = vcmp.ne.s32.totalorder %v8298_v47, 0  ;;  %v5802_v41 = vpop.f32.mrb[22].mxu0 }
 0x22d   : > { %vm8339_vm9 = vcmp.lt.s32.totalorder %v8898_v53, 16  ;;  %vm4429_vm11 = vcmp.lt.s32.totalorder %v8298_v47, 0  ;;  %v5848_v59 = vadd.f32 %v3781_v20, %v2171_v22  ;;  %v4295_v34 = vmul.u32 18, %v4294_v11  ;;  %3914 = vst [vmem:[%s7858_s21 + $0x90] sm:$0xff] %v5847_v30  ;;  %v3800_v58 = vpop.f32.mrb[23].mxu0  ;;  %vm8450_vm12 = vmand %vm4431_vm1, %vm4395_vm8 }
 0x22e   : > { %v8348_v63 = vmul.u32.u64.low 3817748708, %v8301_v56  ;;  %v8349_v32 = vmul.u32.u64.high 3817748708, %v8301_v56, %v8348_v63  ;;  %v5849_v26 = vadd.f32 %v5798_v39, %v5590_v46  ;;  %v8903_v15 = vsel %vm7937_vm15, %v8901_v3, %v8902_v31  ;;  %vm8381_vm15 = vmand %vm4429_vm11, %vm4393_vm10  ;;  %v5805_v46 = vpop.f32.mrb[24].mxu0 }
 0x22f   : > { %vm8357_vm2 = vcmp.lt.s32.totalorder %v8903_v15, 16  ;;  %vm8361_vm7 = vcmp.lt.s32.totalorder %v4530_v12, 16  ;;  %v8366_v27 = vadd.s32 18, %v8295_v42  ;;  %v8369_v39 = vadd.s32 18, %v8298_v47  ;;  %3912 = vst [vmem:[%s7858_s21 + $0x80] sm:$0xff] %v5848_v59 }
 0x230   : > { %v8372_v16 = vsub.s32 %v8123_v62, %v4317_v43  ;;  %v4597_v60 = vsel %vm8204_vm13, %v5848_v59, 0.0  ;;  %v5850_v7 = vadd.f32 %v3784_v5, %v2174_v50  ;;  %3915 = vst [vmem:[%s7858_s21 + $0x98] sm:$0xff] %v5849_v26  ;;  %vm8390_vm4 = vcmp.lt.s32.totalorder %v4532_v45, 16 }
 0x231   : > { %v8386_v57 = vmul.u32.u64.low 3817748708, %v8332_v2  ;;  %v8387_v4 = vmul.u32.u64.high 3817748708, %v8332_v2, %v8386_v57  ;;  %v4632_v62 = vadd.f32 %v4631_v52, %v4597_v60  ;;  %v4675_v36 = vmul.f32 %v4597_v60, %v4597_v60 }
 0x232   : > { %v8395_v5 = vmul.u32.u64.low 3817748708, %v8317_v8  ;;  %v8396_v11 = vmul.u32.u64.high 3817748708, %v8317_v8, %v8395_v5  ;;  %v4599_v19 = vsel %vm8231_vm14, %v5847_v30, 0.0  ;;  %3913 = vst [vmem:[%s7858_s21 + $0x88] sm:$0xff] %v5850_v7  ;;  %v4598_v12 = vsel %vm8240_vm5, %v5850_v7, 0.0  ;;  %v5593_v30 = vpop.f32.mrb[20].mxu1 }
 0x233   : > { %v8404_v43 = vsub.s32 %v8138_v24, %v4295_v34  ;;  %v4349_v52 = vshrl.u32 %v8306_v51, 4  ;;  %v4710_v45 = vadd.f32 %v4709_v1, %v4675_v36  ;;  %v4633_v33 = vadd.f32 %v4632_v62, %v4598_v12  ;;  %v2187_v34 = vpop.f32.mrb[21].mxu1 }
 0x234   : > { %v4676_v22 = vmul.f32 %v4598_v12, %v4598_v12  ;;  %v4537_v53 = vsel %vm8381_vm15, %v8369_v39, %v8298_v47  ;;  %v4600_v61 = vsel %vm8278_vm3, %v5849_v26, 0.0  ;;  %vm4396_vm13 = vcmp.ne.s32.totalorder %v8372_v16, 0  ;;  %v3813_v26 = vpop.f32.mrb[25].mxu0  ;;  %v5594_v50 = vpop.f32.mrb[22].mxu1 }
 0x235   : > { %vm4432_vm14 = vcmp.lt.s32.totalorder %v8372_v16, 0  ;;  %v8416_v24 = vadd.s32 18, %v8372_v16  ;;  %v4677_v54 = vmul.f32 %v4599_v19, %v4599_v19  ;;  %v4634_v1 = vadd.f32 %v4633_v33, %v4599_v19  ;;  %v5806_v57 = vpop.f32.mrb[26].mxu0 }
 0x236   : > { %v4711_v51 = vadd.f32 %v4710_v45, %v4676_v22  ;;  %v5851_v59 = vadd.f32 %v5801_v55, %v5593_v30  ;;  %vm8418_vm5 = vcmp.lt.s32.totalorder %v4533_v17, 16  ;;  %v5852_v38 = vadd.f32 %v3797_v25, %v2187_v34  ;;  %v2190_v17 = vpop.f32.mrb[23].mxu1  ;;  %v3816_v14 = vpop.f32.mrb[27].mxu0  ;;  %vm8470_vm8 = vmand %vm4432_vm14, %vm4396_vm13 }
 0x237   : > { %vm4394_vm3 = vcmp.ne.s32.totalorder %v8404_v43, 0  ;;  %v4350_v3 = vmul.u32 18, %v4349_v52  ;;  %v4327_v31 = vshrl.u32 %v8349_v32, 4  ;;  %v4678_v15 = vmul.f32 %v4600_v61, %v4600_v61  ;;  %v5597_v20 = vpop.f32.mrb[24].mxu1  ;;  %v5809_v22 = vpop.f32.mrb[28].mxu0 }
 0x238   : > { %v4712_v60 = vadd.f32 %v4711_v51, %v4677_v54  ;;  %3918 = vst [vmem:[%s7858_s21 + $0xb0] sm:$0xff] %v5851_v59  ;;  %v4635_v7 = vadd.f32 %v4634_v1, %v4600_v61  ;;  %v5853_v55 = vadd.f32 %v5802_v41, %v5594_v50  ;;  %vm8430_vm10 = vcmp.lt.s32.totalorder %v4535_v23, 16  ;;  %3916 = vst [vmem:[%s7858_s21 + $0xa0] sm:$0xff] %v5852_v38  ;;  %v2203_v61 = vpop.f32.mrb[25].mxu1 }
 0x239   : > { %vm8439_vm11 = vcmp.lt.s32.totalorder %v4534_v28, 16  ;;  %v4601_v0 = vsel %vm8339_vm9, %v5852_v38, 0.0  ;;  %v5854_v41 = vadd.f32 %v3800_v58, %v2190_v17  ;;  %vm4430_vm0 = vcmp.lt.s32.totalorder %v8404_v43, 0  ;;  %v5598_v30 = vpop.f32.mrb[26].mxu1 }
 0x23a   : > { %v4338_v29 = vshrl.u32 %v8387_v4, 4  ;;  %v4636_v37 = vadd.f32 %v4635_v7, %v4601_v0  ;;  %v4679_v40 = vmul.f32 %v4601_v0, %v4601_v0  ;;  %v4713_v23 = vadd.f32 %v4712_v60, %v4678_v15  ;;  %3919 = vst [vmem:[%s7858_s21 + $0xb8] sm:$0xff] %v5853_v55  ;;  %vm8493_vm6 = vmand %vm4430_vm0, %vm4394_vm3  ;;  %v2206_v51 = vpop.f32.mrb[27].mxu1 }
 0x23b   : > { %vm8462_vm9 = vcmp.lt.s32.totalorder %v4536_v21, 16  ;;  %v8475_v58 = vadd.s32 18, %v8404_v43  ;;  %v4603_v35 = vsel %vm8357_vm2, %v5851_v59, 0.0  ;;  %3917 = vst [vmem:[%s7858_s21 + $0xa8] sm:$0xff] %v5854_v41  ;;  %v4602_v9 = vsel %vm8361_vm7, %v5854_v41, 0.0  ;;  %v5601_v17 = vpop.f32.mrb[28].mxu1 }
 0x23c   : > { %v8483_v49 = vsub.s32 %v8151_v44, %v4350_v3  ;;  %v4328_v21 = vmul.u32 18, %v4327_v31  ;;  %v4714_v4 = vadd.f32 %v4713_v23, %v4679_v40  ;;  %v4637_v62 = vadd.f32 %v4636_v37, %v4602_v9 }
 0x23d   : > { %v4680_v36 = vmul.f32 %v4602_v9, %v4602_v9  ;;  %v4539_v5 = vsel %vm8450_vm12, %v8366_v27, %v8295_v42  ;;  %v4604_v44 = vsel %vm8390_vm4, %v5853_v55, 0.0  ;;  %v4540_v19 = vsel %vm8470_vm8, %v8416_v24, %v8372_v16 }
 0x23e   : > { %v4360_v12 = vshrl.u32 %v8396_v11, 4  ;;  %v4339_v42 = vmul.u32 18, %v4338_v29  ;;  %v4681_v27 = vmul.f32 %v4603_v35, %v4603_v35  ;;  %v4638_v52 = vadd.f32 %v4637_v62, %v4603_v35  ;;  %v3829_v11 = vpop.f32.mrb[29].mxu0  ;;  %v2219_v29 = vpop.f32.mrb[29].mxu1 }
 0x23f   : > { %v4715_v45 = vadd.f32 %v4714_v4, %v4680_v36  ;;  %v5855_v33 = vadd.f32 %v5805_v46, %v5597_v20  ;;  %vm8509_vm1 = vcmp.lt.s32.totalorder %v4537_v53, 16  ;;  %v5856_v16 = vadd.f32 %v3813_v26, %v2203_v61  ;;  %v5810_v1 = vpop.f32.mrb[30].mxu0  ;;  %v5602_v23 = vpop.f32.mrb[30].mxu1 }
 0x240   : > { %v4538_v24 = vsel %vm8493_vm6, %v8475_v58, %v8404_v43  ;;  %vm4399_vm2 = vcmp.ne.s32.totalorder %v8483_v49, 0  ;;  %v8519_v10 = vsub.s32 %v8301_v56, %v4328_v21  ;;  %v4682_v54 = vmul.f32 %v4604_v44, %v4604_v44  ;;  %v3832_v56 = vpop.f32.mrb[31].mxu0  ;;  %v2222_v36 = vpop.f32.mrb[31].mxu1 }
 0x241   : > { %v4716_v47 = vadd.f32 %v4715_v45, %v4681_v27  ;;  %3922 = vst [vmem:[%s7858_s21 + $0xd0] sm:$0xff] %v5855_v33  ;;  %v4639_v39 = vadd.f32 %v4638_v52, %v4604_v44  ;;  %v5857_v53 = vadd.f32 %v5806_v57, %v5598_v30  ;;  %vm8522_vm7 = vcmp.lt.s32.totalorder %v4539_v5, 16  ;;  %3920 = vst [vmem:[%s7858_s21 + $0xc0] sm:$0xff] %v5856_v16  ;;  %v5813_v6 = vpop.f32.mrb[32].mxu0 }
 0x242   : > { %v4605_v43 = vsel %vm8418_vm5, %v5856_v16, 0.0  ;;  %v5858_v46 = vadd.f32 %v3816_v14, %v2206_v51  ;;  %v4361_v34 = vmul.u32 18, %v4360_v12  ;;  %v8530_v38 = vsub.s32 %v8332_v2, %v4339_v42  ;;  %v3845_v40 = vpop.f32.mrb[33].mxu0 }
 0x243   : > { %v4640_v26 = vadd.f32 %v4639_v39, %v4605_v43  ;;  %v4683_v50 = vmul.f32 %v4605_v43, %v4605_v43  ;;  %v4717_v3 = vadd.f32 %v4716_v47, %v4682_v54  ;;  %3923 = vst [vmem:[%s7858_s21 + $0xd8] sm:$0xff] %v5857_v53  ;;  %vm8533_vm15 = vcmp.lt.s32.totalorder %v4540_v19, 16  ;;  %v5814_v62 = vpop.f32.mrb[34].mxu0 }
 0x244   : > { %vm4435_vm4 = vcmp.lt.s32.totalorder %v8483_v49, 0  ;;  %v4607_v63 = vsel %vm8430_vm10, %v5855_v33, 0.0  ;;  %3921 = vst [vmem:[%s7858_s21 + $0xc8] sm:$0xff] %v5858_v46  ;;  %v4606_v15 = vsel %vm8439_vm11, %v5858_v46, 0.0  ;;  %vm4397_vm13 = vcmp.ne.s32.totalorder %v8519_v10, 0  ;;  %v3848_v20 = vpop.f32.mrb[35].mxu0 }
 0x245   : > { %vm4433_vm14 = vcmp.lt.s32.totalorder %v8519_v10, 0  ;;  %v4718_v2 = vadd.f32 %v4717_v3, %v4683_v50  ;;  %v4641_v60 = vadd.f32 %v4640_v26, %v4606_v15  ;;  %v4684_v7 = vmul.f32 %v4606_v15, %v4606_v15  ;;  %vm8572_vm12 = vmand %vm4435_vm4, %vm4399_vm2 }
 0x246   : > { %v4505_v55 = vadd.s32 18, %v8519_v10  ;;  %v4608_v57 = vsel %vm8462_vm9, %v5857_v53, 0.0  ;;  %v8549_v25 = vsub.s32 %v8317_v8, %v4361_v34  ;;  %vm4398_vm5 = vcmp.ne.s32.totalorder %v8530_v38, 0  ;;  %vm8562_vm11 = vmand %vm4433_vm14, %vm4397_vm13 }
 0x247   : > { %vm4434_vm3 = vcmp.lt.s32.totalorder %v8530_v38, 0  ;;  %v4685_v32 = vmul.f32 %v4607_v63, %v4607_v63  ;;  %v4642_v0 = vadd.f32 %v4641_v60, %v4607_v63  ;;  %v4719_v41 = vadd.f32 %v4718_v2, %v4684_v7 }
 0x248   : > { %v5859_v14 = vadd.f32 %v5809_v22, %v5601_v17  ;;  %v5860_v37 = vadd.f32 %v3829_v11, %v2219_v29  ;;  %vm8553_vm10 = vcmp.lt.s32.totalorder %v4538_v24, 16  ;;  %v4507_v8 = vadd.s32 18, %v8483_v49  ;;  %vm8585_vm8 = vmand %vm4434_vm3, %vm4398_vm5 }
 0x249   : > { %v4506_v58 = vadd.s32 18, %v8530_v38  ;;  %v4686_v35 = vmul.f32 %v4608_v57, %v4608_v57  ;;  %v4720_v9 = vadd.f32 %v4719_v41, %v4685_v32  ;;  %v4643_v21 = vadd.f32 %v4642_v0, %v4608_v57 }
 0x24a   : > { %3926 = vst [vmem:[%s7858_s21 + $0xf0] sm:$0xff] %v5859_v14  ;;  %v5861_v4 = vadd.f32 %v5810_v1, %v5602_v23  ;;  %3924 = vst [vmem:[%s7858_s21 + $0xe0] sm:$0xff] %v5860_v37  ;;  %v4609_v18 = vsel %vm8509_vm1, %v5860_v37, 0.0  ;;  %v5862_v44 = vadd.f32 %v3832_v56, %v2222_v36  ;;  %vm4400_vm0 = vcmp.ne.s32.totalorder %v8549_v25, 0 }
 0x24b   : > { %vm4436_vm9 = vcmp.lt.s32.totalorder %v8549_v25, 0  ;;  %v4644_v12 = vadd.f32 %v4643_v21, %v4609_v18  ;;  %v4687_v42 = vmul.f32 %v4609_v18, %v4609_v18  ;;  %v4721_v27 = vadd.f32 %v4720_v9, %v4686_v35 }
 0x24c   : > { %3927 = vst [vmem:[%s7858_s21 + $0xf8] sm:$0xff] %v5861_v4  ;;  %v4541_v52 = vsel %vm8562_vm11, %v4505_v55, %v8519_v10  ;;  %v4611_v45 = vsel %vm8522_vm7, %v5859_v14, 0.0  ;;  %3925 = vst [vmem:[%s7858_s21 + $0xe8] sm:$0xff] %v5862_v44  ;;  %v4610_v33 = vsel %vm8553_vm10, %v5862_v44, 0.0  ;;  %v4543_v22 = vsel %vm8572_vm12, %v4507_v8, %v8483_v49  ;;  %v5605_v10 = vpop.f32.mrb[32].mxu1 }
 0x24d   : > { %v4508_v61 = vadd.s32 18, %v8549_v25  ;;  %v4722_v13 = vadd.f32 %v4721_v27, %v4687_v42  ;;  %v4645_v16 = vadd.f32 %v4644_v12, %v4610_v33  ;;  %v4688_v11 = vmul.f32 %v4610_v33, %v4610_v33  ;;  %vm8606_vm6 = vmand %vm4436_vm9, %vm4400_vm0  ;;  %v2235_v51 = vpop.f32.mrb[33].mxu1 }
 0x24e   : > { %v4542_v24 = vsel %vm8585_vm8, %v4506_v58, %v8530_v38  ;;  %v4612_v49 = vsel %vm8533_vm15, %v5861_v4, 0.0  ;;  %vm8615_vm1 = vcmp.lt.s32.totalorder %v4541_v52, 16  ;;  %v4689_v47 = vmul.f32 %v4611_v45, %v4611_v45  ;;  %v5606_v46 = vpop.f32.mrb[34].mxu1 }
 0x24f   : > { %v4646_v39 = vadd.f32 %v4645_v16, %v4611_v45  ;;  %v4723_v53 = vadd.f32 %v4722_v13, %v4688_v11  ;;  %v5863_v1 = vadd.f32 %v5813_v6, %v5605_v10  ;;  %vm8619_vm2 = vcmp.lt.s32.totalorder %v4543_v22, 16  ;;  %v2238_v31 = vpop.f32.mrb[35].mxu1 }
 0x250   : > { %v5864_v43 = vadd.f32 %v3845_v40, %v2235_v51  ;;  %v4544_v56 = vsel %vm8606_vm6, %v4508_v61, %v8549_v25  ;;  %vm8626_vm7 = vcmp.lt.s32.totalorder %v4542_v24, 16  ;;  %v4690_v38 = vmul.f32 %v4612_v49, %v4612_v49 }
 0x251   : > { %v4724_v26 = vadd.f32 %v4723_v53, %v4689_v47  ;;  %3930 = vst [vmem:[%s7858_s21 + $0x110] sm:$0xff] %v5863_v1  ;;  %v4647_v50 = vadd.f32 %v4646_v39, %v4612_v49  ;;  %v5865_v3 = vadd.f32 %v5814_v62, %v5606_v46  ;;  %v5866_v15 = vadd.f32 %v3848_v20, %v2238_v31 }
 0x252   : > { %3928 = vst [vmem:[%s7858_s21 + $0x100] sm:$0xff] %v5864_v43  ;;  %v4613_v63 = vsel %vm8615_vm1, %v5864_v43, 0.0  ;;  %vm4580_vm15 = vcmp.lt.s32.totalorder %v4544_v56, 16  ;;  %v4615_v55 = vsel %vm8619_vm2, %v5863_v1, 0.0 }
 0x253   : > { %v4648_v2 = vadd.f32 %v4647_v50, %v4613_v63  ;;  %v4691_v60 = vmul.f32 %v4613_v63, %v4613_v63  ;;  %v4725_v7 = vadd.f32 %v4724_v26, %v4690_v38  ;;  %3931 = vst [vmem:[%s7858_s21 + $0x118] sm:$0xff] %v5865_v3  ;;  %3929 = vst [vmem:[%s7858_s21 + $0x108] sm:$0xff] %v5866_v15  ;;  %v4614_v57 = vsel %vm8626_vm7, %v5866_v15, 0.0 }
 0x254   : > { %v4692_v32 = vmul.f32 %v4614_v57, %v4614_v57  ;;  %v4616_v0 = vsel %vm4580_vm15, %v5865_v3, 0.0  ;;  %v4693_v41 = vmul.f32 %v4615_v55, %v4615_v55 }
 0x255   : > { %v4726_v17 = vadd.f32 %v4725_v7, %v4691_v60  ;;  %v4649_v25 = vadd.f32 %v4648_v2, %v4614_v57  ;;  %v4694_v29 = vmul.f32 %v4616_v0, %v4616_v0 }
 0x257   : > { %v4650_v14 = vadd.f32 %v4649_v25, %v4615_v55  ;;  %v4727_v6 = vadd.f32 %v4726_v17, %v4692_v32 }
 0x259   : > { %v4651_v37 = vadd.f32 %v4650_v14, %v4616_v0  ;;  %v4728_v40 = vadd.f32 %v4727_v6, %v4693_v41 }
 0x25b   : > { %v4652_v23 = vrot.slane %v4651_v37, 4  ;;  %v4729_v28 = vadd.f32 %v4728_v40, %v4694_v29 }
 0x25d   : > { %v4653_v8 = vadd.f32 %v4652_v23, %v4651_v37  ;;  %v4730_v48 = vrot.slane %v4729_v28, 4 }
 0x25f   : > { %v4654_v58 = vrot.slane %v4653_v8, 2  ;;  %v4731_v35 = vadd.f32 %v4730_v48, %v4729_v28 }
 0x261   : > { %v4655_v9 = vadd.f32 %v4654_v58, %v4653_v8  ;;  %v4732_v21 = vrot.slane %v4731_v35, 2 }
 0x263   : > { %v4656_v4 = vrot.slane %v4655_v9, 1  ;;  %v4733_v62 = vadd.f32 %v4732_v21, %v4731_v35 }
 0x265   : > { %v4657_v36 = vadd.f32 %v4656_v4, %v4655_v9  ;;  %v4734_v5 = vrot.slane %v4733_v62, 1 }
 0x267   : > { %4658 = vst [vmem:[%s211_s24] sm:$0x1] %v4657_v36  ;;  %v4735_v18 = vadd.f32 %v4734_v5, %v4733_v62 }
 0x269   : > { %4736 = vst [vmem:[%s214_s27] sm:$0x1] %v4735_v18 }
 0x26a PF: > { %s15_s15 = sadd.s32 1, %s6384_s15  }
 0x26b   : > { %p12_p4 = scmp.ge.s32.totalorder %s15_s15, 4  }
 0x26d   :  { %14 = sbr.rel (!%p12_p4) target bundleno = 1 (0x1), region = 90 }

// kernel: _lambda_.12
= control target key start
LH: loop header
LB: loop body
LE: loop exit
PB: predicated region body
PF: predicated region fallthrough
CT: control target
= control target key end

     0   :  { %s3265_s15 = smov 0   ;;  %s4181_s0 = inlined_call_operand.vmem [shape: bf16[2,110,128], index: 0, kind: input, shape index: {}]   ;;  %s4182_s1 = inlined_call_operand.vmem [shape: bf16[3,3,128,128], index: 1, kind: input, shape index: {}]   ;;  %s4183_s2 = inlined_call_operand.vmem [shape: f32[2,80,128], index: 2, kind: output, shape index: {0}]   ;;  %s4184_s3 = inlined_call_operand.vmem [shape: f32[2,1,128], index: 3, kind: output, shape index: {1}]   ;;  %s4185_s4 = inlined_call_operand.vmem [shape: f32[2,1,128], index: 4, kind: output, shape index: {2}]  }
   0x1 LB: > { %s2268_s16 = sadd.s32 4294967295, %s3236_s15   ;;  %p2272_p0 = scmp.ge.s32.totalorder %s3236_s15, 1  ;;  %s3236_s15 = sphi %s3265_s15, %s15_s15  }
   0x2   : > { %p167_p1 = scmp.lt.s32.totalorder %s3236_s15, 3 }
   0x4   : > { %p168_p2 = pnand %p2272_p0, %p167_p1 }
   0x5   : > { %v3135_v0 = vld [vmem:[%s4182_s1 + $0x40] sm:$0xff] (!%p168_p2)   ;;  %v3238_v1 = vmov (!%p168_p2), 0.0   ;;  %v3137_v3 = vld [vmem:[%s4182_s1 + $0x48] sm:$0xff] (!%p168_p2)   ;;  %vm3239_vm0 = vmmov (!%p168_p2), 0   ;;  %p199_p3 = scmp.lt.s32.totalorder (!%p168_p2), %s2268_s16, 1  ;;  %v3139_v5 = vld [vmem:[%s4182_s1 + $0x50] sm:$0xff] (!%p168_p2)  }
   0x6   : > { %171 = sbr.rel (%p168_p2) target bundleno = 457 (0x1c9), region = 28  ;;  %2617 = vmatprep.subr.bf16.mxu1 (!%p168_p2), %v3238_v1  ;;  %2761 = vmatprep.subr.bf16.mxu0 (!%p168_p2), %v3238_v1  ;;  %v3136_v2 = vld [vmem:[%s4182_s1 + $0x100] sm:$0xff] (!%p168_p2)   ;;  %v3138_v4 = vld [vmem:[%s4182_s1 + $0x108] sm:$0xff] (!%p168_p2)   ;;  %v3140_v6 = vld [vmem:[%s4182_s1 + $0x110] sm:$0xff] (!%p168_p2)   ;;  %vm288_vm1 = vsmask.f32 (!%p168_p2), 7424 }
   0x7   : > { %2618 = vmatpush3.bf16.msra.mxu1 (!%p168_p2), %v3135_v0  ;;  %2633 = vmatprep.mubr.msk.bf16.mxu1 (!%p168_p2), %vm3239_vm0, %v3238_v1  ;;  %v3141_v7 = vld [vmem:[%s4182_s1 + $0x58] sm:$0xff] (!%p168_p2)   ;;  %v3143_v9 = vld [vmem:[%s4182_s1 + $0x60] sm:$0xff] (!%p168_p2)   ;;  %v3145_v11 = vld [vmem:[%s4182_s1 + $0x68] sm:$0xff] (!%p168_p2)   ;;  %vm978_vm2 = vsmask.f32 (!%p168_p2), 6400  ;;  %vm606_vm3 = vcmask (!%p168_p2), 1046528  }
   0x8   : > { %2762 = vmatpush3.bf16.msra.mxu0 (!%p168_p2), %v3136_v2  ;;  %2619 = vmatprep.subr.bf16.mxu1 (!%p168_p2), %v3238_v1  ;;  %v3142_v8 = vld [vmem:[%s4182_s1 + $0x118] sm:$0xff] (!%p168_p2)   ;;  %v3144_v10 = vld [vmem:[%s4182_s1 + $0x120] sm:$0xff] (!%p168_p2)   ;;  %v3146_v19 = vld [vmem:[%s4182_s1 + $0x128] sm:$0xff] (!%p168_p2)   ;;  %vm1189_vm4 = vcmask (!%p168_p2), 1045504   ;;  %vm1772_vm5 = vcmask (!%p168_p2), 1044480  }
   0x9   : > { %2763 = vmatprep.subr.bf16.mxu0 (!%p168_p2), %v3238_v1  ;;  %2777 = vmatprep.mubr.msk.bf16.mxu0 (!%p168_p2), %vm3239_vm0, %v3238_v1  ;;  %v3147_v22 = vld [vmem:[%s4182_s1 + $0x70] sm:$0xff] (!%p168_p2)   ;;  %v3149_v36 = vld [vmem:[%s4182_s1 + $0x78] sm:$0xff] (!%p168_p2)   ;;  %v3155_v45 = vld [vmem:[%s4182_s1 + $0x140] sm:$0xff] (!%p168_p2)   ;;  %vm1561_vm6 = vsmask.f32 (!%p168_p2), 5376 }
   0xa   : > { %v3148_v25 = vld [vmem:[%s4182_s1 + $0x130] sm:$0xff] (!%p168_p2)   ;;  %v3150_v41 = vld [vmem:[%s4182_s1 + $0x138] sm:$0xff] (!%p168_p2)   ;;  %v3159_v53 = vld [vmem:[%s4182_s1] sm:$0xff] (!%p168_p2)  }
   0xb   : > { %2620 = vmatpush3.bf16.msra.mxu1 (!%p168_p2), %v3137_v3  ;;  %v3156_v54 = vld [vmem:[%s4182_s1 + $0x148] sm:$0xff] (!%p168_p2)   ;;  %v3160_v3 = vld [vmem:[%s4182_s1 + $0x150] sm:$0xff] (!%p168_p2)  }
   0xc   : > { %2764 = vmatpush3.bf16.msra.mxu0 (!%p168_p2), %v3138_v4  ;;  %2621 = vmatprep.subr.bf16.mxu1 (!%p168_p2), %v3238_v1  ;;  %v3161_v61 = vld [vmem:[%s4182_s1 + $0x8] sm:$0xff] (!%p168_p2)  }
   0xd   : > { %s4215_s16 = smov (!%p199_p3, %s2268_s16), 1  ;;  %2765 = vmatprep.subr.bf16.mxu0 %v3238_v1 }
   0xe   : > { %s3103_s29 = smul.u32 56, %s4215_s16  ;;  %s211_s5 = scalar_lea.vmem %s4184_s3, %s4215_s16 }
   0xf   : > { %2622 = vmatpush3.bf16.msra.mxu1 %v3139_v5  ;;  %s3104_s25 = smul.u32 80, %s4215_s16  ;;  %s214_s8 = scalar_lea.vmem %s4185_s4, %s4215_s16 }
  0x10   : > { %2766 = vmatpush3.bf16.msra.mxu0 %v3140_v6  ;;  %2623 = vmatprep.subr.bf16.mxu1 %v3238_v1  ;;  %s3315_s10 = scalar_lea.vmem %s4181_s0, %s3103_s29 }
  0x11   : > { %2767 = vmatprep.subr.bf16.mxu0 %v3238_v1  ;;  %v216_v12 = vld [vmem:[%s3315_s10] sm:$0xf]  ;;  %v3330_v13 = vld [vmem:[%s3315_s10 + $0x4] sm:$0xf]  ;;  %v3336_v15 = vld [vmem:[%s3315_s10 + $0x8] sm:$0xff]   ;;  %s3988_s28 = scalar_lea.vmem %s4183_s2, %s3104_s25 }
  0x12   : > { %v3333_v14 = vcombine.low %v216_v12, %v3330_v13  ;;  %v3339_v16 = vld [vmem:[%s3315_s10 + $0xc] sm:$0xff]   ;;  %v754_v17 = vld [vmem:[%s3315_s10 + $0x4] sm:$0xe]  ;;  %v3343_v18 = vld [vmem:[%s3315_s10 + $0x8] sm:$0xf]  ;;  %v297_v26 = vshll.u32 %v3336_v15, 16 }
  0x13   : > { %2624 = vmatpush3.bf16.msra.mxu1 %v3141_v7  ;;  %v3351_v21 = vcombine.low %v754_v17, %v3343_v18  ;;  %v988_v23 = vshrl.u32 %v3339_v16, 16  ;;  %v991_v24 = vshll.u32 %v3339_v16, 16  ;;  %v3369_v35 = vld [vmem:[%s3315_s10 + $0x14] sm:$0xff]   ;;  %v301_v46 = vshrl.u32 %v3336_v15, 16  ;;  %v3393_v52 = vld [vmem:[%s3315_s10 + $0x1c] sm:$0xff]   ;;  %v3424_v6 = vld [vmem:[%s3315_s10 + $0x24] sm:$0xff]  }
  0x14   : > { %2768 = vmatpush3.bf16.msra.mxu0 %v3142_v8  ;;  %2625 = vmatprep.subr.bf16.mxu1 %v3238_v1  ;;  %v292_v20 = vshll.u32 %v3333_v14, 16  ;;  %v290_v29 = vshrl.u32 %v3333_v14, 16  ;;  %v299_v37 = vrot.slane %v297_v26, 1  ;;  %v3375_v39 = vld [vmem:[%s3315_s10 + $0x10] sm:$0xff]   ;;  %v997_v40 = vshrl.u32 %v3369_v35, 16  ;;  %v3405_v57 = vld [vmem:[%s3315_s10 + $0x18] sm:$0xff]  }
  0x15   : > { %2769 = vmatprep.subr.bf16.mxu0 %v3238_v1  ;;  %v980_v27 = vshrl.u32 %v3351_v21, 16  ;;  %v983_v28 = vshll.u32 %v3351_v21, 16  ;;  %v990_v33 = vrot.slane %v988_v23, 1  ;;  %v993_v34 = vrot.slane %v991_v24, 2  ;;  %v3165_v7 = vld [vmem:[%s4182_s1 + $0x10] sm:$0xff]   ;;  %v3164_v12 = vld [vmem:[%s4182_s1 + $0x158] sm:$0xff]  }
  0x16   : > { %v294_v30 = vrot.slane %v292_v20, 1  ;;  %v1000_v44 = vshll.u32 %v3369_v35, 16  ;;  %v305_v48 = vshll.u32 %v3375_v39, 16  ;;  %v999_v49 = vrot.slane %v997_v40, 1  ;;  %v3166_v20 = vld [vmem:[%s4182_s1 + $0x18] sm:$0xff]  }
  0x17   : > { %2626 = vmatpush3.bf16.msra.mxu1 %v3143_v9  ;;  %v982_v31 = vrot.slane %v980_v27, 1  ;;  %v985_v32 = vrot.slane %v983_v28, 2  ;;  %v994_v43 = vor.u32 %v993_v34, %v990_v33  ;;  %v303_v55 = vor.u32 %v301_v46, %v299_v37  ;;  %v3455_v26 = vld [vmem:[%s3315_s10 + $0x2c] ss:$0 sps:$4 sm:$0x33]  }
  0x18   : > { %2770 = vmatpush3.bf16.msra.mxu0 %v3144_v10  ;;  %2627 = vmatprep.subr.bf16.mxu1 %v3238_v1  ;;  %v295_v38 = vor.u32 %v294_v30, %v290_v29  ;;  %v1002_v51 = vrot.slane %v1000_v44, 2  ;;  %v307_v56 = vrot.slane %v305_v48, 1  ;;  %v1006_v59 = vshrl.u32 %v3393_v52, 16  ;;  %v3434_v10 = vld [vmem:[%s3315_s10 + $0x20] sm:$0xff]  }
  0x19   : > { %2771 = vmatprep.subr.bf16.mxu0 %v3238_v1  ;;  %v986_v42 = vor.u32 %v985_v32, %v982_v31  ;;  %v1009_v60 = vshll.u32 %v3393_v52, 16  ;;  %v309_v63 = vshrl.u32 %v3375_v39, 16  ;;  %v313_v0 = vshll.u32 %v3405_v57, 16  ;;  %v3170_v30 = vld [vmem:[%s4182_s1 + $0x20] sm:$0xff]   ;;  %v3171_v32 = vld [vmem:[%s4182_s1 + $0x168] sm:$0xff]  }
  0x1a   : > { %v300_v47 = vsel %vm288_vm1, %v295_v38, %v299_v37  ;;  %v1003_v58 = vor.u32 %v1002_v51, %v999_v49  ;;  %v308_v62 = vsel %vm288_vm1, %v303_v55, %v307_v56  ;;  %v1008_v4 = vrot.slane %v1006_v59, 1  ;;  %v3463_v31 = vld [vmem:[%s3315_s10 + $0x28] ss:$0 sps:$4 sm:$0x11]   ;;  %v3176_v51 = vld [vmem:[%s4182_s1 + $0x30] sm:$0xff]  }
  0x1b   : > { %2628 = vmatpush3.bf16.msra.mxu1 %v3145_v11  ;;  %v995_v50 = vsel %vm978_vm2, %v986_v42, %v994_v43  ;;  %v1011_v5 = vrot.slane %v1009_v60, 2  ;;  %v311_v8 = vor.u32 %v309_v63, %v307_v56  ;;  %v315_v9 = vrot.slane %v313_v0, 1  ;;  %v3178_v63 = vld [vmem:[%s4182_s1 + $0x38] sm:$0xff]  }
  0x1c   : > { %2772 = vmatpush3.bf16.msra.mxu0 %v3146_v19  ;;  %2629 = vmatprep.subr.bf16.mxu1 %v3238_v1  ;;  %v1004_v2 = vsel %vm978_vm2, %v994_v43, %v1003_v58  ;;  %v1015_v17 = vshrl.u32 %v3424_v6, 16  ;;  %v1018_v19 = vshll.u32 %v3424_v6, 16  ;;  %v317_v23 = vshrl.u32 %v3405_v57, 16  ;;  %v3173_v43 = vld [vmem:[%s4182_s1 + $0x170] sm:$0xff]  }
  0x1d   : > { %2773 = vmatprep.subr.bf16.mxu0 %v3238_v1  ;;  %v1012_v11 = vor.u32 %v1011_v5, %v1008_v4  ;;  %v316_v24 = vsel %vm288_vm1, %v311_v8, %v315_v9  ;;  %v1024_v38 = vshrl.u32 %v3455_v26, 16  ;;  %v1027_v40 = vshll.u32 %v3455_v26, 16 }
  0x1e   : > { %v1017_v28 = vrot.slane %v1015_v17, 1  ;;  %v1020_v29 = vrot.slane %v1018_v19, 2  ;;  %v319_v33 = vor.u32 %v317_v23, %v315_v9  ;;  %v610_v42 = vrot.slane %v3375_v39, 1  ;;  %v585_v9 = vld [vmem:[%s3315_s10] sm:$0xe] }
  0x1f   : > { %2630 = vmatpush3.bf16.msra.mxu1 %v3147_v22  ;;  %v3167_v22 = vld [vmem:[%s4182_s1 + $0x160] sm:$0xff]   ;;  %v1013_v27 = vsel %vm978_vm2, %v1003_v58, %v1012_v11  ;;  %v329_v46 = vshll.u32 %v3463_v31, 16  ;;  %v1026_v49 = vrot.slane %v1024_v38, 1  ;;  %v813_v59 = vrot.slane %v3369_v35, 1  ;;  %v3620_v38 = vld [vmem:[%s3315_s10 + $0x18] sm:$0xff]  }
  0x20   : > { %2774 = vmatpush3.bf16.msra.mxu0 %v3148_v25  ;;  %2631 = vmatprep.subr.bf16.mxu1 %v3238_v1  ;;  %v321_v25 = vshll.u32 %v3434_v10, 16  ;;  %v1021_v37 = vor.u32 %v1020_v29, %v1017_v28  ;;  %v1168_v58 = vld [vmem:[%s3315_s10 + $0x4] sm:$0xc]  ;;  %v1193_v23 = vrot.slane %v3369_v35, 2  ;;  %v3186_v35 = vld [vmem:[%s4182_s1 + $0x90] sm:$0xff]   ;;  %v3185_v28 = vld [vmem:[%s4182_s1 + $0x198] sm:$0xff]  }
  0x21   : > { %2775 = vmatprep.subr.bf16.mxu0 %v3238_v1  ;;  %v331_v56 = vrot.slane %v329_v46, 1  ;;  %v2409_v8 = vcombine.low %v1168_v58, %v3343_v18  ;;  %v1191_v18 = vrot.slane %v3339_v16, 2  ;;  %v3194_v58 = vld [vmem:[%s4182_s1 + $0x1b8] sm:$0xff]  }
  0x22   : > { %v323_v34 = vrot.slane %v321_v25, 1  ;;  %v1022_v48 = vsel %vm978_vm2, %v1012_v11, %v1021_v37  ;;  %v2329_v11 = vcombine.low %v585_v9, %v3330_v13  ;;  %v3183_v25 = vld [vmem:[%s4182_s1 + $0x190] sm:$0xff]   ;;  %v3202_v9 = vld [vmem:[%s4182_s1 + $0xc0] sm:$0xff]  }
  0x23   : > { %2632 = vmatpush3.bf16.msra.mxu1 %v3149_v36  ;;  %v3172_v36 = vld [vmem:[%s4182_s1 + $0x28] sm:$0xff]   ;;  %v1190_v17 = vrot.slane %v2409_v8, 2  ;;  %v3199_v8 = vld [vmem:[%s4182_s1 + $0x1c0] sm:$0xff]  }
  0x24   : > { %2776 = vmatpush3.bf16.msra.mxu0 %v3150_v41  ;;  %2653 = vmatprep.subr.bf16.mxu1 %v3238_v1  ;;  %v608_v41 = vrot.slane %v3336_v15, 1  ;;  %v324_v44 = vsel %vm288_vm1, %v319_v33, %v323_v34  ;;  %v3190_v33 = vld [vmem:[%s4182_s1 + $0x1a8] sm:$0xff]  }
  0x25   : > { %2797 = vmatprep.subr.bf16.mxu0 %v3238_v1  ;;  %v1192_v13 = vsel %vm1189_vm4, %v1190_v17, %v1191_v18  ;;  %v3204_v17 = vld [vmem:[%s4182_s1 + $0xc8] sm:$0xff]  }
  0x26   : > { %2634 = vmatmul.mubr.bf16.vlgmr.msra.gmra.mrb[0].mxu1 %v300_v47  ;;  %v3491_v47 = vsel %vm606_vm3, %v608_v41, %v610_v42 }
  0x27   : > { %2778 = vmatmul.mubr.bf16.vlgmr.msra.gmra.mrb[0].mxu0 %v995_v50  ;;  %2637 = vmatprep.mubr.msk.bf16.mxu1 %vm3239_vm0, %v3238_v1  ;;  %v1029_v50 = vrot.slane %v1027_v40, 2  ;;  %v3226_v40 = vld [vmem:[%s3315_s10 + $0x2c] ss:$0 sps:$4 sm:$0x11]  }
  0x28   : > { %2798 = vmatpush3.bf16.msra.mxu0 %v3155_v45  ;;  %2781 = vmatprep.mubr.msk.bf16.mxu0 %vm3239_vm0, %v3238_v1  ;;  %v325_v45 = vshrl.u32 %v3434_v10, 16  ;;  %v819_v46 = vrot.slane %v3226_v40, 1 }
  0x29   : > { %2799 = vmatprep.subr.bf16.mxu0 %v3238_v1  ;;  %2654 = vmatpush3.bf16.msra.mxu1 %v3159_v53  ;;  %v810_v53 = vrot.slane %v3351_v21, 1  ;;  %v1030_v60 = vor.u32 %v1029_v50, %v1026_v49  ;;  %v3177_v21 = vld [vmem:[%s4182_s1 + $0x178] sm:$0xff]   ;;  %v1338_v49 = vld [vmem:[%s3315_s10 + $0xc] sm:$0xf]  ;;  %v1751_v50 = vld [vmem:[%s3315_s10 + $0x8] sm:$0x8] }
  0x2a   : > { %2655 = vmatprep.subr.bf16.mxu1 %v3238_v1  ;;  %v327_v55 = vor.u32 %v325_v45, %v323_v34  ;;  %v3191_v34 = vld [vmem:[%s4182_s1 + $0xa8] sm:$0xff]  }
  0x2c   : > { %2800 = vmatpush3.bf16.msra.mxu0 %v3156_v54  ;;  %v811_v54 = vrot.slane %v3339_v16, 1  ;;  %v332_v4 = vsel %vm288_vm1, %v327_v55, %v331_v56  ;;  %v3181_v16 = vld [vmem:[%s4182_s1 + $0x188] sm:$0xff]  }
  0x2d   : > { %2801 = vmatprep.subr.bf16.mxu0 %v3238_v1  ;;  %2656 = vmatpush3.bf16.msra.mxu1 %v3161_v61 }
  0x2e   : > { %2638 = vmatmul.mubr.bf16.gmra.mrb[4].mxu1 %v308_v62  ;;  %2657 = vmatprep.subr.bf16.mxu1 %v3238_v1  ;;  %v3511_v61 = vsel %vm606_vm3, %v810_v53, %v811_v54  ;;  %v815_v62 = vrot.slane %v3393_v52, 1  ;;  %v3519_v0 = vsel %vm606_vm3, %v811_v54, %v813_v59  ;;  %v2489_v54 = vcombine.low %v1751_v50, %v1338_v49 }
  0x2f   : > { %2782 = vmatmul.mubr.bf16.gmra.mrb[4].mxu0 %v1004_v2  ;;  %2641 = vmatprep.mubr.msk.bf16.mxu1 %vm3239_vm0, %v3238_v1  ;;  %v817_v2 = vrot.slane %v3424_v6, 1 }
  0x30   : > { %2802 = vmatpush3.bf16.msra.mxu0 %v3160_v3  ;;  %2785 = vmatprep.mubr.msk.bf16.mxu0 %vm3239_vm0, %v3238_v1  ;;  %v3524_v3 = vsel %vm606_vm3, %v813_v59, %v815_v62  ;;  %v1773_v59 = vrot.slane %v2489_v54, 3 }
  0x31   : > { %2803 = vmatprep.subr.bf16.mxu0 %v3238_v1  ;;  %2658 = vmatpush3.bf16.msra.mxu1 %v3165_v7  ;;  %v3530_v5 = vsel %vm606_vm3, %v815_v62, %v817_v2  ;;  %v1031_v7 = vsel %vm978_vm2, %v1021_v37, %v1030_v60  ;;  %v3192_v37 = vld [vmem:[%s4182_s1 + $0x1b0] sm:$0xff]   ;;  %v3641_v53 = vsel %vm606_vm3, %v817_v2, %v819_v46  ;;  %v3195_v60 = vld [vmem:[%s4182_s1 + $0xb8] sm:$0xff]  }
  0x32   : > { %2659 = vmatprep.subr.bf16.mxu1 %v3238_v1 }
  0x34   : > { %2804 = vmatpush3.bf16.msra.mxu0 %v3164_v12  ;;  %v607_v12 = vrot.slane %v2329_v11, 1  ;;  %v3200_v11 = vld [vmem:[%s4182_s1 + $0x1c8] sm:$0xff]  }
  0x35   : > { %2805 = vmatprep.subr.bf16.mxu0 %v3238_v1  ;;  %2660 = vmatpush3.bf16.msra.mxu1 %v3166_v20  ;;  %v3180_v20 = vld [vmem:[%s4182_s1 + $0x180] sm:$0xff]  }
  0x36   : > { %2642 = vmatmul.mubr.bf16.gmra.mrb[8].mxu1 %v316_v24  ;;  %2661 = vmatprep.subr.bf16.mxu1 %v3238_v1  ;;  %v3544_v19 = vsel %vm606_vm3, %v607_v12, %v608_v41  ;;  %v1194_v24 = vsel %vm1189_vm4, %v1191_v18, %v1193_v23  ;;  %v3193_v41 = vld [vmem:[%s4182_s1 + $0xb0] sm:$0xff]   ;;  %v1396_v12 = vrot.slane %v3620_v38, 2 }
  0x37   : > { %2786 = vmatmul.mubr.bf16.gmra.mrb[8].mxu0 %v1013_v27  ;;  %2645 = vmatprep.mubr.msk.bf16.mxu1 %vm3239_vm0, %v3238_v1  ;;  %v1195_v27 = vrot.slane %v3393_v52, 2  ;;  %v3188_v52 = vld [vmem:[%s4182_s1 + $0x1a0] sm:$0xff]  }
  0x38   : > { %2806 = vmatpush3.bf16.msra.mxu0 %v3167_v22  ;;  %2789 = vmatprep.mubr.msk.bf16.mxu0 %vm3239_vm0, %v3238_v1  ;;  %v3182_v22 = vld [vmem:[%s4182_s1 + $0x80] sm:$0xff]  }
  0x39   : > { %2662 = vmatpush3.bf16.msra.mxu1 %v3170_v30  ;;  %2807 = vmatprep.subr.bf16.mxu0 %v3238_v1  ;;  %v1196_v29 = vsel %vm1189_vm4, %v1193_v23, %v1195_v27  ;;  %v3189_v30 = vld [vmem:[%s4182_s1 + $0xa0] sm:$0xff]  }
  0x3a   : > { %2663 = vmatprep.subr.bf16.mxu1 %v3238_v1 }
  0x3c   : > { %2808 = vmatpush3.bf16.msra.mxu0 %v3171_v32  ;;  %v1197_v32 = vrot.slane %v3424_v6, 2  ;;  %v1199_v6 = vrot.slane %v3455_v26, 2 }
  0x3d   : > { %2664 = vmatpush3.bf16.msra.mxu1 %v3172_v36  ;;  %2809 = vmatprep.subr.bf16.mxu0 %v3238_v1  ;;  %v3613_v36 = vld [vmem:[%s3315_s10 + $0x10] sm:$0xff]  }
  0x3e   : > { %2646 = vmatmul.mubr.bf16.gmra.mrb[12].mxu1 %v324_v44  ;;  %2665 = vmatprep.subr.bf16.mxu1 %v3238_v1  ;;  %v1774_v44 = vrot.slane %v3613_v36, 3  ;;  %v1198_v45 = vsel %vm1189_vm4, %v1195_v27, %v1197_v32  ;;  %v1200_v26 = vsel %vm1189_vm4, %v1197_v32, %v1199_v6  ;;  %v3213_v27 = vld [vmem:[%s4182_s1 + $0xe8] sm:$0xff]   ;;  %v1571_v40 = vshrl.u32 %v3613_v36, 16 }
  0x3f   : > { %2790 = vmatmul.mubr.bf16.gmra.mrb[12].mxu0 %v1022_v48  ;;  %2649 = vmatprep.mubr.msk.bf16.mxu1 %vm3239_vm0, %v3238_v1  ;;  %v1776_v48 = vrot.slane %v3620_v38, 3  ;;  %v1580_v6 = vshrl.u32 %v3620_v38, 16 }
  0x40   : > { %2793 = vmatprep.mubr.msk.bf16.mxu0 %vm3239_vm0, %v3238_v1  ;;  %2810 = vmatpush3.bf16.msra.mxu0 %v3173_v43  ;;  %v3627_v43 = vld [vmem:[%s3315_s10 + $0x20] sm:$0xff]   ;;  %v3666_v62 = vsel %vm1772_vm5, %v1773_v59, %v1774_v44 }
  0x41   : > { %2666 = vmatpush3.bf16.msra.mxu1 %v3176_v51  ;;  %2811 = vmatprep.subr.bf16.mxu0 %v3238_v1  ;;  %v1778_v51 = vrot.slane %v3627_v43, 3  ;;  %v3644_v55 = vsel %vm1772_vm5, %v1774_v44, %v1776_v48 }
  0x42   : > { %2667 = vmatprep.subr.bf16.mxu1 %v3238_v1 }
  0x43   : > { %v3651_v56 = vsel %vm1772_vm5, %v1776_v48, %v1778_v51 }
  0x44   : > { %2812 = vmatpush3.bf16.msra.mxu0 %v3177_v21  ;;  %v1337_v21 = vld [vmem:[%s3315_s10 + $0x8] sm:$0xc] }
  0x45   : > { %2668 = vmatpush3.bf16.msra.mxu1 %v3178_v63  ;;  %2833 = vmatprep.subr.bf16.mxu0 %v3238_v1  ;;  %v3669_v63 = vcombine.low %v1337_v21, %v1338_v49  ;;  %v1573_v49 = vrot.slane %v1571_v40, 2  ;;  %v1582_v21 = vrot.slane %v1580_v6, 2 }
  0x46   : > { %2650 = vmatmul.mubr.bf16.gmra.mrb[16].mxu1 %v332_v4  ;;  %2689 = vmatprep.subr.bf16.mxu1 %v3238_v1  ;;  %v1394_v4 = vrot.slane %v3613_v36, 2 }
  0x47   : > { %2794 = vmatmul.mubr.bf16.gmra.mrb[16].mxu0 %v1031_v7  ;;  %2669 = vmatprep.mubr.msk.bf16.mxu1 %vm3239_vm0, %v3238_v1  ;;  %v1393_v2 = vrot.slane %v3669_v63, 2  ;;  %v1563_v32 = vshrl.u32 %v3669_v63, 16 }
  0x48   : > { %2813 = vmatprep.mubr.msk.bf16.mxu0 %vm3239_vm0, %v3238_v1  ;;  %v1397_v18 = vsel %vm1189_vm4, %v1394_v4, %v1396_v12 }
  0x49   : > { %v1395_v7 = vsel %vm1189_vm4, %v1393_v2, %v1394_v4  ;;  %v1589_v2 = vshrl.u32 %v3627_v43, 16  ;;  %v1592_v4 = vshll.u32 %v3627_v43, 16 }
  0x4e   : > { %2670 = vmatmul.mubr.bf16.vlgmr.msra.gmra.mrb[0].mxu1 %v3333_v14  ;;  %v3184_v14 = vld [vmem:[%s4182_s1 + $0x88] sm:$0xff]  }
  0x4f   : > { %2814 = vmatmul.mubr.bf16.vlgmr.msra.gmra.mrb[0].mxu0 %v1192_v13  ;;  %2673 = vmatprep.mubr.msk.bf16.mxu1 %vm3239_vm0, %v3238_v1  ;;  %v3207_v13 = vld [vmem:[%s4182_s1 + $0xd0] sm:$0xff]  }
  0x50   : > { %2834 = vmatpush3.bf16.msra.mxu0 %v3180_v20  ;;  %2817 = vmatprep.mubr.msk.bf16.mxu0 %vm3239_vm0, %v3238_v1  ;;  %v612_v20 = vrot.slane %v3405_v57, 1 }
  0x51   : > { %2835 = vmatprep.subr.bf16.mxu0 %v3238_v1  ;;  %2690 = vmatpush3.bf16.msra.mxu1 %v3182_v22  ;;  %v1398_v22 = vrot.slane %v3627_v43, 2 }
  0x52   : > { %2691 = vmatprep.subr.bf16.mxu1 %v3238_v1 }
  0x53   : > { %v1399_v23 = vsel %vm1189_vm4, %v1396_v12, %v1398_v22  ;;  %v3222_v12 = vld [vmem:[%s4182_s1 + $0x218] sm:$0xff]  }
  0x54   : > { %2836 = vmatpush3.bf16.msra.mxu0 %v3181_v16  ;;  %v3206_v16 = vld [vmem:[%s4182_s1 + $0x1d8] sm:$0xff]  }
  0x55   : > { %2837 = vmatprep.subr.bf16.mxu0 %v3238_v1  ;;  %2692 = vmatpush3.bf16.msra.mxu1 %v3184_v14  ;;  %v3209_v14 = vld [vmem:[%s4182_s1 + $0x1e0] sm:$0xff]  }
  0x56   : > { %2674 = vmatmul.mubr.bf16.gmra.mrb[4].mxu1 %v3336_v15  ;;  %2693 = vmatprep.subr.bf16.mxu1 %v3238_v1  ;;  %v3187_v15 = vld [vmem:[%s4182_s1 + $0x98] sm:$0xff]  }
  0x57   : > { %2818 = vmatmul.mubr.bf16.gmra.mrb[4].mxu0 %v1194_v24  ;;  %2677 = vmatprep.mubr.msk.bf16.mxu1 %vm3239_vm0, %v3238_v1  ;;  %v3733_v24 = vld [vmem:[%s3315_s10 + $0x28] sm:$0xff]  }
  0x58   : > { %2838 = vmatpush3.bf16.msra.mxu0 %v3183_v25  ;;  %2821 = vmatprep.mubr.msk.bf16.mxu0 %vm3239_vm0, %v3238_v1  ;;  %v3211_v25 = vld [vmem:[%s4182_s1 + $0xe0] sm:$0xff]  }
  0x59   : > { %2839 = vmatprep.subr.bf16.mxu0 %v3238_v1  ;;  %2694 = vmatpush3.bf16.msra.mxu1 %v3186_v35  ;;  %v3212_v35 = vld [vmem:[%s4182_s1 + $0x1e8] sm:$0xff]  }
  0x5a   : > { %2695 = vmatprep.subr.bf16.mxu1 %v3238_v1 }
  0x5c   : > { %2840 = vmatpush3.bf16.msra.mxu0 %v3185_v28 }
  0x5d   : > { %2841 = vmatprep.subr.bf16.mxu0 %v3238_v1  ;;  %2696 = vmatpush3.bf16.msra.mxu1 %v3187_v15  ;;  %v3214_v15 = vld [vmem:[%s4182_s1 + $0x1f0] sm:$0xff]  }
  0x5e   : > { %2678 = vmatmul.mubr.bf16.gmra.mrb[8].mxu1 %v3375_v39  ;;  %2697 = vmatprep.subr.bf16.mxu1 %v3238_v1  ;;  %v614_v39 = vrot.slane %v3434_v10, 1 }
  0x5f   : > { %2822 = vmatmul.mubr.bf16.gmra.mrb[8].mxu0 %v1196_v29  ;;  %2681 = vmatprep.mubr.msk.bf16.mxu1 %vm3239_vm0, %v3238_v1  ;;  %v3215_v29 = vld [vmem:[%s3315_s10 + $0x30] ss:$0 sps:$4 sm:$0x33]  }
  0x60   : > { %2842 = vmatpush3.bf16.msra.mxu0 %v3188_v52  ;;  %2825 = vmatprep.mubr.msk.bf16.mxu0 %vm3239_vm0, %v3238_v1  ;;  %v3216_v52 = vld [vmem:[%s4182_s1 + $0xf0] sm:$0xff]  }
  0x61   : > { %2698 = vmatpush3.bf16.msra.mxu1 %v3189_v30  ;;  %2843 = vmatprep.subr.bf16.mxu0 %v3238_v1  ;;  %v616_v30 = vrot.slane %v3463_v31, 1  ;;  %v3218_v31 = vld [vmem:[%s4182_s1 + $0xf8] sm:$0xff]  }
  0x62   : > { %2699 = vmatprep.subr.bf16.mxu1 %v3238_v1 }
  0x63   : > { %v617_v44 = vsel %vm606_vm3, %v614_v39, %v616_v30 }
  0x64   : > { %2844 = vmatpush3.bf16.msra.mxu0 %v3190_v33  ;;  %v1402_v33 = vrot.slane %v3215_v29, 2 }
  0x65   : > { %2700 = vmatpush3.bf16.msra.mxu1 %v3191_v34  ;;  %2845 = vmatprep.subr.bf16.mxu0 %v3238_v1  ;;  %v3217_v34 = vld [vmem:[%s4182_s1 + $0x1f8] sm:$0xff]  }
  0x66   : > { %2682 = vmatmul.mubr.bf16.gmra.mrb[12].mxu1 %v3405_v57  ;;  %2701 = vmatprep.subr.bf16.mxu1 %v3238_v1  ;;  %v613_v57 = vsel %vm606_vm3, %v610_v42, %v612_v20  ;;  %v1400_v42 = vrot.slane %v3733_v24, 2 }
  0x67   : > { %2826 = vmatmul.mubr.bf16.gmra.mrb[12].mxu0 %v1198_v45  ;;  %2685 = vmatprep.mubr.msk.bf16.mxu1 %vm3239_vm0, %v3238_v1  ;;  %v1565_v45 = vrot.slane %v1563_v32, 2 }
  0x68   : > { %2829 = vmatprep.mubr.msk.bf16.mxu0 %vm3239_vm0, %v3238_v1  ;;  %2846 = vmatpush3.bf16.msra.mxu0 %v3192_v37  ;;  %v1401_v28 = vsel %vm1189_vm4, %v1398_v22, %v1400_v42  ;;  %v1566_v37 = vshll.u32 %v3669_v63, 16  ;;  %v1403_v46 = vsel %vm1189_vm4, %v1400_v42, %v1402_v33  ;;  %v3227_v22 = vld [vmem:[%s3315_s10 + $0x30] ss:$0 sps:$4 sm:$0x77]  }
  0x69   : > { %2702 = vmatpush3.bf16.msra.mxu1 %v3193_v41  ;;  %2847 = vmatprep.subr.bf16.mxu0 %v3238_v1  ;;  %v1574_v41 = vshll.u32 %v3613_v36, 16 }
  0x6a   : > { %2703 = vmatprep.subr.bf16.mxu1 %v3238_v1  ;;  %v1568_v48 = vrot.slane %v1566_v37, 3 }
  0x6b   : > { %v1576_v50 = vrot.slane %v1574_v41, 3 }
  0x6c   : > { %2848 = vmatpush3.bf16.msra.mxu0 %v3194_v58  ;;  %v1569_v36 = vor.u32 %v1568_v48, %v1565_v45  ;;  %v1583_v58 = vshll.u32 %v3620_v38, 16  ;;  %v3220_v38 = vld [vmem:[%s4182_s1 + $0x208] sm:$0xff]  }
  0x6d   : > { %2704 = vmatpush3.bf16.msra.mxu1 %v3195_v60  ;;  %2869 = vmatprep.subr.bf16.mxu0 %v3238_v1  ;;  %v1577_v54 = vor.u32 %v1576_v50, %v1573_v49  ;;  %v3219_v60 = vld [vmem:[%s4182_s1 + $0x200] sm:$0xff]  }
  0x6e   : > { %2686 = vmatmul.mubr.bf16.gmra.mrb[16].mxu1 %v3434_v10  ;;  %2725 = vmatprep.subr.bf16.mxu1 %v3238_v1  ;;  %v615_v10 = vsel %vm606_vm3, %v612_v20, %v614_v39 }
  0x6f   : > { %2830 = vmatmul.mubr.bf16.gmra.mrb[16].mxu0 %v1200_v26  ;;  %2705 = vmatprep.mubr.msk.bf16.mxu1 %vm3239_vm0, %v3238_v1  ;;  %v1578_v59 = vsel %vm1561_vm6, %v1569_v36, %v1577_v54  ;;  %v1585_v26 = vrot.slane %v1583_v58, 3 }
  0x70   : > { %2849 = vmatprep.mubr.msk.bf16.mxu0 %vm3239_vm0, %v3238_v1 }
  0x71   : > { %v1586_v63 = vor.u32 %v1585_v26, %v1582_v21 }
  0x76   : > { %2706 = vmatmul.mubr.bf16.vlgmr.msra.gmra.mrb[0].mxu1 %v3544_v19  ;;  %v3203_v19 = vld [vmem:[%s4182_s1 + $0x1d0] sm:$0xff]  }
  0x77   : > { %2850 = vmatmul.mubr.bf16.vlgmr.msra.gmra.mrb[0].mxu0 %v1395_v7  ;;  %2709 = vmatprep.mubr.msk.bf16.mxu1 %vm3239_vm0, %v3238_v1  ;;  %v3221_v7 = vld [vmem:[%s4182_s1 + $0x210] sm:$0xff]  }
  0x78   : > { %2870 = vmatpush3.bf16.msra.mxu0 %v3199_v8  ;;  %2853 = vmatprep.mubr.msk.bf16.mxu0 %vm3239_vm0, %v3238_v1  ;;  %v1591_v8 = vrot.slane %v1589_v2, 2 }
  0x79   : > { %2871 = vmatprep.subr.bf16.mxu0 %v3238_v1  ;;  %2726 = vmatpush3.bf16.msra.mxu1 %v3202_v9  ;;  %v1594_v9 = vrot.slane %v1592_v4, 3 }
  0x7a   : > { %2727 = vmatprep.subr.bf16.mxu1 %v3238_v1 }
  0x7c   : > { %2872 = vmatpush3.bf16.msra.mxu0 %v3200_v11  ;;  %v1595_v11 = vor.u32 %v1594_v9, %v1591_v8 }
  0x7d   : > { %2873 = vmatprep.subr.bf16.mxu0 %v3238_v1  ;;  %2728 = vmatpush3.bf16.msra.mxu1 %v3204_v17  ;;  %v1598_v17 = vshrl.u32 %v3733_v24, 16 }
  0x7e   : > { %2710 = vmatmul.mubr.bf16.gmra.mrb[4].mxu1 %v3491_v47  ;;  %2729 = vmatprep.subr.bf16.mxu1 %v3238_v1  ;;  %v3208_v47 = vld [vmem:[%s4182_s1 + $0xd8] sm:$0xff]  }
  0x7f   : > { %2854 = vmatmul.mubr.bf16.gmra.mrb[4].mxu0 %v1397_v18  ;;  %2713 = vmatprep.mubr.msk.bf16.mxu1 %vm3239_vm0, %v3238_v1  ;;  %v1596_v18 = vsel %vm1561_vm6, %v1586_v63, %v1595_v11 }
  0x80   : > { %2874 = vmatpush3.bf16.msra.mxu0 %v3203_v19  ;;  %2857 = vmatprep.mubr.msk.bf16.mxu0 %vm3239_vm0, %v3238_v1  ;;  %v3223_v19 = vld [vmem:[%s4182_s1 + $0x220] sm:$0xff]  }
  0x81   : > { %2875 = vmatprep.subr.bf16.mxu0 %v3238_v1  ;;  %2730 = vmatpush3.bf16.msra.mxu1 %v3207_v13  ;;  %v1600_v13 = vrot.slane %v1598_v17, 2 }
  0x82   : > { %2731 = vmatprep.subr.bf16.mxu1 %v3238_v1 }
  0x84   : > { %2876 = vmatpush3.bf16.msra.mxu0 %v3206_v16 }
  0x85   : > { %2877 = vmatprep.subr.bf16.mxu0 %v3238_v1  ;;  %2732 = vmatpush3.bf16.msra.mxu1 %v3208_v47  ;;  %v3224_v47 = vld [vmem:[%s4182_s1 + $0x228] sm:$0xff]  }
  0x86   : > { %2714 = vmatmul.mubr.bf16.gmra.mrb[8].mxu1 %v613_v57  ;;  %2733 = vmatprep.subr.bf16.mxu1 %v3238_v1  ;;  %v1607_v57 = vshrl.u32 %v3227_v22, 16 }
  0x87   : > { %2858 = vmatmul.mubr.bf16.gmra.mrb[8].mxu0 %v1399_v23  ;;  %2717 = vmatprep.mubr.msk.bf16.mxu1 %vm3239_vm0, %v3238_v1  ;;  %v1610_v23 = vshll.u32 %v3227_v22, 16 }
  0x88   : > { %2878 = vmatpush3.bf16.msra.mxu0 %v3209_v14  ;;  %2861 = vmatprep.mubr.msk.bf16.mxu0 %vm3239_vm0, %v3238_v1  ;;  %v3225_v14 = vld [vmem:[%s4182_s1 + $0x230] sm:$0xff]  }
  0x89   : > { %2734 = vmatpush3.bf16.msra.mxu1 %v3211_v25  ;;  %2879 = vmatprep.subr.bf16.mxu0 %v3238_v1  ;;  %v1609_v25 = vrot.slane %v1607_v57, 2  ;;  %v1612_v39 = vrot.slane %v1610_v23, 3 }
  0x8a   : > { %2735 = vmatprep.subr.bf16.mxu1 %v3238_v1 }
  0x8b   : > { %v1613_v42 = vor.u32 %v1612_v39, %v1609_v25 }
  0x8c   : > { %2880 = vmatpush3.bf16.msra.mxu0 %v3212_v35  ;;  %v3228_v35 = vld [vmem:[%s4182_s1 + $0x238] sm:$0xff]  }
  0x8d   : > { %2736 = vmatpush3.bf16.msra.mxu1 %v3213_v27  ;;  %2881 = vmatprep.subr.bf16.mxu0 %v3238_v1  ;;  %v1780_v27 = vrot.slane %v3733_v24, 3 }
  0x8e   : > { %2718 = vmatmul.mubr.bf16.gmra.mrb[12].mxu1 %v615_v10  ;;  %2737 = vmatprep.subr.bf16.mxu1 %v3238_v1 }
  0x8f   : > { %2862 = vmatmul.mubr.bf16.gmra.mrb[12].mxu0 %v1401_v28  ;;  %2721 = vmatprep.mubr.msk.bf16.mxu1 %vm3239_vm0, %v3238_v1  ;;  %v1781_v10 = vsel %vm1772_vm5, %v1778_v51, %v1780_v27 }
  0x90   : > { %2865 = vmatprep.mubr.msk.bf16.mxu0 %vm3239_vm0, %v3238_v1  ;;  %2882 = vmatpush3.bf16.msra.mxu0 %v3214_v15  ;;  %v1930_v15 = vlaneseq }
  0x91   : > { %2738 = vmatpush3.bf16.msra.mxu1 %v3216_v52  ;;  %2883 = vmatprep.subr.bf16.mxu0 %v3238_v1 }
  0x92   : > { %2739 = vmatprep.subr.bf16.mxu1 %v3238_v1  ;;  %v1931_v52 = vshrl.u32 %v1930_v15, 7 }
  0x94   : > { %2884 = vmatpush3.bf16.msra.mxu0 %v3217_v34  ;;  %v1932_v33 = vadd.s32 8, %v1931_v52  ;;  %v3887_v34 = vmul.u32.u64.low 3435973837, %v1931_v52  ;;  %v3888_v37 = vmul.u32.u64.high 3435973837, %v1931_v52, %v3887_v34  ;;  %v3895_v41 = vadd.s32 16, %v1931_v52 }
  0x95   : > { %2740 = vmatpush3.bf16.msra.mxu1 %v3218_v31  ;;  %2905 = vmatprep.subr.bf16.mxu0 %v3238_v1  ;;  %v3899_v45 = vadd.s32 24, %v1931_v52  ;;  %v3902_v49 = vadd.s32 48, %v1931_v52  ;;  %v3921_v9 = vadd.s32 40, %v1931_v52 }
  0x96   : > { %2722 = vmatmul.mubr.bf16.gmra.mrb[16].mxu1 %v617_v44  ;;  %2941 = vmatprep.subr.bf16.mxu1 %v3238_v1  ;;  %v1947_v48 = vshrl.u32 %v3888_v37, 3  ;;  %v3905_v50 = vmul.u32.u64.low 3435973837, %v3895_v41  ;;  %v3906_v36 = vmul.u32.u64.high 3435973837, %v3895_v41, %v3905_v50 }
  0x97   : > { %2866 = vmatmul.mubr.bf16.gmra.mrb[16].mxu0 %v1403_v46  ;;  %2741 = vmatprep.mubr.msk.bf16.mxu1 %vm3239_vm0, %v3238_v1  ;;  %v3910_v6 = vmul.u32.u64.low 3435973837, %v3899_v45  ;;  %v3911_v58 = vmul.u32.u64.high 3435973837, %v3899_v45, %v3910_v6 }
  0x98   : > { %2885 = vmatprep.mubr.msk.bf16.mxu0 %vm3239_vm0, %v3238_v1 }
  0x99   : > { %v1980_v57 = vshrl.u32 %v3911_v58, 3 }
  0x9e   : > { %2742 = vmatmul.mubr.bf16.vlgmr.msra.gmra.mrb[0].mxu1 %v3511_v61  ;;  %v1587_v61 = vsel %vm1561_vm6, %v1577_v54, %v1586_v63 }
  0x9f   : > { %2886 = vmatmul.mubr.bf16.vlgmr.msra.gmra.mrb[0].mxu0 %v1578_v59  ;;  %2745 = vmatprep.mubr.msk.bf16.mxu1 %vm3239_vm0, %v3238_v1  ;;  %v1948_v59 = vmul.u32 10, %v1947_v48 }
  0xa0   : > { %2906 = vmatpush3.bf16.msra.mxu0 %v3219_v60  ;;  %2889 = vmatprep.mubr.msk.bf16.mxu0 %vm3239_vm0, %v3238_v1 }
  0xa1   : > { %2907 = vmatprep.subr.bf16.mxu0 %v3238_v1  ;;  %2949 = vmatpush3.bf16.msra.mxu1 %v3219_v60  ;;  %v3914_v60 = vmul.u32.u64.low 3435973837, %v3902_v49  ;;  %v3915_v21 = vmul.u32.u64.high 3435973837, %v3902_v49, %v3914_v60  ;;  %v1949_v17 = vsub.s32 %v1931_v52, %v1948_v59 }
  0xa2   : > { %2942 = vmatprep.subr.bf16.mxu1 %v3238_v1 }
  0xa3   : > { %vm2051_vm7 = vcmp.ne.s32.totalorder %v1949_v17, 0  ;;  %vm2061_vm8 = vcmp.lt.s32.totalorder %v1949_v17, 0 }
  0xa4   : > { %2908 = vmatpush3.bf16.msra.mxu0 %v3220_v38  ;;  %vm3954_vm11 = vmand %vm2061_vm8, %vm2051_vm7 }
  0xa5   : > { %2909 = vmatprep.subr.bf16.mxu0 %v3238_v1  ;;  %2950 = vmatpush3.bf16.msra.mxu1 %v3220_v38  ;;  %v3917_v38 = vadd.s32 32, %v1931_v52 }
  0xa6   : > { %2746 = vmatmul.mubr.bf16.gmra.mrb[4].mxu1 %v3519_v0  ;;  %2943 = vmatprep.subr.bf16.mxu1 %v3238_v1  ;;  %v1601_v0 = vshll.u32 %v3733_v24, 16 }
  0xa7   : > { %2890 = vmatmul.mubr.bf16.gmra.mrb[4].mxu0 %v1587_v61  ;;  %2749 = vmatprep.mubr.msk.bf16.mxu1 %vm3239_vm0, %v3238_v1 }
  0xa8   : > { %2910 = vmatpush3.bf16.msra.mxu0 %v3221_v7  ;;  %2893 = vmatprep.mubr.msk.bf16.mxu0 %vm3239_vm0, %v3238_v1  ;;  %v1603_v20 = vrot.slane %v1601_v0, 3  ;;  %v3923_v0 = vadd.s32 56, %v1931_v52 }
  0xa9   : > { %2911 = vmatprep.subr.bf16.mxu0 %v3238_v1  ;;  %2951 = vmatpush3.bf16.msra.mxu1 %v3221_v7 }
  0xaa   : > { %2944 = vmatprep.subr.bf16.mxu1 %v3238_v1  ;;  %v1604_v16 = vor.u32 %v1603_v20, %v1600_v13  ;;  %v1969_v13 = vshrl.u32 %v3906_v36, 3  ;;  %v3941_v25 = vmul.u32.u64.low 3435973837, %v3923_v0  ;;  %v3942_v39 = vmul.u32.u64.high 3435973837, %v3923_v0, %v3941_v25 }
  0xac   : > { %2912 = vmatpush3.bf16.msra.mxu0 %v3222_v12 }
  0xad   : > { %2913 = vmatprep.subr.bf16.mxu0 %v3238_v1  ;;  %2952 = vmatpush3.bf16.msra.mxu1 %v3222_v12 }
  0xae   : > { %2750 = vmatmul.mubr.bf16.gmra.mrb[8].mxu1 %v3524_v3  ;;  %2945 = vmatprep.subr.bf16.mxu1 %v3238_v1  ;;  %v1605_v3 = vsel %vm1561_vm6, %v1595_v11, %v1604_v16 }
  0xaf   : > { %2894 = vmatmul.mubr.bf16.gmra.mrb[8].mxu0 %v1596_v18  ;;  %2753 = vmatprep.mubr.msk.bf16.mxu1 %vm3239_vm0, %v3238_v1 }
  0xb0   : > { %2914 = vmatpush3.bf16.msra.mxu0 %v3223_v19  ;;  %2897 = vmatprep.mubr.msk.bf16.mxu0 %vm3239_vm0, %v3238_v1 }
  0xb1   : > { %2953 = vmatpush3.bf16.msra.mxu1 %v3223_v19  ;;  %2915 = vmatprep.subr.bf16.mxu0 %v3238_v1 }
  0xb2   : > { %2946 = vmatprep.subr.bf16.mxu1 %v3238_v1 }
  0xb4   : > { %2916 = vmatpush3.bf16.msra.mxu0 %v3224_v47 }
  0xb5   : > { %2954 = vmatpush3.bf16.msra.mxu1 %v3224_v47  ;;  %2917 = vmatprep.subr.bf16.mxu0 %v3238_v1 }
  0xb6   : > { %2754 = vmatmul.mubr.bf16.gmra.mrb[12].mxu1 %v3530_v5  ;;  %2947 = vmatprep.subr.bf16.mxu1 %v3238_v1  ;;  %v1614_v5 = vsel %vm1561_vm6, %v1604_v16, %v1613_v42  ;;  %v3932_v16 = vadd.s32 64, %v1931_v52  ;;  %v3944_v42 = vadd.s32 72, %v1931_v52  ;;  %v1981_v52 = vmul.u32 10, %v1980_v57 }
  0xb7   : > { %2898 = vmatmul.mubr.bf16.gmra.mrb[12].mxu0 %v1605_v3  ;;  %2757 = vmatprep.mubr.msk.bf16.mxu1 %vm3239_vm0, %v3238_v1  ;;  %v3936_v23 = vmul.u32.u64.low 3435973837, %v3921_v9  ;;  %v3937_v3 = vmul.u32.u64.high 3435973837, %v3921_v9, %v3936_v23 }
  0xb8   : > { %2901 = vmatprep.mubr.msk.bf16.mxu0 %vm3239_vm0, %v3238_v1  ;;  %2918 = vmatpush3.bf16.msra.mxu0 %v3225_v14  ;;  %v3978_v58 = vsub.s32 %v3899_v45, %v1981_v52 }
  0xb9   : > { %2955 = vmatpush3.bf16.msra.mxu1 %v3225_v14  ;;  %2919 = vmatprep.subr.bf16.mxu0 %v3238_v1  ;;  %v2013_v14 = vshrl.u32 %v3915_v21, 3  ;;  %v2002_v59 = vshrl.u32 %v3937_v3, 3 }
  0xba   : > { %2948 = vmatprep.subr.bf16.mxu1 %v3238_v1  ;;  %vm2064_vm1 = vcmp.lt.s32.totalorder %v3978_v58, 0 }
  0xbb   : > { %v2014_v37 = vmul.u32 10, %v2013_v14  ;;  %v2084_v14 = vadd.s32 10, %v3978_v58 }
  0xbc   : > { %2920 = vmatpush3.bf16.msra.mxu0 %v3228_v35 }
  0xbd   : > { %2956 = vmatpush3.bf16.msra.mxu1 %v3228_v35  ;;  %v3982_v60 = vsub.s32 %v3902_v49, %v2014_v37 }
  0xbe   : > { %2758 = vmatmul.mubr.bf16.gmra.mrb[16].mxu1 %v3641_v53  ;;  %v1782_v53 = vrot.slane %v3227_v22, 3  ;;  %v3929_v20 = vmul.u32.u64.low 3435973837, %v3917_v38  ;;  %v3930_v22 = vmul.u32.u64.high 3435973837, %v3917_v38, %v3929_v20 }
  0xbf   : > { %2902 = vmatmul.mubr.bf16.gmra.mrb[16].mxu0 %v1614_v5  ;;  %2933 = vmatprep.mubr.msk.bf16.mxu1 %vm3239_vm0, %v3238_v1  ;;  %v1970_v5 = vmul.u32 10, %v1969_v13  ;;  %vm2057_vm4 = vcmp.ne.s32.totalorder %v3982_v60, 0 }
  0xc0   : > { %2921 = vmatprep.mubr.msk.bf16.mxu0 %vm3239_vm0, %v3238_v1  ;;  %v1783_v28 = vsel %vm1772_vm5, %v1780_v27, %v1782_v53  ;;  %v2081_v53 = vadd.s32 10, %v1949_v17  ;;  %v1991_v36 = vshrl.u32 %v3930_v22, 3  ;;  %vm2067_vm5 = vcmp.lt.s32.totalorder %v3982_v60, 0 }
  0xc1   : > { %v3966_v50 = vsub.s32 %v3895_v41, %v1970_v5  ;;  %v2024_v41 = vshrl.u32 %v3942_v39, 3 }
  0xc2   : > { %v2091_v6 = vsel %vm3954_vm11, %v2081_v53, %v1949_v17  ;;  %v1992_v45 = vmul.u32 10, %v1991_v36 }
  0xc3   : > { %vm2053_vm13 = vcmp.ne.s32.totalorder %v3966_v50, 0  ;;  %vm2063_vm14 = vcmp.lt.s32.totalorder %v3966_v50, 0  ;;  %vm3994_vm15 = vcmp.lt.s32.totalorder %v2091_v6, 8  ;;  %v2025_v22 = vmul.u32 10, %v2024_v41 }
  0xc4   : > { %vm4019_vm3 = vmand %vm2063_vm14, %vm2053_vm13  ;;  %v4030_v25 = vsub.s32 %v3917_v38, %v1992_v45 }
  0xc6   : > { %2934 = vmatmul.mubr.bf16.vlgmr.msra.gmra.mrb[20].mxu1 %v1781_v10  ;;  %vm2055_vm7 = vcmp.ne.s32.totalorder %v4030_v25, 0  ;;  %vm2065_vm8 = vcmp.lt.s32.totalorder %v4030_v25, 0 }
  0xc7   : > { %2922 = vmatmul.mubr.bf16.vlgmr.msra.gmra.mrb[0].mxu0 %v3666_v62  ;;  %2937 = vmatprep.mubr.msk.bf16.mxu1 %vm3239_vm0, %v3238_v1 }
  0xc8   : > { %2925 = vmatprep.mubr.msk.bf16.mxu0 %vm3239_vm0, %v3238_v1 }
  0xce   : > { %2938 = vmatmul.mubr.bf16.gmra.mrb[24].mxu1 %v1783_v28 }
  0xcf   : > { %2926 = vmatmul.mubr.bf16.gmra.mrb[4].mxu0 %v3644_v55 }
  0xd0   : > { %2929 = vmatprep.mubr.msk.bf16.mxu0 %vm3239_vm0, %v3238_v1  ;;  %vm2054_vm0 = vcmp.ne.s32.totalorder %v3978_v58, 0 }
  0xd1   : > { %vm4040_vm6 = vmand %vm2064_vm1, %vm2054_vm0 }
  0xd2   : > { %vm4101_vm0 = vmand %vm2067_vm5, %vm2057_vm4 }
  0xd7   : > { %2930 = vmatmul.mubr.bf16.gmra.mrb[8].mxu0 %v3651_v56  ;;  %v3890_v1 = vmul.u32.u64.low 3435973837, %v1932_v33  ;;  %v3891_v56 = vmul.u32.u64.high 3435973837, %v1932_v33, %v3890_v1 }
  0xd9   : > { %v1958_v54 = vshrl.u32 %v3891_v56, 3  ;;  %v3959_v1 = vmul.u32.u64.low 3435973837, %v3944_v42  ;;  %v3960_v56 = vmul.u32.u64.high 3435973837, %v3944_v42, %v3959_v1 }
  0xdb   : > { %v1959_v8 = vmul.u32 10, %v1958_v54  ;;  %v2046_v57 = vshrl.u32 %v3960_v56, 3 }
  0xdd   : > { %v1960_v47 = vsub.s32 %v1932_v33, %v1959_v8  ;;  %v2047_v52 = vmul.u32 10, %v2046_v57 }
  0xdf   : > { %vm2052_vm9 = vcmp.ne.s32.totalorder %v1960_v47, 0  ;;  %vm2062_vm10 = vcmp.lt.s32.totalorder %v1960_v47, 0  ;;  %v2082_v48 = vadd.s32 10, %v1960_v47 }
  0xe0   : > { %vm3971_vm12 = vmand %vm2062_vm10, %vm2052_vm9 }
 0x171   : > { %v3879_v43 = vpop.f32.mrb[0].mxu1 }
 0x172   : > { %v2743_v51 = vpop.f32.mrb[1].mxu1 }
 0x173   : > { %v3881_v62 = vpop.f32.mrb[2].mxu1  ;;  %v3947_v28 = vmul.u32.u64.low 3435973837, %v3932_v16  ;;  %v3948_v51 = vmul.u32.u64.high 3435973837, %v3932_v16, %v3947_v28 }
 0x174   : > { %v2744_v24 = vpop.f32.mrb[3].mxu1 }
 0x175   : > { %v2035_v8 = vshrl.u32 %v3948_v51, 3  ;;  %v4057_v51 = vsub.s32 %v3923_v0, %v2025_v22 }
 0x177   : > { %v2036_v39 = vmul.u32 10, %v2035_v8  ;;  %vm2068_vm13 = vcmp.lt.s32.totalorder %v4057_v51, 0 }
 0x179   : > { %v3883_v29 = vpop.f32.mrb[4].mxu1  ;;  %v4072_v34 = vsub.s32 %v3932_v16, %v2036_v39 }
 0x17a   : > { %v2747_v30 = vpop.f32.mrb[5].mxu1 }
 0x17b   : > { %v3885_v32 = vpop.f32.mrb[6].mxu1 }
 0x17c   : > { %v2748_v55 = vpop.f32.mrb[7].mxu1 }
 0x181   : > { %v3893_v40 = vpop.f32.mrb[8].mxu1 }
 0x182   : > { %v2751_v31 = vpop.f32.mrb[9].mxu1 }
 0x183   : > { %v3897_v44 = vpop.f32.mrb[10].mxu1 }
 0x184   : > { %v2752_v46 = vpop.f32.mrb[11].mxu1 }
 0x189   : > { %v932_v26 = vpop.f32.mrb[12].mxu1 }
 0x18a   : > { %v1726_v63 = vpop.f32.mrb[12].mxu0  ;;  %v2755_v2 = vpop.f32.mrb[13].mxu1 }
 0x18b   : > { %v3919_v4 = vadd.f32 %v1726_v63, %v932_v26  ;;  %v2899_v61 = vpop.f32.mrb[13].mxu0  ;;  %v935_v7 = vpop.f32.mrb[14].mxu1  ;;  %v2092_v26 = vsel %vm3971_vm12, %v2082_v48, %v1960_v47  ;;  %v2085_v48 = vadd.s32 10, %v4030_v25  ;;  %vm2058_vm12 = vcmp.ne.s32.totalorder %v4057_v51, 0 }
 0x18c   : > { %v1729_v11 = vpop.f32.mrb[14].mxu0  ;;  %v2756_v12 = vpop.f32.mrb[15].mxu1  ;;  %vm4008_vm2 = vcmp.lt.s32.totalorder %v2092_v26, 8  ;;  %vm4138_vm4 = vmand %vm2068_vm13, %vm2058_vm12 }
 0x18d   : > { %v3925_v18 = vadd.f32 %v1729_v11, %v935_v7  ;;  %v2900_v19 = vpop.f32.mrb[15].mxu0  ;;  %v2083_v7 = vadd.s32 10, %v3966_v50 }
 0x18e   : > { %v2003_v19 = vmul.u32 10, %v2002_v59 }
 0x18f   : > { %v2093_v5 = vsel %vm4019_vm3, %v2083_v7, %v3966_v50  ;;  %vm2069_vm3 = vcmp.lt.s32.totalorder %v4072_v34, 0 }
 0x190   : > { %vm4064_vm9 = vcmp.lt.s32.totalorder %v2093_v5, 8 }
 0x191   : > { %v940_v35 = vpop.f32.mrb[16].mxu1 }
 0x192   : > { %v1734_v27 = vpop.f32.mrb[16].mxu0  ;;  %v2759_v10 = vpop.f32.mrb[17].mxu1 }
 0x193   : > { %v3950_v24 = vadd.f32 %v1734_v27, %v940_v35  ;;  %v2903_v15 = vpop.f32.mrb[17].mxu0  ;;  %v943_v30 = vpop.f32.mrb[18].mxu1  ;;  %v4054_v27 = vsub.s32 %v3921_v9, %v2003_v19 }
 0x194   : > { %v1737_v33 = vpop.f32.mrb[18].mxu0  ;;  %v2760_v55 = vpop.f32.mrb[19].mxu1 }
 0x195   : > { %v3962_v31 = vadd.f32 %v1737_v33, %v943_v30  ;;  %v2904_v46 = vpop.f32.mrb[19].mxu0  ;;  %v2094_v30 = vsel %vm4040_vm6, %v2084_v14, %v3978_v58  ;;  %vm2056_vm10 = vcmp.ne.s32.totalorder %v4054_v27, 0  ;;  %vm2066_vm11 = vcmp.lt.s32.totalorder %v4054_v27, 0 }
 0x196   : > { %vm4082_vm14 = vcmp.lt.s32.totalorder %v2094_v30, 8  ;;  %v2048_v58 = vsub.s32 %v3944_v42, %v2047_v52  ;;  %v2086_v41 = vadd.s32 10, %v4054_v27  ;;  %vm4118_vm1 = vmand %vm2066_vm11, %vm2056_vm10 }
 0x198   : > { %vm2060_vm5 = vcmp.ne.s32.totalorder %v2048_v58, 0  ;;  %vm2070_vm6 = vcmp.lt.s32.totalorder %v2048_v58, 0  ;;  %v2090_v22 = vadd.s32 10, %v2048_v58 }
 0x199   : > { %v1895_v21 = vpop.f32.mrb[20].mxu1  ;;  %vm4154_vm10 = vmand %vm2070_vm6, %vm2060_vm5 }
 0x19a   : > { %v1871_v63 = vpop.f32.mrb[0].mxu0  ;;  %v3999_v2 = vadd.f32 %v3919_v4, %v1895_v21  ;;  %v2935_v61 = vpop.f32.mrb[21].mxu1  ;;  %v2088_v21 = vadd.s32 10, %v4057_v51 }
 0x19b   : > { %v2957_v11 = vadd.f32 %v1871_v63, %v3879_v43  ;;  %v2923_v12 = vpop.f32.mrb[1].mxu0  ;;  %v1898_v17 = vpop.f32.mrb[22].mxu1 }
 0x19c   : > { %1926 = vst [vmem:[%s3988_s28 + $0x30] sm:$0xff] %v3999_v2  ;;  %v1874_v4 = vpop.f32.mrb[2].mxu0  ;;  %v4013_v20 = vadd.f32 %v3925_v18, %v1898_v17  ;;  %v2936_v43 = vpop.f32.mrb[23].mxu1  ;;  %v2089_v12 = vadd.s32 10, %v4072_v34  ;;  %v2098_v13 = vsel %vm4138_vm4, %v2088_v21, %v4057_v51 }
 0x19d   : > { %1920 = vst [vmem:[%s3988_s28] sm:$0xff] %v2957_v11  ;;  %v2111_v23 = vsel %vm3994_vm15, %v2957_v11, 0.0  ;;  %v2958_v18 = vadd.f32 %v1874_v4, %v3881_v62  ;;  %v2924_v3 = vpop.f32.mrb[3].mxu0  ;;  %v4045_v62 = vadd.s32 10, %v3982_v60  ;;  %vm4093_vm15 = vmand %vm2065_vm8, %vm2055_vm7  ;;  %vm2108_vm12 = vcmp.lt.s32.totalorder %v2098_v13, 8 }
 0x19e   : > { %1927 = vst [vmem:[%s3988_s28 + $0x38] sm:$0xff] %v4013_v20  ;;  %v2137_v10 = vmul.f32 %v2111_v23, %v2111_v23  ;;  %v2095_v42 = vsel %vm4093_vm15, %v2085_v48, %v4030_v25 }
 0x19f   : > { %1921 = vst [vmem:[%s3988_s28 + $0x8] sm:$0xff] %v2958_v18  ;;  %v2112_v38 = vsel %vm4008_vm2, %v2958_v18, 0.0  ;;  %vm2059_vm2 = vcmp.ne.s32.totalorder %v4072_v34, 0  ;;  %v2097_v49 = vsel %vm4101_vm0, %v4045_v62, %v3982_v60  ;;  %v2096_v60 = vsel %vm4118_vm1, %v2086_v41, %v4054_v27 }
 0x1a0   : > { %v2121_v53 = vadd.f32 %v2112_v38, %v2111_v23  ;;  %v2138_v28 = vmul.f32 %v2112_v38, %v2112_v38  ;;  %vm4146_vm7 = vmand %vm2069_vm3, %vm2059_vm2  ;;  %vm2105_vm8 = vcmp.lt.s32.totalorder %v2095_v42, 8  ;;  %vm2106_vm11 = vcmp.lt.s32.totalorder %v2096_v60, 8 }
 0x1a1   : > { %v1903_v15 = vpop.f32.mrb[24].mxu1  ;;  %v2099_v18 = vsel %vm4146_vm7, %v2089_v12, %v4072_v34  ;;  %v2100_v62 = vsel %vm4154_vm10, %v2090_v22, %v2048_v58 }
 0x1a2   : > { %v2147_v33 = vadd.f32 %v2138_v28, %v2137_v10  ;;  %v1879_v9 = vpop.f32.mrb[4].mxu0  ;;  %v4069_v0 = vadd.f32 %v3950_v24, %v1903_v15  ;;  %v2939_v37 = vpop.f32.mrb[25].mxu1  ;;  %vm2109_vm13 = vcmp.lt.s32.totalorder %v2099_v18, 8 }
 0x1a3   : > { %v2959_v1 = vadd.f32 %v1879_v9, %v3883_v29  ;;  %v2927_v56 = vpop.f32.mrb[5].mxu0  ;;  %v1906_v46 = vpop.f32.mrb[26].mxu1 }
 0x1a4   : > { %1928 = vst [vmem:[%s3988_s28 + $0x40] sm:$0xff] %v4069_v0  ;;  %v1882_v16 = vpop.f32.mrb[6].mxu0  ;;  %v4087_v29 = vadd.f32 %v3962_v31, %v1906_v46  ;;  %v2940_v36 = vpop.f32.mrb[27].mxu1  ;;  %v2119_v15 = vsel %vm2109_vm13, %v4069_v0, 0.0 }
 0x1a5   : > { %1922 = vst [vmem:[%s3988_s28 + $0x10] sm:$0xff] %v2959_v1  ;;  %v2113_v31 = vsel %vm4064_vm9, %v2959_v1, 0.0  ;;  %v2960_v6 = vadd.f32 %v1882_v16, %v3885_v32  ;;  %v2928_v59 = vpop.f32.mrb[7].mxu0  ;;  %vm2107_vm9 = vcmp.lt.s32.totalorder %v2097_v49, 8  ;;  %v2145_v9 = vmul.f32 %v2119_v15, %v2119_v15 }
 0x1a6   : > { %v2122_v26 = vadd.f32 %v2121_v53, %v2113_v31  ;;  %v2139_v45 = vmul.f32 %v2113_v31, %v2113_v31  ;;  %1929 = vst [vmem:[%s3988_s28 + $0x48] sm:$0xff] %v4087_v29  ;;  %v2117_v35 = vsel %vm2107_vm9, %v3999_v2, 0.0  ;;  %v2118_v53 = vsel %vm2108_vm12, %v4013_v20, 0.0 }
 0x1a7   : > { %1923 = vst [vmem:[%s3988_s28 + $0x18] sm:$0xff] %v2960_v6  ;;  %v2114_v32 = vsel %vm4082_vm14, %v2960_v6, 0.0  ;;  %v2143_v28 = vmul.f32 %v2117_v35, %v2117_v35  ;;  %vm2110_vm14 = vcmp.lt.s32.totalorder %v2100_v62, 8  ;;  %v2144_v30 = vmul.f32 %v2118_v53, %v2118_v53 }
 0x1a8   : > { %v2148_v7 = vadd.f32 %v2147_v33, %v2139_v45  ;;  %v2123_v8 = vadd.f32 %v2122_v26, %v2114_v32  ;;  %v2140_v11 = vmul.f32 %v2114_v32, %v2114_v32  ;;  %v2120_v33 = vsel %vm2110_vm14, %v4087_v29, 0.0 }
 0x1a9   : > { %v2146_v37 = vmul.f32 %v2120_v33, %v2120_v33 }
 0x1aa   : > { %v2149_v19 = vadd.f32 %v2148_v7, %v2140_v11  ;;  %v1887_v4 = vpop.f32.mrb[8].mxu0 }
 0x1ab   : > { %v2961_v43 = vadd.f32 %v1887_v4, %v3893_v40  ;;  %v2931_v47 = vpop.f32.mrb[9].mxu0 }
 0x1ac   : > { %v1890_v23 = vpop.f32.mrb[10].mxu0 }
 0x1ad   : > { %1924 = vst [vmem:[%s3988_s28 + $0x20] sm:$0xff] %v2961_v43  ;;  %v2115_v3 = vsel %vm2105_vm8, %v2961_v43, 0.0  ;;  %v2962_v14 = vadd.f32 %v1890_v23, %v3897_v44  ;;  %v2932_v25 = vpop.f32.mrb[11].mxu0 }
 0x1ae   : > { %v2124_v40 = vadd.f32 %v2123_v8, %v2115_v3  ;;  %v2141_v39 = vmul.f32 %v2115_v3, %v2115_v3 }
 0x1af   : > { %1925 = vst [vmem:[%s3988_s28 + $0x28] sm:$0xff] %v2962_v14  ;;  %v2116_v38 = vsel %vm2106_vm11, %v2962_v14, 0.0 }
 0x1b0   : > { %v2150_v5 = vadd.f32 %v2149_v19, %v2141_v39  ;;  %v2125_v27 = vadd.f32 %v2124_v40, %v2116_v38  ;;  %v2142_v10 = vmul.f32 %v2116_v38, %v2116_v38 }
 0x1b2   : > { %v2126_v44 = vadd.f32 %v2125_v27, %v2117_v35  ;;  %v2151_v51 = vadd.f32 %v2150_v5, %v2142_v10 }
 0x1b4   : > { %v2127_v52 = vadd.f32 %v2126_v44, %v2118_v53  ;;  %v2152_v2 = vadd.f32 %v2151_v51, %v2143_v28 }
 0x1b6   : > { %v2128_v55 = vadd.f32 %v2127_v52, %v2119_v15  ;;  %v2153_v34 = vadd.f32 %v2152_v2, %v2144_v30 }
 0x1b8   : > { %v2129_v1 = vadd.f32 %v2128_v55, %v2120_v33  ;;  %v2154_v56 = vadd.f32 %v2153_v34, %v2145_v9 }
 0x1ba   : > { %v2130_v20 = vrot.slane %v2129_v1, 4  ;;  %v2155_v46 = vadd.f32 %v2154_v56, %v2146_v37 }
 0x1bc   : > { %v2131_v48 = vadd.f32 %v2130_v20, %v2129_v1  ;;  %v2156_v16 = vrot.slane %v2155_v46, 4 }
 0x1be   : > { %v2132_v24 = vrot.slane %v2131_v48, 2  ;;  %v2157_v50 = vadd.f32 %v2156_v16, %v2155_v46 }
 0x1c0   : > { %v2133_v0 = vadd.f32 %v2132_v24, %v2131_v48  ;;  %v2158_v36 = vrot.slane %v2157_v50, 2 }
 0x1c2   : > { %v2134_v54 = vrot.slane %v2133_v0, 1  ;;  %v2159_v31 = vadd.f32 %v2158_v36, %v2157_v50 }
 0x1c4   : > { %v2135_v29 = vadd.f32 %v2134_v54, %v2133_v0  ;;  %v2160_v6 = vrot.slane %v2159_v31, 1 }
 0x1c6   : > { %2136 = vst [vmem:[%s211_s5] sm:$0x1] %v2135_v29  ;;  %v2161_v58 = vadd.f32 %v2160_v6, %v2159_v31 }
 0x1c8   : > { %2162 = vst [vmem:[%s214_s8] sm:$0x1] %v2161_v58 }
 0x1c9 PF: > { %s15_s15 = sadd.s32 1, %s3236_s15  }
 0x1ca   : > { %p12_p4 = scmp.ge.s32.totalorder %s15_s15, 4  }
 0x1cc   :  { %14 = sbr.rel (!%p12_p4) target bundleno = 1 (0x1), region = 90 }

// kernel: _lambda_.16
= control target key start
LH: loop header
LB: loop body
LE: loop exit
PB: predicated region body
PF: predicated region fallthrough
CT: control target
= control target key end

     0   :  { %s319_s12 = smov 0   ;;  %s342_s0 = inlined_call_operand.vmem [shape: f32[2,4,6,128], index: 0, kind: input, shape index: {}]   ;;  %s343_s1 = inlined_call_operand.vmem [shape: f32[1,1,128], index: 1, kind: input, shape index: {}]   ;;  %s344_s2 = inlined_call_operand.vmem [shape: f32[1,1,128], index: 2, kind: input, shape index: {}]   ;;  %s345_s3 = inlined_call_operand.vmem [shape: bf16[2,4,4,128], index: 3, kind: output, shape index: {}]  }
   0x1 LB: > { %s268_s13 = sadd.s32 4294967295, %s297_s12   ;;  %p272_p0 = scmp.ge.s32.totalorder %s297_s12, 1  ;;  %s297_s12 = sphi %s319_s12, %s13_s12  }
   0x2   : > { %p137_p1 = scmp.lt.s32.totalorder %s297_s12, 3 }
   0x4   : > { %p138_p2 = pnand %p272_p0, %p137_p1 }
   0x5   : > { %p161_p3 = scmp.lt.s32.totalorder (!%p138_p2), %s268_s13, 1  ;;  %v277_v0 = vld [vmem:[%s343_s1] ss:$0 sm:$0xff] (!%p138_p2) }
   0x6   : > { %141 = sbr.rel (%p138_p2) target bundleno = 29 (0x1d), region = 32  ;;  %v278_v1 = vld [vmem:[%s344_s2] ss:$0 sm:$0xff] (!%p138_p2) }
   0xd   : > { %s347_s13 = smov (!%p161_p3, %s268_s13), 1 }
   0xe   : > { %s281_s14 = sshll.u32 %s347_s13, 5  ;;  %s282_s22 = sshll.u32 %s347_s13, 3 }
   0xf   : > { %s165_s19 = scalar_lea.vmem %s342_s0, %s281_s14  ;;  %s170_s25 = scalar_lea.vmem %s345_s3, %s282_s22 }
  0x10   : > { %v171_v2 = vld [vmem:[%s165_s19] sm:$0xf]  ;;  %v172_v3 = vld [vmem:[%s165_s19 + $0x8] sm:$0xf]  ;;  %v173_v4 = vld [vmem:[%s165_s19 + $0x10] sm:$0xf] }
  0x11   : > { %v182_v5 = vmul.f32 %v277_v0, %v171_v2  ;;  %v183_v6 = vmul.f32 %v277_v0, %v172_v3  ;;  %v184_v7 = vmul.f32 %v277_v0, %v173_v4  ;;  %v174_v8 = vld [vmem:[%s165_s19 + $0x18] sm:$0xf] }
  0x12   : > { %v185_v9 = vmul.f32 %v277_v0, %v174_v8 }
  0x13   : > { %v193_v10 = vadd.f32 %v278_v1, %v182_v5  ;;  %v194_v11 = vadd.f32 %v278_v1, %v183_v6  ;;  %v195_v12 = vadd.f32 %v278_v1, %v184_v7 }
  0x14   : > { %v196_v13 = vadd.f32 %v278_v1, %v185_v9 }
  0x15   : > { %v197_v14 = vmul.f32 0.1, %v193_v10  ;;  %v198_v15 = vmul.f32 0.1, %v194_v11  ;;  %v199_v16 = vmul.f32 0.1, %v195_v12 }
  0x16   : > { %v200_v17 = vmul.f32 0.1, %v196_v13 }
  0x17   : > { %v201_v18 = vmax.f32 %v193_v10, %v197_v14  ;;  %v202_v19 = vmax.f32 %v194_v11, %v198_v15  ;;  %v203_v20 = vmax.f32 %v195_v12, %v199_v16 }
  0x18   : > { %v204_v21 = vmax.f32 %v196_v13, %v200_v17 }
  0x19   : > { %v205_v22 = vpack.c.bf16 %v201_v18, %v201_v18  ;;  %v206_v23 = vpack.c.bf16 %v202_v19, %v202_v19  ;;  %v207_v24 = vpack.c.bf16 %v203_v20, %v203_v20 }
  0x1a   : > { %v208_v25 = vpack.c.bf16 %v204_v21, %v204_v21 }
  0x1b   : > { %209 = vst [vmem:[%s170_s25] sm:$0x3] %v205_v22  ;;  %210 = vst [vmem:[%s170_s25 + $0x2] sm:$0x3] %v206_v23 }
  0x1c   : > { %211 = vst [vmem:[%s170_s25 + $0x4] sm:$0x3] %v207_v24  ;;  %212 = vst [vmem:[%s170_s25 + $0x6] sm:$0x3] %v208_v25 }
  0x1d PF: > { %s13_s12 = sadd.s32 1, %s297_s12  }
  0x1e   : > { %p10_p4 = scmp.ge.s32.totalorder %s13_s12, 4  }
  0x20   :  { %12 = sbr.rel (!%p10_p4) target bundleno = 1 (0x1), region = 62 }

// kernel: _lambda_.15
= control target key start
LH: loop header
LB: loop body
LE: loop exit
PB: predicated region body
PF: predicated region fallthrough
CT: control target
= control target key end

     0   :  { %s2236_s15 = smov 0   ;;  %s2578_s0 = inlined_call_operand.vmem [shape: bf16[2,42,128], index: 0, kind: input, shape index: {}]   ;;  %s2579_s1 = inlined_call_operand.vmem [shape: bf16[3,3,128,128], index: 1, kind: input, shape index: {}]   ;;  %s2580_s2 = inlined_call_operand.vmem [shape: f32[2,24,128], index: 2, kind: output, shape index: {0}]   ;;  %s2581_s3 = inlined_call_operand.vmem [shape: f32[2,1,128], index: 3, kind: output, shape index: {1}]   ;;  %s2582_s4 = inlined_call_operand.vmem [shape: f32[2,1,128], index: 4, kind: output, shape index: {2}]  }
   0x1 LB: > { %s1580_s16 = sadd.s32 4294967295, %s2209_s15   ;;  %p1584_p0 = scmp.ge.s32.totalorder %s2209_s15, 1  ;;  %s2209_s15 = sphi %s2236_s15, %s15_s15  }
   0x2   : > { %p167_p1 = scmp.lt.s32.totalorder %s2209_s15, 3 }
   0x4   : > { %p168_p2 = pnand %p1584_p0, %p167_p1 }
   0x5   : > { %v2118_v0 = vld [vmem:[%s2579_s1 + $0x40] sm:$0xff] (!%p168_p2)   ;;  %p199_p3 = scmp.lt.s32.totalorder (!%p168_p2), %s1580_s16, 1  ;;  %v2120_v2 = vld [vmem:[%s2579_s1 + $0x48] sm:$0xff] (!%p168_p2)   ;;  %v2122_v4 = vld [vmem:[%s2579_s1 + $0x50] sm:$0xff] (!%p168_p2)   ;;  %vm263_vm0 = vsmask.f32 (!%p168_p2), 7424 }
   0x6   : > { %171 = sbr.rel (%p168_p2) target bundleno = 404 (0x194), region = 28  ;;  %v2119_v1 = vld [vmem:[%s2579_s1 + $0x100] sm:$0xff] (!%p168_p2)   ;;  %1892 = vmatprep.subr.bf16.mxu1 (!%p168_p2), %v2118_v0  ;;  %v2121_v3 = vld [vmem:[%s2579_s1 + $0x108] sm:$0xff] (!%p168_p2)   ;;  %v2123_v5 = vld [vmem:[%s2579_s1 + $0x110] sm:$0xff] (!%p168_p2)   ;;  %vm753_vm1 = vsmask.f32 (!%p168_p2), 4352 }
   0x7   : > { %1972 = vmatprep.subr.bf16.mxu0 (!%p168_p2), %v2119_v1  ;;  %1893 = vmatpush3.bf16.msra.mxu1 (!%p168_p2), %v2118_v0  ;;  %v2124_v6 = vld [vmem:[%s2579_s1 + $0x58] sm:$0xff] (!%p168_p2)   ;;  %v2126_v8 = vld [vmem:[%s2579_s1 + $0x60] sm:$0xff] (!%p168_p2)   ;;  %v2128_v10 = vld [vmem:[%s2579_s1 + $0x68] sm:$0xff] (!%p168_p2)   ;;  %vm497_vm2 = vcmask (!%p168_p2), 1046528   ;;  %vm1023_vm3 = vcmask (!%p168_p2), 1045504   ;;  %vm627_vm4 = vcmask (!%p168_p2), 1044480  }
   0x8   : > { %1973 = vmatpush3.bf16.msra.mxu0 (!%p168_p2), %v2119_v1  ;;  %1894 = vmatprep.subr.bf16.mxu1 (!%p168_p2), %v2120_v2  ;;  %v2125_v7 = vld [vmem:[%s2579_s1 + $0x118] sm:$0xff] (!%p168_p2)   ;;  %v2127_v9 = vld [vmem:[%s2579_s1 + $0x120] sm:$0xff] (!%p168_p2)   ;;  %v2129_v11 = vld [vmem:[%s2579_s1 + $0x128] sm:$0xff] (!%p168_p2)   ;;  %vm1149_vm5 = vsmask.f32 (!%p168_p2), 5376 }
   0x9   : > { %1974 = vmatprep.subr.bf16.mxu0 (!%p168_p2), %v2121_v3  ;;  %v2130_v23 = vld [vmem:[%s2579_s1 + $0x70] sm:$0xff] (!%p168_p2)   ;;  %v2132_v30 = vld [vmem:[%s2579_s1 + $0x78] sm:$0xff] (!%p168_p2)   ;;  %v2136_v44 = vld [vmem:[%s2579_s1] sm:$0xff] (!%p168_p2)  }
   0xa   : > { %v2131_v26 = vld [vmem:[%s2579_s1 + $0x130] sm:$0xff] (!%p168_p2)   ;;  %v2133_v34 = vld [vmem:[%s2579_s1 + $0x138] sm:$0xff] (!%p168_p2)   ;;  %v2139_v46 = vld [vmem:[%s2579_s1 + $0x140] sm:$0xff] (!%p168_p2)  }
   0xb   : > { %1895 = vmatpush3.bf16.msra.mxu1 (!%p168_p2), %v2120_v2  ;;  %v2140_v48 = vld [vmem:[%s2579_s1 + $0x8] sm:$0xff] (!%p168_p2)   ;;  %v2142_v51 = vld [vmem:[%s2579_s1 + $0x10] sm:$0xff] (!%p168_p2)   ;;  %v2144_v53 = vld [vmem:[%s2579_s1 + $0x18] sm:$0xff] (!%p168_p2)  }
   0xc   : > { %1975 = vmatpush3.bf16.msra.mxu0 (!%p168_p2), %v2121_v3  ;;  %1896 = vmatprep.subr.bf16.mxu1 (!%p168_p2), %v2122_v4  ;;  %v2141_v49 = vld [vmem:[%s2579_s1 + $0x148] sm:$0xff] (!%p168_p2)   ;;  %v2143_v52 = vld [vmem:[%s2579_s1 + $0x150] sm:$0xff] (!%p168_p2)   ;;  %v2145_v54 = vld [vmem:[%s2579_s1 + $0x158] sm:$0xff] (!%p168_p2)  }
   0xd   : > { %s2584_s16 = smov (!%p199_p3, %s1580_s16), 1  ;;  %1976 = vmatprep.subr.bf16.mxu0 %v2123_v5  ;;  %v2146_v55 = vld [vmem:[%s2579_s1 + $0x20] sm:$0xff]   ;;  %v2148_v57 = vld [vmem:[%s2579_s1 + $0x28] sm:$0xff]   ;;  %v2150_v59 = vld [vmem:[%s2579_s1 + $0x30] sm:$0xff]  }
   0xe   : > { %s2103_s7 = smul.u32 24, %s2584_s16  ;;  %v2147_v56 = vld [vmem:[%s2579_s1 + $0x160] sm:$0xff]   ;;  %v2149_v58 = vld [vmem:[%s2579_s1 + $0x168] sm:$0xff]   ;;  %v2151_v60 = vld [vmem:[%s2579_s1 + $0x170] sm:$0xff]   ;;  %s211_s9 = scalar_lea.vmem %s2581_s3, %s2584_s16 }
   0xf   : > { %1897 = vmatpush3.bf16.msra.mxu1 %v2122_v4  ;;  %v2152_v61 = vld [vmem:[%s2579_s1 + $0x38] sm:$0xff]   ;;  %s214_s12 = scalar_lea.vmem %s2582_s4, %s2584_s16 }
  0x10   : > { %1977 = vmatpush3.bf16.msra.mxu0 %v2123_v5  ;;  %1898 = vmatprep.subr.bf16.mxu1 %v2124_v6  ;;  %s2282_s14 = scalar_lea.vmem %s2578_s0, %s2103_s7  ;;  %v2153_v3 = vld [vmem:[%s2579_s1 + $0x178] sm:$0xff]   ;;  %s208_s6 = scalar_lea.vmem %s2580_s2, %s2103_s7 }
  0x11   : > { %1978 = vmatprep.subr.bf16.mxu0 %v2125_v7  ;;  %v216_v12 = vld [vmem:[%s2282_s14] sm:$0xf]  ;;  %v2292_v13 = vld [vmem:[%s2282_s14 + $0x4] sm:$0xf]  ;;  %v2295_v14 = vld [vmem:[%s2282_s14 + $0x8] sm:$0xf] }
  0x12   : > { %v235_v15 = vld [vmem:[%s2282_s14 + $0xc] sm:$0x1]  ;;  %v1603_v16 = vcombine.low %v216_v12, %v2292_v13  ;;  %v602_v18 = vld [vmem:[%s2282_s14] sm:$0x8]  ;;  %v1714_v50 = vcombine.low %v2292_v13, %v2295_v14  ;;  %v992_v63 = vld [vmem:[%s2282_s14 + $0x4] sm:$0xc] }
  0x13   : > { %1899 = vmatpush3.bf16.msra.mxu1 %v2124_v6  ;;  %v2300_v17 = vcombine.low %v2295_v14, %v235_v15  ;;  %v2304_v21 = vcombine.low %v602_v18, %v2292_v13  ;;  %v2307_v22 = vld [vmem:[%s2282_s14 + $0xc] sm:$0xf]  ;;  %v476_v62 = vld [vmem:[%s2282_s14] sm:$0xe]  ;;  %v2378_v0 = vld [vmem:[%s2282_s14 + $0x8] sm:$0xf] }
  0x14   : > { %1979 = vmatpush3.bf16.msra.mxu0 %v2125_v7  ;;  %1900 = vmatprep.subr.bf16.mxu1 %v2126_v8  ;;  %v265_v19 = vshrl.u32 %v1603_v16, 16  ;;  %v267_v20 = vshll.u32 %v1603_v16, 16  ;;  %v1689_v25 = vcombine.low %v2295_v14, %v2307_v22  ;;  %v2381_v1 = vld [vmem:[%s2282_s14 + $0xc] sm:$0xf]  ;;  %v995_v2 = vld [vmem:[%s2282_s14 + $0x10] sm:$0x3]  ;;  %v1638_v4 = vcombine.low %v476_v62, %v2292_v13 }
  0x15   : > { %1980 = vmatprep.subr.bf16.mxu0 %v2127_v9  ;;  %v272_v24 = vshll.u32 %v2300_v17, 16  ;;  %v755_v28 = vshrl.u32 %v2304_v21, 16  ;;  %v758_v29 = vshll.u32 %v2304_v21, 16  ;;  %v276_v43 = vshrl.u32 %v2300_v17, 16  ;;  %v2154_v7 = vld [vmem:[%s2579_s1 + $0x80] sm:$0xff]   ;;  %v2160_v18 = vld [vmem:[%s2579_s1 + $0x188] sm:$0xff]  }
  0x16   : > { %v269_v27 = vrot.slane %v267_v20, 1  ;;  %v763_v32 = vshrl.u32 %v1689_v25, 16  ;;  %v766_v33 = vshll.u32 %v1689_v25, 16  ;;  %v2389_v5 = vcombine.low %v992_v63, %v2378_v0  ;;  %v2190_v62 = vld [vmem:[%s2579_s1 + $0x1f0] sm:$0xff]   ;;  %v1268_v63 = vld [vmem:[%s2282_s14 + $0x4] sm:$0x8] }
  0x17   : > { %1901 = vmatpush3.bf16.msra.mxu1 %v2126_v8  ;;  %v274_v31 = vrot.slane %v272_v24, 1  ;;  %v757_v36 = vrot.slane %v755_v28, 3  ;;  %v760_v37 = vrot.slane %v758_v29, 4  ;;  %v1741_v6 = vcombine.low %v2381_v1, %v995_v2  ;;  %v2156_v8 = vld [vmem:[%s2579_s1 + $0x180] sm:$0xff]   ;;  %v603_v24 = vld [vmem:[%s2282_s14 + $0xc] sm:$0x7] }
  0x18   : > { %1981 = vmatpush3.bf16.msra.mxu0 %v2127_v9  ;;  %1902 = vmatprep.subr.bf16.mxu1 %v2128_v10  ;;  %v270_v35 = vor.u32 %v269_v27, %v265_v19  ;;  %v765_v38 = vrot.slane %v763_v32, 3  ;;  %v768_v39 = vrot.slane %v766_v33, 4  ;;  %v1613_v9 = vcombine.low %v2295_v14, %v2295_v14  ;;  %v2163_v27 = vld [vmem:[%s2579_s1 + $0x98] sm:$0xff]   ;;  %v1128_v32 = vld [vmem:[%s2282_s14 + $0x10] sm:$0x7]  ;;  %v2168_v33 = vld [vmem:[%s2579_s1 + $0x1a8] sm:$0xff]  }
  0x19   : > { %1982 = vmatprep.subr.bf16.mxu0 %v2129_v11  ;;  %v761_v41 = vor.u32 %v760_v37, %v757_v36  ;;  %v278_v47 = vor.u32 %v276_v43, %v274_v31  ;;  %v1715_v12 = vcombine.low %v2307_v22, %v2307_v22  ;;  %v1024_v13 = vrot.slane %v2389_v5, 2  ;;  %v2161_v22 = vld [vmem:[%s2579_s1 + $0x90] sm:$0xff]   ;;  %v2164_v28 = vld [vmem:[%s2579_s1 + $0x198] sm:$0xff]  }
  0x1a   : > { %v275_v40 = vsel %vm263_vm0, %v270_v35, %v274_v31  ;;  %v769_v42 = vor.u32 %v768_v39, %v765_v38  ;;  %v2404_v15 = vrot.slane %v1741_v6, 2  ;;  %v628_v25 = vrot.slane %v2304_v21, 3  ;;  %v2167_v31 = vld [vmem:[%s2579_s1 + $0xa8] sm:$0xff]   ;;  %v2169_v35 = vld [vmem:[%s2579_s1 + $0xb0] sm:$0xff]   ;;  %v2192_v2 = vld [vmem:[%s2579_s1 + $0x1f8] sm:$0xff]  }
  0x1b   : > { %1903 = vmatpush3.bf16.msra.mxu1 %v2128_v10  ;;  %1908 = vmatprep.mubr.bf16.mxu1 %v275_v40  ;;  %v498_v10 = vrot.slane %v1638_v4, 1  ;;  %v2170_v36 = vld [vmem:[%s2579_s1 + $0x1b0] sm:$0xff]   ;;  %v1151_v37 = vshrl.u32 %v2389_v5, 16  ;;  %v1154_v38 = vshll.u32 %v2389_v5, 16  ;;  %v2194_v4 = vld [vmem:[%s2579_s1 + $0x200] sm:$0xff]  }
  0x1c   : > { %1983 = vmatpush3.bf16.msra.mxu0 %v2129_v11  ;;  %1904 = vmatprep.subr.bf16.mxu1 %v2130_v23  ;;  %v770_v45 = vsel %vm753_vm1, %v761_v41, %v769_v42  ;;  %v499_v11 = vrot.slane %v2300_v17, 1  ;;  %v1026_v20 = vsel %vm1023_vm3, %v1024_v13, %v2404_v15  ;;  %v2171_v41 = vld [vmem:[%s2579_s1 + $0xb8] sm:$0xff]  }
  0x1d   : > { %1984 = vmatprep.subr.bf16.mxu0 %v2131_v26  ;;  %1988 = vmatprep.mubr.bf16.mxu0 %v770_v45  ;;  %v1153_v43 = vrot.slane %v1151_v37, 2  ;;  %v2183_v17 = vld [vmem:[%s2579_s1 + $0xd8] sm:$0xff]  }
  0x1e   : > { %v500_v19 = vsel %vm497_vm2, %v498_v10, %v499_v11  ;;  %v2198_v10 = vld [vmem:[%s2579_s1 + $0x220] sm:$0xff]   ;;  %v2201_v13 = vld [vmem:[%s2579_s1 + $0x238] sm:$0xff]  }
  0x1f   : > { %1905 = vmatpush3.bf16.msra.mxu1 %v2130_v23  ;;  %v2162_v23 = vld [vmem:[%s2579_s1 + $0x190] sm:$0xff]  }
  0x20   : > { %1985 = vmatpush3.bf16.msra.mxu0 %v2131_v26  ;;  %1906 = vmatprep.subr.bf16.mxu1 %v2132_v30  ;;  %v1664_v26 = vcombine.low %v2295_v14, %v603_v24  ;;  %v2165_v14 = vld [vmem:[%s2579_s1 + $0xa0] sm:$0xff]  }
  0x21   : > { %1986 = vmatprep.subr.bf16.mxu0 %v2133_v34 }
  0x22   : > { %v2430_v29 = vrot.slane %v1664_v26, 3 }
  0x23   : > { %1907 = vmatpush3.bf16.msra.mxu1 %v2132_v30  ;;  %v2166_v30 = vld [vmem:[%s2579_s1 + $0x1a0] sm:$0xff]  }
  0x24   : > { %1987 = vmatpush3.bf16.msra.mxu0 %v2133_v34  ;;  %1912 = vmatprep.subr.bf16.mxu1 %v2136_v44  ;;  %v630_v21 = vsel %vm627_vm4, %v628_v25, %v2430_v29  ;;  %v2448_v34 = vcombine.low %v2381_v1, %v1128_v32  ;;  %v2191_v1 = vld [vmem:[%s2579_s1 + $0xf8] sm:$0xff]  }
  0x25   : > { %1992 = vmatprep.subr.bf16.mxu0 %v2139_v46 }
  0x26   : > { %1909 = vmatmul.mubr.bf16.vlgmr.msra.gmra.mrb[0].mxu1 %v278_v47  ;;  %v1159_v39 = vshrl.u32 %v2448_v34, 16  ;;  %v1162_v40 = vshll.u32 %v2448_v34, 16  ;;  %v2174_v47 = vld [vmem:[%s2579_s1 + $0xc0] sm:$0xff]   ;;  %v1290_v6 = vrot.slane %v2448_v34, 3 }
  0x27   : > { %1913 = vmatpush3.bf16.msra.mxu1 %v2136_v44  ;;  %1989 = vmatmul.mubr.bf16.vlgmr.msra.gmra.mrb[0].mxu0 %v769_v42  ;;  %v2172_v42 = vld [vmem:[%s2579_s1 + $0x1b8] sm:$0xff]   ;;  %v1156_v44 = vrot.slane %v1154_v38, 3 }
  0x28   : > { %1993 = vmatpush3.bf16.msra.mxu0 %v2139_v46  ;;  %1914 = vmatprep.subr.bf16.mxu1 %v2140_v48  ;;  %v1161_v45 = vrot.slane %v1159_v39, 2  ;;  %v1164_v46 = vrot.slane %v1162_v40, 3 }
  0x29   : > { %1994 = vmatprep.subr.bf16.mxu0 %v2141_v49  ;;  %1928 = vmatprep.mubr.bf16.mxu1 %v1603_v16  ;;  %v2159_v16 = vld [vmem:[%s2579_s1 + $0x88] sm:$0xff]  }
  0x2a   : > { %2008 = vmatprep.mubr.bf16.mxu0 %v1714_v50  ;;  %v2472_v50 = vor.u32 %v1164_v46, %v1161_v45 }
  0x2b   : > { %1915 = vmatpush3.bf16.msra.mxu1 %v2140_v48  ;;  %v2178_v48 = vld [vmem:[%s2579_s1 + $0x1c0] sm:$0xff]  }
  0x2c   : > { %1995 = vmatpush3.bf16.msra.mxu0 %v2141_v49  ;;  %1916 = vmatprep.subr.bf16.mxu1 %v2142_v51  ;;  %v1157_v49 = vor.u32 %v1156_v44, %v1153_v43 }
  0x2d   : > { %1996 = vmatprep.subr.bf16.mxu0 %v2143_v52 }
  0x2f   : > { %1917 = vmatpush3.bf16.msra.mxu1 %v2142_v51  ;;  %v2179_v51 = vld [vmem:[%s2579_s1 + $0xc8] sm:$0xff]  }
  0x30   : > { %1997 = vmatpush3.bf16.msra.mxu0 %v2143_v52  ;;  %1918 = vmatprep.subr.bf16.mxu1 %v2144_v53  ;;  %v2180_v52 = vld [vmem:[%s2579_s1 + $0x1c8] sm:$0xff]  }
  0x31   : > { %1998 = vmatprep.subr.bf16.mxu0 %v2145_v54 }
  0x33   : > { %1919 = vmatpush3.bf16.msra.mxu1 %v2144_v53  ;;  %v1166_v53 = vsel %vm1149_vm5, %v1157_v49, %v2472_v50 }
  0x34   : > { %1999 = vmatpush3.bf16.msra.mxu0 %v2145_v54  ;;  %1920 = vmatprep.subr.bf16.mxu1 %v2146_v55  ;;  %v2181_v54 = vld [vmem:[%s2579_s1 + $0xd0] sm:$0xff]  }
  0x35   : > { %2000 = vmatprep.subr.bf16.mxu0 %v2147_v56 }
  0x37   : > { %1921 = vmatpush3.bf16.msra.mxu1 %v2146_v55  ;;  %v2182_v55 = vld [vmem:[%s2579_s1 + $0x1d0] sm:$0xff]  }
  0x38   : > { %2001 = vmatpush3.bf16.msra.mxu0 %v2147_v56  ;;  %1922 = vmatprep.subr.bf16.mxu1 %v2148_v57  ;;  %v2184_v56 = vld [vmem:[%s2579_s1 + $0x1d8] sm:$0xff]  }
  0x39   : > { %2002 = vmatprep.subr.bf16.mxu0 %v2149_v58 }
  0x3b   : > { %1923 = vmatpush3.bf16.msra.mxu1 %v2148_v57  ;;  %v2185_v57 = vld [vmem:[%s2579_s1 + $0xe0] sm:$0xff]  }
  0x3c   : > { %2003 = vmatpush3.bf16.msra.mxu0 %v2149_v58  ;;  %1924 = vmatprep.subr.bf16.mxu1 %v2150_v59  ;;  %v2186_v58 = vld [vmem:[%s2579_s1 + $0x1e0] sm:$0xff]  }
  0x3d   : > { %2004 = vmatprep.subr.bf16.mxu0 %v2151_v60 }
  0x3f   : > { %1925 = vmatpush3.bf16.msra.mxu1 %v2150_v59  ;;  %v2187_v59 = vld [vmem:[%s2579_s1 + $0xe8] sm:$0xff]  }
  0x40   : > { %2005 = vmatpush3.bf16.msra.mxu0 %v2151_v60  ;;  %1926 = vmatprep.subr.bf16.mxu1 %v2152_v61  ;;  %v2188_v60 = vld [vmem:[%s2579_s1 + $0x1e8] sm:$0xff]  }
  0x41   : > { %2006 = vmatprep.subr.bf16.mxu0 %v2153_v3 }
  0x43   : > { %1927 = vmatpush3.bf16.msra.mxu1 %v2152_v61  ;;  %v2189_v61 = vld [vmem:[%s2579_s1 + $0xf0] sm:$0xff]  }
  0x44   : > { %2007 = vmatpush3.bf16.msra.mxu0 %v2153_v3  ;;  %1932 = vmatprep.subr.bf16.mxu1 %v2154_v7  ;;  %v1791_v3 = vcombine.low %v1268_v63, %v2378_v0 }
  0x45   : > { %2012 = vmatprep.subr.bf16.mxu0 %v2156_v8 }
  0x46   : > { %1929 = vmatmul.mubr.bf16.vlgmr.msra.gmra.mrb[0].mxu1 %v1613_v9  ;;  %v1289_v5 = vrot.slane %v1791_v3, 3  ;;  %v2197_v9 = vld [vmem:[%s2579_s1 + $0x218] sm:$0xff]  }
  0x47   : > { %1933 = vmatpush3.bf16.msra.mxu1 %v2154_v7  ;;  %2009 = vmatmul.mubr.bf16.vlgmr.msra.gmra.mrb[0].mxu0 %v1715_v12  ;;  %v2195_v7 = vld [vmem:[%s2579_s1 + $0x208] sm:$0xff]   ;;  %v2200_v12 = vld [vmem:[%s2579_s1 + $0x230] sm:$0xff]  }
  0x48   : > { %2013 = vmatpush3.bf16.msra.mxu0 %v2156_v8  ;;  %1934 = vmatprep.subr.bf16.mxu1 %v2159_v16  ;;  %v1291_v0 = vsel %vm627_vm4, %v1289_v5, %v1290_v6  ;;  %v2196_v8 = vld [vmem:[%s2579_s1 + $0x210] sm:$0xff]  }
  0x49   : > { %2014 = vmatprep.subr.bf16.mxu0 %v2160_v18  ;;  %1948 = vmatprep.mubr.bf16.mxu1 %v500_v19 }
  0x4a   : > { %2028 = vmatprep.mubr.bf16.mxu0 %v1026_v20 }
  0x4b   : > { %1935 = vmatpush3.bf16.msra.mxu1 %v2159_v16 }
  0x4c   : > { %2015 = vmatpush3.bf16.msra.mxu0 %v2160_v18  ;;  %1936 = vmatprep.subr.bf16.mxu1 %v2161_v22 }
  0x4d   : > { %2016 = vmatprep.subr.bf16.mxu0 %v2162_v23 }
  0x4f   : > { %1937 = vmatpush3.bf16.msra.mxu1 %v2161_v22 }
  0x50   : > { %2017 = vmatpush3.bf16.msra.mxu0 %v2162_v23  ;;  %1938 = vmatprep.subr.bf16.mxu1 %v2163_v27 }
  0x51   : > { %2018 = vmatprep.subr.bf16.mxu0 %v2164_v28 }
  0x53   : > { %1939 = vmatpush3.bf16.msra.mxu1 %v2163_v27 }
  0x54   : > { %2019 = vmatpush3.bf16.msra.mxu0 %v2164_v28  ;;  %1940 = vmatprep.subr.bf16.mxu1 %v2165_v14 }
  0x55   : > { %2020 = vmatprep.subr.bf16.mxu0 %v2166_v30 }
  0x57   : > { %1941 = vmatpush3.bf16.msra.mxu1 %v2165_v14 }
  0x58   : > { %2021 = vmatpush3.bf16.msra.mxu0 %v2166_v30  ;;  %1942 = vmatprep.subr.bf16.mxu1 %v2167_v31 }
  0x59   : > { %2022 = vmatprep.subr.bf16.mxu0 %v2168_v33 }
  0x5b   : > { %1943 = vmatpush3.bf16.msra.mxu1 %v2167_v31 }
  0x5c   : > { %2023 = vmatpush3.bf16.msra.mxu0 %v2168_v33  ;;  %1944 = vmatprep.subr.bf16.mxu1 %v2169_v35 }
  0x5d   : > { %2024 = vmatprep.subr.bf16.mxu0 %v2170_v36 }
  0x5f   : > { %1945 = vmatpush3.bf16.msra.mxu1 %v2169_v35 }
  0x60   : > { %2025 = vmatpush3.bf16.msra.mxu0 %v2170_v36  ;;  %1946 = vmatprep.subr.bf16.mxu1 %v2171_v41 }
  0x61   : > { %2026 = vmatprep.subr.bf16.mxu0 %v2172_v42 }
  0x63   : > { %1947 = vmatpush3.bf16.msra.mxu1 %v2171_v41 }
  0x64   : > { %2027 = vmatpush3.bf16.msra.mxu0 %v2172_v42  ;;  %1952 = vmatprep.subr.bf16.mxu1 %v2174_v47 }
  0x65   : > { %2032 = vmatprep.subr.bf16.mxu0 %v2178_v48 }
  0x66   : > { %1949 = vmatmul.mubr.bf16.vlgmr.msra.gmra.mrb[0].mxu1 %v499_v11  ;;  %v2199_v11 = vld [vmem:[%s2579_s1 + $0x228] sm:$0xff]  }
  0x67   : > { %1953 = vmatpush3.bf16.msra.mxu1 %v2174_v47  ;;  %2029 = vmatmul.mubr.bf16.vlgmr.msra.gmra.mrb[0].mxu0 %v2404_v15  ;;  %v1396_v15 = vlaneseq }
  0x68   : > { %2033 = vmatpush3.bf16.msra.mxu0 %v2178_v48  ;;  %1954 = vmatprep.subr.bf16.mxu1 %v2179_v51 }
  0x69   : > { %2034 = vmatprep.subr.bf16.mxu0 %v2180_v52  ;;  %1968 = vmatprep.mubr.bf16.mxu1 %v630_v21  ;;  %v1397_v16 = vshrl.u32 %v1396_v15, 7 }
  0x6a   : > { %2048 = vmatprep.mubr.bf16.mxu0 %v1166_v53 }
  0x6b   : > { %1955 = vmatpush3.bf16.msra.mxu1 %v2179_v51  ;;  %v1399_v22 = vadd.s32 16, %v1397_v16  ;;  %v1398_v24 = vadd.s32 8, %v1397_v16  ;;  %v2550_v25 = vmul.u32.u64.low 2863311531, %v1397_v16  ;;  %v2551_v26 = vmul.u32.u64.high 2863311531, %v1397_v16, %v2550_v25 }
  0x6c   : > { %2035 = vmatpush3.bf16.msra.mxu0 %v2180_v52  ;;  %1956 = vmatprep.subr.bf16.mxu1 %v2181_v54 }
  0x6d   : > { %2036 = vmatprep.subr.bf16.mxu0 %v2182_v55  ;;  %v2553_v27 = vmul.u32.u64.low 2863311531, %v1399_v22  ;;  %v2554_v28 = vmul.u32.u64.high 2863311531, %v1399_v22, %v2553_v27  ;;  %v1406_v14 = vshrl.u32 %v2551_v26, 2 }
  0x6f   : > { %1957 = vmatpush3.bf16.msra.mxu1 %v2181_v54  ;;  %v1428_v30 = vshrl.u32 %v2554_v28, 2  ;;  %v1407_v32 = vmul.u32 6, %v1406_v14 }
  0x70   : > { %2037 = vmatpush3.bf16.msra.mxu0 %v2182_v55  ;;  %1958 = vmatprep.subr.bf16.mxu1 %v2183_v17 }
  0x71   : > { %2038 = vmatprep.subr.bf16.mxu0 %v2184_v56  ;;  %v1429_v33 = vmul.u32 6, %v1428_v30  ;;  %v1408_v35 = vsub.s32 %v1397_v16, %v1407_v32 }
  0x73   : > { %1959 = vmatpush3.bf16.msra.mxu1 %v2183_v17  ;;  %v1430_v36 = vsub.s32 %v1399_v22, %v1429_v33  ;;  %vm1433_vm6 = vcmp.ne.s32.totalorder %v1408_v35, 0  ;;  %vm1436_vm7 = vcmp.lt.s32.totalorder %v1408_v35, 0  ;;  %v1442_v38 = vadd.s32 6, %v1408_v35 }
  0x74   : > { %2039 = vmatpush3.bf16.msra.mxu0 %v2184_v56  ;;  %1960 = vmatprep.subr.bf16.mxu1 %v2185_v57  ;;  %vm1439_vm12 = vmand %vm1436_vm7, %vm1433_vm6 }
  0x75   : > { %2040 = vmatprep.subr.bf16.mxu0 %v2186_v58  ;;  %vm1435_vm8 = vcmp.ne.s32.totalorder %v1430_v36, 0  ;;  %vm1438_vm9 = vcmp.lt.s32.totalorder %v1430_v36, 0  ;;  %v1444_v39 = vadd.s32 6, %v1430_v36  ;;  %v1445_v41 = vsel %vm1439_vm12, %v1442_v38, %v1408_v35 }
  0x76   : > { %vm1441_vm13 = vmand %vm1438_vm9, %vm1435_vm8  ;;  %vm1448_vm15 = vcmp.lt.s32.totalorder %v1445_v41, 4 }
  0x77   : > { %1961 = vmatpush3.bf16.msra.mxu1 %v2185_v57  ;;  %v1447_v43 = vsel %vm1441_vm13, %v1444_v39, %v1430_v36 }
  0x78   : > { %2041 = vmatpush3.bf16.msra.mxu0 %v2186_v58  ;;  %1962 = vmatprep.subr.bf16.mxu1 %v2187_v59  ;;  %vm1450_vm0 = vcmp.lt.s32.totalorder %v1447_v43, 4 }
  0x79   : > { %2042 = vmatprep.subr.bf16.mxu0 %v2188_v60 }
  0x7b   : > { %1963 = vmatpush3.bf16.msra.mxu1 %v2187_v59 }
  0x7c   : > { %2043 = vmatpush3.bf16.msra.mxu0 %v2188_v60  ;;  %1964 = vmatprep.subr.bf16.mxu1 %v2189_v61 }
  0x7d   : > { %2044 = vmatprep.subr.bf16.mxu0 %v2190_v62 }
  0x7f   : > { %1965 = vmatpush3.bf16.msra.mxu1 %v2189_v61 }
  0x80   : > { %2045 = vmatpush3.bf16.msra.mxu0 %v2190_v62  ;;  %1966 = vmatprep.subr.bf16.mxu1 %v2191_v1 }
  0x81   : > { %2046 = vmatprep.subr.bf16.mxu0 %v2192_v2 }
  0x83   : > { %1967 = vmatpush3.bf16.msra.mxu1 %v2191_v1 }
  0x84   : > { %2047 = vmatpush3.bf16.msra.mxu0 %v2192_v2 }
  0x85   : > { %2052 = vmatprep.subr.bf16.mxu0 %v2194_v4 }
  0x86   : > { %1969 = vmatmul.mubr.bf16.vlgmr.msra.gmra.mrb[0].mxu1 %v2430_v29  ;;  %v2556_v29 = vmul.u32.u64.low 2863311531, %v1398_v24  ;;  %v2557_v21 = vmul.u32.u64.high 2863311531, %v1398_v24, %v2556_v29 }
  0x87   : > { %2049 = vmatmul.mubr.bf16.vlgmr.msra.gmra.mrb[0].mxu0 %v2472_v50 }
  0x88   : > { %2053 = vmatpush3.bf16.msra.mxu0 %v2194_v4  ;;  %2068 = vmatprep.mubr.bf16.mxu0 %v1291_v0  ;;  %v1417_v31 = vshrl.u32 %v2557_v21, 2 }
  0x89   : > { %2054 = vmatprep.subr.bf16.mxu0 %v2195_v7 }
  0x8a   : > { %v1418_v34 = vmul.u32 6, %v1417_v31 }
  0x8c   : > { %2055 = vmatpush3.bf16.msra.mxu0 %v2195_v7  ;;  %v1419_v37 = vsub.s32 %v1398_v24, %v1418_v34 }
  0x8d   : > { %2056 = vmatprep.subr.bf16.mxu0 %v2196_v8 }
  0x8e   : > { %vm1434_vm10 = vcmp.ne.s32.totalorder %v1419_v37, 0  ;;  %vm1437_vm11 = vcmp.lt.s32.totalorder %v1419_v37, 0  ;;  %v1443_v40 = vadd.s32 6, %v1419_v37 }
  0x8f   : > { %vm1440_vm14 = vmand %vm1437_vm11, %vm1434_vm10 }
  0x90   : > { %2057 = vmatpush3.bf16.msra.mxu0 %v2196_v8  ;;  %v1446_v44 = vsel %vm1440_vm14, %v1443_v40, %v1419_v37 }
  0x91   : > { %2058 = vmatprep.subr.bf16.mxu0 %v2197_v9  ;;  %vm1449_vm1 = vcmp.lt.s32.totalorder %v1446_v44, 4 }
  0x94   : > { %2059 = vmatpush3.bf16.msra.mxu0 %v2197_v9 }
  0x95   : > { %2060 = vmatprep.subr.bf16.mxu0 %v2198_v10 }
  0x98   : > { %2061 = vmatpush3.bf16.msra.mxu0 %v2198_v10 }
  0x99   : > { %2062 = vmatprep.subr.bf16.mxu0 %v2199_v11 }
  0x9c   : > { %2063 = vmatpush3.bf16.msra.mxu0 %v2199_v11 }
  0x9d   : > { %2064 = vmatprep.subr.bf16.mxu0 %v2200_v12 }
  0xa0   : > { %2065 = vmatpush3.bf16.msra.mxu0 %v2200_v12 }
  0xa1   : > { %2066 = vmatprep.subr.bf16.mxu0 %v2201_v13 }
  0xa4   : > { %2067 = vmatpush3.bf16.msra.mxu0 %v2201_v13 }
  0xa7   : > { %2069 = vmatmul.mubr.bf16.vlgmr.msra.gmra.mrb[0].mxu0 %v1290_v6 }
 0x159   : > { %v1970_v18 = vpop.f32.mrb[0].mxu1 }
 0x15a   : > { %v715_v19 = vpop.f32.mrb[1].mxu1 }
 0x15b   : > { %v1971_v20 = vpop.f32.mrb[2].mxu1 }
 0x15c   : > { %v718_v23 = vpop.f32.mrb[3].mxu1 }
 0x17a   : > { %v2070_v42 = vpop.f32.mrb[0].mxu0 }
 0x17b   : > { %v2072_v45 = vadd.f32 %v2070_v42, %v1970_v18  ;;  %v1376_v46 = vpop.f32.mrb[1].mxu0 }
 0x17c   : > { %v2073_v47 = vadd.f32 %v1376_v46, %v715_v19  ;;  %v2071_v48 = vpop.f32.mrb[2].mxu0 }
 0x17d   : > { %1395 = vst [vmem:[%s208_s6 + $0x10] sm:$0xff] %v2072_v45  ;;  %v1379_v49 = vpop.f32.mrb[3].mxu0  ;;  %v1453_v52 = vsel %vm1450_vm0, %v2072_v45, 0.0 }
 0x17e   : > { %1393 = vst [vmem:[%s208_s6] sm:$0xff] %v2073_v47  ;;  %v1451_v50 = vsel %vm1448_vm15, %v2073_v47, 0.0  ;;  %v2074_v51 = vadd.f32 %v1379_v49, %v718_v23  ;;  %v1465_v56 = vmul.f32 %v1453_v52, %v1453_v52 }
 0x17f   : > { %v1463_v54 = vmul.f32 %v1451_v50, %v1451_v50 }
 0x180   : > { %1394 = vst [vmem:[%s208_s6 + $0x8] sm:$0xff] %v2074_v51  ;;  %v1452_v53 = vsel %vm1449_vm1, %v2074_v51, 0.0 }
 0x181   : > { %v1454_v55 = vadd.f32 %v1452_v53, %v1451_v50  ;;  %v1464_v17 = vmul.f32 %v1452_v53, %v1452_v53 }
 0x183   : > { %v1455_v57 = vadd.f32 %v1454_v55, %v1453_v52  ;;  %v1466_v58 = vadd.f32 %v1464_v17, %v1463_v54 }
 0x185   : > { %v1456_v59 = vrot.slane %v1455_v57, 4  ;;  %v1467_v60 = vadd.f32 %v1466_v58, %v1465_v56 }
 0x187   : > { %v1457_v61 = vadd.f32 %v1456_v59, %v1455_v57  ;;  %v1468_v62 = vrot.slane %v1467_v60, 4 }
 0x189   : > { %v1458_v63 = vrot.slane %v1457_v61, 2  ;;  %v1469_v1 = vadd.f32 %v1468_v62, %v1467_v60 }
 0x18b   : > { %v1459_v2 = vadd.f32 %v1458_v63, %v1457_v61  ;;  %v1470_v3 = vrot.slane %v1469_v1, 2 }
 0x18d   : > { %v1460_v4 = vrot.slane %v1459_v2, 1  ;;  %v1471_v5 = vadd.f32 %v1470_v3, %v1469_v1 }
 0x18f   : > { %v1461_v6 = vadd.f32 %v1460_v4, %v1459_v2  ;;  %v1472_v7 = vrot.slane %v1471_v5, 1 }
 0x191   : > { %1462 = vst [vmem:[%s211_s9] sm:$0x1] %v1461_v6  ;;  %v1473_v0 = vadd.f32 %v1472_v7, %v1471_v5 }
 0x193   : > { %1474 = vst [vmem:[%s214_s12] sm:$0x1] %v1473_v0 }
 0x194 PF: > { %s15_s15 = sadd.s32 1, %s2209_s15  }
 0x195   : > { %p12_p4 = scmp.ge.s32.totalorder %s15_s15, 4  }
 0x197   :  { %14 = sbr.rel (!%p12_p4) target bundleno = 1 (0x1), region = 90 }

// kernel: _lambda_.17
= control target key start
LH: loop header
LB: loop body
LE: loop exit
PB: predicated region body
PF: predicated region fallthrough
CT: control target
= control target key end

     0   :  { %s711_s18 = smov 0   ;;  %s786_s0 = inlined_call_operand.vmem [shape: bf16[2,16,128], index: 0, kind: input, shape index: {}]   ;;  %s787_s1 = inlined_call_operand.vmem [shape: bf16[2,16,128], index: 1, kind: input, shape index: {}]   ;;  %s788_s2 = inlined_call_operand.vmem [shape: bf16[1,1,128,128], index: 2, kind: input, shape index: {}]   ;;  %s789_s3 = inlined_call_operand.vmem [shape: bf16[1,1,128,128], index: 3, kind: input, shape index: {}]   ;;  %s790_s4 = inlined_call_operand.vmem [shape: f32[1,1,128], index: 4, kind: input, shape index: {}]   ;;  %s791_s5 = inlined_call_operand.vmem [shape: f32[2,16,128], index: 5, kind: output, shape index: {}]  }
   0x1 LB: > { %s550_s19 = sadd.s32 4294967295, %s677_s18   ;;  %p554_p0 = scmp.ge.s32.totalorder %s677_s18, 1  ;;  %s677_s18 = sphi %s711_s18, %s15_s18  }
   0x2   : > { %p197_p1 = scmp.lt.s32.totalorder %s677_s18, 3 }
   0x4   : > { %p198_p2 = pnand %p554_p0, %p197_p1 }
   0x5   : > { %v653_v0 = vld [vmem:[%s789_s3] sm:$0xff] (!%p198_p2)   ;;  %v679_v1 = vmov (!%p198_p2), 0.0   ;;  %v655_v3 = vld [vmem:[%s789_s3 + $0x8] sm:$0xff] (!%p198_p2)   ;;  %vm680_vm0 = vmmov (!%p198_p2), 0   ;;  %p230_p3 = scmp.lt.s32.totalorder (!%p198_p2), %s550_s19, 1  ;;  %v657_v5 = vld [vmem:[%s789_s3 + $0x10] sm:$0xff] (!%p198_p2)  }
   0x6   : > { %201 = sbr.rel (%p198_p2) target bundleno = 258 (0x102), region = 40  ;;  %603 = vmatprep.subr.bf16.mxu0 (!%p198_p2), %v679_v1  ;;  %623 = vmatprep.subr.bf16.mxu1 (!%p198_p2), %v679_v1  ;;  %v654_v2 = vld [vmem:[%s788_s2] sm:$0xff] (!%p198_p2)   ;;  %v656_v4 = vld [vmem:[%s788_s2 + $0x8] sm:$0xff] (!%p198_p2)   ;;  %v658_v6 = vld [vmem:[%s788_s2 + $0x10] sm:$0xff] (!%p198_p2)  }
   0x7   : > { %604 = vmatpush3.bf16.msra.mxu0 (!%p198_p2), %v653_v0  ;;  %619 = vmatprep.mubr.msk.bf16.mxu0 (!%p198_p2), %vm680_vm0, %v679_v1  ;;  %v659_v7 = vld [vmem:[%s789_s3 + $0x18] sm:$0xff] (!%p198_p2)   ;;  %v661_v9 = vld [vmem:[%s789_s3 + $0x20] sm:$0xff] (!%p198_p2)   ;;  %v663_v11 = vld [vmem:[%s789_s3 + $0x28] sm:$0xff] (!%p198_p2)  }
   0x8   : > { %624 = vmatpush3.bf16.msra.mxu1 (!%p198_p2), %v654_v2  ;;  %605 = vmatprep.subr.bf16.mxu0 (!%p198_p2), %v679_v1  ;;  %v660_v8 = vld [vmem:[%s788_s2 + $0x18] sm:$0xff] (!%p198_p2)   ;;  %v662_v10 = vld [vmem:[%s788_s2 + $0x20] sm:$0xff] (!%p198_p2)   ;;  %v664_v12 = vld [vmem:[%s788_s2 + $0x28] sm:$0xff] (!%p198_p2)  }
   0x9   : > { %625 = vmatprep.subr.bf16.mxu1 (!%p198_p2), %v679_v1  ;;  %639 = vmatprep.mubr.msk.bf16.mxu1 (!%p198_p2), %vm680_vm0, %v679_v1  ;;  %v665_v13 = vld [vmem:[%s789_s3 + $0x30] sm:$0xff] (!%p198_p2)   ;;  %v667_v15 = vld [vmem:[%s789_s3 + $0x38] sm:$0xff] (!%p198_p2)   ;;  %v579_v21 = vld [vmem:[%s790_s4] ss:$0 sm:$0xff] (!%p198_p2) }
   0xa   : > { %v666_v14 = vld [vmem:[%s788_s2 + $0x30] sm:$0xff] (!%p198_p2)   ;;  %v668_v16 = vld [vmem:[%s788_s2 + $0x38] sm:$0xff] (!%p198_p2)  }
   0xb   : > { %606 = vmatpush3.bf16.msra.mxu0 (!%p198_p2), %v655_v3 }
   0xc   : > { %626 = vmatpush3.bf16.msra.mxu1 (!%p198_p2), %v656_v4  ;;  %607 = vmatprep.subr.bf16.mxu0 (!%p198_p2), %v679_v1 }
   0xd   : > { %627 = vmatprep.subr.bf16.mxu1 %v679_v1  ;;  %s793_s19 = smov (!%p230_p3, %s550_s19), 1 }
   0xe   : > { %s582_s11 = sshll.u32 %s793_s19, 3 }
   0xf   : > { %608 = vmatpush3.bf16.msra.mxu0 %v657_v5  ;;  %s239_s20 = scalar_lea.vmem %s787_s1, %s582_s11  ;;  %s234_s23 = scalar_lea.vmem %s786_s0, %s582_s11 }
  0x10   : > { %628 = vmatpush3.bf16.msra.mxu1 %v658_v6  ;;  %609 = vmatprep.subr.bf16.mxu0 %v679_v1  ;;  %v669_v17 = vld [vmem:[%s239_s20] sm:$0xff]   ;;  %s584_s11 = sshll.u32 %s793_s19, 4 }
  0x11   : > { %629 = vmatprep.subr.bf16.mxu1 %v679_v1  ;;  %v670_v18 = vld [vmem:[%s234_s23] sm:$0xff]   ;;  %s244_s16 = scalar_lea.vmem %s791_s5, %s584_s11 }
  0x13   : > { %610 = vmatpush3.bf16.msra.mxu0 %v659_v7 }
  0x14   : > { %630 = vmatpush3.bf16.msra.mxu1 %v660_v8  ;;  %611 = vmatprep.subr.bf16.mxu0 %v679_v1 }
  0x15   : > { %631 = vmatprep.subr.bf16.mxu1 %v679_v1 }
  0x17   : > { %612 = vmatpush3.bf16.msra.mxu0 %v661_v9 }
  0x18   : > { %632 = vmatpush3.bf16.msra.mxu1 %v662_v10  ;;  %613 = vmatprep.subr.bf16.mxu0 %v679_v1 }
  0x19   : > { %633 = vmatprep.subr.bf16.mxu1 %v679_v1 }
  0x1b   : > { %614 = vmatpush3.bf16.msra.mxu0 %v663_v11 }
  0x1c   : > { %634 = vmatpush3.bf16.msra.mxu1 %v664_v12  ;;  %615 = vmatprep.subr.bf16.mxu0 %v679_v1 }
  0x1d   : > { %635 = vmatprep.subr.bf16.mxu1 %v679_v1 }
  0x1f   : > { %616 = vmatpush3.bf16.msra.mxu0 %v665_v13 }
  0x20   : > { %636 = vmatpush3.bf16.msra.mxu1 %v666_v14  ;;  %617 = vmatprep.subr.bf16.mxu0 %v679_v1 }
  0x21   : > { %637 = vmatprep.subr.bf16.mxu1 %v679_v1 }
  0x23   : > { %618 = vmatpush3.bf16.msra.mxu0 %v667_v15 }
  0x24   : > { %638 = vmatpush3.bf16.msra.mxu1 %v668_v16 }
  0x26   : > { %620 = vmatmul.mubr.bf16.vlgmr.msra.gmra.mrb[0].mxu0 %v669_v17 }
  0x27   : > { %640 = vmatmul.mubr.bf16.vlgmr.msra.gmra.mrb[0].mxu1 %v670_v18 }
  0xf9   : > { %v370_v19 = vpop.f32.mrb[0].mxu0 }
  0xfa   : > { %v465_v20 = vpop.f32.mrb[0].mxu1  ;;  %v621_v22 = vpop.f32.mrb[1].mxu0 }
  0xfb   : > { %v466_v23 = vadd.f32 %v465_v20, %v370_v19  ;;  %v641_v24 = vpop.f32.mrb[1].mxu1  ;;  %v373_v25 = vpop.f32.mrb[2].mxu0 }
  0xfc   : > { %v468_v26 = vpop.f32.mrb[2].mxu1  ;;  %v622_v27 = vpop.f32.mrb[3].mxu0 }
  0xfd   : > { %v479_v28 = vadd.f32 %v579_v21, %v466_v23  ;;  %v469_v29 = vadd.f32 %v468_v26, %v373_v25  ;;  %v642_v30 = vpop.f32.mrb[3].mxu1 }
  0xff   : > { %481 = vst [vmem:[%s244_s16] sm:$0xff] %v479_v28  ;;  %v480_v31 = vadd.f32 %v579_v21, %v469_v29 }
 0x101   : > { %482 = vst [vmem:[%s244_s16 + $0x8] sm:$0xff] %v480_v31 }
 0x102 PF: > { %s15_s18 = sadd.s32 1, %s677_s18  }
 0x103   : > { %p12_p4 = scmp.ge.s32.totalorder %s15_s18, 4  }
 0x105   :  { %14 = sbr.rel (!%p12_p4) target bundleno = 1 (0x1), region = 73 }

</bundles_post_ra>
